<compile_context>
chip_gen: v5e
topology: v5e:2x2
jax: 0.10.0
libtpu: 0.0.40
codegen_flags: <defaults>
</compile_context>

<pallas_src>
import functools

import jax
import jax.numpy as jnp
import numpy as np
from jax.experimental import pallas as pl
from jax.experimental.pallas import tpu as pltpu


# ----------------------------- Fused Pallas kernel ------------------------------

def make_fused_lstm_fc_kernel(T, B, H, num_layers):
    """Kernel computing num_layers LSTM layers over a (T, B, D) block, then
    relu(fc1(h_T of last layer)).

    Ref layout (positional):
      x_ref                      : (T, B, D)   time-major batch block, bf16
      wih0, whh0, b0             : (D, 4H) bf16, (H, 4H) bf16, (1, 4H) f32   layer 0
      [wstack_l, b_l] * (L-1)    : (2H, 4H) bf16, (1, 4H) f32                layers >= 1
      fcw, fcb                   : (H, F) bf16, (1, F) f32
      out_ref                    : (B, F) f32
      seq_scr                    : (T*B, H) bf16 VMEM  - previous layer's output sequence
      gx_scr                     : (T*B, 4H) f32 VMEM  - layer-0 x @ W_ih + b (all steps)

    Gate columns are pre-permuted to (i, f, o, g).
    """

    def kernel(*refs):
        x_ref = refs[0]
        wih0_ref, whh0_ref, b0_ref = refs[1], refs[2], refs[3]
        stacked = refs[4:4 + 2 * (num_layers - 1)]
        fcw_ref = refs[4 + 2 * (num_layers - 1)]
        fcb_ref = refs[5 + 2 * (num_layers - 1)]
        out_ref = refs[6 + 2 * (num_layers - 1)]
        seq_scr = refs[7 + 2 * (num_layers - 1)]
        gx_scr = refs[8 + 2 * (num_layers - 1)]

        def gate_math(gates, c):
            # gates columns are (i, f, o, g); sigmoid(x) == 0.5*tanh(0.5*x) + 0.5
            sig = 0.5 * jnp.tanh(0.5 * gates[:, 0:3 * H]) + 0.5
            i_g = sig[:, 0 * H:1 * H]
            f_g = sig[:, 1 * H:2 * H]
            o_g = sig[:, 2 * H:3 * H]
            g_g = jnp.tanh(gates[:, 3 * H:4 * H])
            c_new = f_g * c + i_g * g_g
            h_new = o_g * jnp.tanh(c_new)
            return h_new, c_new

        # ---- Layer 0: one big MXU matmul for the input contribution of ALL steps.
        x2d = x_ref[...].reshape(T * B, x_ref.shape[-1])          # bf16, layout no-op
        gx_scr[...] = (
            jnp.dot(x2d, wih0_ref[...], preferred_element_type=jnp.float32)
            + b0_ref[...]
        )

        whh0 = whh0_ref[...]
        h = jnp.zeros((B, H), jnp.float32)
        c = jnp.zeros((B, H), jnp.float32)
        # T is small + static -> full unroll (static slices, no loop overhead).
        for t in range(T):
            gates = gx_scr[pl.ds(t * B, B), :] + jnp.dot(
                h.astype(whh0.dtype), whh0, preferred_element_type=jnp.float32
            )
            h, c = gate_math(gates, c)
            if num_layers > 1:
                seq_scr[pl.ds(t * B, B), :] = h.astype(seq_scr.dtype)

        # ---- Layers 1..L-1: fused K=2H per-step matmul (x_t ++ h_{t-1}) @ [Wih; Whh].
        for l in range(1, num_layers):
            wstack = stacked[2 * (l - 1)][...]
            b = stacked[2 * (l - 1) + 1][...]
            h = jnp.zeros((B, H), jnp.float32)
            c = jnp.zeros((B, H), jnp.float32)
            for t in range(T):
                xt = seq_scr[pl.ds(t * B, B), :]                   # bf16 (B, H)
                lhs = jnp.concatenate([xt, h.astype(xt.dtype)], axis=1)   # (B, 2H)
                gates = jnp.dot(lhs, wstack, preferred_element_type=jnp.float32) + b
                h, c = gate_math(gates, c)
                if l < num_layers - 1:
                    # Only intermediate layers need the full sequence for the next layer.
                    seq_scr[pl.ds(t * B, B), :] = h.astype(seq_scr.dtype)

        # ---- fc1 + ReLU on h_T of the last layer; dense lane-aligned (B, F) store.
        fcw = fcw_ref[...]
        out_ref[...] = jnp.maximum(
            jnp.dot(h.astype(fcw.dtype), fcw, preferred_element_type=jnp.float32)
            + fcb_ref[...],
            0.0,
        )

    return kernel


# --------------------------------- Wrapper ---------------------------------------

def _round_up(a, m):
    return ((a + m - 1) // m) * m


@functools.partial(jax.jit, static_argnames=("num_layers",))
def lstm_model_forward(x_rnn, kparams, num_layers):
    """Equivalent of LSTM.forward with load_pretrain=False.

    x_rnn: (B, T, input_size) batch-first (same as PyTorch).
    kparams: output of prepare_kernel_params (bf16 weights, permuted gates).
    Returns: (B, h_FC_dim) = relu(fc1(RNN_out[:, -1, :])).
    """
    B, T, D = x_rnn.shape
    H = kparams["whh0"].shape[0]
    F_out = kparams["fc1_w"].shape[1]

    # Pad batch to a sublane multiple; split into >= 2 blocks when possible so the
    # "parallel" grid axis can shard batch across v7x's two TensorCores (a 1-point
    # grid on small batches / single-TC chips is harmless).
    B8 = _round_up(B, 8)
    if B8 % 16 == 0:
        B_blk = min(B8 // 2, 128)
    else:
        B_blk = min(B8, 128)
    B_pad = _round_up(B8, B_blk)

    x = x_rnn.astype(jnp.float32)
    if B_pad != B:
        x = jnp.pad(x, ((0, B_pad - B), (0, 0), (0, 0)))   # zero rows dropped at the end
    # Time-major (T, B_pad, D); bf16 because it is a matmul-only operand.
    x_tm = jnp.transpose(x, (1, 0, 2)).astype(jnp.bfloat16)

    weight_args = [kparams["wih0"], kparams["whh0"], kparams["b0"]]
    for l in range(1, num_layers):
        weight_args.append(kparams["wstack"][l - 1])
        weight_args.append(kparams["bstack"][l - 1])
    weight_args.append(kparams["fc1_w"])
    weight_args.append(kparams["fc1_b"])

    in_specs = [pl.BlockSpec((T, B_blk, D), lambda i: (0, i, 0))]
    in_specs += [pl.BlockSpec(w.shape, lambda i: (0, 0)) for w in weight_args]

    out = pl.pallas_call(
        make_fused_lstm_fc_kernel(T, B_blk, H, num_layers),
        out_shape=jax.ShapeDtypeStruct((B_pad, F_out), jnp.float32),
        grid_spec=pltpu.PrefetchScalarGridSpec(
            num_scalar_prefetch=0,
            grid=(B_pad // B_blk,),
            in_specs=in_specs,
            out_specs=pl.BlockSpec((B_blk, F_out), lambda i: (i, 0)),
            scratch_shapes=[
                pltpu.VMEM((T * B_blk, H), jnp.bfloat16),     # prev-layer output sequence
                pltpu.VMEM((T * B_blk, 4 * H), jnp.float32),  # layer-0 x @ W_ih + b
            ],
        ),
        compiler_params=pltpu.CompilerParams(
            dimension_semantics=("parallel",)),
    )(x_tm, *weight_args)

    return out[:B]


# ------------------------- Parameter init & kernel prep -------------------------

def init_params(key, input_size, h_rnn, num_layers, h_fc):
    """Raw PyTorch-layout params: w_ih (4H, in), w_hh (4H, H), b_ih, b_hh (4H,)
    with PyTorch gate row order (i, f, g, o); fc1_w (F, H), fc1_b (F,)."""
    params = {"lstm": []}
    k = 1.0 / np.sqrt(h_rnn)
    keys = jax.random.split(key, num_layers * 4 + 2)
    ki = 0
    for l in range(num_layers):
        in_dim = input_size if l == 0 else h_rnn
        w_ih = jax.random.uniform(keys[ki], (4 * h_rnn, in_dim), jnp.float32, -k, k); ki += 1
        w_hh = jax.random.uniform(keys[ki], (4 * h_rnn, h_rnn), jnp.float32, -k, k); ki += 1
        b_ih = jax.random.uniform(keys[ki], (4 * h_rnn,), jnp.float32, -k, k); ki += 1
        b_hh = jax.random.uniform(keys[ki], (4 * h_rnn,), jnp.float32, -k, k); ki += 1
        params["lstm"].append((w_ih, w_hh, b_ih, b_hh))
    fc1_w = jax.random.uniform(keys[ki], (h_fc, h_rnn), jnp.float32, -k, k); ki += 1
    fc1_b = jax.random.uniform(keys[ki], (h_fc,), jnp.float32, -k, k); ki += 1
    params["fc1_w"] = fc1_w
    params["fc1_b"] = fc1_b
    return params


def _permute_gate_rows(w, H):
    """PyTorch gate order (i, f, g, o) -> kernel order (i, f, o, g) along axis 0."""
    return jnp.concatenate([w[: 2 * H], w[3 * H: 4 * H], w[2 * H: 3 * H]], axis=0)


def prepare_kernel_params(raw, num_layers):
    """One-time weight prep: transpose, permute gates, fuse biases, cast to bf16,
    stack [W_ih; W_hh] for layers >= 1."""
    H = raw["lstm"][0][1].shape[1]
    kp = {}

    w_ih, w_hh, b_ih, b_hh = raw["lstm"][0]
    kp["wih0"] = _permute_gate_rows(w_ih, H).T.astype(jnp.bfloat16)          # (D, 4H)
    kp["whh0"] = _permute_gate_rows(w_hh, H).T.astype(jnp.bfloat16)          # (H, 4H)
    kp["b0"] = _permute_gate_rows(b_ih + b_hh, H)[None, :].astype(jnp.float32)

    kp["wstack"], kp["bstack"] = [], []
    for l in range(1, num_layers):
        w_ih, w_hh, b_ih, b_hh = raw["lstm"][l]
        ws = jnp.concatenate(
            [_permute_gate_rows(w_ih, H).T, _permute_gate_rows(w_hh, H).T], axis=0
        ).astype(jnp.bfloat16)                                               # (2H, 4H)
        kp["wstack"].append(ws)
        kp["bstack"].append(_permute_gate_rows(b_ih + b_hh, H)[None, :].astype(jnp.float32))

    kp["fc1_w"] = raw["fc1_w"].T.astype(jnp.bfloat16)                        # (H, F)
    kp["fc1_b"] = raw["fc1_b"][None, :].astype(jnp.float32)
    return kp


# ------------------------------ Reference -----------------------------------

def reference_forward(x_rnn, raw, num_layers):
    """Pure-JAX f32 reference (lax.scan), PyTorch gate order, for validation."""
    x_tm = jnp.transpose(x_rnn, (1, 0, 2)).astype(jnp.float32)

    def layer(x_tm, w_ih, w_hh, b_ih, b_hh):
        B = x_tm.shape[1]
        H = w_hh.shape[1]
        wih_t, whh_t = w_ih.T, w_hh.T
        b2 = (b_ih + b_hh)[None, :]

        def step(carry, xt):
            h, c = carry
            g = xt @ wih_t + h @ whh_t + b2
            i = jax.nn.sigmoid(g[:, :H])
            f = jax.nn.sigmoid(g[:, H:2 * H])
            gg = jnp.tanh(g[:, 2 * H:3 * H])
            o = jax.nn.sigmoid(g[:, 3 * H:])
            c = f * c + i * gg
            h = o * jnp.tanh(c)
            return (h, c), h

        init = (jnp.zeros((B, H), jnp.float32), jnp.zeros((B, H), jnp.float32))
        _, ys = jax.lax.scan(step, init, x_tm)
        return ys

    h_seq = x_tm
    for l in range(num_layers):
        h_seq = layer(h_seq, *raw["lstm"][l])
    h_last = h_seq[-1]
    return jnp.maximum(h_last @ raw["fc1_w"].T + raw["fc1_b"][None, :], 0.0)


# --------------------------------- Main --------------------------------------

if __name__ == "__main__":
    # Small TPU-friendly shapes consistent with the module forward:
    # x_RNN (batch, time, input_size); H = 128 keeps every gate slice lane-aligned,
    # batch = 16 -> two sublane-aligned batch blocks (exercises the parallel grid).
    batch, time_steps, input_size = 16, 8, 128
    h_rnn_layers, h_rnn, h_fc = 3, 128, 128

    key = jax.random.PRNGKey(0)
    k_x, k_p = jax.random.split(key)
    x_rnn = jax.random.normal(k_x, (batch, time_steps, input_size), jnp.float32)

    raw_params = init_params(k_p, input_size, h_rnn, h_rnn_layers, h_fc)
    kparams = prepare_kernel_params(raw_params, h_rnn_layers)

    out = lstm_model_forward(x_rnn, kparams, h_rnn_layers)
    out = jax.block_until_ready(out)
    assert out.shape == (batch, h_fc), out.shape

    # bf16 MXU operands vs. f32 reference -> loosened tolerance (per review note).
    ref = reference_forward(x_rnn, raw_params, h_rnn_layers)
    np.testing.assert_allclose(np.asarray(out), np.asarray(ref), rtol=5e-2, atol=5e-2)

    # TODO(synk): dropout + fc2 branch only runs when load_pretrain=True; default path omits it.
    print("KERNEL_OK")
</pallas_src>

<mosaic_0001>
module attributes {stable_mosaic.version = 11 : i64} {
  func.func @kernel(%arg0: i32, %arg1: memref<8x8x128xbf16, #tpu.memory_space<vmem>>, %arg2: memref<128x512xbf16, #tpu.memory_space<vmem>>, %arg3: memref<128x512xbf16, #tpu.memory_space<vmem>>, %arg4: memref<1x512xf32, #tpu.memory_space<vmem>>, %arg5: memref<256x512xbf16, #tpu.memory_space<vmem>>, %arg6: memref<1x512xf32, #tpu.memory_space<vmem>>, %arg7: memref<256x512xbf16, #tpu.memory_space<vmem>>, %arg8: memref<1x512xf32, #tpu.memory_space<vmem>>, %arg9: memref<128x128xbf16, #tpu.memory_space<vmem>>, %arg10: memref<1x128xf32, #tpu.memory_space<vmem>>, %arg11: memref<8x128xf32, #tpu.memory_space<vmem>>, %arg12: memref<64x128xbf16, #tpu.memory_space<vmem>>, %arg13: memref<64x512xf32, #tpu.memory_space<vmem>>) attributes {dimension_semantics = [#tpu.dimension_semantics<parallel>], iteration_bounds = array<i64: 2>, scalar_prefetch = 0 : i64, scratch_operands = 2 : i64, tpu.core_type = #tpu.core_type<tc>, window_params = [{transform_indices = @transform_0, window_bounds = array<i64: 8, 8, 128>}, {pipeline_mode = #tpu.pipeline_mode<synchronous>, transform_indices = @transform_1, window_bounds = array<i64: 128, 512>}, {pipeline_mode = #tpu.pipeline_mode<synchronous>, transform_indices = @transform_2, window_bounds = array<i64: 128, 512>}, {pipeline_mode = #tpu.pipeline_mode<synchronous>, transform_indices = @transform_3, window_bounds = array<i64: 1, 512>}, {pipeline_mode = #tpu.pipeline_mode<synchronous>, transform_indices = @transform_4, window_bounds = array<i64: 256, 512>}, {pipeline_mode = #tpu.pipeline_mode<synchronous>, transform_indices = @transform_5, window_bounds = array<i64: 1, 512>}, {pipeline_mode = #tpu.pipeline_mode<synchronous>, transform_indices = @transform_6, window_bounds = array<i64: 256, 512>}, {pipeline_mode = #tpu.pipeline_mode<synchronous>, transform_indices = @transform_7, window_bounds = array<i64: 1, 512>}, {pipeline_mode = #tpu.pipeline_mode<synchronous>, transform_indices = @transform_8, window_bounds = array<i64: 128, 128>}, {pipeline_mode = #tpu.pipeline_mode<synchronous>, transform_indices = @transform_9, window_bounds = array<i64: 1, 128>}, {transform_indices = @transform_10, window_bounds = array<i64: 8, 128>}]} {
    %c0 = arith.constant 0 : index
    %c0_0 = arith.constant 0 : index
    %c0_1 = arith.constant 0 : index
    %0 = vector.load %arg1[%c0, %c0_0, %c0_1] : memref<8x8x128xbf16, #tpu.memory_space<vmem>>, vector<8x8x128xbf16>
    %1 = vector.shape_cast %0 : vector<8x8x128xbf16> to vector<64x128xbf16>
    %c0_2 = arith.constant 0 : index
    %c0_3 = arith.constant 0 : index
    %2 = vector.load %arg2[%c0_2, %c0_3] : memref<128x512xbf16, #tpu.memory_space<vmem>>, vector<128x512xbf16>
    %cst = arith.constant dense<0.000000e+00> : vector<64x512xf32>
    %3 = tpu.matmul %1, %2, %cst {dimension_numbers = #tpu.dot_dimension_numbers<[1], [0], [0], [1], [0, 0, 1, 1], [], []>} : vector<64x128xbf16>, vector<128x512xbf16>, vector<64x512xf32> -> vector<64x512xf32>
    %c0_4 = arith.constant 0 : index
    %c0_5 = arith.constant 0 : index
    %4 = vector.load %arg4[%c0_4, %c0_5] : memref<1x512xf32, #tpu.memory_space<vmem>>, vector<1x512xf32>
    %5 = vector.broadcast %4 : vector<1x512xf32> to vector<64x512xf32>
    %6 = arith.addf %3, %5 : vector<64x512xf32>
    %c0_6 = arith.constant 0 : index
    %c0_7 = arith.constant 0 : index
    %7 = vector.load %arg13[%c0_6, %c0_7] : memref<64x512xf32, #tpu.memory_space<vmem>>, vector<64x512xf32>
    tpu.vector_store %arg13[%c0_6, %c0_7], %6 {strides = array<i32>} : memref<64x512xf32, #tpu.memory_space<vmem>>, vector<64x512xf32>,
    %c0_8 = arith.constant 0 : index
    %c0_9 = arith.constant 0 : index
    %8 = vector.load %arg3[%c0_8, %c0_9] : memref<128x512xbf16, #tpu.memory_space<vmem>>, vector<128x512xbf16>
    %cst_10 = arith.constant 0.000000e+00 : f32
    %9 = vector.broadcast %cst_10 : f32 to vector<8x128xf32>
    %cst_11 = arith.constant 0.000000e+00 : f32
    %10 = vector.broadcast %cst_11 : f32 to vector<8x128xf32>
    %c0_12 = arith.constant 0 : index
    %c0_13 = arith.constant 0 : index
    %11 = vector.load %arg13[%c0_12, %c0_13] : memref<64x512xf32, #tpu.memory_space<vmem>>, vector<8x512xf32>
    %12 = arith.truncf %9 : vector<8x128xf32> to vector<8x128xbf16>
    %cst_14 = arith.constant dense<0.000000e+00> : vector<8x512xf32>
    %13 = tpu.matmul %12, %8, %cst_14 {dimension_numbers = #tpu.dot_dimension_numbers<[1], [0], [0], [1], [0, 0, 1, 1], [], []>} : vector<8x128xbf16>, vector<128x512xbf16>, vector<8x512xf32> -> vector<8x512xf32>
    %14 = arith.addf %11, %13 : vector<8x512xf32>
    %15 = vector.extract_strided_slice %14 {offsets = [0, 0], sizes = [8, 384], strides = [1, 1]} : vector<8x512xf32> to vector<8x384xf32>
    %cst_15 = arith.constant 5.000000e-01 : f32
    %16 = vector.broadcast %cst_15 : f32 to vector<8x384xf32>
    %17 = arith.mulf %16, %15 : vector<8x384xf32>
    %18 = math.tanh %17 : vector<8x384xf32>
    %cst_16 = arith.constant 5.000000e-01 : f32
    %19 = vector.broadcast %cst_16 : f32 to vector<8x384xf32>
    %20 = arith.mulf %19, %18 : vector<8x384xf32>
    %cst_17 = arith.constant 5.000000e-01 : f32
    %21 = vector.broadcast %cst_17 : f32 to vector<8x384xf32>
    %22 = arith.addf %20, %21 : vector<8x384xf32>
    %23 = vector.extract_strided_slice %22 {offsets = [0, 0], sizes = [8, 128], strides = [1, 1]} : vector<8x384xf32> to vector<8x128xf32>
    %24 = vector.extract_strided_slice %22 {offsets = [0, 128], sizes = [8, 128], strides = [1, 1]} : vector<8x384xf32> to vector<8x128xf32>
    %25 = vector.extract_strided_slice %22 {offsets = [0, 256], sizes = [8, 128], strides = [1, 1]} : vector<8x384xf32> to vector<8x128xf32>
    %26 = vector.extract_strided_slice %14 {offsets = [0, 384], sizes = [8, 128], strides = [1, 1]} : vector<8x512xf32> to vector<8x128xf32>
    %27 = math.tanh %26 : vector<8x128xf32>
    %28 = arith.mulf %24, %10 : vector<8x128xf32>
    %29 = arith.mulf %23, %27 : vector<8x128xf32>
    %30 = arith.addf %28, %29 : vector<8x128xf32>
    %31 = math.tanh %30 : vector<8x128xf32>
    %32 = arith.mulf %25, %31 : vector<8x128xf32>
    %33 = arith.truncf %32 : vector<8x128xf32> to vector<8x128xbf16>
    %c0_18 = arith.constant 0 : index
    %c0_19 = arith.constant 0 : index
    %34 = vector.load %arg12[%c0_18, %c0_19] : memref<64x128xbf16, #tpu.memory_space<vmem>>, vector<8x128xbf16>
    tpu.vector_store %arg12[%c0_18, %c0_19], %33 {strides = array<i32>} : memref<64x128xbf16, #tpu.memory_space<vmem>>, vector<8x128xbf16>,
    %c8 = arith.constant 8 : index
    %c0_20 = arith.constant 0 : index
    %35 = vector.load %arg13[%c8, %c0_20] : memref<64x512xf32, #tpu.memory_space<vmem>>, vector<8x512xf32>
    %36 = arith.truncf %32 : vector<8x128xf32> to vector<8x128xbf16>
    %cst_21 = arith.constant dense<0.000000e+00> : vector<8x512xf32>
    %37 = tpu.matmul %36, %8, %cst_21 {dimension_numbers = #tpu.dot_dimension_numbers<[1], [0], [0], [1], [0, 0, 1, 1], [], []>} : vector<8x128xbf16>, vector<128x512xbf16>, vector<8x512xf32> -> vector<8x512xf32>
    %38 = arith.addf %35, %37 : vector<8x512xf32>
    %39 = vector.extract_strided_slice %38 {offsets = [0, 0], sizes = [8, 384], strides = [1, 1]} : vector<8x512xf32> to vector<8x384xf32>
    %cst_22 = arith.constant 5.000000e-01 : f32
    %40 = vector.broadcast %cst_22 : f32 to vector<8x384xf32>
    %41 = arith.mulf %40, %39 : vector<8x384xf32>
    %42 = math.tanh %41 : vector<8x384xf32>
    %cst_23 = arith.constant 5.000000e-01 : f32
    %43 = vector.broadcast %cst_23 : f32 to vector<8x384xf32>
    %44 = arith.mulf %43, %42 : vector<8x384xf32>
    %cst_24 = arith.constant 5.000000e-01 : f32
    %45 = vector.broadcast %cst_24 : f32 to vector<8x384xf32>
    %46 = arith.addf %44, %45 : vector<8x384xf32>
    %47 = vector.extract_strided_slice %46 {offsets = [0, 0], sizes = [8, 128], strides = [1, 1]} : vector<8x384xf32> to vector<8x128xf32>
    %48 = vector.extract_strided_slice %46 {offsets = [0, 128], sizes = [8, 128], strides = [1, 1]} : vector<8x384xf32> to vector<8x128xf32>
    %49 = vector.extract_strided_slice %46 {offsets = [0, 256], sizes = [8, 128], strides = [1, 1]} : vector<8x384xf32> to vector<8x128xf32>
    %50 = vector.extract_strided_slice %38 {offsets = [0, 384], sizes = [8, 128], strides = [1, 1]} : vector<8x512xf32> to vector<8x128xf32>
    %51 = math.tanh %50 : vector<8x128xf32>
    %52 = arith.mulf %48, %30 : vector<8x128xf32>
    %53 = arith.mulf %47, %51 : vector<8x128xf32>
    %54 = arith.addf %52, %53 : vector<8x128xf32>
    %55 = math.tanh %54 : vector<8x128xf32>
    %56 = arith.mulf %49, %55 : vector<8x128xf32>
    %57 = arith.truncf %56 : vector<8x128xf32> to vector<8x128xbf16>
    %c8_25 = arith.constant 8 : index
    %c0_26 = arith.constant 0 : index
    %58 = vector.load %arg12[%c8_25, %c0_26] : memref<64x128xbf16, #tpu.memory_space<vmem>>, vector<8x128xbf16>
    tpu.vector_store %arg12[%c8_25, %c0_26], %57 {strides = array<i32>} : memref<64x128xbf16, #tpu.memory_space<vmem>>, vector<8x128xbf16>,
    %c16 = arith.constant 16 : index
    %c0_27 = arith.constant 0 : index
    %59 = vector.load %arg13[%c16, %c0_27] : memref<64x512xf32, #tpu.memory_space<vmem>>, vector<8x512xf32>
    %60 = arith.truncf %56 : vector<8x128xf32> to vector<8x128xbf16>
    %cst_28 = arith.constant dense<0.000000e+00> : vector<8x512xf32>
    %61 = tpu.matmul %60, %8, %cst_28 {dimension_numbers = #tpu.dot_dimension_numbers<[1], [0], [0], [1], [0, 0, 1, 1], [], []>} : vector<8x128xbf16>, vector<128x512xbf16>, vector<8x512xf32> -> vector<8x512xf32>
    %62 = arith.addf %59, %61 : vector<8x512xf32>
    %63 = vector.extract_strided_slice %62 {offsets = [0, 0], sizes = [8, 384], strides = [1, 1]} : vector<8x512xf32> to vector<8x384xf32>
    %cst_29 = arith.constant 5.000000e-01 : f32
    %64 = vector.broadcast %cst_29 : f32 to vector<8x384xf32>
    %65 = arith.mulf %64, %63 : vector<8x384xf32>
    %66 = math.tanh %65 : vector<8x384xf32>
    %cst_30 = arith.constant 5.000000e-01 : f32
    %67 = vector.broadcast %cst_30 : f32 to vector<8x384xf32>
    %68 = arith.mulf %67, %66 : vector<8x384xf32>
    %cst_31 = arith.constant 5.000000e-01 : f32
    %69 = vector.broadcast %cst_31 : f32 to vector<8x384xf32>
    %70 = arith.addf %68, %69 : vector<8x384xf32>
    %71 = vector.extract_strided_slice %70 {offsets = [0, 0], sizes = [8, 128], strides = [1, 1]} : vector<8x384xf32> to vector<8x128xf32>
    %72 = vector.extract_strided_slice %70 {offsets = [0, 128], sizes = [8, 128], strides = [1, 1]} : vector<8x384xf32> to vector<8x128xf32>
    %73 = vector.extract_strided_slice %70 {offsets = [0, 256], sizes = [8, 128], strides = [1, 1]} : vector<8x384xf32> to vector<8x128xf32>
    %74 = vector.extract_strided_slice %62 {offsets = [0, 384], sizes = [8, 128], strides = [1, 1]} : vector<8x512xf32> to vector<8x128xf32>
    %75 = math.tanh %74 : vector<8x128xf32>
    %76 = arith.mulf %72, %54 : vector<8x128xf32>
    %77 = arith.mulf %71, %75 : vector<8x128xf32>
    %78 = arith.addf %76, %77 : vector<8x128xf32>
    %79 = math.tanh %78 : vector<8x128xf32>
    %80 = arith.mulf %73, %79 : vector<8x128xf32>
    %81 = arith.truncf %80 : vector<8x128xf32> to vector<8x128xbf16>
    %c16_32 = arith.constant 16 : index
    %c0_33 = arith.constant 0 : index
    %82 = vector.load %arg12[%c16_32, %c0_33] : memref<64x128xbf16, #tpu.memory_space<vmem>>, vector<8x128xbf16>
    tpu.vector_store %arg12[%c16_32, %c0_33], %81 {strides = array<i32>} : memref<64x128xbf16, #tpu.memory_space<vmem>>, vector<8x128xbf16>,
    %c24 = arith.constant 24 : index
    %c0_34 = arith.constant 0 : index
    %83 = vector.load %arg13[%c24, %c0_34] : memref<64x512xf32, #tpu.memory_space<vmem>>, vector<8x512xf32>
    %84 = arith.truncf %80 : vector<8x128xf32> to vector<8x128xbf16>
    %cst_35 = arith.constant dense<0.000000e+00> : vector<8x512xf32>
    %85 = tpu.matmul %84, %8, %cst_35 {dimension_numbers = #tpu.dot_dimension_numbers<[1], [0], [0], [1], [0, 0, 1, 1], [], []>} : vector<8x128xbf16>, vector<128x512xbf16>, vector<8x512xf32> -> vector<8x512xf32>
    %86 = arith.addf %83, %85 : vector<8x512xf32>
    %87 = vector.extract_strided_slice %86 {offsets = [0, 0], sizes = [8, 384], strides = [1, 1]} : vector<8x512xf32> to vector<8x384xf32>
    %cst_36 = arith.constant 5.000000e-01 : f32
    %88 = vector.broadcast %cst_36 : f32 to vector<8x384xf32>
    %89 = arith.mulf %88, %87 : vector<8x384xf32>
    %90 = math.tanh %89 : vector<8x384xf32>
    %cst_37 = arith.constant 5.000000e-01 : f32
    %91 = vector.broadcast %cst_37 : f32 to vector<8x384xf32>
    %92 = arith.mulf %91, %90 : vector<8x384xf32>
    %cst_38 = arith.constant 5.000000e-01 : f32
    %93 = vector.broadcast %cst_38 : f32 to vector<8x384xf32>
    %94 = arith.addf %92, %93 : vector<8x384xf32>
    %95 = vector.extract_strided_slice %94 {offsets = [0, 0], sizes = [8, 128], strides = [1, 1]} : vector<8x384xf32> to vector<8x128xf32>
    %96 = vector.extract_strided_slice %94 {offsets = [0, 128], sizes = [8, 128], strides = [1, 1]} : vector<8x384xf32> to vector<8x128xf32>
    %97 = vector.extract_strided_slice %94 {offsets = [0, 256], sizes = [8, 128], strides = [1, 1]} : vector<8x384xf32> to vector<8x128xf32>
    %98 = vector.extract_strided_slice %86 {offsets = [0, 384], sizes = [8, 128], strides = [1, 1]} : vector<8x512xf32> to vector<8x128xf32>
    %99 = math.tanh %98 : vector<8x128xf32>
    %100 = arith.mulf %96, %78 : vector<8x128xf32>
    %101 = arith.mulf %95, %99 : vector<8x128xf32>
    %102 = arith.addf %100, %101 : vector<8x128xf32>
    %103 = math.tanh %102 : vector<8x128xf32>
    %104 = arith.mulf %97, %103 : vector<8x128xf32>
    %105 = arith.truncf %104 : vector<8x128xf32> to vector<8x128xbf16>
    %c24_39 = arith.constant 24 : index
    %c0_40 = arith.constant 0 : index
    %106 = vector.load %arg12[%c24_39, %c0_40] : memref<64x128xbf16, #tpu.memory_space<vmem>>, vector<8x128xbf16>
    tpu.vector_store %arg12[%c24_39, %c0_40], %105 {strides = array<i32>} : memref<64x128xbf16, #tpu.memory_space<vmem>>, vector<8x128xbf16>,
    %c32 = arith.constant 32 : index
    %c0_41 = arith.constant 0 : index
    %107 = vector.load %arg13[%c32, %c0_41] : memref<64x512xf32, #tpu.memory_space<vmem>>, vector<8x512xf32>
    %108 = arith.truncf %104 : vector<8x128xf32> to vector<8x128xbf16>
    %cst_42 = arith.constant dense<0.000000e+00> : vector<8x512xf32>
    %109 = tpu.matmul %108, %8, %cst_42 {dimension_numbers = #tpu.dot_dimension_numbers<[1], [0], [0], [1], [0, 0, 1, 1], [], []>} : vector<8x128xbf16>, vector<128x512xbf16>, vector<8x512xf32> -> vector<8x512xf32>
    %110 = arith.addf %107, %109 : vector<8x512xf32>
    %111 = vector.extract_strided_slice %110 {offsets = [0, 0], sizes = [8, 384], strides = [1, 1]} : vector<8x512xf32> to vector<8x384xf32>
    %cst_43 = arith.constant 5.000000e-01 : f32
    %112 = vector.broadcast %cst_43 : f32 to vector<8x384xf32>
    %113 = arith.mulf %112, %111 : vector<8x384xf32>
    %114 = math.tanh %113 : vector<8x384xf32>
    %cst_44 = arith.constant 5.000000e-01 : f32
    %115 = vector.broadcast %cst_44 : f32 to vector<8x384xf32>
    %116 = arith.mulf %115, %114 : vector<8x384xf32>
    %cst_45 = arith.constant 5.000000e-01 : f32
    %117 = vector.broadcast %cst_45 : f32 to vector<8x384xf32>
    %118 = arith.addf %116, %117 : vector<8x384xf32>
    %119 = vector.extract_strided_slice %118 {offsets = [0, 0], sizes = [8, 128], strides = [1, 1]} : vector<8x384xf32> to vector<8x128xf32>
    %120 = vector.extract_strided_slice %118 {offsets = [0, 128], sizes = [8, 128], strides = [1, 1]} : vector<8x384xf32> to vector<8x128xf32>
    %121 = vector.extract_strided_slice %118 {offsets = [0, 256], sizes = [8, 128], strides = [1, 1]} : vector<8x384xf32> to vector<8x128xf32>
    %122 = vector.extract_strided_slice %110 {offsets = [0, 384], sizes = [8, 128], strides = [1, 1]} : vector<8x512xf32> to vector<8x128xf32>
    %123 = math.tanh %122 : vector<8x128xf32>
    %124 = arith.mulf %120, %102 : vector<8x128xf32>
    %125 = arith.mulf %119, %123 : vector<8x128xf32>
    %126 = arith.addf %124, %125 : vector<8x128xf32>
    %127 = math.tanh %126 : vector<8x128xf32>
    %128 = arith.mulf %121, %127 : vector<8x128xf32>
    %129 = arith.truncf %128 : vector<8x128xf32> to vector<8x128xbf16>
    %c32_46 = arith.constant 32 : index
    %c0_47 = arith.constant 0 : index
    %130 = vector.load %arg12[%c32_46, %c0_47] : memref<64x128xbf16, #tpu.memory_space<vmem>>, vector<8x128xbf16>
    tpu.vector_store %arg12[%c32_46, %c0_47], %129 {strides = array<i32>} : memref<64x128xbf16, #tpu.memory_space<vmem>>, vector<8x128xbf16>,
    %c40 = arith.constant 40 : index
    %c0_48 = arith.constant 0 : index
    %131 = vector.load %arg13[%c40, %c0_48] : memref<64x512xf32, #tpu.memory_space<vmem>>, vector<8x512xf32>
    %132 = arith.truncf %128 : vector<8x128xf32> to vector<8x128xbf16>
    %cst_49 = arith.constant dense<0.000000e+00> : vector<8x512xf32>
    %133 = tpu.matmul %132, %8, %cst_49 {dimension_numbers = #tpu.dot_dimension_numbers<[1], [0], [0], [1], [0, 0, 1, 1], [], []>} : vector<8x128xbf16>, vector<128x512xbf16>, vector<8x512xf32> -> vector<8x512xf32>
    %134 = arith.addf %131, %133 : vector<8x512xf32>
    %135 = vector.extract_strided_slice %134 {offsets = [0, 0], sizes = [8, 384], strides = [1, 1]} : vector<8x512xf32> to vector<8x384xf32>
    %cst_50 = arith.constant 5.000000e-01 : f32
    %136 = vector.broadcast %cst_50 : f32 to vector<8x384xf32>
    %137 = arith.mulf %136, %135 : vector<8x384xf32>
    %138 = math.tanh %137 : vector<8x384xf32>
    %cst_51 = arith.constant 5.000000e-01 : f32
    %139 = vector.broadcast %cst_51 : f32 to vector<8x384xf32>
    %140 = arith.mulf %139, %138 : vector<8x384xf32>
    %cst_52 = arith.constant 5.000000e-01 : f32
    %141 = vector.broadcast %cst_52 : f32 to vector<8x384xf32>
    %142 = arith.addf %140, %141 : vector<8x384xf32>
    %143 = vector.extract_strided_slice %142 {offsets = [0, 0], sizes = [8, 128], strides = [1, 1]} : vector<8x384xf32> to vector<8x128xf32>
    %144 = vector.extract_strided_slice %142 {offsets = [0, 128], sizes = [8, 128], strides = [1, 1]} : vector<8x384xf32> to vector<8x128xf32>
    %145 = vector.extract_strided_slice %142 {offsets = [0, 256], sizes = [8, 128], strides = [1, 1]} : vector<8x384xf32> to vector<8x128xf32>
    %146 = vector.extract_strided_slice %134 {offsets = [0, 384], sizes = [8, 128], strides = [1, 1]} : vector<8x512xf32> to vector<8x128xf32>
    %147 = math.tanh %146 : vector<8x128xf32>
    %148 = arith.mulf %144, %126 : vector<8x128xf32>
    %149 = arith.mulf %143, %147 : vector<8x128xf32>
    %150 = arith.addf %148, %149 : vector<8x128xf32>
    %151 = math.tanh %150 : vector<8x128xf32>
    %152 = arith.mulf %145, %151 : vector<8x128xf32>
    %153 = arith.truncf %152 : vector<8x128xf32> to vector<8x128xbf16>
    %c40_53 = arith.constant 40 : index
    %c0_54 = arith.constant 0 : index
    %154 = vector.load %arg12[%c40_53, %c0_54] : memref<64x128xbf16, #tpu.memory_space<vmem>>, vector<8x128xbf16>
    tpu.vector_store %arg12[%c40_53, %c0_54], %153 {strides = array<i32>} : memref<64x128xbf16, #tpu.memory_space<vmem>>, vector<8x128xbf16>,
    %c48 = arith.constant 48 : index
    %c0_55 = arith.constant 0 : index
    %155 = vector.load %arg13[%c48, %c0_55] : memref<64x512xf32, #tpu.memory_space<vmem>>, vector<8x512xf32>
    %156 = arith.truncf %152 : vector<8x128xf32> to vector<8x128xbf16>
    %cst_56 = arith.constant dense<0.000000e+00> : vector<8x512xf32>
    %157 = tpu.matmul %156, %8, %cst_56 {dimension_numbers = #tpu.dot_dimension_numbers<[1], [0], [0], [1], [0, 0, 1, 1], [], []>} : vector<8x128xbf16>, vector<128x512xbf16>, vector<8x512xf32> -> vector<8x512xf32>
    %158 = arith.addf %155, %157 : vector<8x512xf32>
    %159 = vector.extract_strided_slice %158 {offsets = [0, 0], sizes = [8, 384], strides = [1, 1]} : vector<8x512xf32> to vector<8x384xf32>
    %cst_57 = arith.constant 5.000000e-01 : f32
    %160 = vector.broadcast %cst_57 : f32 to vector<8x384xf32>
    %161 = arith.mulf %160, %159 : vector<8x384xf32>
    %162 = math.tanh %161 : vector<8x384xf32>
    %cst_58 = arith.constant 5.000000e-01 : f32
    %163 = vector.broadcast %cst_58 : f32 to vector<8x384xf32>
    %164 = arith.mulf %163, %162 : vector<8x384xf32>
    %cst_59 = arith.constant 5.000000e-01 : f32
    %165 = vector.broadcast %cst_59 : f32 to vector<8x384xf32>
    %166 = arith.addf %164, %165 : vector<8x384xf32>
    %167 = vector.extract_strided_slice %166 {offsets = [0, 0], sizes = [8, 128], strides = [1, 1]} : vector<8x384xf32> to vector<8x128xf32>
    %168 = vector.extract_strided_slice %166 {offsets = [0, 128], sizes = [8, 128], strides = [1, 1]} : vector<8x384xf32> to vector<8x128xf32>
    %169 = vector.extract_strided_slice %166 {offsets = [0, 256], sizes = [8, 128], strides = [1, 1]} : vector<8x384xf32> to vector<8x128xf32>
    %170 = vector.extract_strided_slice %158 {offsets = [0, 384], sizes = [8, 128], strides = [1, 1]} : vector<8x512xf32> to vector<8x128xf32>
    %171 = math.tanh %170 : vector<8x128xf32>
    %172 = arith.mulf %168, %150 : vector<8x128xf32>
    %173 = arith.mulf %167, %171 : vector<8x128xf32>
    %174 = arith.addf %172, %173 : vector<8x128xf32>
    %175 = math.tanh %174 : vector<8x128xf32>
    %176 = arith.mulf %169, %175 : vector<8x128xf32>
    %177 = arith.truncf %176 : vector<8x128xf32> to vector<8x128xbf16>
    %c48_60 = arith.constant 48 : index
    %c0_61 = arith.constant 0 : index
    %178 = vector.load %arg12[%c48_60, %c0_61] : memref<64x128xbf16, #tpu.memory_space<vmem>>, vector<8x128xbf16>
    tpu.vector_store %arg12[%c48_60, %c0_61], %177 {strides = array<i32>} : memref<64x128xbf16, #tpu.memory_space<vmem>>, vector<8x128xbf16>,
    %c56 = arith.constant 56 : index
    %c0_62 = arith.constant 0 : index
    %179 = vector.load %arg13[%c56, %c0_62] : memref<64x512xf32, #tpu.memory_space<vmem>>, vector<8x512xf32>
    %180 = arith.truncf %176 : vector<8x128xf32> to vector<8x128xbf16>
    %cst_63 = arith.constant dense<0.000000e+00> : vector<8x512xf32>
    %181 = tpu.matmul %180, %8, %cst_63 {dimension_numbers = #tpu.dot_dimension_numbers<[1], [0], [0], [1], [0, 0, 1, 1], [], []>} : vector<8x128xbf16>, vector<128x512xbf16>, vector<8x512xf32> -> vector<8x512xf32>
    %182 = arith.addf %179, %181 : vector<8x512xf32>
    %183 = vector.extract_strided_slice %182 {offsets = [0, 0], sizes = [8, 384], strides = [1, 1]} : vector<8x512xf32> to vector<8x384xf32>
    %cst_64 = arith.constant 5.000000e-01 : f32
    %184 = vector.broadcast %cst_64 : f32 to vector<8x384xf32>
    %185 = arith.mulf %184, %183 : vector<8x384xf32>
    %186 = math.tanh %185 : vector<8x384xf32>
    %cst_65 = arith.constant 5.000000e-01 : f32
    %187 = vector.broadcast %cst_65 : f32 to vector<8x384xf32>
    %188 = arith.mulf %187, %186 : vector<8x384xf32>
    %cst_66 = arith.constant 5.000000e-01 : f32
    %189 = vector.broadcast %cst_66 : f32 to vector<8x384xf32>
    %190 = arith.addf %188, %189 : vector<8x384xf32>
    %191 = vector.extract_strided_slice %190 {offsets = [0, 0], sizes = [8, 128], strides = [1, 1]} : vector<8x384xf32> to vector<8x128xf32>
    %192 = vector.extract_strided_slice %190 {offsets = [0, 128], sizes = [8, 128], strides = [1, 1]} : vector<8x384xf32> to vector<8x128xf32>
    %193 = vector.extract_strided_slice %190 {offsets = [0, 256], sizes = [8, 128], strides = [1, 1]} : vector<8x384xf32> to vector<8x128xf32>
    %194 = vector.extract_strided_slice %182 {offsets = [0, 384], sizes = [8, 128], strides = [1, 1]} : vector<8x512xf32> to vector<8x128xf32>
    %195 = math.tanh %194 : vector<8x128xf32>
    %196 = arith.mulf %192, %174 : vector<8x128xf32>
    %197 = arith.mulf %191, %195 : vector<8x128xf32>
    %198 = arith.addf %196, %197 : vector<8x128xf32>
    %199 = math.tanh %198 : vector<8x128xf32>
    %200 = arith.mulf %193, %199 : vector<8x128xf32>
    %201 = arith.truncf %200 : vector<8x128xf32> to vector<8x128xbf16>
    %c56_67 = arith.constant 56 : index
    %c0_68 = arith.constant 0 : index
    %202 = vector.load %arg12[%c56_67, %c0_68] : memref<64x128xbf16, #tpu.memory_space<vmem>>, vector<8x128xbf16>
    tpu.vector_store %arg12[%c56_67, %c0_68], %201 {strides = array<i32>} : memref<64x128xbf16, #tpu.memory_space<vmem>>, vector<8x128xbf16>,
    %c0_69 = arith.constant 0 : index
    %c0_70 = arith.constant 0 : index
    %203 = vector.load %arg5[%c0_69, %c0_70] : memref<256x512xbf16, #tpu.memory_space<vmem>>, vector<256x512xbf16>
    %c0_71 = arith.constant 0 : index
    %c0_72 = arith.constant 0 : index
    %204 = vector.load %arg6[%c0_71, %c0_72] : memref<1x512xf32, #tpu.memory_space<vmem>>, vector<1x512xf32>
    %cst_73 = arith.constant 0.000000e+00 : f32
    %205 = vector.broadcast %cst_73 : f32 to vector<8x128xf32>
    %cst_74 = arith.constant 0.000000e+00 : f32
    %206 = vector.broadcast %cst_74 : f32 to vector<8x128xf32>
    %c0_75 = arith.constant 0 : index
    %c0_76 = arith.constant 0 : index
    %207 = vector.load %arg12[%c0_75, %c0_76] : memref<64x128xbf16, #tpu.memory_space<vmem>>, vector<8x128xbf16>
    %208 = arith.truncf %205 : vector<8x128xf32> to vector<8x128xbf16>
    %209 = tpu.concatenate %207, %208 in 1 : vector<8x128xbf16>, vector<8x128xbf16> -> vector<8x256xbf16>
    %cst_77 = arith.constant dense<0.000000e+00> : vector<8x512xf32>
    %210 = tpu.matmul %209, %203, %cst_77 {dimension_numbers = #tpu.dot_dimension_numbers<[1], [0], [0], [1], [0, 0, 1, 1], [], []>} : vector<8x256xbf16>, vector<256x512xbf16>, vector<8x512xf32> -> vector<8x512xf32>
    %211 = vector.broadcast %204 : vector<1x512xf32> to vector<8x512xf32>
    %212 = arith.addf %210, %211 : vector<8x512xf32>
    %213 = vector.extract_strided_slice %212 {offsets = [0, 0], sizes = [8, 384], strides = [1, 1]} : vector<8x512xf32> to vector<8x384xf32>
    %cst_78 = arith.constant 5.000000e-01 : f32
    %214 = vector.broadcast %cst_78 : f32 to vector<8x384xf32>
    %215 = arith.mulf %214, %213 : vector<8x384xf32>
    %216 = math.tanh %215 : vector<8x384xf32>
    %cst_79 = arith.constant 5.000000e-01 : f32
    %217 = vector.broadcast %cst_79 : f32 to vector<8x384xf32>
    %218 = arith.mulf %217, %216 : vector<8x384xf32>
    %cst_80 = arith.constant 5.000000e-01 : f32
    %219 = vector.broadcast %cst_80 : f32 to vector<8x384xf32>
    %220 = arith.addf %218, %219 : vector<8x384xf32>
    %221 = vector.extract_strided_slice %220 {offsets = [0, 0], sizes = [8, 128], strides = [1, 1]} : vector<8x384xf32> to vector<8x128xf32>
    %222 = vector.extract_strided_slice %220 {offsets = [0, 128], sizes = [8, 128], strides = [1, 1]} : vector<8x384xf32> to vector<8x128xf32>
    %223 = vector.extract_strided_slice %220 {offsets = [0, 256], sizes = [8, 128], strides = [1, 1]} : vector<8x384xf32> to vector<8x128xf32>
    %224 = vector.extract_strided_slice %212 {offsets = [0, 384], sizes = [8, 128], strides = [1, 1]} : vector<8x512xf32> to vector<8x128xf32>
    %225 = math.tanh %224 : vector<8x128xf32>
    %226 = arith.mulf %222, %206 : vector<8x128xf32>
    %227 = arith.mulf %221, %225 : vector<8x128xf32>
    %228 = arith.addf %226, %227 : vector<8x128xf32>
    %229 = math.tanh %228 : vector<8x128xf32>
    %230 = arith.mulf %223, %229 : vector<8x128xf32>
    %231 = arith.truncf %230 : vector<8x128xf32> to vector<8x128xbf16>
    %c0_81 = arith.constant 0 : index
    %c0_82 = arith.constant 0 : index
    %232 = vector.load %arg12[%c0_81, %c0_82] : memref<64x128xbf16, #tpu.memory_space<vmem>>, vector<8x128xbf16>
    tpu.vector_store %arg12[%c0_81, %c0_82], %231 {strides = array<i32>} : memref<64x128xbf16, #tpu.memory_space<vmem>>, vector<8x128xbf16>,
    %c8_83 = arith.constant 8 : index
    %c0_84 = arith.constant 0 : index
    %233 = vector.load %arg12[%c8_83, %c0_84] : memref<64x128xbf16, #tpu.memory_space<vmem>>, vector<8x128xbf16>
    %234 = arith.truncf %230 : vector<8x128xf32> to vector<8x128xbf16>
    %235 = tpu.concatenate %233, %234 in 1 : vector<8x128xbf16>, vector<8x128xbf16> -> vector<8x256xbf16>
    %cst_85 = arith.constant dense<0.000000e+00> : vector<8x512xf32>
    %236 = tpu.matmul %235, %203, %cst_85 {dimension_numbers = #tpu.dot_dimension_numbers<[1], [0], [0], [1], [0, 0, 1, 1], [], []>} : vector<8x256xbf16>, vector<256x512xbf16>, vector<8x512xf32> -> vector<8x512xf32>
    %237 = vector.broadcast %204 : vector<1x512xf32> to vector<8x512xf32>
    %238 = arith.addf %236, %237 : vector<8x512xf32>
    %239 = vector.extract_strided_slice %238 {offsets = [0, 0], sizes = [8, 384], strides = [1, 1]} : vector<8x512xf32> to vector<8x384xf32>
    %cst_86 = arith.constant 5.000000e-01 : f32
    %240 = vector.broadcast %cst_86 : f32 to vector<8x384xf32>
    %241 = arith.mulf %240, %239 : vector<8x384xf32>
    %242 = math.tanh %241 : vector<8x384xf32>
    %cst_87 = arith.constant 5.000000e-01 : f32
    %243 = vector.broadcast %cst_87 : f32 to vector<8x384xf32>
    %244 = arith.mulf %243, %242 : vector<8x384xf32>
    %cst_88 = arith.constant 5.000000e-01 : f32
    %245 = vector.broadcast %cst_88 : f32 to vector<8x384xf32>
    %246 = arith.addf %244, %245 : vector<8x384xf32>
    %247 = vector.extract_strided_slice %246 {offsets = [0, 0], sizes = [8, 128], strides = [1, 1]} : vector<8x384xf32> to vector<8x128xf32>
    %248 = vector.extract_strided_slice %246 {offsets = [0, 128], sizes = [8, 128], strides = [1, 1]} : vector<8x384xf32> to vector<8x128xf32>
    %249 = vector.extract_strided_slice %246 {offsets = [0, 256], sizes = [8, 128], strides = [1, 1]} : vector<8x384xf32> to vector<8x128xf32>
    %250 = vector.extract_strided_slice %238 {offsets = [0, 384], sizes = [8, 128], strides = [1, 1]} : vector<8x512xf32> to vector<8x128xf32>
    %251 = math.tanh %250 : vector<8x128xf32>
    %252 = arith.mulf %248, %228 : vector<8x128xf32>
    %253 = arith.mulf %247, %251 : vector<8x128xf32>
    %254 = arith.addf %252, %253 : vector<8x128xf32>
    %255 = math.tanh %254 : vector<8x128xf32>
    %256 = arith.mulf %249, %255 : vector<8x128xf32>
    %257 = arith.truncf %256 : vector<8x128xf32> to vector<8x128xbf16>
    %c8_89 = arith.constant 8 : index
    %c0_90 = arith.constant 0 : index
    %258 = vector.load %arg12[%c8_89, %c0_90] : memref<64x128xbf16, #tpu.memory_space<vmem>>, vector<8x128xbf16>
    tpu.vector_store %arg12[%c8_89, %c0_90], %257 {strides = array<i32>} : memref<64x128xbf16, #tpu.memory_space<vmem>>, vector<8x128xbf16>,
    %c16_91 = arith.constant 16 : index
    %c0_92 = arith.constant 0 : index
    %259 = vector.load %arg12[%c16_91, %c0_92] : memref<64x128xbf16, #tpu.memory_space<vmem>>, vector<8x128xbf16>
    %260 = arith.truncf %256 : vector<8x128xf32> to vector<8x128xbf16>
    %261 = tpu.concatenate %259, %260 in 1 : vector<8x128xbf16>, vector<8x128xbf16> -> vector<8x256xbf16>
    %cst_93 = arith.constant dense<0.000000e+00> : vector<8x512xf32>
    %262 = tpu.matmul %261, %203, %cst_93 {dimension_numbers = #tpu.dot_dimension_numbers<[1], [0], [0], [1], [0, 0, 1, 1], [], []>} : vector<8x256xbf16>, vector<256x512xbf16>, vector<8x512xf32> -> vector<8x512xf32>
    %263 = vector.broadcast %204 : vector<1x512xf32> to vector<8x512xf32>
    %264 = arith.addf %262, %263 : vector<8x512xf32>
    %265 = vector.extract_strided_slice %264 {offsets = [0, 0], sizes = [8, 384], strides = [1, 1]} : vector<8x512xf32> to vector<8x384xf32>
    %cst_94 = arith.constant 5.000000e-01 : f32
    %266 = vector.broadcast %cst_94 : f32 to vector<8x384xf32>
    %267 = arith.mulf %266, %265 : vector<8x384xf32>
    %268 = math.tanh %267 : vector<8x384xf32>
    %cst_95 = arith.constant 5.000000e-01 : f32
    %269 = vector.broadcast %cst_95 : f32 to vector<8x384xf32>
    %270 = arith.mulf %269, %268 : vector<8x384xf32>
    %cst_96 = arith.constant 5.000000e-01 : f32
    %271 = vector.broadcast %cst_96 : f32 to vector<8x384xf32>
    %272 = arith.addf %270, %271 : vector<8x384xf32>
    %273 = vector.extract_strided_slice %272 {offsets = [0, 0], sizes = [8, 128], strides = [1, 1]} : vector<8x384xf32> to vector<8x128xf32>
    %274 = vector.extract_strided_slice %272 {offsets = [0, 128], sizes = [8, 128], strides = [1, 1]} : vector<8x384xf32> to vector<8x128xf32>
    %275 = vector.extract_strided_slice %272 {offsets = [0, 256], sizes = [8, 128], strides = [1, 1]} : vector<8x384xf32> to vector<8x128xf32>
    %276 = vector.extract_strided_slice %264 {offsets = [0, 384], sizes = [8, 128], strides = [1, 1]} : vector<8x512xf32> to vector<8x128xf32>
    %277 = math.tanh %276 : vector<8x128xf32>
    %278 = arith.mulf %274, %254 : vector<8x128xf32>
    %279 = arith.mulf %273, %277 : vector<8x128xf32>
    %280 = arith.addf %278, %279 : vector<8x128xf32>
    %281 = math.tanh %280 : vector<8x128xf32>
    %282 = arith.mulf %275, %281 : vector<8x128xf32>
    %283 = arith.truncf %282 : vector<8x128xf32> to vector<8x128xbf16>
    %c16_97 = arith.constant 16 : index
    %c0_98 = arith.constant 0 : index
    %284 = vector.load %arg12[%c16_97, %c0_98] : memref<64x128xbf16, #tpu.memory_space<vmem>>, vector<8x128xbf16>
    tpu.vector_store %arg12[%c16_97, %c0_98], %283 {strides = array<i32>} : memref<64x128xbf16, #tpu.memory_space<vmem>>, vector<8x128xbf16>,
    %c24_99 = arith.constant 24 : index
    %c0_100 = arith.constant 0 : index
    %285 = vector.load %arg12[%c24_99, %c0_100] : memref<64x128xbf16, #tpu.memory_space<vmem>>, vector<8x128xbf16>
    %286 = arith.truncf %282 : vector<8x128xf32> to vector<8x128xbf16>
    %287 = tpu.concatenate %285, %286 in 1 : vector<8x128xbf16>, vector<8x128xbf16> -> vector<8x256xbf16>
    %cst_101 = arith.constant dense<0.000000e+00> : vector<8x512xf32>
    %288 = tpu.matmul %287, %203, %cst_101 {dimension_numbers = #tpu.dot_dimension_numbers<[1], [0], [0], [1], [0, 0, 1, 1], [], []>} : vector<8x256xbf16>, vector<256x512xbf16>, vector<8x512xf32> -> vector<8x512xf32>
    %289 = vector.broadcast %204 : vector<1x512xf32> to vector<8x512xf32>
    %290 = arith.addf %288, %289 : vector<8x512xf32>
    %291 = vector.extract_strided_slice %290 {offsets = [0, 0], sizes = [8, 384], strides = [1, 1]} : vector<8x512xf32> to vector<8x384xf32>
    %cst_102 = arith.constant 5.000000e-01 : f32
    %292 = vector.broadcast %cst_102 : f32 to vector<8x384xf32>
    %293 = arith.mulf %292, %291 : vector<8x384xf32>
    %294 = math.tanh %293 : vector<8x384xf32>
    %cst_103 = arith.constant 5.000000e-01 : f32
    %295 = vector.broadcast %cst_103 : f32 to vector<8x384xf32>
    %296 = arith.mulf %295, %294 : vector<8x384xf32>
    %cst_104 = arith.constant 5.000000e-01 : f32
    %297 = vector.broadcast %cst_104 : f32 to vector<8x384xf32>
    %298 = arith.addf %296, %297 : vector<8x384xf32>
    %299 = vector.extract_strided_slice %298 {offsets = [0, 0], sizes = [8, 128], strides = [1, 1]} : vector<8x384xf32> to vector<8x128xf32>
    %300 = vector.extract_strided_slice %298 {offsets = [0, 128], sizes = [8, 128], strides = [1, 1]} : vector<8x384xf32> to vector<8x128xf32>
    %301 = vector.extract_strided_slice %298 {offsets = [0, 256], sizes = [8, 128], strides = [1, 1]} : vector<8x384xf32> to vector<8x128xf32>
    %302 = vector.extract_strided_slice %290 {offsets = [0, 384], sizes = [8, 128], strides = [1, 1]} : vector<8x512xf32> to vector<8x128xf32>
    %303 = math.tanh %302 : vector<8x128xf32>
    %304 = arith.mulf %300, %280 : vector<8x128xf32>
    %305 = arith.mulf %299, %303 : vector<8x128xf32>
    %306 = arith.addf %304, %305 : vector<8x128xf32>
    %307 = math.tanh %306 : vector<8x128xf32>
    %308 = arith.mulf %301, %307 : vector<8x128xf32>
    %309 = arith.truncf %308 : vector<8x128xf32> to vector<8x128xbf16>
    %c24_105 = arith.constant 24 : index
    %c0_106 = arith.constant 0 : index
    %310 = vector.load %arg12[%c24_105, %c0_106] : memref<64x128xbf16, #tpu.memory_space<vmem>>, vector<8x128xbf16>
    tpu.vector_store %arg12[%c24_105, %c0_106], %309 {strides = array<i32>} : memref<64x128xbf16, #tpu.memory_space<vmem>>, vector<8x128xbf16>,
    %c32_107 = arith.constant 32 : index
    %c0_108 = arith.constant 0 : index
    %311 = vector.load %arg12[%c32_107, %c0_108] : memref<64x128xbf16, #tpu.memory_space<vmem>>, vector<8x128xbf16>
    %312 = arith.truncf %308 : vector<8x128xf32> to vector<8x128xbf16>
    %313 = tpu.concatenate %311, %312 in 1 : vector<8x128xbf16>, vector<8x128xbf16> -> vector<8x256xbf16>
    %cst_109 = arith.constant dense<0.000000e+00> : vector<8x512xf32>
    %314 = tpu.matmul %313, %203, %cst_109 {dimension_numbers = #tpu.dot_dimension_numbers<[1], [0], [0], [1], [0, 0, 1, 1], [], []>} : vector<8x256xbf16>, vector<256x512xbf16>, vector<8x512xf32> -> vector<8x512xf32>
    %315 = vector.broadcast %204 : vector<1x512xf32> to vector<8x512xf32>
    %316 = arith.addf %314, %315 : vector<8x512xf32>
    %317 = vector.extract_strided_slice %316 {offsets = [0, 0], sizes = [8, 384], strides = [1, 1]} : vector<8x512xf32> to vector<8x384xf32>
    %cst_110 = arith.constant 5.000000e-01 : f32
    %318 = vector.broadcast %cst_110 : f32 to vector<8x384xf32>
    %319 = arith.mulf %318, %317 : vector<8x384xf32>
    %320 = math.tanh %319 : vector<8x384xf32>
    %cst_111 = arith.constant 5.000000e-01 : f32
    %321 = vector.broadcast %cst_111 : f32 to vector<8x384xf32>
    %322 = arith.mulf %321, %320 : vector<8x384xf32>
    %cst_112 = arith.constant 5.000000e-01 : f32
    %323 = vector.broadcast %cst_112 : f32 to vector<8x384xf32>
    %324 = arith.addf %322, %323 : vector<8x384xf32>
    %325 = vector.extract_strided_slice %324 {offsets = [0, 0], sizes = [8, 128], strides = [1, 1]} : vector<8x384xf32> to vector<8x128xf32>
    %326 = vector.extract_strided_slice %324 {offsets = [0, 128], sizes = [8, 128], strides = [1, 1]} : vector<8x384xf32> to vector<8x128xf32>
    %327 = vector.extract_strided_slice %324 {offsets = [0, 256], sizes = [8, 128], strides = [1, 1]} : vector<8x384xf32> to vector<8x128xf32>
    %328 = vector.extract_strided_slice %316 {offsets = [0, 384], sizes = [8, 128], strides = [1, 1]} : vector<8x512xf32> to vector<8x128xf32>
    %329 = math.tanh %328 : vector<8x128xf32>
    %330 = arith.mulf %326, %306 : vector<8x128xf32>
    %331 = arith.mulf %325, %329 : vector<8x128xf32>
    %332 = arith.addf %330, %331 : vector<8x128xf32>
    %333 = math.tanh %332 : vector<8x128xf32>
    %334 = arith.mulf %327, %333 : vector<8x128xf32>
    %335 = arith.truncf %334 : vector<8x128xf32> to vector<8x128xbf16>
    %c32_113 = arith.constant 32 : index
    %c0_114 = arith.constant 0 : index
    %336 = vector.load %arg12[%c32_113, %c0_114] : memref<64x128xbf16, #tpu.memory_space<vmem>>, vector<8x128xbf16>
    tpu.vector_store %arg12[%c32_113, %c0_114], %335 {strides = array<i32>} : memref<64x128xbf16, #tpu.memory_space<vmem>>, vector<8x128xbf16>,
    %c40_115 = arith.constant 40 : index
    %c0_116 = arith.constant 0 : index
    %337 = vector.load %arg12[%c40_115, %c0_116] : memref<64x128xbf16, #tpu.memory_space<vmem>>, vector<8x128xbf16>
    %338 = arith.truncf %334 : vector<8x128xf32> to vector<8x128xbf16>
    %339 = tpu.concatenate %337, %338 in 1 : vector<8x128xbf16>, vector<8x128xbf16> -> vector<8x256xbf16>
    %cst_117 = arith.constant dense<0.000000e+00> : vector<8x512xf32>
    %340 = tpu.matmul %339, %203, %cst_117 {dimension_numbers = #tpu.dot_dimension_numbers<[1], [0], [0], [1], [0, 0, 1, 1], [], []>} : vector<8x256xbf16>, vector<256x512xbf16>, vector<8x512xf32> -> vector<8x512xf32>
    %341 = vector.broadcast %204 : vector<1x512xf32> to vector<8x512xf32>
    %342 = arith.addf %340, %341 : vector<8x512xf32>
    %343 = vector.extract_strided_slice %342 {offsets = [0, 0], sizes = [8, 384], strides = [1, 1]} : vector<8x512xf32> to vector<8x384xf32>
    %cst_118 = arith.constant 5.000000e-01 : f32
    %344 = vector.broadcast %cst_118 : f32 to vector<8x384xf32>
    %345 = arith.mulf %344, %343 : vector<8x384xf32>
    %346 = math.tanh %345 : vector<8x384xf32>
    %cst_119 = arith.constant 5.000000e-01 : f32
    %347 = vector.broadcast %cst_119 : f32 to vector<8x384xf32>
    %348 = arith.mulf %347, %346 : vector<8x384xf32>
    %cst_120 = arith.constant 5.000000e-01 : f32
    %349 = vector.broadcast %cst_120 : f32 to vector<8x384xf32>
    %350 = arith.addf %348, %349 : vector<8x384xf32>
    %351 = vector.extract_strided_slice %350 {offsets = [0, 0], sizes = [8, 128], strides = [1, 1]} : vector<8x384xf32> to vector<8x128xf32>
    %352 = vector.extract_strided_slice %350 {offsets = [0, 128], sizes = [8, 128], strides = [1, 1]} : vector<8x384xf32> to vector<8x128xf32>
    %353 = vector.extract_strided_slice %350 {offsets = [0, 256], sizes = [8, 128], strides = [1, 1]} : vector<8x384xf32> to vector<8x128xf32>
    %354 = vector.extract_strided_slice %342 {offsets = [0, 384], sizes = [8, 128], strides = [1, 1]} : vector<8x512xf32> to vector<8x128xf32>
    %355 = math.tanh %354 : vector<8x128xf32>
    %356 = arith.mulf %352, %332 : vector<8x128xf32>
    %357 = arith.mulf %351, %355 : vector<8x128xf32>
    %358 = arith.addf %356, %357 : vector<8x128xf32>
    %359 = math.tanh %358 : vector<8x128xf32>
    %360 = arith.mulf %353, %359 : vector<8x128xf32>
    %361 = arith.truncf %360 : vector<8x128xf32> to vector<8x128xbf16>
    %c40_121 = arith.constant 40 : index
    %c0_122 = arith.constant 0 : index
    %362 = vector.load %arg12[%c40_121, %c0_122] : memref<64x128xbf16, #tpu.memory_space<vmem>>, vector<8x128xbf16>
    tpu.vector_store %arg12[%c40_121, %c0_122], %361 {strides = array<i32>} : memref<64x128xbf16, #tpu.memory_space<vmem>>, vector<8x128xbf16>,
    %c48_123 = arith.constant 48 : index
    %c0_124 = arith.constant 0 : index
    %363 = vector.load %arg12[%c48_123, %c0_124] : memref<64x128xbf16, #tpu.memory_space<vmem>>, vector<8x128xbf16>
    %364 = arith.truncf %360 : vector<8x128xf32> to vector<8x128xbf16>
    %365 = tpu.concatenate %363, %364 in 1 : vector<8x128xbf16>, vector<8x128xbf16> -> vector<8x256xbf16>
    %cst_125 = arith.constant dense<0.000000e+00> : vector<8x512xf32>
    %366 = tpu.matmul %365, %203, %cst_125 {dimension_numbers = #tpu.dot_dimension_numbers<[1], [0], [0], [1], [0, 0, 1, 1], [], []>} : vector<8x256xbf16>, vector<256x512xbf16>, vector<8x512xf32> -> vector<8x512xf32>
    %367 = vector.broadcast %204 : vector<1x512xf32> to vector<8x512xf32>
    %368 = arith.addf %366, %367 : vector<8x512xf32>
    %369 = vector.extract_strided_slice %368 {offsets = [0, 0], sizes = [8, 384], strides = [1, 1]} : vector<8x512xf32> to vector<8x384xf32>
    %cst_126 = arith.constant 5.000000e-01 : f32
    %370 = vector.broadcast %cst_126 : f32 to vector<8x384xf32>
    %371 = arith.mulf %370, %369 : vector<8x384xf32>
    %372 = math.tanh %371 : vector<8x384xf32>
    %cst_127 = arith.constant 5.000000e-01 : f32
    %373 = vector.broadcast %cst_127 : f32 to vector<8x384xf32>
    %374 = arith.mulf %373, %372 : vector<8x384xf32>
    %cst_128 = arith.constant 5.000000e-01 : f32
    %375 = vector.broadcast %cst_128 : f32 to vector<8x384xf32>
    %376 = arith.addf %374, %375 : vector<8x384xf32>
    %377 = vector.extract_strided_slice %376 {offsets = [0, 0], sizes = [8, 128], strides = [1, 1]} : vector<8x384xf32> to vector<8x128xf32>
    %378 = vector.extract_strided_slice %376 {offsets = [0, 128], sizes = [8, 128], strides = [1, 1]} : vector<8x384xf32> to vector<8x128xf32>
    %379 = vector.extract_strided_slice %376 {offsets = [0, 256], sizes = [8, 128], strides = [1, 1]} : vector<8x384xf32> to vector<8x128xf32>
    %380 = vector.extract_strided_slice %368 {offsets = [0, 384], sizes = [8, 128], strides = [1, 1]} : vector<8x512xf32> to vector<8x128xf32>
    %381 = math.tanh %380 : vector<8x128xf32>
    %382 = arith.mulf %378, %358 : vector<8x128xf32>
    %383 = arith.mulf %377, %381 : vector<8x128xf32>
    %384 = arith.addf %382, %383 : vector<8x128xf32>
    %385 = math.tanh %384 : vector<8x128xf32>
    %386 = arith.mulf %379, %385 : vector<8x128xf32>
    %387 = arith.truncf %386 : vector<8x128xf32> to vector<8x128xbf16>
    %c48_129 = arith.constant 48 : index
    %c0_130 = arith.constant 0 : index
    %388 = vector.load %arg12[%c48_129, %c0_130] : memref<64x128xbf16, #tpu.memory_space<vmem>>, vector<8x128xbf16>
    tpu.vector_store %arg12[%c48_129, %c0_130], %387 {strides = array<i32>} : memref<64x128xbf16, #tpu.memory_space<vmem>>, vector<8x128xbf16>,
    %c56_131 = arith.constant 56 : index
    %c0_132 = arith.constant 0 : index
    %389 = vector.load %arg12[%c56_131, %c0_132] : memref<64x128xbf16, #tpu.memory_space<vmem>>, vector<8x128xbf16>
    %390 = arith.truncf %386 : vector<8x128xf32> to vector<8x128xbf16>
    %391 = tpu.concatenate %389, %390 in 1 : vector<8x128xbf16>, vector<8x128xbf16> -> vector<8x256xbf16>
    %cst_133 = arith.constant dense<0.000000e+00> : vector<8x512xf32>
    %392 = tpu.matmul %391, %203, %cst_133 {dimension_numbers = #tpu.dot_dimension_numbers<[1], [0], [0], [1], [0, 0, 1, 1], [], []>} : vector<8x256xbf16>, vector<256x512xbf16>, vector<8x512xf32> -> vector<8x512xf32>
    %393 = vector.broadcast %204 : vector<1x512xf32> to vector<8x512xf32>
    %394 = arith.addf %392, %393 : vector<8x512xf32>
    %395 = vector.extract_strided_slice %394 {offsets = [0, 0], sizes = [8, 384], strides = [1, 1]} : vector<8x512xf32> to vector<8x384xf32>
    %cst_134 = arith.constant 5.000000e-01 : f32
    %396 = vector.broadcast %cst_134 : f32 to vector<8x384xf32>
    %397 = arith.mulf %396, %395 : vector<8x384xf32>
    %398 = math.tanh %397 : vector<8x384xf32>
    %cst_135 = arith.constant 5.000000e-01 : f32
    %399 = vector.broadcast %cst_135 : f32 to vector<8x384xf32>
    %400 = arith.mulf %399, %398 : vector<8x384xf32>
    %cst_136 = arith.constant 5.000000e-01 : f32
    %401 = vector.broadcast %cst_136 : f32 to vector<8x384xf32>
    %402 = arith.addf %400, %401 : vector<8x384xf32>
    %403 = vector.extract_strided_slice %402 {offsets = [0, 0], sizes = [8, 128], strides = [1, 1]} : vector<8x384xf32> to vector<8x128xf32>
    %404 = vector.extract_strided_slice %402 {offsets = [0, 128], sizes = [8, 128], strides = [1, 1]} : vector<8x384xf32> to vector<8x128xf32>
    %405 = vector.extract_strided_slice %402 {offsets = [0, 256], sizes = [8, 128], strides = [1, 1]} : vector<8x384xf32> to vector<8x128xf32>
    %406 = vector.extract_strided_slice %394 {offsets = [0, 384], sizes = [8, 128], strides = [1, 1]} : vector<8x512xf32> to vector<8x128xf32>
    %407 = math.tanh %406 : vector<8x128xf32>
    %408 = arith.mulf %404, %384 : vector<8x128xf32>
    %409 = arith.mulf %403, %407 : vector<8x128xf32>
    %410 = arith.addf %408, %409 : vector<8x128xf32>
    %411 = math.tanh %410 : vector<8x128xf32>
    %412 = arith.mulf %405, %411 : vector<8x128xf32>
    %413 = arith.truncf %412 : vector<8x128xf32> to vector<8x128xbf16>
    %c56_137 = arith.constant 56 : index
    %c0_138 = arith.constant 0 : index
    %414 = vector.load %arg12[%c56_137, %c0_138] : memref<64x128xbf16, #tpu.memory_space<vmem>>, vector<8x128xbf16>
    tpu.vector_store %arg12[%c56_137, %c0_138], %413 {strides = array<i32>} : memref<64x128xbf16, #tpu.memory_space<vmem>>, vector<8x128xbf16>,
    %c0_139 = arith.constant 0 : index
    %c0_140 = arith.constant 0 : index
    %415 = vector.load %arg7[%c0_139, %c0_140] : memref<256x512xbf16, #tpu.memory_space<vmem>>, vector<256x512xbf16>
    %c0_141 = arith.constant 0 : index
    %c0_142 = arith.constant 0 : index
    %416 = vector.load %arg8[%c0_141, %c0_142] : memref<1x512xf32, #tpu.memory_space<vmem>>, vector<1x512xf32>
    %cst_143 = arith.constant 0.000000e+00 : f32
    %417 = vector.broadcast %cst_143 : f32 to vector<8x128xf32>
    %cst_144 = arith.constant 0.000000e+00 : f32
    %418 = vector.broadcast %cst_144 : f32 to vector<8x128xf32>
    %c0_145 = arith.constant 0 : index
    %c0_146 = arith.constant 0 : index
    %419 = vector.load %arg12[%c0_145, %c0_146] : memref<64x128xbf16, #tpu.memory_space<vmem>>, vector<8x128xbf16>
    %420 = arith.truncf %417 : vector<8x128xf32> to vector<8x128xbf16>
    %421 = tpu.concatenate %419, %420 in 1 : vector<8x128xbf16>, vector<8x128xbf16> -> vector<8x256xbf16>
    %cst_147 = arith.constant dense<0.000000e+00> : vector<8x512xf32>
    %422 = tpu.matmul %421, %415, %cst_147 {dimension_numbers = #tpu.dot_dimension_numbers<[1], [0], [0], [1], [0, 0, 1, 1], [], []>} : vector<8x256xbf16>, vector<256x512xbf16>, vector<8x512xf32> -> vector<8x512xf32>
    %423 = vector.broadcast %416 : vector<1x512xf32> to vector<8x512xf32>
    %424 = arith.addf %422, %423 : vector<8x512xf32>
    %425 = vector.extract_strided_slice %424 {offsets = [0, 0], sizes = [8, 384], strides = [1, 1]} : vector<8x512xf32> to vector<8x384xf32>
    %cst_148 = arith.constant 5.000000e-01 : f32
    %426 = vector.broadcast %cst_148 : f32 to vector<8x384xf32>
    %427 = arith.mulf %426, %425 : vector<8x384xf32>
    %428 = math.tanh %427 : vector<8x384xf32>
    %cst_149 = arith.constant 5.000000e-01 : f32
    %429 = vector.broadcast %cst_149 : f32 to vector<8x384xf32>
    %430 = arith.mulf %429, %428 : vector<8x384xf32>
    %cst_150 = arith.constant 5.000000e-01 : f32
    %431 = vector.broadcast %cst_150 : f32 to vector<8x384xf32>
    %432 = arith.addf %430, %431 : vector<8x384xf32>
    %433 = vector.extract_strided_slice %432 {offsets = [0, 0], sizes = [8, 128], strides = [1, 1]} : vector<8x384xf32> to vector<8x128xf32>
    %434 = vector.extract_strided_slice %432 {offsets = [0, 128], sizes = [8, 128], strides = [1, 1]} : vector<8x384xf32> to vector<8x128xf32>
    %435 = vector.extract_strided_slice %432 {offsets = [0, 256], sizes = [8, 128], strides = [1, 1]} : vector<8x384xf32> to vector<8x128xf32>
    %436 = vector.extract_strided_slice %424 {offsets = [0, 384], sizes = [8, 128], strides = [1, 1]} : vector<8x512xf32> to vector<8x128xf32>
    %437 = math.tanh %436 : vector<8x128xf32>
    %438 = arith.mulf %434, %418 : vector<8x128xf32>
    %439 = arith.mulf %433, %437 : vector<8x128xf32>
    %440 = arith.addf %438, %439 : vector<8x128xf32>
    %441 = math.tanh %440 : vector<8x128xf32>
    %442 = arith.mulf %435, %441 : vector<8x128xf32>
    %c8_151 = arith.constant 8 : index
    %c0_152 = arith.constant 0 : index
    %443 = vector.load %arg12[%c8_151, %c0_152] : memref<64x128xbf16, #tpu.memory_space<vmem>>, vector<8x128xbf16>
    %444 = arith.truncf %442 : vector<8x128xf32> to vector<8x128xbf16>
    %445 = tpu.concatenate %443, %444 in 1 : vector<8x128xbf16>, vector<8x128xbf16> -> vector<8x256xbf16>
    %cst_153 = arith.constant dense<0.000000e+00> : vector<8x512xf32>
    %446 = tpu.matmul %445, %415, %cst_153 {dimension_numbers = #tpu.dot_dimension_numbers<[1], [0], [0], [1], [0, 0, 1, 1], [], []>} : vector<8x256xbf16>, vector<256x512xbf16>, vector<8x512xf32> -> vector<8x512xf32>
    %447 = vector.broadcast %416 : vector<1x512xf32> to vector<8x512xf32>
    %448 = arith.addf %446, %447 : vector<8x512xf32>
    %449 = vector.extract_strided_slice %448 {offsets = [0, 0], sizes = [8, 384], strides = [1, 1]} : vector<8x512xf32> to vector<8x384xf32>
    %cst_154 = arith.constant 5.000000e-01 : f32
    %450 = vector.broadcast %cst_154 : f32 to vector<8x384xf32>
    %451 = arith.mulf %450, %449 : vector<8x384xf32>
    %452 = math.tanh %451 : vector<8x384xf32>
    %cst_155 = arith.constant 5.000000e-01 : f32
    %453 = vector.broadcast %cst_155 : f32 to vector<8x384xf32>
    %454 = arith.mulf %453, %452 : vector<8x384xf32>
    %cst_156 = arith.constant 5.000000e-01 : f32
    %455 = vector.broadcast %cst_156 : f32 to vector<8x384xf32>
    %456 = arith.addf %454, %455 : vector<8x384xf32>
    %457 = vector.extract_strided_slice %456 {offsets = [0, 0], sizes = [8, 128], strides = [1, 1]} : vector<8x384xf32> to vector<8x128xf32>
    %458 = vector.extract_strided_slice %456 {offsets = [0, 128], sizes = [8, 128], strides = [1, 1]} : vector<8x384xf32> to vector<8x128xf32>
    %459 = vector.extract_strided_slice %456 {offsets = [0, 256], sizes = [8, 128], strides = [1, 1]} : vector<8x384xf32> to vector<8x128xf32>
    %460 = vector.extract_strided_slice %448 {offsets = [0, 384], sizes = [8, 128], strides = [1, 1]} : vector<8x512xf32> to vector<8x128xf32>
    %461 = math.tanh %460 : vector<8x128xf32>
    %462 = arith.mulf %458, %440 : vector<8x128xf32>
    %463 = arith.mulf %457, %461 : vector<8x128xf32>
    %464 = arith.addf %462, %463 : vector<8x128xf32>
    %465 = math.tanh %464 : vector<8x128xf32>
    %466 = arith.mulf %459, %465 : vector<8x128xf32>
    %c16_157 = arith.constant 16 : index
    %c0_158 = arith.constant 0 : index
    %467 = vector.load %arg12[%c16_157, %c0_158] : memref<64x128xbf16, #tpu.memory_space<vmem>>, vector<8x128xbf16>
    %468 = arith.truncf %466 : vector<8x128xf32> to vector<8x128xbf16>
    %469 = tpu.concatenate %467, %468 in 1 : vector<8x128xbf16>, vector<8x128xbf16> -> vector<8x256xbf16>
    %cst_159 = arith.constant dense<0.000000e+00> : vector<8x512xf32>
    %470 = tpu.matmul %469, %415, %cst_159 {dimension_numbers = #tpu.dot_dimension_numbers<[1], [0], [0], [1], [0, 0, 1, 1], [], []>} : vector<8x256xbf16>, vector<256x512xbf16>, vector<8x512xf32> -> vector<8x512xf32>
    %471 = vector.broadcast %416 : vector<1x512xf32> to vector<8x512xf32>
    %472 = arith.addf %470, %471 : vector<8x512xf32>
    %473 = vector.extract_strided_slice %472 {offsets = [0, 0], sizes = [8, 384], strides = [1, 1]} : vector<8x512xf32> to vector<8x384xf32>
    %cst_160 = arith.constant 5.000000e-01 : f32
    %474 = vector.broadcast %cst_160 : f32 to vector<8x384xf32>
    %475 = arith.mulf %474, %473 : vector<8x384xf32>
    %476 = math.tanh %475 : vector<8x384xf32>
    %cst_161 = arith.constant 5.000000e-01 : f32
    %477 = vector.broadcast %cst_161 : f32 to vector<8x384xf32>
    %478 = arith.mulf %477, %476 : vector<8x384xf32>
    %cst_162 = arith.constant 5.000000e-01 : f32
    %479 = vector.broadcast %cst_162 : f32 to vector<8x384xf32>
    %480 = arith.addf %478, %479 : vector<8x384xf32>
    %481 = vector.extract_strided_slice %480 {offsets = [0, 0], sizes = [8, 128], strides = [1, 1]} : vector<8x384xf32> to vector<8x128xf32>
    %482 = vector.extract_strided_slice %480 {offsets = [0, 128], sizes = [8, 128], strides = [1, 1]} : vector<8x384xf32> to vector<8x128xf32>
    %483 = vector.extract_strided_slice %480 {offsets = [0, 256], sizes = [8, 128], strides = [1, 1]} : vector<8x384xf32> to vector<8x128xf32>
    %484 = vector.extract_strided_slice %472 {offsets = [0, 384], sizes = [8, 128], strides = [1, 1]} : vector<8x512xf32> to vector<8x128xf32>
    %485 = math.tanh %484 : vector<8x128xf32>
    %486 = arith.mulf %482, %464 : vector<8x128xf32>
    %487 = arith.mulf %481, %485 : vector<8x128xf32>
    %488 = arith.addf %486, %487 : vector<8x128xf32>
    %489 = math.tanh %488 : vector<8x128xf32>
    %490 = arith.mulf %483, %489 : vector<8x128xf32>
    %c24_163 = arith.constant 24 : index
    %c0_164 = arith.constant 0 : index
    %491 = vector.load %arg12[%c24_163, %c0_164] : memref<64x128xbf16, #tpu.memory_space<vmem>>, vector<8x128xbf16>
    %492 = arith.truncf %490 : vector<8x128xf32> to vector<8x128xbf16>
    %493 = tpu.concatenate %491, %492 in 1 : vector<8x128xbf16>, vector<8x128xbf16> -> vector<8x256xbf16>
    %cst_165 = arith.constant dense<0.000000e+00> : vector<8x512xf32>
    %494 = tpu.matmul %493, %415, %cst_165 {dimension_numbers = #tpu.dot_dimension_numbers<[1], [0], [0], [1], [0, 0, 1, 1], [], []>} : vector<8x256xbf16>, vector<256x512xbf16>, vector<8x512xf32> -> vector<8x512xf32>
    %495 = vector.broadcast %416 : vector<1x512xf32> to vector<8x512xf32>
    %496 = arith.addf %494, %495 : vector<8x512xf32>
    %497 = vector.extract_strided_slice %496 {offsets = [0, 0], sizes = [8, 384], strides = [1, 1]} : vector<8x512xf32> to vector<8x384xf32>
    %cst_166 = arith.constant 5.000000e-01 : f32
    %498 = vector.broadcast %cst_166 : f32 to vector<8x384xf32>
    %499 = arith.mulf %498, %497 : vector<8x384xf32>
    %500 = math.tanh %499 : vector<8x384xf32>
    %cst_167 = arith.constant 5.000000e-01 : f32
    %501 = vector.broadcast %cst_167 : f32 to vector<8x384xf32>
    %502 = arith.mulf %501, %500 : vector<8x384xf32>
    %cst_168 = arith.constant 5.000000e-01 : f32
    %503 = vector.broadcast %cst_168 : f32 to vector<8x384xf32>
    %504 = arith.addf %502, %503 : vector<8x384xf32>
    %505 = vector.extract_strided_slice %504 {offsets = [0, 0], sizes = [8, 128], strides = [1, 1]} : vector<8x384xf32> to vector<8x128xf32>
    %506 = vector.extract_strided_slice %504 {offsets = [0, 128], sizes = [8, 128], strides = [1, 1]} : vector<8x384xf32> to vector<8x128xf32>
    %507 = vector.extract_strided_slice %504 {offsets = [0, 256], sizes = [8, 128], strides = [1, 1]} : vector<8x384xf32> to vector<8x128xf32>
    %508 = vector.extract_strided_slice %496 {offsets = [0, 384], sizes = [8, 128], strides = [1, 1]} : vector<8x512xf32> to vector<8x128xf32>
    %509 = math.tanh %508 : vector<8x128xf32>
    %510 = arith.mulf %506, %488 : vector<8x128xf32>
    %511 = arith.mulf %505, %509 : vector<8x128xf32>
    %512 = arith.addf %510, %511 : vector<8x128xf32>
    %513 = math.tanh %512 : vector<8x128xf32>
    %514 = arith.mulf %507, %513 : vector<8x128xf32>
    %c32_169 = arith.constant 32 : index
    %c0_170 = arith.constant 0 : index
    %515 = vector.load %arg12[%c32_169, %c0_170] : memref<64x128xbf16, #tpu.memory_space<vmem>>, vector<8x128xbf16>
    %516 = arith.truncf %514 : vector<8x128xf32> to vector<8x128xbf16>
    %517 = tpu.concatenate %515, %516 in 1 : vector<8x128xbf16>, vector<8x128xbf16> -> vector<8x256xbf16>
    %cst_171 = arith.constant dense<0.000000e+00> : vector<8x512xf32>
    %518 = tpu.matmul %517, %415, %cst_171 {dimension_numbers = #tpu.dot_dimension_numbers<[1], [0], [0], [1], [0, 0, 1, 1], [], []>} : vector<8x256xbf16>, vector<256x512xbf16>, vector<8x512xf32> -> vector<8x512xf32>
    %519 = vector.broadcast %416 : vector<1x512xf32> to vector<8x512xf32>
    %520 = arith.addf %518, %519 : vector<8x512xf32>
    %521 = vector.extract_strided_slice %520 {offsets = [0, 0], sizes = [8, 384], strides = [1, 1]} : vector<8x512xf32> to vector<8x384xf32>
    %cst_172 = arith.constant 5.000000e-01 : f32
    %522 = vector.broadcast %cst_172 : f32 to vector<8x384xf32>
    %523 = arith.mulf %522, %521 : vector<8x384xf32>
    %524 = math.tanh %523 : vector<8x384xf32>
    %cst_173 = arith.constant 5.000000e-01 : f32
    %525 = vector.broadcast %cst_173 : f32 to vector<8x384xf32>
    %526 = arith.mulf %525, %524 : vector<8x384xf32>
    %cst_174 = arith.constant 5.000000e-01 : f32
    %527 = vector.broadcast %cst_174 : f32 to vector<8x384xf32>
    %528 = arith.addf %526, %527 : vector<8x384xf32>
    %529 = vector.extract_strided_slice %528 {offsets = [0, 0], sizes = [8, 128], strides = [1, 1]} : vector<8x384xf32> to vector<8x128xf32>
    %530 = vector.extract_strided_slice %528 {offsets = [0, 128], sizes = [8, 128], strides = [1, 1]} : vector<8x384xf32> to vector<8x128xf32>
    %531 = vector.extract_strided_slice %528 {offsets = [0, 256], sizes = [8, 128], strides = [1, 1]} : vector<8x384xf32> to vector<8x128xf32>
    %532 = vector.extract_strided_slice %520 {offsets = [0, 384], sizes = [8, 128], strides = [1, 1]} : vector<8x512xf32> to vector<8x128xf32>
    %533 = math.tanh %532 : vector<8x128xf32>
    %534 = arith.mulf %530, %512 : vector<8x128xf32>
    %535 = arith.mulf %529, %533 : vector<8x128xf32>
    %536 = arith.addf %534, %535 : vector<8x128xf32>
    %537 = math.tanh %536 : vector<8x128xf32>
    %538 = arith.mulf %531, %537 : vector<8x128xf32>
    %c40_175 = arith.constant 40 : index
    %c0_176 = arith.constant 0 : index
    %539 = vector.load %arg12[%c40_175, %c0_176] : memref<64x128xbf16, #tpu.memory_space<vmem>>, vector<8x128xbf16>
    %540 = arith.truncf %538 : vector<8x128xf32> to vector<8x128xbf16>
    %541 = tpu.concatenate %539, %540 in 1 : vector<8x128xbf16>, vector<8x128xbf16> -> vector<8x256xbf16>
    %cst_177 = arith.constant dense<0.000000e+00> : vector<8x512xf32>
    %542 = tpu.matmul %541, %415, %cst_177 {dimension_numbers = #tpu.dot_dimension_numbers<[1], [0], [0], [1], [0, 0, 1, 1], [], []>} : vector<8x256xbf16>, vector<256x512xbf16>, vector<8x512xf32> -> vector<8x512xf32>
    %543 = vector.broadcast %416 : vector<1x512xf32> to vector<8x512xf32>
    %544 = arith.addf %542, %543 : vector<8x512xf32>
    %545 = vector.extract_strided_slice %544 {offsets = [0, 0], sizes = [8, 384], strides = [1, 1]} : vector<8x512xf32> to vector<8x384xf32>
    %cst_178 = arith.constant 5.000000e-01 : f32
    %546 = vector.broadcast %cst_178 : f32 to vector<8x384xf32>
    %547 = arith.mulf %546, %545 : vector<8x384xf32>
    %548 = math.tanh %547 : vector<8x384xf32>
    %cst_179 = arith.constant 5.000000e-01 : f32
    %549 = vector.broadcast %cst_179 : f32 to vector<8x384xf32>
    %550 = arith.mulf %549, %548 : vector<8x384xf32>
    %cst_180 = arith.constant 5.000000e-01 : f32
    %551 = vector.broadcast %cst_180 : f32 to vector<8x384xf32>
    %552 = arith.addf %550, %551 : vector<8x384xf32>
    %553 = vector.extract_strided_slice %552 {offsets = [0, 0], sizes = [8, 128], strides = [1, 1]} : vector<8x384xf32> to vector<8x128xf32>
    %554 = vector.extract_strided_slice %552 {offsets = [0, 128], sizes = [8, 128], strides = [1, 1]} : vector<8x384xf32> to vector<8x128xf32>
    %555 = vector.extract_strided_slice %552 {offsets = [0, 256], sizes = [8, 128], strides = [1, 1]} : vector<8x384xf32> to vector<8x128xf32>
    %556 = vector.extract_strided_slice %544 {offsets = [0, 384], sizes = [8, 128], strides = [1, 1]} : vector<8x512xf32> to vector<8x128xf32>
    %557 = math.tanh %556 : vector<8x128xf32>
    %558 = arith.mulf %554, %536 : vector<8x128xf32>
    %559 = arith.mulf %553, %557 : vector<8x128xf32>
    %560 = arith.addf %558, %559 : vector<8x128xf32>
    %561 = math.tanh %560 : vector<8x128xf32>
    %562 = arith.mulf %555, %561 : vector<8x128xf32>
    %c48_181 = arith.constant 48 : index
    %c0_182 = arith.constant 0 : index
    %563 = vector.load %arg12[%c48_181, %c0_182] : memref<64x128xbf16, #tpu.memory_space<vmem>>, vector<8x128xbf16>
    %564 = arith.truncf %562 : vector<8x128xf32> to vector<8x128xbf16>
    %565 = tpu.concatenate %563, %564 in 1 : vector<8x128xbf16>, vector<8x128xbf16> -> vector<8x256xbf16>
    %cst_183 = arith.constant dense<0.000000e+00> : vector<8x512xf32>
    %566 = tpu.matmul %565, %415, %cst_183 {dimension_numbers = #tpu.dot_dimension_numbers<[1], [0], [0], [1], [0, 0, 1, 1], [], []>} : vector<8x256xbf16>, vector<256x512xbf16>, vector<8x512xf32> -> vector<8x512xf32>
    %567 = vector.broadcast %416 : vector<1x512xf32> to vector<8x512xf32>
    %568 = arith.addf %566, %567 : vector<8x512xf32>
    %569 = vector.extract_strided_slice %568 {offsets = [0, 0], sizes = [8, 384], strides = [1, 1]} : vector<8x512xf32> to vector<8x384xf32>
    %cst_184 = arith.constant 5.000000e-01 : f32
    %570 = vector.broadcast %cst_184 : f32 to vector<8x384xf32>
    %571 = arith.mulf %570, %569 : vector<8x384xf32>
    %572 = math.tanh %571 : vector<8x384xf32>
    %cst_185 = arith.constant 5.000000e-01 : f32
    %573 = vector.broadcast %cst_185 : f32 to vector<8x384xf32>
    %574 = arith.mulf %573, %572 : vector<8x384xf32>
    %cst_186 = arith.constant 5.000000e-01 : f32
    %575 = vector.broadcast %cst_186 : f32 to vector<8x384xf32>
    %576 = arith.addf %574, %575 : vector<8x384xf32>
    %577 = vector.extract_strided_slice %576 {offsets = [0, 0], sizes = [8, 128], strides = [1, 1]} : vector<8x384xf32> to vector<8x128xf32>
    %578 = vector.extract_strided_slice %576 {offsets = [0, 128], sizes = [8, 128], strides = [1, 1]} : vector<8x384xf32> to vector<8x128xf32>
    %579 = vector.extract_strided_slice %576 {offsets = [0, 256], sizes = [8, 128], strides = [1, 1]} : vector<8x384xf32> to vector<8x128xf32>
    %580 = vector.extract_strided_slice %568 {offsets = [0, 384], sizes = [8, 128], strides = [1, 1]} : vector<8x512xf32> to vector<8x128xf32>
    %581 = math.tanh %580 : vector<8x128xf32>
    %582 = arith.mulf %578, %560 : vector<8x128xf32>
    %583 = arith.mulf %577, %581 : vector<8x128xf32>
    %584 = arith.addf %582, %583 : vector<8x128xf32>
    %585 = math.tanh %584 : vector<8x128xf32>
    %586 = arith.mulf %579, %585 : vector<8x128xf32>
    %c56_187 = arith.constant 56 : index
    %c0_188 = arith.constant 0 : index
    %587 = vector.load %arg12[%c56_187, %c0_188] : memref<64x128xbf16, #tpu.memory_space<vmem>>, vector<8x128xbf16>
    %588 = arith.truncf %586 : vector<8x128xf32> to vector<8x128xbf16>
    %589 = tpu.concatenate %587, %588 in 1 : vector<8x128xbf16>, vector<8x128xbf16> -> vector<8x256xbf16>
    %cst_189 = arith.constant dense<0.000000e+00> : vector<8x512xf32>
    %590 = tpu.matmul %589, %415, %cst_189 {dimension_numbers = #tpu.dot_dimension_numbers<[1], [0], [0], [1], [0, 0, 1, 1], [], []>} : vector<8x256xbf16>, vector<256x512xbf16>, vector<8x512xf32> -> vector<8x512xf32>
    %591 = vector.broadcast %416 : vector<1x512xf32> to vector<8x512xf32>
    %592 = arith.addf %590, %591 : vector<8x512xf32>
    %593 = vector.extract_strided_slice %592 {offsets = [0, 0], sizes = [8, 384], strides = [1, 1]} : vector<8x512xf32> to vector<8x384xf32>
    %cst_190 = arith.constant 5.000000e-01 : f32
    %594 = vector.broadcast %cst_190 : f32 to vector<8x384xf32>
    %595 = arith.mulf %594, %593 : vector<8x384xf32>
    %596 = math.tanh %595 : vector<8x384xf32>
    %cst_191 = arith.constant 5.000000e-01 : f32
    %597 = vector.broadcast %cst_191 : f32 to vector<8x384xf32>
    %598 = arith.mulf %597, %596 : vector<8x384xf32>
    %cst_192 = arith.constant 5.000000e-01 : f32
    %599 = vector.broadcast %cst_192 : f32 to vector<8x384xf32>
    %600 = arith.addf %598, %599 : vector<8x384xf32>
    %601 = vector.extract_strided_slice %600 {offsets = [0, 0], sizes = [8, 128], strides = [1, 1]} : vector<8x384xf32> to vector<8x128xf32>
    %602 = vector.extract_strided_slice %600 {offsets = [0, 128], sizes = [8, 128], strides = [1, 1]} : vector<8x384xf32> to vector<8x128xf32>
    %603 = vector.extract_strided_slice %600 {offsets = [0, 256], sizes = [8, 128], strides = [1, 1]} : vector<8x384xf32> to vector<8x128xf32>
    %604 = vector.extract_strided_slice %592 {offsets = [0, 384], sizes = [8, 128], strides = [1, 1]} : vector<8x512xf32> to vector<8x128xf32>
    %605 = math.tanh %604 : vector<8x128xf32>
    %606 = arith.mulf %602, %584 : vector<8x128xf32>
    %607 = arith.mulf %601, %605 : vector<8x128xf32>
    %608 = arith.addf %606, %607 : vector<8x128xf32>
    %609 = math.tanh %608 : vector<8x128xf32>
    %610 = arith.mulf %603, %609 : vector<8x128xf32>
    %c0_193 = arith.constant 0 : index
    %c0_194 = arith.constant 0 : index
    %611 = vector.load %arg9[%c0_193, %c0_194] : memref<128x128xbf16, #tpu.memory_space<vmem>>, vector<128x128xbf16>
    %612 = arith.truncf %610 : vector<8x128xf32> to vector<8x128xbf16>
    %cst_195 = arith.constant dense<0.000000e+00> : vector<8x128xf32>
    %613 = tpu.matmul %612, %611, %cst_195 {dimension_numbers = #tpu.dot_dimension_numbers<[1], [0], [0], [1], [0, 0, 1, 1], [], []>} : vector<8x128xbf16>, vector<128x128xbf16>, vector<8x128xf32> -> vector<8x128xf32>
    %c0_196 = arith.constant 0 : index
    %c0_197 = arith.constant 0 : index
    %614 = vector.load %arg10[%c0_196, %c0_197] : memref<1x128xf32, #tpu.memory_space<vmem>>, vector<1x128xf32>
    %615 = vector.broadcast %614 : vector<1x128xf32> to vector<8x128xf32>
    %616 = arith.addf %613, %615 : vector<8x128xf32>
    %cst_198 = arith.constant 0.000000e+00 : f32
    %617 = vector.broadcast %cst_198 : f32 to vector<8x128xf32>
    %618 = arith.maximumf %616, %617 : vector<8x128xf32>
    %c0_199 = arith.constant 0 : index
    %c0_200 = arith.constant 0 : index
    %619 = vector.load %arg11[%c0_199, %c0_200] : memref<8x128xf32, #tpu.memory_space<vmem>>, vector<8x128xf32>
    tpu.vector_store %arg11[%c0_199, %c0_200], %618 {strides = array<i32>} : memref<8x128xf32, #tpu.memory_space<vmem>>, vector<8x128xf32>,
    return
  }
  func.func @transform_0(%arg0: i32) -> (i32, i32, i32) {
    %c0_i32 = arith.constant 0 : i32
    %c0_i32_0 = arith.constant 0 : i32
    %c0_i32_1 = arith.constant 0 : i32
    return %c0_i32, %arg0, %c0_i32_0 : i32, i32, i32
  }
  func.func @transform_1(%arg0: i32) -> (i32, i32) {
    %c0_i32 = arith.constant 0 : i32
    %c0_i32_0 = arith.constant 0 : i32
    %c0_i32_1 = arith.constant 0 : i32
    return %c0_i32, %c0_i32_0 : i32, i32
  }
  func.func @transform_2(%arg0: i32) -> (i32, i32) {
    %c0_i32 = arith.constant 0 : i32
    %c0_i32_0 = arith.constant 0 : i32
    %c0_i32_1 = arith.constant 0 : i32
    return %c0_i32, %c0_i32_0 : i32, i32
  }
  func.func @transform_3(%arg0: i32) -> (i32, i32) {
    %c0_i32 = arith.constant 0 : i32
    %c0_i32_0 = arith.constant 0 : i32
    %c0_i32_1 = arith.constant 0 : i32
    return %c0_i32, %c0_i32_0 : i32, i32
  }
  func.func @transform_4(%arg0: i32) -> (i32, i32) {
    %c0_i32 = arith.constant 0 : i32
    %c0_i32_0 = arith.constant 0 : i32
    %c0_i32_1 = arith.constant 0 : i32
    return %c0_i32, %c0_i32_0 : i32, i32
  }
  func.func @transform_5(%arg0: i32) -> (i32, i32) {
    %c0_i32 = arith.constant 0 : i32
    %c0_i32_0 = arith.constant 0 : i32
    %c0_i32_1 = arith.constant 0 : i32
    return %c0_i32, %c0_i32_0 : i32, i32
  }
  func.func @transform_6(%arg0: i32) -> (i32, i32) {
    %c0_i32 = arith.constant 0 : i32
    %c0_i32_0 = arith.constant 0 : i32
    %c0_i32_1 = arith.constant 0 : i32
    return %c0_i32, %c0_i32_0 : i32, i32
  }
  func.func @transform_7(%arg0: i32) -> (i32, i32) {
    %c0_i32 = arith.constant 0 : i32
    %c0_i32_0 = arith.constant 0 : i32
    %c0_i32_1 = arith.constant 0 : i32
    return %c0_i32, %c0_i32_0 : i32, i32
  }
  func.func @transform_8(%arg0: i32) -> (i32, i32) {
    %c0_i32 = arith.constant 0 : i32
    %c0_i32_0 = arith.constant 0 : i32
    %c0_i32_1 = arith.constant 0 : i32
    return %c0_i32, %c0_i32_0 : i32, i32
  }
  func.func @transform_9(%arg0: i32) -> (i32, i32) {
    %c0_i32 = arith.constant 0 : i32
    %c0_i32_0 = arith.constant 0 : i32
    %c0_i32_1 = arith.constant 0 : i32
    return %c0_i32, %c0_i32_0 : i32, i32
  }
  func.func @transform_10(%arg0: i32) -> (i32, i32) {
    %c0_i32 = arith.constant 0 : i32
    %c0_i32_0 = arith.constant 0 : i32
    return %arg0, %c0_i32 : i32, i32
  }
}

</mosaic_0001>

<bundles_post_ra>
// kernel: lstm_model_forward.1
= control target key start
LH: loop header
LB: loop body
LE: loop exit
PB: predicated region body
PF: predicated region fallthrough
CT: control target
= control target key end

     0   :  { %s8602_s0 = inlined_call_operand.vmem [shape: bf16[8,16,128], index: 0, kind: input, shape index: {}]   ;;  %s8603_s1 = inlined_call_operand.hbm [shape: bf16[128,512], index: 1, kind: input, shape index: {}]   ;;  %s8604_s2 = inlined_call_operand.hbm [shape: bf16[128,512], index: 2, kind: input, shape index: {}]   ;;  %s8605_s3 = inlined_call_operand.vmem [shape: f32[1,512], index: 3, kind: input, shape index: {}]   ;;  %s8606_s4 = inlined_call_operand.hbm [shape: bf16[256,512], index: 4, kind: input, shape index: {}]   ;;  %s8607_s5 = inlined_call_operand.vmem [shape: f32[1,512], index: 5, kind: input, shape index: {}]   ;;  %s8608_s6 = inlined_call_operand.hbm [shape: bf16[256,512], index: 6, kind: input, shape index: {}]   ;;  %s8609_s7 = inlined_call_operand.vmem [shape: f32[1,512], index: 7, kind: input, shape index: {}]   ;;  %s8610_s8 = inlined_call_operand.vmem [shape: bf16[128,128], index: 8, kind: input, shape index: {}]   ;;  %s8611_s9 = inlined_call_operand.vmem [shape: f32[1,128], index: 9, kind: input, shape index: {}]   ;;  %s8612_s10 = inlined_call_operand.hbm [shape: f32[16,128], index: 10, kind: output, shape index: {}]  }
   0x1   :  { %8717 = sst [smem:[#allocation79_spill]] %s8603_s1 }
   0x2   :  { %8718 = sst [smem:[#allocation80_spill]] %s8604_s2 }
   0x3   :  { %15 = vsyncpa [#allocation6], 0 }
   0x4   :  { %16 = vsyncpa [#allocation9], 0 }
   0x5   :  { %17 = vsyncpa [#allocation12], 0 }
   0x6   :  { %18 = vsyncpa [#allocation7], 0 }
   0x7   :  { %20 = vsyncpa [#allocation7 + $0x1], 0  ;;  %s6318_s13 = smov 0   ;;  %s6320_s14 = smov 0  }
   0x8   :  { %s6322_s15 = smov 0   ;;  %s6324_s16 = smov 0  }
   0x9 LB: > { %8719 = sst [smem:[#allocation18_spill]] %s6242_s13  ;;  %s6339_s17 = sadd.s32 4294967295, %s6254_s16   ;;  %s6254_s16 = sphi %s6324_s16, %s9081_s16   ;;  %s6250_s15 = sphi %s6322_s15, %s9085_s15   ;;  %s6246_s14 = sphi %s6320_s14, %s9084_s14   ;;  %s6242_s13 = sphi %s6318_s13, %s9083_s13  }
   0xa   : > { %s4696_s18 = sadd.s32 4294967294, %s6254_s16   ;;  %s6343_s19 = sadd.s32 1, %s6254_s16  }
   0xb   : > { %8720 = sst [smem:[#allocation19_spill]] %s6343_s19  ;;  %s33_s20 = sadd.s32 1, %s6250_s15 }
   0xc   : > { %s30_s21 = ssub.s32 %s6254_s16, %s6343_s19  ;;  %p40_p0 = scmp.ne.s32.totalorder %s6250_s15, %s6246_s14 }
   0xd   : > { %p31_p1 = scmp.eq.s32.totalorder %s30_s21, 0  ;;  %p41_p2 = scmp.eq.s32.totalorder %s6254_s16, 0 }
   0xe   : > { %p259_p3 = scmp.eq.s32.totalorder %s6339_s17, 1  ;;  %p264_p4 = scmp.ne.s32.totalorder %s6246_s14, %s6242_s13 }
   0xf   : > { %s6355_s22 = scalar_select %p31_p1, %s6250_s15, %s33_s20  }
  0x10   : > { %p6357_p5 = por %p41_p2, %p40_p0  ;;  %p6361_p6 = por %p259_p3, %p40_p0 }
  0x11   : > { %8721 = sst [smem:[#allocation20_spill]] %s6355_s22  ;;  %p265_p7 = scmp.eq.s32.totalorder %s4696_s18, 1 }
  0x12   : > { %s8723_s24 = scalar_select %p6361_p6, 1, 0 }
  0x13   : > { %p4697_p8 = scmp.ge.s32.totalorder %s6254_s16, 1  ;;  %p272_p9 = scmp.lt.s32.totalorder %s6254_s16, 3 }
  0x14   : > { %8724 = sst [smem:[#allocation21_spill]] %s8723_s24  ;;  %p6367_p10 = por %p265_p7, %p264_p4 }
  0x15   : > { %p5771_p11 = scmp.eq.s32.totalorder %s6339_s17, 0  ;;  %p6372_p12 = pnand %p4697_p8, %p272_p9 }
  0x16   : > { %s8725_s25 = scalar_select %p6367_p10, 1, 0 }
  0x17   : > { %s8728_s2 = sld [smem:[#allocation80_spill]]  ;;  %p5754_p13 = pneg %p6372_p12 }
  0x18   : > { %8726 = sst [smem:[#allocation22_spill]] %s8725_s25  ;;  %s6256_s20 = smov [#allocation8]  }
  0x19   : > { %s8729_s1 = sld [smem:[#allocation79_spill]]  ;;  %p6386_p0 = pnand %p5771_p11, %p5754_p13 }
  0x1a   : > { %s299_s21 = sshll.u32 %s6256_s20, 4  ;;  %s6257_s27 = smov 256   ;;  %s300_s21 = int_to_ptr.vmem [resolvable:$true] %s299_s21 }
  0x1b   : > { %s6258_s28 = smov 16   ;;  %s314_s22 = sshll.u32 %s8606_s4, 4  ;;  %s315_s22 = int_to_ptr.hbm [resolvable:$true] %s314_s22 }
  0x1c   : > { %s331_s25 = sshll.u32 %s8608_s6, 4  ;;  %s6260_s13 = smov [#allocation10]   ;;  %s332_s25 = int_to_ptr.hbm [resolvable:$true] %s331_s25 }
  0x1d   : > { %s297_s29 = sshll.u32 %s8728_s2, 4  ;;  %s6259_s2 = smov [#allocation5]   ;;  %s298_s29 = int_to_ptr.hbm [resolvable:$true] %s297_s29 }
  0x1e   : > { %5760 = dma.hbm_to_vmem [thread:$0]  (!%p6386_p0), %s298_s29, 4096, %s300_s21, [#allocation9], %s6257_s27, %s6257_s27, %s6258_s28  }
  0x1f   : > { %s283_s12 = sshll.u32 %s8729_s1, 4  ;;  %s285_s30 = sshll.u32 %s6259_s2, 4  ;;  %s284_s12 = int_to_ptr.hbm [resolvable:$true] %s283_s12  ;;  %s286_s30 = int_to_ptr.vmem [resolvable:$true] %s285_s30 }
  0x20   : > { %5757 = dma.hbm_to_vmem [thread:$0]  (!%p6386_p0), %s284_s12, 4096, %s286_s30, [#allocation6], %s6257_s27, %s6257_s27, %s6258_s28  }
  0x21   : > { %s316_s24 = sshll.u32 %s6260_s13, 4  ;;  %s6261_s29 = smov [#allocation11]   ;;  %s317_s24 = int_to_ptr.vmem [resolvable:$true] %s316_s24 }
  0x22   : > { %5763 = dma.hbm_to_vmem [thread:$0]  (!%p6386_p0), %s315_s22, 8192, %s317_s24, [#allocation9], %s6257_s27, %s6257_s27, %s6258_s28  }
  0x23   : > { %s333_s2 = sshll.u32 %s6261_s29, 4  ;;  %p4702_p1 = scmp.ge.s32.totalorder %s6254_s16, 2  ;;  %s334_s2 = int_to_ptr.vmem [resolvable:$true] %s333_s2 }
  0x24   : > { %5766 = dma.hbm_to_vmem [thread:$0]  (!%p6386_p0), %s332_s25, 8192, %s334_s2, [#allocation12], %s6257_s27, %s6257_s27, %s6258_s28  }
  0x25   : > { %352 = sbr.rel (%p4702_p1) target bundleno = 54 (0x36), region = 52 }
  0x2a   : > { %355 = sbr.rel (!%p6357_p5) target bundleno = 54 (0x36), region = 56  ;;  %s357_s1 = sand.u32 (%p6357_p5), 1, %s6250_s15  }
  0x2b   : > { %s4704_s13 = sshll.u32 (%p6357_p5), %s6254_s16, 2  ;;  %s4703_s19 = sshll.u32 (%p6357_p5), %s357_s1, 5 }
  0x2c   : > { %s361_s24 = scalar_lea.vmem (%p6357_p5), %s8602_s0, %s4704_s13  ;;  %s359_s25 = scalar_lea.vmem (%p6357_p5), [#allocation4], %s4703_s19 }
  0x2d   : > { %v378_v0 = vld [vmem:[%s361_s24] sm:$0xf] (%p6357_p5)  ;;  %v380_v1 = vld [vmem:[%s361_s24 + $0x8] sm:$0xf] (%p6357_p5)  ;;  %v382_v2 = vld [vmem:[%s361_s24 + $0x10] sm:$0xf] (%p6357_p5) }
  0x2e   : > { %379 = vst [vmem:[%s359_s25] sm:$0xf] (%p6357_p5), %v378_v0  ;;  %v384_v3 = vld [vmem:[%s361_s24 + $0x18] sm:$0xf] (%p6357_p5)  ;;  %v386_v4 = vld [vmem:[%s361_s24 + $0x20] sm:$0xf] (%p6357_p5) }
  0x2f   : > { %381 = vst [vmem:[%s359_s25 + $0x4] sm:$0xf] %v380_v1  ;;  %v388_v5 = vld [vmem:[%s361_s24 + $0x28] sm:$0xf]  ;;  %v390_v6 = vld [vmem:[%s361_s24 + $0x30] sm:$0xf] }
  0x30   : > { %383 = vst [vmem:[%s359_s25 + $0x8] sm:$0xf] %v382_v2  ;;  %v392_v7 = vld [vmem:[%s361_s24 + $0x38] sm:$0xf] }
  0x31   : > { %385 = vst [vmem:[%s359_s25 + $0xc] sm:$0xf] %v384_v3 }
  0x32   : > { %387 = vst [vmem:[%s359_s25 + $0x10] sm:$0xf] %v386_v4 }
  0x33   : > { %389 = vst [vmem:[%s359_s25 + $0x14] sm:$0xf] %v388_v5 }
  0x34   : > { %391 = vst [vmem:[%s359_s25 + $0x18] sm:$0xf] %v390_v6 }
  0x35   : > { %393 = vst [vmem:[%s359_s25 + $0x1c] sm:$0xf] %v392_v7 }
  0x36 PF: > { %436 = sbr.rel (%p6372_p12) target bundleno = 4103 (0x1007), region = 97 }
  0x3b   : > { %s6417_s23 = sand.u32 1, %s6246_s14  }
  0x3c   : > { %s4706_s18 = sshll.u32 %s6417_s23, 5 }
  0x3d   : > { %s6420_s21 = scalar_lea.vmem [#allocation4], %s4706_s18 }
  0x3e   : > { %6225 = dma.done.wait (%p5771_p11), [#allocation6], 4096  }
  0x3f   : > { %6227 = vsyncadd (%p5771_p11), [#allocation6], 4294963200 }
  0x40   : > { %6229 = dma.done.wait (%p5771_p11), [#allocation9], 12288  }
  0x41   : > { %6231 = vsyncadd (%p5771_p11), [#allocation9], 4294955008 }
  0x42   : > { %6233 = dma.done.wait (%p5771_p11), [#allocation12], 8192  }
  0x43   : > { %6235 = vsyncadd (%p5771_p11), [#allocation12], 4294959104  ;;  %v4842_v8 = vld [vmem:[#allocation5 + $0xe0] sm:$0xf]  ;;  %v5566_v9 = vld [vmem:[#allocation5 + $0xec] sm:$0xf0] }
  0x44   : > { %v5564_v10 = vld [vmem:[#allocation5 + $0xe4] sm:$0xf]  ;;  %v4843_v11 = vor.u32 %v5566_v9, %v4842_v8  ;;  %v4844_v12 = vld [vmem:[#allocation5 + $0xf0] sm:$0xf0]  ;;  %v4850_v13 = vld [vmem:[#allocation5 + $0xe8] sm:$0xf] }
  0x45   : > { %v5567_v14 = vld [vmem:[#allocation5 + $0xf4] sm:$0xf0]  ;;  %v4847_v15 = vor.u32 %v5564_v10, %v4844_v12  ;;  %v5565_v17 = vld [vmem:[#allocation5 + $0xec] sm:$0xf]  ;;  %v4852_v18 = vld [vmem:[#allocation5 + $0xf8] sm:$0xf0] }
  0x46   : > { %v4851_v16 = vor.u32 %v5567_v14, %v4850_v13  ;;  %v4826_v19 = vld [vmem:[#allocation5 + $0xc0] sm:$0xf]  ;;  %731 = vmatpush.bf16.msra.mxu0 %v4843_v11  ;;  %v4855_v20 = vor.u32 %v5565_v17, %v4852_v18  ;;  %v5562_v21 = vld [vmem:[#allocation5 + $0xcc] sm:$0xf0]  ;;  %v5560_v22 = vld [vmem:[#allocation5 + $0xc4] sm:$0xf] }
  0x47   : > { %v4828_v23 = vld [vmem:[#allocation5 + $0xd0] sm:$0xf0]  ;;  %760 = vmatpush.bf16.msra.mxu1 %v4847_v15  ;;  %v4827_v24 = vor.u32 %v5562_v21, %v4826_v19  ;;  %v4834_v26 = vld [vmem:[#allocation5 + $0xc8] sm:$0xf]  ;;  %v5563_v27 = vld [vmem:[#allocation5 + $0xd4] sm:$0xf0] }
  0x48   : > { %789 = vmatpush.bf16.msra.mxu2 %v4851_v16  ;;  %v4831_v25 = vor.u32 %v5560_v22, %v4828_v23  ;;  %v5561_v28 = vld [vmem:[#allocation5 + $0xcc] sm:$0xf]  ;;  %818 = vmatpush.bf16.msra.mxu3 %v4855_v20  ;;  %v4835_v29 = vor.u32 %v5563_v27, %v4834_v26  ;;  %v4836_v30 = vld [vmem:[#allocation5 + $0xd8] sm:$0xf0]  ;;  %v4810_v31 = vld [vmem:[#allocation5 + $0xa0] sm:$0xf] }
  0x49   : > { %v5558_v32 = vld [vmem:[#allocation5 + $0xac] sm:$0xf0]  ;;  %v4839_v33 = vor.u32 %v5561_v28, %v4836_v30  ;;  %v5556_v34 = vld [vmem:[#allocation5 + $0xa4] sm:$0xf]  ;;  %v4812_v35 = vld [vmem:[#allocation5 + $0xb0] sm:$0xf0] }
  0x4a   : > { %v4818_v36 = vld [vmem:[#allocation5 + $0xa8] sm:$0xf]  ;;  %732 = vmatpush.bf16.msra.mxu0 %v4827_v24  ;;  %v4811_v37 = vor.u32 %v5558_v32, %v4810_v31  ;;  %v5559_v38 = vld [vmem:[#allocation5 + $0xb4] sm:$0xf0]  ;;  %v5557_v39 = vld [vmem:[#allocation5 + $0xac] sm:$0xf]  ;;  %v4815_v41 = vor.u32 %v5556_v34, %v4812_v35 }
  0x4b   : > { %v4820_v40 = vld [vmem:[#allocation5 + $0xb8] sm:$0xf0]  ;;  %761 = vmatpush.bf16.msra.mxu1 %v4831_v25  ;;  %v4819_v42 = vor.u32 %v5559_v38, %v4818_v36  ;;  %v4794_v43 = vld [vmem:[#allocation5 + $0x80] sm:$0xf]  ;;  %v5554_v44 = vld [vmem:[#allocation5 + $0x8c] sm:$0xf0] }
  0x4c   : > { %790 = vmatpush.bf16.msra.mxu2 %v4835_v29  ;;  %v5552_v45 = vld [vmem:[#allocation5 + $0x84] sm:$0xf]  ;;  %819 = vmatpush.bf16.msra.mxu3 %v4839_v33  ;;  %v4823_v46 = vor.u32 %v5557_v39, %v4820_v40  ;;  %v4796_v47 = vld [vmem:[#allocation5 + $0x90] sm:$0xf0]  ;;  %v4802_v48 = vld [vmem:[#allocation5 + $0x88] sm:$0xf]  ;;  %v4795_v52 = vor.u32 %v5554_v44, %v4794_v43 }
  0x4d   : > { %v5555_v49 = vld [vmem:[#allocation5 + $0x94] sm:$0xf0]  ;;  %v5553_v50 = vld [vmem:[#allocation5 + $0x8c] sm:$0xf]  ;;  %v4804_v51 = vld [vmem:[#allocation5 + $0x98] sm:$0xf0]  ;;  %v4799_v53 = vor.u32 %v5552_v45, %v4796_v47 }
  0x4e   : > { %733 = vmatpush.bf16.msra.mxu0 %v4811_v37  ;;  %v4803_v54 = vor.u32 %v5555_v49, %v4802_v48  ;;  %v4778_v55 = vld [vmem:[#allocation5 + $0x60] sm:$0xf]  ;;  %v5550_v56 = vld [vmem:[#allocation5 + $0x6c] sm:$0xf0]  ;;  %v5548_v57 = vld [vmem:[#allocation5 + $0x64] sm:$0xf]  ;;  %v4807_v58 = vor.u32 %v5553_v50, %v4804_v51 }
  0x4f   : > { %762 = vmatpush.bf16.msra.mxu1 %v4815_v41  ;;  %v4780_v59 = vld [vmem:[#allocation5 + $0x70] sm:$0xf0]  ;;  %v4786_v60 = vld [vmem:[#allocation5 + $0x68] sm:$0xf]  ;;  %v5551_v61 = vld [vmem:[#allocation5 + $0x74] sm:$0xf0]  ;;  %v4779_v0 = vor.u32 %v5550_v56, %v4778_v55 }
  0x50   : > { %791 = vmatpush.bf16.msra.mxu2 %v4819_v42  ;;  %820 = vmatpush.bf16.msra.mxu3 %v4823_v46  ;;  %v5549_v62 = vld [vmem:[#allocation5 + $0x6c] sm:$0xf]  ;;  %v4788_v63 = vld [vmem:[#allocation5 + $0x78] sm:$0xf0]  ;;  %v4783_v1 = vor.u32 %v5548_v57, %v4780_v59  ;;  %v4787_v2 = vor.u32 %v5551_v61, %v4786_v60  ;;  %v4762_v3 = vld [vmem:[#allocation5 + $0x40] sm:$0xf] }
  0x51   : > { %v5546_v4 = vld [vmem:[#allocation5 + $0x4c] sm:$0xf0]  ;;  %v5544_v5 = vld [vmem:[#allocation5 + $0x44] sm:$0xf]  ;;  %v4791_v6 = vor.u32 %v5549_v62, %v4788_v63  ;;  %v4764_v7 = vld [vmem:[#allocation5 + $0x50] sm:$0xf0] }
  0x52   : > { %734 = vmatpush.bf16.msra.mxu0 %v4795_v52  ;;  %v4770_v8 = vld [vmem:[#allocation5 + $0x48] sm:$0xf]  ;;  %v5547_v9 = vld [vmem:[#allocation5 + $0x54] sm:$0xf0]  ;;  %v5545_v10 = vld [vmem:[#allocation5 + $0x4c] sm:$0xf]  ;;  %v4763_v12 = vor.u32 %v5546_v4, %v4762_v3  ;;  %v4767_v13 = vor.u32 %v5544_v5, %v4764_v7 }
  0x53   : > { %763 = vmatpush.bf16.msra.mxu1 %v4799_v53  ;;  %v4772_v11 = vld [vmem:[#allocation5 + $0x58] sm:$0xf0]  ;;  %v4771_v14 = vor.u32 %v5547_v9, %v4770_v8  ;;  %v4746_v15 = vld [vmem:[#allocation5 + $0x20] sm:$0xf]  ;;  %v5542_v16 = vld [vmem:[#allocation5 + $0x2c] sm:$0xf0] }
  0x54   : > { %792 = vmatpush.bf16.msra.mxu2 %v4803_v54  ;;  %821 = vmatpush.bf16.msra.mxu3 %v4807_v58  ;;  %v5540_v17 = vld [vmem:[#allocation5 + $0x24] sm:$0xf]  ;;  %v4775_v18 = vor.u32 %v5545_v10, %v4772_v11  ;;  %v4748_v19 = vld [vmem:[#allocation5 + $0x30] sm:$0xf0]  ;;  %v4754_v20 = vld [vmem:[#allocation5 + $0x28] sm:$0xf]  ;;  %v4747_v24 = vor.u32 %v5542_v16, %v4746_v15 }
  0x55   : > { %v5543_v21 = vld [vmem:[#allocation5 + $0x34] sm:$0xf0]  ;;  %v5541_v22 = vld [vmem:[#allocation5 + $0x2c] sm:$0xf]  ;;  %v4756_v23 = vld [vmem:[#allocation5 + $0x38] sm:$0xf0]  ;;  %v4751_v26 = vor.u32 %v5540_v17, %v4748_v19 }
  0x56   : > { %735 = vmatpush.bf16.msra.mxu0 %v4779_v0  ;;  %v4730_v25 = vld [vmem:[#allocation5] sm:$0xf]  ;;  %v4755_v27 = vor.u32 %v5543_v21, %v4754_v20  ;;  %v5538_v28 = vld [vmem:[#allocation5 + $0xc] sm:$0xf0]  ;;  %v5536_v29 = vld [vmem:[#allocation5 + $0x4] sm:$0xf]  ;;  %v4759_v31 = vor.u32 %v5541_v22, %v4756_v23 }
  0x57   : > { %764 = vmatpush.bf16.msra.mxu1 %v4783_v1  ;;  %v4732_v30 = vld [vmem:[#allocation5 + $0x10] sm:$0xf0]  ;;  %v4738_v32 = vld [vmem:[#allocation5 + $0x8] sm:$0xf]  ;;  %v5539_v33 = vld [vmem:[#allocation5 + $0x14] sm:$0xf0]  ;;  %v4731_v38 = vor.u32 %v5538_v28, %v4730_v25 }
  0x58   : > { %793 = vmatpush.bf16.msra.mxu2 %v4787_v2  ;;  %822 = vmatpush.bf16.msra.mxu3 %v4791_v6  ;;  %v5537_v34 = vld [vmem:[#allocation5 + $0xc] sm:$0xf]  ;;  %v4740_v35 = vld [vmem:[#allocation5 + $0x18] sm:$0xf0]  ;;  %v4970_v36 = vld [vmem:[#allocation8 + $0xe0] sm:$0xf]  ;;  %v4735_v41 = vor.u32 %v5536_v29, %v4732_v30  ;;  %v4739_v42 = vor.u32 %v5539_v33, %v4738_v32 }
  0x59   : > { %v5598_v37 = vld [vmem:[#allocation8 + $0xec] sm:$0xf0]  ;;  %v5596_v39 = vld [vmem:[#allocation8 + $0xe4] sm:$0xf]  ;;  %v4972_v40 = vld [vmem:[#allocation8 + $0xf0] sm:$0xf0]  ;;  %v4743_v45 = vor.u32 %v5537_v34, %v4740_v35 }
  0x5a   : > { %736 = vmatpush.bf16.msra.mxu0 %v4763_v12  ;;  %v5532_v43 = vld [vmem:[%s6420_s21] sm:$0xff]  ;;  %v5597_v44 = vld [vmem:[#allocation8 + $0xec] sm:$0xf]  ;;  %v6435_v46 = vor.u32 %v5598_v37, %v4970_v36  ;;  %v4978_v47 = vld [vmem:[#allocation8 + $0xe8] sm:$0xf]  ;;  %v6437_v49 = vor.u32 %v5596_v39, %v4972_v40  ;;  %s4711_s20 = sshll.u32 %s6417_s23, 3 }
  0x5b   : > { %765 = vmatpush.bf16.msra.mxu1 %v4767_v13  ;;  %v5599_v48 = vld [vmem:[#allocation8 + $0xf4] sm:$0xf0]  ;;  %v4980_v50 = vld [vmem:[#allocation8 + $0xf8] sm:$0xf0]  ;;  %v4954_v51 = vld [vmem:[#allocation8 + $0xc0] sm:$0xf] }
  0x5c   : > { %794 = vmatpush.bf16.msra.mxu2 %v4771_v14  ;;  %823 = vmatpush.bf16.msra.mxu3 %v4775_v18  ;;  %v5594_v52 = vld [vmem:[#allocation8 + $0xcc] sm:$0xf0]  ;;  %v5592_v53 = vld [vmem:[#allocation8 + $0xc4] sm:$0xf]  ;;  %v4956_v54 = vld [vmem:[#allocation8 + $0xd0] sm:$0xf0]  ;;  %v6439_v55 = vor.u32 %v5599_v48, %v4978_v47  ;;  %v6442_v56 = vor.u32 %v5597_v44, %v4980_v50 }
  0x5d   : > { %v6444_v57 = vor.u32 %v5594_v52, %v4954_v51  ;;  %v5593_v58 = vld [vmem:[#allocation8 + $0xcc] sm:$0xf]  ;;  %v4962_v59 = vld [vmem:[#allocation8 + $0xc8] sm:$0xf]  ;;  %v5595_v60 = vld [vmem:[#allocation8 + $0xd4] sm:$0xf0]  ;;  %v6447_v61 = vor.u32 %v5592_v53, %v4956_v54 }
  0x5e   : > { %737 = vmatpush.bf16.msra.mxu0 %v4747_v24  ;;  %v4964_v62 = vld [vmem:[#allocation8 + $0xd8] sm:$0xf0]  ;;  %v4938_v63 = vld [vmem:[#allocation8 + $0xa0] sm:$0xf]  ;;  %v5590_v0 = vld [vmem:[#allocation8 + $0xac] sm:$0xf0]  ;;  %v6450_v3 = vor.u32 %v5595_v60, %v4962_v59 }
  0x5f   : > { %766 = vmatpush.bf16.msra.mxu1 %v4751_v26  ;;  %v5588_v1 = vld [vmem:[#allocation8 + $0xa4] sm:$0xf]  ;;  %v4940_v2 = vld [vmem:[#allocation8 + $0xb0] sm:$0xf0]  ;;  %v6454_v4 = vor.u32 %v5593_v58, %v4964_v62  ;;  %v6456_v5 = vor.u32 %v5590_v0, %v4938_v63  ;;  %v5589_v6 = vld [vmem:[#allocation8 + $0xac] sm:$0xf] }
  0x60   : > { %795 = vmatpush.bf16.msra.mxu2 %v4755_v27  ;;  %824 = vmatpush.bf16.msra.mxu3 %v4759_v31  ;;  %v4946_v7 = vld [vmem:[#allocation8 + $0xa8] sm:$0xf]  ;;  %v5591_v8 = vld [vmem:[#allocation8 + $0xb4] sm:$0xf0]  ;;  %v6459_v9 = vor.u32 %v5588_v1, %v4940_v2  ;;  %v4948_v10 = vld [vmem:[#allocation8 + $0xb8] sm:$0xf0] }
  0x61   : > { %v4922_v11 = vld [vmem:[#allocation8 + $0x80] sm:$0xf]  ;;  %v5586_v12 = vld [vmem:[#allocation8 + $0x8c] sm:$0xf0]  ;;  %v5584_v13 = vld [vmem:[#allocation8 + $0x84] sm:$0xf]  ;;  %v6462_v15 = vor.u32 %v5591_v8, %v4946_v7  ;;  %v6466_v16 = vor.u32 %v5589_v6, %v4948_v10 }
  0x62   : > { %738 = vmatpush.bf16.msra.mxu0 %v4731_v38  ;;  %v4924_v14 = vld [vmem:[#allocation8 + $0x90] sm:$0xf0]  ;;  %v6468_v17 = vor.u32 %v5586_v12, %v4922_v11  ;;  %v5585_v18 = vld [vmem:[#allocation8 + $0x8c] sm:$0xf]  ;;  %v4930_v19 = vld [vmem:[#allocation8 + $0x88] sm:$0xf] }
  0x63   : > { %767 = vmatpush.bf16.msra.mxu1 %v4735_v41  ;;  %v5587_v20 = vld [vmem:[#allocation8 + $0x94] sm:$0xf0]  ;;  %v6471_v21 = vor.u32 %v5584_v13, %v4924_v14  ;;  %v4932_v22 = vld [vmem:[#allocation8 + $0x98] sm:$0xf0]  ;;  %v4906_v23 = vld [vmem:[#allocation8 + $0x60] sm:$0xf] }
  0x64   : > { %796 = vmatpush.bf16.msra.mxu2 %v4739_v42  ;;  %825 = vmatpush.bf16.msra.mxu3 %v4743_v45  ;;  %v5582_v24 = vld [vmem:[#allocation8 + $0x6c] sm:$0xf0]  ;;  %v5580_v25 = vld [vmem:[#allocation8 + $0x64] sm:$0xf]  ;;  %v4908_v26 = vld [vmem:[#allocation8 + $0x70] sm:$0xf0]  ;;  %v6474_v27 = vor.u32 %v5587_v20, %v4930_v19  ;;  %v6478_v28 = vor.u32 %v5585_v18, %v4932_v22 }
  0x65   : > { %739 = vmatmul.bf16.vlgmr.msra.gmra.mxu0 %v5532_v43  ;;  %v6480_v29 = vor.u32 %v5582_v24, %v4906_v23  ;;  %v5533_v30 = vld [vmem:[%s6420_s21 + $0x8] sm:$0xff]  ;;  %v6484_v31 = vor.u32 %v5580_v25, %v4908_v26  ;;  %v4916_v33 = vld [vmem:[#allocation8 + $0x78] sm:$0xf0]  ;;  %v5583_v36 = vld [vmem:[#allocation8 + $0x74] sm:$0xf0]  ;;  %v8619_v26 = vmov 0  }
  0x66   : > { %1075 = vmatpush.bf16.msrb.mxu0 %v6435_v46  ;;  %768 = vmatmul.bf16.vlgmr.msra.gmra.mxu1 %v5532_v43  ;;  %v5581_v32 = vld [vmem:[#allocation8 + $0x6c] sm:$0xf]  ;;  %v4914_v35 = vld [vmem:[#allocation8 + $0x68] sm:$0xf]  ;;  %v4890_v38 = vld [vmem:[#allocation8 + $0x40] sm:$0xf] }
  0x67   : > { %1088 = vmatpush.bf16.msrb.mxu1 %v6437_v49  ;;  %797 = vmatmul.bf16.vlgmr.msra.gmra.mxu2 %v5532_v43  ;;  %v6489_v34 = vor.u32 %v5581_v32, %v4916_v33  ;;  %v6492_v37 = vor.u32 %v5583_v36, %v4914_v35  ;;  %v5578_v39 = vld [vmem:[#allocation8 + $0x4c] sm:$0xf0]  ;;  %v5576_v40 = vld [vmem:[#allocation8 + $0x44] sm:$0xf]  ;;  %v4892_v42 = vld [vmem:[#allocation8 + $0x50] sm:$0xf0] }
  0x68   : > { %826 = vmatmul.bf16.vlgmr.msra.gmra.mxu3 %v5532_v43  ;;  %1101 = vmatpush.bf16.msrb.mxu2 %v6439_v55  ;;  %v6496_v41 = vor.u32 %v5578_v39, %v4890_v38  ;;  %v5577_v43 = vld [vmem:[#allocation8 + $0x4c] sm:$0xf]  ;;  %v4900_v44 = vld [vmem:[#allocation8 + $0x58] sm:$0xf0]  ;;  %v6498_v45 = vor.u32 %v5576_v40, %v4892_v42  ;;  %v4898_v48 = vld [vmem:[#allocation8 + $0x48] sm:$0xf] }
  0x69   : > { %1114 = vmatpush.bf16.msrb.mxu3 %v6442_v56  ;;  %v6500_v47 = vor.u32 %v5577_v43, %v4900_v44  ;;  %v5579_v50 = vld [vmem:[#allocation8 + $0x54] sm:$0xf0]  ;;  %v4874_v51 = vld [vmem:[#allocation8 + $0x20] sm:$0xf]  ;;  %v5574_v53 = vld [vmem:[#allocation8 + $0x2c] sm:$0xf0] }
  0x6a   : > { %1076 = vmatpush.bf16.msrb.mxu0 %v6444_v57  ;;  %v6503_v52 = vor.u32 %v5579_v50, %v4898_v48  ;;  %v5572_v54 = vld [vmem:[#allocation8 + $0x24] sm:$0xf]  ;;  %v4876_v58 = vld [vmem:[#allocation8 + $0x30] sm:$0xf0]  ;;  %v6506_v59 = vor.u32 %v5574_v53, %v4874_v51  ;;  %v4882_v62 = vld [vmem:[#allocation8 + $0x28] sm:$0xf] }
  0x6b   : > { %1089 = vmatpush.bf16.msrb.mxu1 %v6447_v61  ;;  %v6508_v60 = vor.u32 %v5572_v54, %v4876_v58  ;;  %v5575_v63 = vld [vmem:[#allocation8 + $0x34] sm:$0xf0]  ;;  %v5573_v0 = vld [vmem:[#allocation8 + $0x2c] sm:$0xf]  ;;  %v4884_v2 = vld [vmem:[#allocation8 + $0x38] sm:$0xf0] }
  0x6c   : > { %1102 = vmatpush.bf16.msrb.mxu2 %v6450_v3  ;;  %v6512_v1 = vor.u32 %v5575_v63, %v4882_v62  ;;  %v4858_v6 = vld [vmem:[#allocation8] sm:$0xf]  ;;  %v5570_v7 = vld [vmem:[#allocation8 + $0xc] sm:$0xf0]  ;;  %v6514_v8 = vor.u32 %v5573_v0, %v4884_v2  ;;  %v5568_v10 = vld [vmem:[#allocation8 + $0x4] sm:$0xf] }
  0x6d   : > { %1115 = vmatpush.bf16.msrb.mxu3 %v6454_v4  ;;  %v4860_v11 = vld [vmem:[#allocation8 + $0x10] sm:$0xf0]  ;;  %v4866_v12 = vld [vmem:[#allocation8 + $0x8] sm:$0xf]  ;;  %v6517_v13 = vor.u32 %v5570_v7, %v4858_v6  ;;  %v5571_v14 = vld [vmem:[#allocation8 + $0x14] sm:$0xf0] }
  0x6e   : > { %1077 = vmatpush.bf16.msrb.mxu0 %v6456_v5  ;;  %v5569_v18 = vld [vmem:[#allocation8 + $0xc] sm:$0xf]  ;;  %v4868_v19 = vld [vmem:[#allocation8 + $0x18] sm:$0xf0]  ;;  %v6520_v20 = vor.u32 %v5568_v10, %v4860_v11  ;;  %v6524_v22 = vor.u32 %v5571_v14, %v4866_v12  ;;  %v5534_v24 = vld [vmem:[%s6420_s21 + $0x10] sm:$0xff]  ;;  %s5529_s29 = sshll.u32 %s6339_s17, 3 }
  0x6f   : > { %1090 = vmatpush.bf16.msrb.mxu1 %v6459_v9  ;;  %v6526_v23 = vor.u32 %v5569_v18, %v4868_v19  ;;  %v5535_v25 = vld [vmem:[%s6420_s21 + $0x18] sm:$0xff]  ;;  %v537_v39 = vld [vmem:[%s8605_s3] sm:$0xf]  ;;  %s4585_s22 = scalar_lea.hbm %s8612_s10, %s5529_s29  ;;  %s495_s24 = scalar_lea.vmem [#allocation13], %s4711_s20 }
  0x70   : > { %1103 = vmatpush.bf16.msrb.mxu2 %v6462_v15  ;;  %v6609_v40 = vperm.slane %v537_v39, 0  ;;  %v6613_v43 = vperm.slane %v537_v39, 1  ;;  %v6623_v54 = vperm.slane %v537_v39, 2  ;;  %v6625_v58 = vperm.slane %v537_v39, 3  ;;  %s4587_s25 = sshll.u32 %s495_s24, 4  ;;  %s4589_s18 = sshll.u32 %s4585_s22, 4  ;;  %s4588_s25 = int_to_ptr.vmem [resolvable:$true] %s4587_s25  ;;  %s4590_s18 = int_to_ptr.hbm [resolvable:$true] %s4589_s18 }
  0x71   : > { %1116 = vmatpush.bf16.msrb.mxu3 %v6466_v16  ;;  %s4575_s21 = scalar_lea.sflag [#allocation7], %s6417_s23  ;;  %s6194_s17 = sshra.s32 %s4590_s18, 4  ;;  %s6195_s17 = int_to_ptr.hbm [resolvable:$true] %s6194_s17 }
  0x72   : > { %1078 = vmatpush.bf16.msrb.mxu0 %v6468_v17  ;;  %8731 = vst [vmem:[#allocation23_spill] sm:$0xff] %v6609_v40  ;;  %s6196_s26 = scalar_lea.hbm %s6195_s17, 8  ;;  %s6200_s30 = scalar_lea.hbm %s8612_s10, 16 }
  0x73   : > { %1091 = vmatpush.bf16.msrb.mxu1 %v6471_v21  ;;  %8732 = vst [vmem:[#allocation24_spill] sm:$0xff] %v6613_v43  ;;  %p6197_p2 = scmp.ne.s32.totalorder %s6195_s17, %s6196_s26  ;;  %p6201_p5 = scmp.lt.s32.totalorder %s6195_s17, %s8612_s10 }
  0x74   : > { %1104 = vmatpush.bf16.msrb.mxu2 %v6474_v27  ;;  %8733 = vst [vmem:[#allocation25_spill] sm:$0xff] %v6623_v54  ;;  %p6202_p7 = scmp.lt.s32.totalorder %s6200_s30, %s6196_s26 }
  0x75   : > { %1117 = vmatpush.bf16.msrb.mxu3 %v6478_v28  ;;  %744 = vmatmul.bf16.gmra.mxu0 %v5533_v30  ;;  %8734 = vst [vmem:[#allocation26_spill] sm:$0xff] %v6625_v58  ;;  %p6198_p3 = pnand %p6197_p2, %p6361_p6 }
  0x76   : > { %1079 = vmatpush.bf16.msrb.mxu0 %v6480_v29  ;;  %773 = vmatmul.bf16.gmra.mxu1 %v5533_v30  ;;  %p6203_p8 = por %p6202_p7, %p6201_p5 }
  0x77   : > { %1092 = vmatpush.bf16.msrb.mxu1 %v6484_v31  ;;  %802 = vmatmul.bf16.gmra.mxu2 %v5533_v30  ;;  %p6199_p4 = pneg %p6198_p3 }
  0x78   : > { %831 = vmatmul.bf16.gmra.mxu3 %v5533_v30  ;;  %1105 = vmatpush.bf16.msrb.mxu2 %v6492_v37 }
  0x79   : > { %1118 = vmatpush.bf16.msrb.mxu3 %v6489_v34  ;;  %p6204_p9 = pnand %p6203_p8, %p6199_p4 }
  0x7a   : > { %1080 = vmatpush.bf16.msrb.mxu0 %v6496_v41 }
  0x7b   : > { %1093 = vmatpush.bf16.msrb.mxu1 %v6498_v45 }
  0x7c   : > { %1106 = vmatpush.bf16.msrb.mxu2 %v6503_v52 }
  0x7d   : > { %1119 = vmatpush.bf16.msrb.mxu3 %v6500_v47 }
  0x7e   : > { %1081 = vmatpush.bf16.msrb.mxu0 %v6506_v59 }
  0x7f   : > { %1094 = vmatpush.bf16.msrb.mxu1 %v6508_v60 }
  0x80   : > { %1107 = vmatpush.bf16.msrb.mxu2 %v6512_v1 }
  0x81   : > { %1120 = vmatpush.bf16.msrb.mxu3 %v6514_v8 }
  0x82   : > { %1082 = vmatpush.bf16.msrb.mxu0 %v6517_v13 }
  0x83   : > { %1095 = vmatpush.bf16.msrb.mxu1 %v6520_v20 }
  0x84   : > { %1108 = vmatpush.bf16.msrb.mxu2 %v6524_v22 }
  0x85   : > { %1121 = vmatpush.bf16.msrb.mxu3 %v6526_v23  ;;  %749 = vmatmul.bf16.gmra.mxu0 %v5534_v24 }
  0x86   : > { %1155 = vmatpush.bf16.msra.mxu0 %v6435_v46  ;;  %778 = vmatmul.bf16.gmra.mxu1 %v5534_v24 }
  0x87   : > { %1168 = vmatpush.bf16.msra.mxu1 %v6437_v49  ;;  %807 = vmatmul.bf16.gmra.mxu2 %v5534_v24 }
  0x88   : > { %836 = vmatmul.bf16.gmra.mxu3 %v5534_v24  ;;  %1181 = vmatpush.bf16.msra.mxu2 %v6439_v55 }
  0x89   : > { %1194 = vmatpush.bf16.msra.mxu3 %v6442_v56 }
  0x8a   : > { %1156 = vmatpush.bf16.msra.mxu0 %v6444_v57 }
  0x8b   : > { %1169 = vmatpush.bf16.msra.mxu1 %v6447_v61 }
  0x8c   : > { %1182 = vmatpush.bf16.msra.mxu2 %v6450_v3 }
  0x8d   : > { %1195 = vmatpush.bf16.msra.mxu3 %v6454_v4 }
  0x8e   : > { %1157 = vmatpush.bf16.msra.mxu0 %v6456_v5 }
  0x8f   : > { %1170 = vmatpush.bf16.msra.mxu1 %v6459_v9 }
  0x90   : > { %1183 = vmatpush.bf16.msra.mxu2 %v6462_v15 }
  0x91   : > { %1196 = vmatpush.bf16.msra.mxu3 %v6466_v16 }
  0x92   : > { %1158 = vmatpush.bf16.msra.mxu0 %v6468_v17 }
  0x93   : > { %1171 = vmatpush.bf16.msra.mxu1 %v6471_v21 }
  0x94   : > { %1184 = vmatpush.bf16.msra.mxu2 %v6474_v27 }
  0x95   : > { %1197 = vmatpush.bf16.msra.mxu3 %v6478_v28  ;;  %754 = vmatmul.bf16.gmra.mxu0 %v5535_v25 }
  0x96   : > { %1159 = vmatpush.bf16.msra.mxu0 %v6480_v29  ;;  %783 = vmatmul.bf16.gmra.mxu1 %v5535_v25 }
  0x97   : > { %1172 = vmatpush.bf16.msra.mxu1 %v6484_v31  ;;  %812 = vmatmul.bf16.gmra.mxu2 %v5535_v25 }
  0x98   : > { %841 = vmatmul.bf16.gmra.mxu3 %v5535_v25  ;;  %1185 = vmatpush.bf16.msra.mxu2 %v6492_v37 }
  0x99   : > { %1198 = vmatpush.bf16.msra.mxu3 %v6489_v34 }
  0x9a   : > { %1160 = vmatpush.bf16.msra.mxu0 %v6496_v41 }
  0x9b   : > { %1173 = vmatpush.bf16.msra.mxu1 %v6498_v45 }
  0x9c   : > { %1186 = vmatpush.bf16.msra.mxu2 %v6503_v52 }
  0x9d   : > { %1199 = vmatpush.bf16.msra.mxu3 %v6500_v47 }
  0x9e   : > { %1161 = vmatpush.bf16.msra.mxu0 %v6506_v59 }
  0x9f   : > { %1174 = vmatpush.bf16.msra.mxu1 %v6508_v60 }
  0xa0   : > { %1187 = vmatpush.bf16.msra.mxu2 %v6512_v1 }
  0xa1   : > { %1200 = vmatpush.bf16.msra.mxu3 %v6514_v8 }
  0xa2   : > { %1162 = vmatpush.bf16.msra.mxu0 %v6517_v13 }
  0xa3   : > { %1175 = vmatpush.bf16.msra.mxu1 %v6520_v20 }
  0xa4   : > { %1188 = vmatpush.bf16.msra.mxu2 %v6524_v22 }
  0xa5   : > { %1201 = vmatpush.bf16.msra.mxu3 %v6526_v23  ;;  %1083 = vmatmul.bf16.vlgmr.msrb.gmra.mxu0 %v8619_v26 }
  0xa6   : > { %1096 = vmatmul.bf16.vlgmr.msrb.gmra.mxu1 %v8619_v26  ;;  %1235 = vmatpush.bf16.msrb.mxu0 %v6435_v46 }
  0xa7   : > { %1109 = vmatmul.bf16.vlgmr.msrb.gmra.mxu2 %v8619_v26  ;;  %1248 = vmatpush.bf16.msrb.mxu1 %v6437_v49 }
  0xa8   : > { %1122 = vmatmul.bf16.vlgmr.msrb.gmra.mxu3 %v8619_v26  ;;  %1261 = vmatpush.bf16.msrb.mxu2 %v6439_v55 }
  0xa9   : > { %1274 = vmatpush.bf16.msrb.mxu3 %v6442_v56 }
  0xaa   : > { %1236 = vmatpush.bf16.msrb.mxu0 %v6444_v57 }
  0xab   : > { %1249 = vmatpush.bf16.msrb.mxu1 %v6447_v61 }
  0xac   : > { %1262 = vmatpush.bf16.msrb.mxu2 %v6450_v3 }
  0xad   : > { %1275 = vmatpush.bf16.msrb.mxu3 %v6454_v4 }
  0xae   : > { %1237 = vmatpush.bf16.msrb.mxu0 %v6456_v5 }
  0xaf   : > { %1250 = vmatpush.bf16.msrb.mxu1 %v6459_v9 }
  0xb0   : > { %1263 = vmatpush.bf16.msrb.mxu2 %v6462_v15 }
  0xb1   : > { %1276 = vmatpush.bf16.msrb.mxu3 %v6466_v16 }
  0xb2   : > { %1238 = vmatpush.bf16.msrb.mxu0 %v6468_v17 }
  0xb3   : > { %1251 = vmatpush.bf16.msrb.mxu1 %v6471_v21 }
  0xb4   : > { %1264 = vmatpush.bf16.msrb.mxu2 %v6474_v27 }
  0xb5   : > { %1277 = vmatpush.bf16.msrb.mxu3 %v6478_v28 }
  0xb6   : > { %1239 = vmatpush.bf16.msrb.mxu0 %v6480_v29 }
  0xb7   : > { %1252 = vmatpush.bf16.msrb.mxu1 %v6484_v31 }
  0xb8   : > { %1265 = vmatpush.bf16.msrb.mxu2 %v6492_v37 }
  0xb9   : > { %1278 = vmatpush.bf16.msrb.mxu3 %v6489_v34 }
  0xba   : > { %1240 = vmatpush.bf16.msrb.mxu0 %v6496_v41 }
  0xbb   : > { %1253 = vmatpush.bf16.msrb.mxu1 %v6498_v45 }
  0xbc   : > { %1266 = vmatpush.bf16.msrb.mxu2 %v6503_v52 }
  0xbd   : > { %1279 = vmatpush.bf16.msrb.mxu3 %v6500_v47 }
  0xbe   : > { %1241 = vmatpush.bf16.msrb.mxu0 %v6506_v59 }
  0xbf   : > { %1254 = vmatpush.bf16.msrb.mxu1 %v6508_v60 }
  0xc0   : > { %1267 = vmatpush.bf16.msrb.mxu2 %v6512_v1 }
  0xc1   : > { %1280 = vmatpush.bf16.msrb.mxu3 %v6514_v8 }
  0xc2   : > { %1242 = vmatpush.bf16.msrb.mxu0 %v6517_v13 }
  0xc3   : > { %1255 = vmatpush.bf16.msrb.mxu1 %v6520_v20 }
  0xc4   : > { %1268 = vmatpush.bf16.msrb.mxu2 %v6524_v22 }
  0xc5   : > { %1281 = vmatpush.bf16.msrb.mxu3 %v6526_v23 }
  0xe2   : > { %v740_v30 = vpop.f32.mrf.mxu0 }
  0xe3   : > { %v769_v32 = vpop.f32.mrf.mxu1 }
  0xea   : > { %v798_v33 = vpop.f32.mrf.mxu2  ;;  %v6602_v36 = vpop.f32.mrf.mxu0 }
  0xeb   : > { %v827_v35 = vpop.f32.mrf.mxu3  ;;  %v6604_v38 = vpop.f32.mrf.mxu1 }
  0xf2   : > { %v6611_v42 = vpop.f32.mrf.mxu2  ;;  %v745_v48 = vpop.f32.mrf.mxu0 }
  0xf3   : > { %v6615_v44 = vpop.f32.mrf.mxu3  ;;  %v6618_v50 = vadd.f32 %v745_v48, %v6609_v40  ;;  %v774_v51 = vpop.f32.mrf.mxu1 }
  0xf4   : > { %v6621_v53 = vadd.f32 %v774_v51, %v6613_v43 }
  0xfa   : > { %v803_v62 = vpop.f32.mrf.mxu2  ;;  %v6630_v2 = vpop.f32.mrf.mxu0 }
  0xfb   : > { %v6628_v63 = vadd.f32 %v803_v62, %v6623_v54  ;;  %v832_v0 = vpop.f32.mrf.mxu3  ;;  %8735 = vst [vmem:[#allocation27_spill] sm:$0xff] %v6630_v2  ;;  %v6635_v7 = vpop.f32.mrf.mxu1 }
  0xfc   : > { %v6633_v6 = vadd.f32 %v832_v0, %v6625_v58  ;;  %8737 = vst [vmem:[#allocation29_spill] sm:$0xff] %v6635_v7 }
  0xfe   : > { %8736 = vst [vmem:[#allocation28_spill] sm:$0xff] %v6633_v6 }
 0x102   : > { %v6637_v10 = vpop.f32.mrf.mxu2  ;;  %v750_v12 = vpop.f32.mrf.mxu0 }
 0x103   : > { %8738 = vst [vmem:[#allocation30_spill] sm:$0xff] %v6637_v10  ;;  %v6639_v11 = vpop.f32.mrf.mxu3  ;;  %v6642_v14 = vadd.f32 %v750_v12, %v6609_v40  ;;  %v779_v18 = vpop.f32.mrf.mxu1 }
 0x104   : > { %8739 = vst [vmem:[#allocation31_spill] sm:$0xff] %v6639_v11  ;;  %v6645_v19 = vadd.f32 %v779_v18, %v6613_v43 }
 0x105   : > { %8740 = vst [vmem:[#allocation32_spill] sm:$0xff] %v6642_v14 }
 0x106   : > { %8741 = vst [vmem:[#allocation33_spill] sm:$0xff] %v6645_v19 }
 0x10a   : > { %v808_v24 = vpop.f32.mrf.mxu2  ;;  %v6650_v48 = vpop.f32.mrf.mxu0 }
 0x10b   : > { %v6648_v25 = vadd.f32 %v808_v24, %v6623_v54  ;;  %v837_v39 = vpop.f32.mrf.mxu3  ;;  %8743 = vst [vmem:[#allocation35_spill] sm:$0xff] %v6650_v48  ;;  %v6655_v62 = vpop.f32.mrf.mxu1 }
 0x10c   : > { %v6653_v51 = vadd.f32 %v837_v39, %v6625_v58  ;;  %8745 = vst [vmem:[#allocation37_spill] sm:$0xff] %v6655_v62 }
 0x10d   : > { %8742 = vst [vmem:[#allocation34_spill] sm:$0xff] %v6648_v25 }
 0x10e   : > { %8744 = vst [vmem:[#allocation36_spill] sm:$0xff] %v6653_v51 }
 0x112   : > { %v6657_v0 = vpop.f32.mrf.mxu2  ;;  %v755_v26 = vpop.f32.mrf.mxu0 }
 0x113   : > { %8746 = vst [vmem:[#allocation38_spill] sm:$0xff] %v6657_v0  ;;  %v6659_v12 = vpop.f32.mrf.mxu3  ;;  %v6662_v18 = vadd.f32 %v755_v26, %v6609_v40  ;;  %v784_v19 = vpop.f32.mrf.mxu1 }
 0x114   : > { %8747 = vst [vmem:[#allocation39_spill] sm:$0xff] %v6659_v12  ;;  %v6665_v24 = vadd.f32 %v784_v19, %v6613_v43  ;;  %v741_v12 = vadd.f32 %v740_v30, %v6609_v40 }
 0x115   : > { %8748 = vst [vmem:[#allocation40_spill] sm:$0xff] %v6662_v18  ;;  %v770_v18 = vadd.f32 %v769_v32, %v6613_v43 }
 0x116   : > { %8749 = vst [vmem:[#allocation41_spill] sm:$0xff] %v6665_v24 }
 0x11a   : > { %v813_v25 = vpop.f32.mrf.mxu2  ;;  %v6670_v51 = vpop.f32.mrf.mxu0 }
 0x11b   : > { %v6668_v48 = vadd.f32 %v813_v25, %v6623_v54  ;;  %v842_v39 = vpop.f32.mrf.mxu3  ;;  %8751 = vst [vmem:[#allocation43_spill] sm:$0xff] %v6670_v51  ;;  %v6675_v0 = vpop.f32.mrf.mxu1 }
 0x11c   : > { %v6673_v62 = vadd.f32 %v842_v39, %v6625_v58  ;;  %8753 = vst [vmem:[#allocation45_spill] sm:$0xff] %v6675_v0  ;;  %v799_v39 = vadd.f32 %v798_v33, %v6623_v54  ;;  %v828_v0 = vadd.f32 %v827_v35, %v6625_v58 }
 0x11d   : > { %8750 = vst [vmem:[#allocation42_spill] sm:$0xff] %v6668_v48 }
 0x11e   : > { %8752 = vst [vmem:[#allocation44_spill] sm:$0xff] %v6673_v62 }
 0x122   : > { %v6678_v26 = vpop.f32.mrf.mxu2  ;;  %v1084_v24 = vpop.f32.mrf.mxu0 }
 0x123   : > { %8754 = vst [vmem:[#allocation46_spill] sm:$0xff] %v6678_v26  ;;  %v6681_v19 = vpop.f32.mrf.mxu3  ;;  %v1127_v14 = vadd.f32 %v1084_v24, %v741_v12  ;;  %v1097_v25 = vpop.f32.mrf.mxu1 }
 0x124   : > { %8755 = vst [vmem:[#allocation47_spill] sm:$0xff] %v6681_v19  ;;  %v1128_v48 = vadd.f32 %v1097_v25, %v770_v18 }
 0x125   : > { %v1131_v11 = vmul.f32 0.5, %v1127_v14 }
 0x126   : > { %v1132_v10 = vmul.f32 0.5, %v1128_v48 }
 0x127   : > { %5820 = vtanh.f32 %v1131_v11 }
 0x128   : > { %5822 = vtanh.f32 %v1132_v10 }
 0x12a   : > { %v1110_v51 = vpop.f32.mrf.mxu2  ;;  %v1086_v26 = vpop.f32.mrf.mxu0 }
 0x12b   : > { %v1129_v30 = vadd.f32 %v1110_v51, %v799_v39  ;;  %v1123_v62 = vpop.f32.mrf.mxu3  ;;  %v1099_v32 = vpop.f32.mrf.mxu1 }
 0x12c   : > { %v1130_v7 = vadd.f32 %v1123_v62, %v828_v0 }
 0x12d   : > { %v1133_v2 = vmul.f32 0.5, %v1129_v30  ;;  %v5821_v19 = vpop.eup %5820 }
 0x12e   : > { %5824 = vtanh.f32 %v1130_v7  ;;  %v5823_v12 = vpop.eup %5822  ;;  %v1137_v24 = vmul.f32 0.5, %v5821_v19 }
 0x12f   : > { %v1138_v18 = vmul.f32 0.5, %v5823_v12  ;;  %5826 = vtanh.f32 %v1133_v2  ;;  %v743_v2 = vadd.f32 %v6602_v36, %v6609_v40 }
 0x130   : > { %v1140_v14 = vadd.f32 0.5, %v1137_v24 }
 0x131   : > { %v1141_v11 = vadd.f32 0.5, %v1138_v18 }
 0x132   : > { %v1112_v48 = vpop.f32.mrf.mxu2 }
 0x133   : > { %v1125_v33 = vpop.f32.mrf.mxu3  ;;  %v1144_v25 = vmul.f32 0.0, %v1141_v11  ;;  %v830_v11 = vadd.f32 %v6615_v44, %v6625_v58 }
 0x134   : > { %v5825_v10 = vpop.eup %5824 }
 0x135   : > { %v1145_v35 = vmul.f32 %v5825_v10, %v1140_v14  ;;  %v5827_v6 = vpop.eup %5826  ;;  %v801_v14 = vadd.f32 %v6611_v42, %v6623_v54 }
 0x136   : > { %v1139_v62 = vmul.f32 0.5, %v5827_v6  ;;  %v772_v6 = vadd.f32 %v6604_v38, %v6613_v43 }
 0x137   : > { %v6685_v51 = vadd.f32 %v1145_v35, %v1144_v25 }
 0x138   : > { %v1142_v0 = vadd.f32 0.5, %v1139_v62 }
 0x139   : > { %5828 = vtanh.f32 %v6685_v51 }
 0x13f   : > { %v5829_v26 = vpop.eup %5828 }
 0x140   : > { %v1148_v7 = vmul.f32 %v5829_v26, %v1142_v0 }
 0x142   : > { %v1149_v39 = vpack.c.bf16 %v1148_v7, %v1148_v7 }
 0x144   : > { %1150 = vst [vmem:[#allocation2] sm:$0xf] %v1149_v39  ;;  %1163 = vmatmul.bf16.vlgmr.msra.gmra.mxu0 %v1149_v39  ;;  %1176 = vmatmul.bf16.vlgmr.msra.gmra.mxu1 %v1149_v39 }
 0x145   : > { %1189 = vmatmul.bf16.vlgmr.msra.gmra.mxu2 %v1149_v39  ;;  %1202 = vmatmul.bf16.vlgmr.msra.gmra.mxu3 %v1149_v39 }
 0x146   : > { %1315 = vmatpush.bf16.msra.mxu0 %v6435_v46  ;;  %1328 = vmatpush.bf16.msra.mxu1 %v6437_v49 }
 0x147   : > { %1341 = vmatpush.bf16.msra.mxu2 %v6439_v55  ;;  %1354 = vmatpush.bf16.msra.mxu3 %v6442_v56 }
 0x14a   : > { %1316 = vmatpush.bf16.msra.mxu0 %v6444_v57  ;;  %1329 = vmatpush.bf16.msra.mxu1 %v6447_v61 }
 0x14b   : > { %1342 = vmatpush.bf16.msra.mxu2 %v6450_v3  ;;  %1355 = vmatpush.bf16.msra.mxu3 %v6454_v4 }
 0x14e   : > { %1317 = vmatpush.bf16.msra.mxu0 %v6456_v5  ;;  %1330 = vmatpush.bf16.msra.mxu1 %v6459_v9 }
 0x14f   : > { %1343 = vmatpush.bf16.msra.mxu2 %v6462_v15  ;;  %1356 = vmatpush.bf16.msra.mxu3 %v6466_v16 }
 0x152   : > { %1318 = vmatpush.bf16.msra.mxu0 %v6468_v17  ;;  %1331 = vmatpush.bf16.msra.mxu1 %v6471_v21 }
 0x153   : > { %1344 = vmatpush.bf16.msra.mxu2 %v6474_v27  ;;  %1357 = vmatpush.bf16.msra.mxu3 %v6478_v28 }
 0x156   : > { %1319 = vmatpush.bf16.msra.mxu0 %v6480_v29  ;;  %1332 = vmatpush.bf16.msra.mxu1 %v6484_v31 }
 0x157   : > { %1345 = vmatpush.bf16.msra.mxu2 %v6492_v37  ;;  %1358 = vmatpush.bf16.msra.mxu3 %v6489_v34 }
 0x15a   : > { %1320 = vmatpush.bf16.msra.mxu0 %v6496_v41  ;;  %1333 = vmatpush.bf16.msra.mxu1 %v6498_v45 }
 0x15b   : > { %1346 = vmatpush.bf16.msra.mxu2 %v6503_v52  ;;  %1359 = vmatpush.bf16.msra.mxu3 %v6500_v47 }
 0x15e   : > { %1321 = vmatpush.bf16.msra.mxu0 %v6506_v59  ;;  %1334 = vmatpush.bf16.msra.mxu1 %v6508_v60 }
 0x15f   : > { %1347 = vmatpush.bf16.msra.mxu2 %v6512_v1  ;;  %1360 = vmatpush.bf16.msra.mxu3 %v6514_v8 }
 0x162   : > { %1322 = vmatpush.bf16.msra.mxu0 %v6517_v13  ;;  %1335 = vmatpush.bf16.msra.mxu1 %v6520_v20 }
 0x163   : > { %1348 = vmatpush.bf16.msra.mxu2 %v6524_v22  ;;  %1361 = vmatpush.bf16.msra.mxu3 %v6526_v23 }
 0x1c1   : > { %v1164_v19 = vpop.f32.mrf.mxu0  ;;  %v1177_v30 = vpop.f32.mrf.mxu1 }
 0x1c2   : > { %v1207_v32 = vadd.f32 %v1164_v19, %v743_v2  ;;  %v1208_v12 = vadd.f32 %v1177_v30, %v772_v6 }
 0x1c4   : > { %v1211_v24 = vmul.f32 0.5, %v1207_v32  ;;  %v1212_v18 = vmul.f32 0.5, %v1208_v12 }
 0x1c6   : > { %5830 = vtanh.f32 %v1211_v24 }
 0x1c7   : > { %5832 = vtanh.f32 %v1212_v18 }
 0x1c8   : > { %v1190_v48 = vpop.f32.mrf.mxu2  ;;  %v1203_v33 = vpop.f32.mrf.mxu3 }
 0x1c9   : > { %v1209_v36 = vadd.f32 %v1190_v48, %v801_v14  ;;  %v1210_v10 = vadd.f32 %v1203_v33, %v830_v11  ;;  %v1166_v25 = vpop.f32.mrf.mxu0  ;;  %v1179_v38 = vpop.f32.mrf.mxu1 }
 0x1cb   : > { %v1213_v35 = vmul.f32 0.5, %v1209_v36  ;;  %5834 = vtanh.f32 %v1210_v10 }
 0x1cc   : > { %v5831_v62 = vpop.eup %5830 }
 0x1cd   : > { %v5833_v0 = vpop.eup %5832  ;;  %v1217_v26 = vmul.f32 0.5, %v5831_v62  ;;  %5836 = vtanh.f32 %v1213_v35 }
 0x1ce   : > { %v1218_v7 = vmul.f32 0.5, %v5833_v0 }
 0x1cf   : > { %v1220_v39 = vadd.f32 0.5, %v1217_v26  ;;  %v8756_v26 = vld [vmem:[#allocation28_spill] sm:$0xff] }
 0x1d0   : > { %v1221_v2 = vadd.f32 0.5, %v1218_v7  ;;  %v1192_v42 = vpop.f32.mrf.mxu2  ;;  %v1205_v6 = vpop.f32.mrf.mxu3 }
 0x1d1   : > { %v5835_v19 = vpop.eup %5834 }
 0x1d2   : > { %v1224_v44 = vmul.f32 %v1221_v2, %v6685_v51  ;;  %v1225_v30 = vmul.f32 %v5835_v19, %v1220_v39 }
 0x1d3   : > { %v5837_v32 = vpop.eup %5836 }
 0x1d4   : > { %v6729_v12 = vadd.f32 %v1225_v30, %v1224_v44  ;;  %v1219_v24 = vmul.f32 0.5, %v5837_v32 }
 0x1d6   : > { %5838 = vtanh.f32 %v6729_v12  ;;  %v1222_v18 = vadd.f32 0.5, %v1219_v24 }
 0x1dc   : > { %v5839_v14 = vpop.eup %5838 }
 0x1dd   : > { %v1228_v11 = vmul.f32 %v5839_v14, %v1222_v18 }
 0x1df   : > { %v1229_v48 = vpack.c.bf16 %v1228_v11, %v1228_v11 }
 0x1e1   : > { %1230 = vst [vmem:[#allocation2 + $0x4] sm:$0xf] %v1229_v48  ;;  %1243 = vmatmul.bf16.vlgmr.msrb.gmra.mxu0 %v1229_v48  ;;  %1256 = vmatmul.bf16.vlgmr.msrb.gmra.mxu1 %v1229_v48 }
 0x1e2   : > { %1269 = vmatmul.bf16.vlgmr.msrb.gmra.mxu2 %v1229_v48  ;;  %1282 = vmatmul.bf16.vlgmr.msrb.gmra.mxu3 %v1229_v48 }
 0x1e3   : > { %1395 = vmatpush.bf16.msrb.mxu0 %v6435_v46  ;;  %1408 = vmatpush.bf16.msrb.mxu1 %v6437_v49 }
 0x1e4   : > { %1421 = vmatpush.bf16.msrb.mxu2 %v6439_v55  ;;  %1434 = vmatpush.bf16.msrb.mxu3 %v6442_v56 }
 0x1e7   : > { %1396 = vmatpush.bf16.msrb.mxu0 %v6444_v57  ;;  %1409 = vmatpush.bf16.msrb.mxu1 %v6447_v61 }
 0x1e8   : > { %1422 = vmatpush.bf16.msrb.mxu2 %v6450_v3  ;;  %1435 = vmatpush.bf16.msrb.mxu3 %v6454_v4 }
 0x1eb   : > { %1397 = vmatpush.bf16.msrb.mxu0 %v6456_v5  ;;  %1410 = vmatpush.bf16.msrb.mxu1 %v6459_v9 }
 0x1ec   : > { %1423 = vmatpush.bf16.msrb.mxu2 %v6462_v15  ;;  %1436 = vmatpush.bf16.msrb.mxu3 %v6466_v16 }
 0x1ef   : > { %1398 = vmatpush.bf16.msrb.mxu0 %v6468_v17  ;;  %1411 = vmatpush.bf16.msrb.mxu1 %v6471_v21 }
 0x1f0   : > { %1424 = vmatpush.bf16.msrb.mxu2 %v6474_v27  ;;  %1437 = vmatpush.bf16.msrb.mxu3 %v6478_v28 }
 0x1f3   : > { %1399 = vmatpush.bf16.msrb.mxu0 %v6480_v29  ;;  %1412 = vmatpush.bf16.msrb.mxu1 %v6484_v31 }
 0x1f4   : > { %1425 = vmatpush.bf16.msrb.mxu2 %v6492_v37  ;;  %1438 = vmatpush.bf16.msrb.mxu3 %v6489_v34 }
 0x1f7   : > { %1400 = vmatpush.bf16.msrb.mxu0 %v6496_v41  ;;  %1413 = vmatpush.bf16.msrb.mxu1 %v6498_v45 }
 0x1f8   : > { %1426 = vmatpush.bf16.msrb.mxu2 %v6503_v52  ;;  %1439 = vmatpush.bf16.msrb.mxu3 %v6500_v47 }
 0x1fb   : > { %1401 = vmatpush.bf16.msrb.mxu0 %v6506_v59  ;;  %1414 = vmatpush.bf16.msrb.mxu1 %v6508_v60 }
 0x1fc   : > { %1427 = vmatpush.bf16.msrb.mxu2 %v6512_v1  ;;  %1440 = vmatpush.bf16.msrb.mxu3 %v6514_v8 }
 0x1ff   : > { %1402 = vmatpush.bf16.msrb.mxu0 %v6517_v13  ;;  %1415 = vmatpush.bf16.msrb.mxu1 %v6520_v20 }
 0x200   : > { %1428 = vmatpush.bf16.msrb.mxu2 %v6524_v22  ;;  %1441 = vmatpush.bf16.msrb.mxu3 %v6526_v23 }
 0x25e   : > { %v1244_v51 = vpop.f32.mrf.mxu0  ;;  %v1257_v33 = vpop.f32.mrf.mxu1 }
 0x25f   : > { %v1287_v36 = vadd.f32 %v1244_v51, %v6618_v50  ;;  %v1288_v10 = vadd.f32 %v1257_v33, %v6621_v53 }
 0x261   : > { %v1291_v25 = vmul.f32 0.5, %v1287_v36  ;;  %v1292_v38 = vmul.f32 0.5, %v1288_v10 }
 0x263   : > { %5840 = vtanh.f32 %v1291_v25 }
 0x264   : > { %5842 = vtanh.f32 %v1292_v38 }
 0x265   : > { %v1270_v35 = vpop.f32.mrf.mxu2  ;;  %v1283_v62 = vpop.f32.mrf.mxu3 }
 0x266   : > { %v1289_v0 = vadd.f32 %v1270_v35, %v6628_v63  ;;  %v1290_v7 = vadd.f32 %v1283_v62, %v8756_v26  ;;  %v1246_v39 = vpop.f32.mrf.mxu0  ;;  %v1259_v2 = vpop.f32.mrf.mxu1  ;;  %v8758_v35 = vld [vmem:[#allocation29_spill] sm:$0xff] }
 0x267   : > { %v777_v62 = vadd.f32 %v8758_v35, %v6613_v43 }
 0x268   : > { %v1293_v42 = vmul.f32 0.5, %v1289_v0  ;;  %5844 = vtanh.f32 %v1290_v7 }
 0x269   : > { %v5841_v6 = vpop.eup %5840 }
 0x26a   : > { %v5843_v19 = vpop.eup %5842  ;;  %v1297_v44 = vmul.f32 0.5, %v5841_v6  ;;  %5846 = vtanh.f32 %v1293_v42  ;;  %v8759_v6 = vld [vmem:[#allocation30_spill] sm:$0xff] }
 0x26b   : > { %v1298_v50 = vmul.f32 0.5, %v5843_v19  ;;  %v806_v19 = vadd.f32 %v8759_v6, %v6623_v54 }
 0x26c   : > { %v1300_v53 = vadd.f32 0.5, %v1297_v44  ;;  %v8760_v44 = vld [vmem:[#allocation31_spill] sm:$0xff] }
 0x26d   : > { %v1301_v30 = vadd.f32 0.5, %v1298_v50  ;;  %v1272_v32 = vpop.f32.mrf.mxu2  ;;  %v1285_v24 = vpop.f32.mrf.mxu3  ;;  %v835_v50 = vadd.f32 %v8760_v44, %v6625_v58 }
 0x26e   : > { %v5845_v18 = vpop.eup %5844 }
 0x26f   : > { %v1304_v14 = vmul.f32 %v1301_v30, %v6729_v12  ;;  %v1305_v11 = vmul.f32 %v5845_v18, %v1300_v53  ;;  %v8757_v12 = vld [vmem:[#allocation27_spill] sm:$0xff] }
 0x270   : > { %v5847_v63 = vpop.eup %5846  ;;  %v748_v38 = vadd.f32 %v8757_v12, %v6609_v40 }
 0x271   : > { %v6769_v48 = vadd.f32 %v1305_v11, %v1304_v14  ;;  %v1299_v51 = vmul.f32 0.5, %v5847_v63 }
 0x273   : > { %5848 = vtanh.f32 %v6769_v48  ;;  %v1302_v33 = vadd.f32 0.5, %v1299_v51 }
 0x279   : > { %v5849_v36 = vpop.eup %5848 }
 0x27a   : > { %v1308_v10 = vmul.f32 %v5849_v36, %v1302_v33 }
 0x27c   : > { %v1309_v25 = vpack.c.bf16 %v1308_v10, %v1308_v10 }
 0x27e   : > { %1310 = vst [vmem:[#allocation2 + $0x8] sm:$0xf] %v1309_v25  ;;  %1323 = vmatmul.bf16.vlgmr.msra.gmra.mxu0 %v1309_v25  ;;  %1336 = vmatmul.bf16.vlgmr.msra.gmra.mxu1 %v1309_v25 }
 0x27f   : > { %1349 = vmatmul.bf16.vlgmr.msra.gmra.mxu2 %v1309_v25  ;;  %1362 = vmatmul.bf16.vlgmr.msra.gmra.mxu3 %v1309_v25 }
 0x280   : > { %1475 = vmatpush.bf16.msra.mxu0 %v6435_v46  ;;  %1488 = vmatpush.bf16.msra.mxu1 %v6437_v49 }
 0x281   : > { %1501 = vmatpush.bf16.msra.mxu2 %v6439_v55  ;;  %1514 = vmatpush.bf16.msra.mxu3 %v6442_v56 }
 0x284   : > { %1476 = vmatpush.bf16.msra.mxu0 %v6444_v57  ;;  %1489 = vmatpush.bf16.msra.mxu1 %v6447_v61 }
 0x285   : > { %1502 = vmatpush.bf16.msra.mxu2 %v6450_v3  ;;  %1515 = vmatpush.bf16.msra.mxu3 %v6454_v4 }
 0x288   : > { %1477 = vmatpush.bf16.msra.mxu0 %v6456_v5  ;;  %1490 = vmatpush.bf16.msra.mxu1 %v6459_v9 }
 0x289   : > { %1503 = vmatpush.bf16.msra.mxu2 %v6462_v15  ;;  %1516 = vmatpush.bf16.msra.mxu3 %v6466_v16 }
 0x28c   : > { %1478 = vmatpush.bf16.msra.mxu0 %v6468_v17  ;;  %1491 = vmatpush.bf16.msra.mxu1 %v6471_v21 }
 0x28d   : > { %1504 = vmatpush.bf16.msra.mxu2 %v6474_v27  ;;  %1517 = vmatpush.bf16.msra.mxu3 %v6478_v28 }
 0x290   : > { %1479 = vmatpush.bf16.msra.mxu0 %v6480_v29  ;;  %1492 = vmatpush.bf16.msra.mxu1 %v6484_v31 }
 0x291   : > { %1505 = vmatpush.bf16.msra.mxu2 %v6492_v37  ;;  %1518 = vmatpush.bf16.msra.mxu3 %v6489_v34 }
 0x294   : > { %1480 = vmatpush.bf16.msra.mxu0 %v6496_v41  ;;  %1493 = vmatpush.bf16.msra.mxu1 %v6498_v45 }
 0x295   : > { %1506 = vmatpush.bf16.msra.mxu2 %v6503_v52  ;;  %1519 = vmatpush.bf16.msra.mxu3 %v6500_v47 }
 0x298   : > { %1481 = vmatpush.bf16.msra.mxu0 %v6506_v59  ;;  %1494 = vmatpush.bf16.msra.mxu1 %v6508_v60 }
 0x299   : > { %1507 = vmatpush.bf16.msra.mxu2 %v6512_v1  ;;  %1520 = vmatpush.bf16.msra.mxu3 %v6514_v8 }
 0x29c   : > { %1482 = vmatpush.bf16.msra.mxu0 %v6517_v13  ;;  %1495 = vmatpush.bf16.msra.mxu1 %v6520_v20 }
 0x29d   : > { %1508 = vmatpush.bf16.msra.mxu2 %v6524_v22  ;;  %1521 = vmatpush.bf16.msra.mxu3 %v6526_v23 }
 0x2fb   : > { %v1324_v0 = vpop.f32.mrf.mxu0  ;;  %v1337_v26 = vpop.f32.mrf.mxu1 }
 0x2fc   : > { %v1367_v7 = vadd.f32 %v1324_v0, %v748_v38  ;;  %v1368_v39 = vadd.f32 %v1337_v26, %v777_v62 }
 0x2fe   : > { %v1371_v2 = vmul.f32 0.5, %v1367_v7  ;;  %v1372_v42 = vmul.f32 0.5, %v1368_v39 }
 0x300   : > { %5850 = vtanh.f32 %v1371_v2 }
 0x301   : > { %5852 = vtanh.f32 %v1372_v42 }
 0x302   : > { %v1350_v53 = vpop.f32.mrf.mxu2  ;;  %v1363_v30 = vpop.f32.mrf.mxu3 }
 0x303   : > { %v1369_v32 = vadd.f32 %v1350_v53, %v806_v19  ;;  %v1370_v24 = vadd.f32 %v1363_v30, %v835_v50  ;;  %v1326_v18 = vpop.f32.mrf.mxu0  ;;  %v1339_v14 = vpop.f32.mrf.mxu1  ;;  %v8761_v50 = vld [vmem:[#allocation32_spill] sm:$0xff]  ;;  %v8762_v30 = vld [vmem:[#allocation33_spill] sm:$0xff] }
 0x305   : > { %v1373_v11 = vmul.f32 0.5, %v1369_v32  ;;  %5854 = vtanh.f32 %v1370_v24 }
 0x306   : > { %v5851_v63 = vpop.eup %5850 }
 0x307   : > { %v5853_v51 = vpop.eup %5852  ;;  %v1377_v33 = vmul.f32 0.5, %v5851_v63  ;;  %5856 = vtanh.f32 %v1373_v11  ;;  %v8763_v63 = vld [vmem:[#allocation34_spill] sm:$0xff] }
 0x308   : > { %v1378_v36 = vmul.f32 0.5, %v5853_v51 }
 0x309   : > { %v1380_v10 = vadd.f32 0.5, %v1377_v33  ;;  %v8764_v33 = vld [vmem:[#allocation36_spill] sm:$0xff] }
 0x30a   : > { %v1381_v25 = vadd.f32 0.5, %v1378_v36  ;;  %v1352_v12 = vpop.f32.mrf.mxu2  ;;  %v1365_v38 = vpop.f32.mrf.mxu3 }
 0x30b   : > { %v5855_v35 = vpop.eup %5854 }
 0x30c   : > { %v1384_v62 = vmul.f32 %v1381_v25, %v6769_v48  ;;  %v1385_v0 = vmul.f32 %v5855_v35, %v1380_v10 }
 0x30d   : > { %v5857_v26 = vpop.eup %5856 }
 0x30e   : > { %v6813_v7 = vadd.f32 %v1385_v0, %v1384_v62  ;;  %v1379_v39 = vmul.f32 0.5, %v5857_v26 }
 0x310   : > { %5858 = vtanh.f32 %v6813_v7  ;;  %v1382_v2 = vadd.f32 0.5, %v1379_v39 }
 0x316   : > { %v5859_v42 = vpop.eup %5858 }
 0x317   : > { %v1388_v6 = vmul.f32 %v5859_v42, %v1382_v2 }
 0x319   : > { %v1389_v19 = vpack.c.bf16 %v1388_v6, %v1388_v6 }
 0x31b   : > { %1390 = vst [vmem:[#allocation2 + $0xc] sm:$0xf] %v1389_v19  ;;  %1403 = vmatmul.bf16.vlgmr.msrb.gmra.mxu0 %v1389_v19  ;;  %1416 = vmatmul.bf16.vlgmr.msrb.gmra.mxu1 %v1389_v19 }
 0x31c   : > { %1429 = vmatmul.bf16.vlgmr.msrb.gmra.mxu2 %v1389_v19  ;;  %1442 = vmatmul.bf16.vlgmr.msrb.gmra.mxu3 %v1389_v19 }
 0x31d   : > { %1555 = vmatpush.bf16.msrb.mxu0 %v6435_v46  ;;  %1568 = vmatpush.bf16.msrb.mxu1 %v6437_v49 }
 0x31e   : > { %1581 = vmatpush.bf16.msrb.mxu2 %v6439_v55  ;;  %1594 = vmatpush.bf16.msrb.mxu3 %v6442_v56 }
 0x321   : > { %1556 = vmatpush.bf16.msrb.mxu0 %v6444_v57  ;;  %1569 = vmatpush.bf16.msrb.mxu1 %v6447_v61 }
 0x322   : > { %1582 = vmatpush.bf16.msrb.mxu2 %v6450_v3  ;;  %1595 = vmatpush.bf16.msrb.mxu3 %v6454_v4 }
 0x325   : > { %1557 = vmatpush.bf16.msrb.mxu0 %v6456_v5  ;;  %1570 = vmatpush.bf16.msrb.mxu1 %v6459_v9 }
 0x326   : > { %1583 = vmatpush.bf16.msrb.mxu2 %v6462_v15  ;;  %1596 = vmatpush.bf16.msrb.mxu3 %v6466_v16 }
 0x329   : > { %1558 = vmatpush.bf16.msrb.mxu0 %v6468_v17  ;;  %1571 = vmatpush.bf16.msrb.mxu1 %v6471_v21 }
 0x32a   : > { %1584 = vmatpush.bf16.msrb.mxu2 %v6474_v27  ;;  %1597 = vmatpush.bf16.msrb.mxu3 %v6478_v28 }
 0x32d   : > { %1559 = vmatpush.bf16.msrb.mxu0 %v6480_v29  ;;  %1572 = vmatpush.bf16.msrb.mxu1 %v6484_v31 }
 0x32e   : > { %1585 = vmatpush.bf16.msrb.mxu2 %v6492_v37  ;;  %1598 = vmatpush.bf16.msrb.mxu3 %v6489_v34 }
 0x331   : > { %1560 = vmatpush.bf16.msrb.mxu0 %v6496_v41  ;;  %1573 = vmatpush.bf16.msrb.mxu1 %v6498_v45 }
 0x332   : > { %1586 = vmatpush.bf16.msrb.mxu2 %v6503_v52  ;;  %1599 = vmatpush.bf16.msrb.mxu3 %v6500_v47 }
 0x335   : > { %1561 = vmatpush.bf16.msrb.mxu0 %v6506_v59  ;;  %1574 = vmatpush.bf16.msrb.mxu1 %v6508_v60 }
 0x336   : > { %1587 = vmatpush.bf16.msrb.mxu2 %v6512_v1  ;;  %1600 = vmatpush.bf16.msrb.mxu3 %v6514_v8 }
 0x339   : > { %1562 = vmatpush.bf16.msrb.mxu0 %v6517_v13  ;;  %1575 = vmatpush.bf16.msrb.mxu1 %v6520_v20 }
 0x33a   : > { %1588 = vmatpush.bf16.msrb.mxu2 %v6524_v22  ;;  %1601 = vmatpush.bf16.msrb.mxu3 %v6526_v23 }
 0x398   : > { %v1404_v48 = vpop.f32.mrf.mxu0  ;;  %v1417_v44 = vpop.f32.mrf.mxu1 }
 0x399   : > { %v1447_v53 = vadd.f32 %v1404_v48, %v8761_v50  ;;  %v1448_v32 = vadd.f32 %v1417_v44, %v8762_v30 }
 0x39b   : > { %v1451_v24 = vmul.f32 0.5, %v1447_v53  ;;  %v1452_v18 = vmul.f32 0.5, %v1448_v32 }
 0x39d   : > { %5860 = vtanh.f32 %v1451_v24 }
 0x39e   : > { %5862 = vtanh.f32 %v1452_v18 }
 0x39f   : > { %v1430_v14 = vpop.f32.mrf.mxu2  ;;  %v1443_v11 = vpop.f32.mrf.mxu3 }
 0x3a0   : > { %v1449_v51 = vadd.f32 %v1430_v14, %v8763_v63  ;;  %v1450_v36 = vadd.f32 %v1443_v11, %v8764_v33  ;;  %v1406_v10 = vpop.f32.mrf.mxu0  ;;  %v1419_v25 = vpop.f32.mrf.mxu1 }
 0x3a1   : > { %v5098_v10 = vld [vmem:[#allocation10 + $0xe0] sm:$0xf]  ;;  %v5630_v25 = vld [vmem:[#allocation10 + $0xec] sm:$0xf0] }
 0x3a2   : > { %v1453_v12 = vmul.f32 0.5, %v1449_v51  ;;  %5864 = vtanh.f32 %v1450_v36 }
 0x3a3   : > { %v5861_v38 = vpop.eup %5860 }
 0x3a4   : > { %v5863_v35 = vpop.eup %5862  ;;  %v1457_v62 = vmul.f32 0.5, %v5861_v38  ;;  %5866 = vtanh.f32 %v1453_v12  ;;  %v5628_v12 = vld [vmem:[#allocation10 + $0xe4] sm:$0xf]  ;;  %v6900_v38 = vor.u32 %v5630_v25, %v5098_v10  ;;  %v5018_v25 = vld [vmem:[#allocation10 + $0x40] sm:$0xf] }
 0x3a5   : > { %v1458_v0 = vmul.f32 0.5, %v5863_v35  ;;  %v5100_v35 = vld [vmem:[#allocation10 + $0xf0] sm:$0xf0] }
 0x3a6   : > { %v1460_v26 = vadd.f32 0.5, %v1457_v62  ;;  %v5660_v62 = vld [vmem:[#allocation10 + $0x1e4] sm:$0xf] }
 0x3a7   : > { %v1461_v39 = vadd.f32 0.5, %v1458_v0  ;;  %v1432_v2 = vpop.f32.mrf.mxu2  ;;  %v1445_v42 = vpop.f32.mrf.mxu3  ;;  %v5228_v0 = vld [vmem:[#allocation10 + $0x1f0] sm:$0xf0] }
 0x3a8   : > { %v5865_v6 = vpop.eup %5864  ;;  %v5226_v2 = vld [vmem:[#allocation10 + $0x1e0] sm:$0xf]  ;;  %v5662_v42 = vld [vmem:[#allocation10 + $0x1ec] sm:$0xf0] }
 0x3a9   : > { %v1464_v19 = vmul.f32 %v1461_v39, %v6813_v7  ;;  %v1465_v48 = vmul.f32 %v5865_v6, %v1460_v26  ;;  %v6902_v26 = vor.u32 %v5628_v12, %v5100_v35  ;;  %v6904_v39 = vor.u32 %v5660_v62, %v5228_v0  ;;  %v5610_v12 = vld [vmem:[#allocation10 + $0x4c] sm:$0xf0]  ;;  %v5608_v35 = vld [vmem:[#allocation10 + $0x44] sm:$0xf]  ;;  %v5020_v0 = vld [vmem:[#allocation10 + $0x50] sm:$0xf0] }
 0x3aa   : > { %v5867_v44 = vpop.eup %5866  ;;  %v6909_v6 = vor.u32 %v5662_v42, %v5226_v2  ;;  %v6959_v62 = vor.u32 %v5610_v12, %v5018_v25  ;;  %v5640_v2 = vld [vmem:[#allocation10 + $0x144] sm:$0xf]  ;;  %v5148_v42 = vld [vmem:[#allocation10 + $0x150] sm:$0xf0]  ;;  %v5114_v25 = vld [vmem:[#allocation10 + $0x100] sm:$0xf] }
 0x3ab   : > { %v6853_v50 = vadd.f32 %v1465_v48, %v1464_v19  ;;  %v1459_v53 = vmul.f32 0.5, %v5867_v44  ;;  %v5082_v19 = vld [vmem:[#allocation10 + $0xc0] sm:$0xf]  ;;  %v5626_v48 = vld [vmem:[#allocation10 + $0xcc] sm:$0xf0] }
 0x3ac   : > { %v5624_v44 = vld [vmem:[#allocation10 + $0xc4] sm:$0xf]  ;;  %v5634_v12 = vld [vmem:[#allocation10 + $0x10c] sm:$0xf0] }
 0x3ad   : > { %5868 = vtanh.f32 %v6853_v50  ;;  %v1462_v30 = vadd.f32 0.5, %v1459_v53  ;;  %v5084_v53 = vld [vmem:[#allocation10 + $0xd0] sm:$0xf0] }
 0x3b3   : > { %v5869_v32 = vpop.eup %5868 }
 0x3b4   : > { %v1468_v24 = vmul.f32 %v5869_v32, %v1462_v30  ;;  %v5656_v30 = vld [vmem:[#allocation10 + $0x1c4] sm:$0xf]  ;;  %v5212_v32 = vld [vmem:[#allocation10 + $0x1d0] sm:$0xf0] }
 0x3b6   : > { %v1469_v18 = vpack.c.bf16 %v1468_v24, %v1468_v24  ;;  %v6914_v24 = vor.u32 %v5624_v44, %v5084_v53  ;;  %v5146_v44 = vld [vmem:[#allocation10 + $0x140] sm:$0xf]  ;;  %v5642_v53 = vld [vmem:[#allocation10 + $0x14c] sm:$0xf0] }
 0x3b8   : > { %1470 = vst [vmem:[#allocation2 + $0x10] sm:$0xf] %v1469_v18  ;;  %1483 = vmatmul.bf16.vlgmr.msra.gmra.mxu0 %v1469_v18  ;;  %1496 = vmatmul.bf16.vlgmr.msra.gmra.mxu1 %v1469_v18 }
 0x3b9   : > { %1509 = vmatmul.bf16.vlgmr.msra.gmra.mxu2 %v1469_v18  ;;  %1522 = vmatmul.bf16.vlgmr.msra.gmra.mxu3 %v1469_v18  ;;  %v6916_v18 = vor.u32 %v5656_v30, %v5212_v32  ;;  %v5002_v30 = vld [vmem:[#allocation10 + $0x20] sm:$0xf]  ;;  %v6967_v32 = vor.u32 %v5642_v53, %v5146_v44  ;;  %v8775_v53 = vld [vmem:[#allocation42_spill] sm:$0xff] }
 0x3ba   : > { %1635 = vmatpush.bf16.msra.mxu0 %v6435_v46  ;;  %1661 = vmatpush.bf16.msra.mxu2 %v6439_v55  ;;  %v8765_v46 = vld [vmem:[#allocation35_spill] sm:$0xff]  ;;  %v8766_v55 = vld [vmem:[#allocation37_spill] sm:$0xff] }
 0x3bb   : > { %1674 = vmatpush.bf16.msra.mxu3 %v6442_v56  ;;  %1648 = vmatpush.bf16.msra.mxu1 %v6437_v49  ;;  %v753_v49 = vadd.f32 %v8765_v46, %v6609_v40  ;;  %v782_v56 = vadd.f32 %v8766_v55, %v6613_v43  ;;  %v5210_v46 = vld [vmem:[#allocation10 + $0x1c0] sm:$0xf]  ;;  %v5170_v43 = vld [vmem:[#allocation10 + $0x168] sm:$0xf]  ;;  %v5647_v40 = vld [vmem:[#allocation10 + $0x174] sm:$0xf0] }
 0x3be   : > { %1636 = vmatpush.bf16.msra.mxu0 %v6444_v57  ;;  %1662 = vmatpush.bf16.msra.mxu2 %v6450_v3 }
 0x3bf   : > { %1675 = vmatpush.bf16.msra.mxu3 %v6454_v4  ;;  %1649 = vmatpush.bf16.msra.mxu1 %v6447_v61 }
 0x3c2   : > { %1637 = vmatpush.bf16.msra.mxu0 %v6456_v5  ;;  %1663 = vmatpush.bf16.msra.mxu2 %v6462_v15  ;;  %v8767_v15 = vld [vmem:[#allocation38_spill] sm:$0xff] }
 0x3c3   : > { %1676 = vmatpush.bf16.msra.mxu3 %v6466_v16  ;;  %1650 = vmatpush.bf16.msra.mxu1 %v6459_v9  ;;  %v811_v16 = vadd.f32 %v8767_v15, %v6623_v54  ;;  %v5172_v54 = vld [vmem:[#allocation10 + $0x178] sm:$0xf0] }
 0x3c6   : > { %1638 = vmatpush.bf16.msra.mxu0 %v6468_v17  ;;  %1664 = vmatpush.bf16.msra.mxu2 %v6474_v27  ;;  %v8768_v17 = vld [vmem:[#allocation39_spill] sm:$0xff] }
 0x3c7   : > { %1677 = vmatpush.bf16.msra.mxu3 %v6478_v28  ;;  %1651 = vmatpush.bf16.msra.mxu1 %v6471_v21  ;;  %v840_v21 = vadd.f32 %v8768_v17, %v6625_v58  ;;  %v5194_v17 = vld [vmem:[#allocation10 + $0x1a0] sm:$0xf]  ;;  %v5645_v58 = vld [vmem:[#allocation10 + $0x16c] sm:$0xf] }
 0x3ca   : > { %1639 = vmatpush.bf16.msra.mxu0 %v6480_v29  ;;  %1665 = vmatpush.bf16.msra.mxu2 %v6492_v37 }
 0x3cb   : > { %1678 = vmatpush.bf16.msra.mxu3 %v6489_v34  ;;  %1652 = vmatpush.bf16.msra.mxu1 %v6484_v31 }
 0x3ce   : > { %1640 = vmatpush.bf16.msra.mxu0 %v6496_v41  ;;  %1666 = vmatpush.bf16.msra.mxu2 %v6503_v52 }
 0x3cf   : > { %1679 = vmatpush.bf16.msra.mxu3 %v6500_v47  ;;  %1653 = vmatpush.bf16.msra.mxu1 %v6498_v45 }
 0x3d2   : > { %1641 = vmatpush.bf16.msra.mxu0 %v6506_v59  ;;  %1667 = vmatpush.bf16.msra.mxu2 %v6512_v1 }
 0x3d3   : > { %1680 = vmatpush.bf16.msra.mxu3 %v6514_v8  ;;  %1654 = vmatpush.bf16.msra.mxu1 %v6508_v60 }
 0x3d6   : > { %1642 = vmatpush.bf16.msra.mxu0 %v6517_v13  ;;  %1668 = vmatpush.bf16.msra.mxu2 %v6524_v22 }
 0x3d7   : > { %1681 = vmatpush.bf16.msra.mxu3 %v6526_v23  ;;  %1655 = vmatpush.bf16.msra.mxu1 %v6520_v20 }
 0x435   : > { %v1484_v57 = vpop.f32.mrf.mxu0  ;;  %v1497_v61 = vpop.f32.mrf.mxu1 }
 0x436   : > { %v1527_v3 = vadd.f32 %v1484_v57, %v753_v49  ;;  %v1528_v4 = vadd.f32 %v1497_v61, %v782_v56  ;;  %v5658_v49 = vld [vmem:[#allocation10 + $0x1cc] sm:$0xf0]  ;;  %v5066_v56 = vld [vmem:[#allocation10 + $0xa0] sm:$0xf]  ;;  %v5620_v61 = vld [vmem:[#allocation10 + $0xa4] sm:$0xf] }
 0x437   : > { %v6921_v55 = vor.u32 %v5658_v49, %v5210_v46  ;;  %v5622_v57 = vld [vmem:[#allocation10 + $0xac] sm:$0xf0]  ;;  %v5604_v49 = vld [vmem:[#allocation10 + $0x24] sm:$0xf] }
 0x438   : > { %v1531_v5 = vmul.f32 0.5, %v1527_v3  ;;  %v1532_v9 = vmul.f32 0.5, %v1528_v4  ;;  %v6923_v3 = vor.u32 %v5622_v57, %v5066_v56  ;;  %v5068_v4 = vld [vmem:[#allocation10 + $0xb0] sm:$0xf0]  ;;  %v5606_v46 = vld [vmem:[#allocation10 + $0x2c] sm:$0xf0] }
 0x439   : > { %v6926_v15 = vor.u32 %v5620_v61, %v5068_v4  ;;  %v5004_v56 = vld [vmem:[#allocation10 + $0x30] sm:$0xf0]  ;;  %v6971_v57 = vor.u32 %v5606_v46, %v5002_v30  ;;  %v5636_v4 = vld [vmem:[#allocation10 + $0x124] sm:$0xf]  ;;  %v8776_v46 = vld [vmem:[#allocation44_spill] sm:$0xff] }
 0x43a   : > { %5870 = vtanh.f32 %v1531_v5  ;;  %v5652_v5 = vld [vmem:[#allocation10 + $0x1a4] sm:$0xf]  ;;  %v6973_v61 = vor.u32 %v5604_v49, %v5004_v56 }
 0x43b   : > { %5872 = vtanh.f32 %v1532_v9  ;;  %v5196_v9 = vld [vmem:[#allocation10 + $0x1b0] sm:$0xf0] }
 0x43c   : > { %v1510_v27 = vpop.f32.mrf.mxu2  ;;  %v1523_v28 = vpop.f32.mrf.mxu3 }
 0x43d   : > { %v1529_v29 = vadd.f32 %v1510_v27, %v811_v16  ;;  %v1530_v31 = vadd.f32 %v1523_v28, %v840_v21  ;;  %v1486_v34 = vpop.f32.mrf.mxu0  ;;  %v1499_v37 = vpop.f32.mrf.mxu1  ;;  %v6928_v16 = vor.u32 %v5652_v5, %v5196_v9  ;;  %v5654_v21 = vld [vmem:[#allocation10 + $0x1ac] sm:$0xf0]  ;;  %v5050_v28 = vld [vmem:[#allocation10 + $0x80] sm:$0xf]  ;;  %v5132_v5 = vld [vmem:[#allocation10 + $0x130] sm:$0xf0] }
 0x43e   : > { %v6933_v27 = vor.u32 %v5654_v21, %v5194_v17  ;;  %v5052_v37 = vld [vmem:[#allocation10 + $0x90] sm:$0xf0]  ;;  %v5130_v9 = vld [vmem:[#allocation10 + $0x120] sm:$0xf]  ;;  %v6975_v17 = vor.u32 %v5636_v4, %v5132_v5  ;;  %v5638_v21 = vld [vmem:[#allocation10 + $0x12c] sm:$0xf0] }
 0x43f   : > { %v1533_v41 = vmul.f32 0.5, %v1529_v29  ;;  %5874 = vtanh.f32 %v1530_v31  ;;  %v5618_v29 = vld [vmem:[#allocation10 + $0x8c] sm:$0xf0]  ;;  %v5616_v31 = vld [vmem:[#allocation10 + $0x84] sm:$0xf] }
 0x440   : > { %v5871_v45 = vpop.eup %5870  ;;  %v6935_v34 = vor.u32 %v5618_v29, %v5050_v28  ;;  %8769 = vst [vmem:[#allocation28_spill] sm:$0xff] %v6975_v17  ;;  %v4986_v28 = vld [vmem:[#allocation10] sm:$0xf]  ;;  %v5602_v29 = vld [vmem:[#allocation10 + $0xc] sm:$0xf0] }
 0x441   : > { %v5873_v47 = vpop.eup %5872  ;;  %v1537_v52 = vmul.f32 0.5, %v5871_v45  ;;  %5876 = vtanh.f32 %v1533_v41  ;;  %v5648_v41 = vld [vmem:[#allocation10 + $0x184] sm:$0xf]  ;;  %v5180_v45 = vld [vmem:[#allocation10 + $0x190] sm:$0xf0] }
 0x442   : > { %v1538_v59 = vmul.f32 0.5, %v5873_v47  ;;  %v6938_v47 = vor.u32 %v5616_v31, %v5052_v37  ;;  %v6978_v31 = vor.u32 %v5638_v21, %v5130_v9  ;;  %v5600_v37 = vld [vmem:[#allocation10 + $0x4] sm:$0xf] }
 0x443   : > { %v1540_v60 = vadd.f32 0.5, %v1537_v52  ;;  %v6940_v52 = vor.u32 %v5648_v41, %v5180_v45  ;;  %v4988_v41 = vld [vmem:[#allocation10 + $0x10] sm:$0xf0]  ;;  %v6981_v45 = vor.u32 %v5602_v29, %v4986_v28 }
 0x444   : > { %v1541_v1 = vadd.f32 0.5, %v1538_v59  ;;  %v1512_v8 = vpop.f32.mrf.mxu2  ;;  %v1525_v13 = vpop.f32.mrf.mxu3  ;;  %v5178_v59 = vld [vmem:[#allocation10 + $0x180] sm:$0xf]  ;;  %8770 = vst [vmem:[#allocation27_spill] sm:$0xff] %v6978_v31 }
 0x445   : > { %v5875_v20 = vpop.eup %5874  ;;  %v5034_v8 = vld [vmem:[#allocation10 + $0x60] sm:$0xf]  ;;  %v5614_v13 = vld [vmem:[#allocation10 + $0x6c] sm:$0xf0] }
 0x446   : > { %v1544_v22 = vmul.f32 %v1541_v1, %v6853_v50  ;;  %v1545_v23 = vmul.f32 %v5875_v20, %v1540_v60  ;;  %v6911_v50 = vor.u32 %v5626_v48, %v5082_v19  ;;  %v5650_v60 = vld [vmem:[#allocation10 + $0x18c] sm:$0xf0]  ;;  %v5612_v20 = vld [vmem:[#allocation10 + $0x64] sm:$0xf]  ;;  %v6962_v19 = vor.u32 %v5608_v35, %v5020_v0 }
 0x447   : > { %v5877_v7 = vpop.eup %5876  ;;  %v6945_v1 = vor.u32 %v5650_v60, %v5178_v59  ;;  %v6964_v48 = vor.u32 %v5640_v2, %v5148_v42  ;;  %v6985_v59 = vor.u32 %v5600_v37, %v4988_v41  ;;  %v5632_v60 = vld [vmem:[#allocation10 + $0x104] sm:$0xf]  ;;  %v6995_v35 = vor.u32 %v5634_v12, %v5114_v25  ;;  %v5106_v12 = vld [vmem:[#allocation10 + $0xe8] sm:$0xf] }
 0x448   : > { %v6897_v14 = vadd.f32 %v1545_v23, %v1544_v22  ;;  %v1539_v11 = vmul.f32 0.5, %v5877_v7  ;;  %v6947_v22 = vor.u32 %v5614_v13, %v5034_v8  ;;  %v5036_v23 = vld [vmem:[#allocation10 + $0x70] sm:$0xf0]  ;;  %v5644_v7 = vld [vmem:[#allocation10 + $0x164] sm:$0xf] }
 0x449   : > { %v5116_v8 = vld [vmem:[#allocation10 + $0x110] sm:$0xf0]  ;;  %8774 = vst [vmem:[#allocation30_spill] sm:$0xff] %v6995_v35 }
 0x44a   : > { %5878 = vtanh.f32 %v6897_v14  ;;  %v1542_v63 = vadd.f32 0.5, %v1539_v11  ;;  %v5164_v11 = vld [vmem:[#allocation10 + $0x170] sm:$0xf0]  ;;  %v6989_v13 = vor.u32 %v5632_v60, %v5116_v8 }
 0x44c   : > { %8771 = vst [vmem:[#allocation29_spill] sm:$0xff] %v6989_v13 }
 0x450   : > { %v5879_v51 = vpop.eup %5878 }
 0x451   : > { %v1548_v33 = vmul.f32 %v5879_v51, %v1542_v63  ;;  %v6950_v63 = vor.u32 %v5612_v20, %v5036_v23  ;;  %v6952_v51 = vor.u32 %v5644_v7, %v5164_v11  ;;  %v8772_v7 = vld [vmem:[#allocation40_spill] sm:$0xff] }
 0x453   : > { %v1549_v36 = vpack.c.bf16 %v1548_v33, %v1548_v33  ;;  %v5162_v33 = vld [vmem:[#allocation10 + $0x160] sm:$0xf] }
 0x455   : > { %1550 = vst [vmem:[#allocation2 + $0x14] sm:$0xf] %v1549_v36  ;;  %1563 = vmatmul.bf16.vlgmr.msrb.gmra.mxu0 %v1549_v36  ;;  %1576 = vmatmul.bf16.vlgmr.msrb.gmra.mxu1 %v1549_v36 }
 0x456   : > { %1589 = vmatmul.bf16.vlgmr.msrb.gmra.mxu2 %v1549_v36  ;;  %1602 = vmatmul.bf16.vlgmr.msrb.gmra.mxu3 %v1549_v36  ;;  %v5646_v36 = vld [vmem:[#allocation10 + $0x16c] sm:$0xf0] }
 0x457   : > { %2106 = vmatpush.bf16.msrb.mxu0 %v6900_v38  ;;  %2132 = vmatpush.bf16.msrb.mxu2 %v6902_v26  ;;  %v6957_v10 = vor.u32 %v5646_v36, %v5162_v33  ;;  %v8773_v33 = vld [vmem:[#allocation41_spill] sm:$0xff] }
 0x458   : > { %2145 = vmatpush.bf16.msrb.mxu3 %v6904_v39  ;;  %2119 = vmatpush.bf16.msrb.mxu1 %v6909_v6 }
 0x45b   : > { %2107 = vmatpush.bf16.msrb.mxu0 %v6911_v50  ;;  %2133 = vmatpush.bf16.msrb.mxu2 %v6914_v24 }
 0x45c   : > { %2146 = vmatpush.bf16.msrb.mxu3 %v6916_v18  ;;  %2120 = vmatpush.bf16.msrb.mxu1 %v6921_v55 }
 0x45f   : > { %2108 = vmatpush.bf16.msrb.mxu0 %v6923_v3  ;;  %2134 = vmatpush.bf16.msrb.mxu2 %v6926_v15 }
 0x460   : > { %2147 = vmatpush.bf16.msrb.mxu3 %v6928_v16  ;;  %2121 = vmatpush.bf16.msrb.mxu1 %v6933_v27 }
 0x463   : > { %2109 = vmatpush.bf16.msrb.mxu0 %v6935_v34  ;;  %2135 = vmatpush.bf16.msrb.mxu2 %v6938_v47 }
 0x464   : > { %2148 = vmatpush.bf16.msrb.mxu3 %v6940_v52  ;;  %2122 = vmatpush.bf16.msrb.mxu1 %v6945_v1 }
 0x467   : > { %2110 = vmatpush.bf16.msrb.mxu0 %v6947_v22  ;;  %2136 = vmatpush.bf16.msrb.mxu2 %v6950_v63 }
 0x468   : > { %2149 = vmatpush.bf16.msrb.mxu3 %v6952_v51  ;;  %2123 = vmatpush.bf16.msrb.mxu1 %v6957_v10 }
 0x46b   : > { %2111 = vmatpush.bf16.msrb.mxu0 %v6959_v62  ;;  %2137 = vmatpush.bf16.msrb.mxu2 %v6962_v19 }
 0x46c   : > { %2150 = vmatpush.bf16.msrb.mxu3 %v6964_v48  ;;  %2124 = vmatpush.bf16.msrb.mxu1 %v6967_v32 }
 0x46f   : > { %2112 = vmatpush.bf16.msrb.mxu0 %v6971_v57  ;;  %2138 = vmatpush.bf16.msrb.mxu2 %v6973_v61 }
 0x470   : > { %2151 = vmatpush.bf16.msrb.mxu3 %v6975_v17  ;;  %2125 = vmatpush.bf16.msrb.mxu1 %v6978_v31 }
 0x473   : > { %2113 = vmatpush.bf16.msrb.mxu0 %v6981_v45  ;;  %2139 = vmatpush.bf16.msrb.mxu2 %v6985_v59 }
 0x474   : > { %2152 = vmatpush.bf16.msrb.mxu3 %v6989_v13  ;;  %2126 = vmatpush.bf16.msrb.mxu1 %v6995_v35 }
 0x4d2   : > { %v1564_v20 = vpop.f32.mrf.mxu0  ;;  %v1577_v23 = vpop.f32.mrf.mxu1 }
 0x4d3   : > { %v1607_v11 = vadd.f32 %v1564_v20, %v8772_v7  ;;  %v1608_v36 = vadd.f32 %v1577_v23, %v8773_v33 }
 0x4d5   : > { %v1611_v0 = vmul.f32 0.5, %v1607_v11  ;;  %v1612_v2 = vmul.f32 0.5, %v1608_v36 }
 0x4d7   : > { %5880 = vtanh.f32 %v1611_v0  ;;  %v5631_v0 = vld [vmem:[#allocation10 + $0xf4] sm:$0xf0] }
 0x4d8   : > { %5882 = vtanh.f32 %v1612_v2 }
 0x4d9   : > { %v1590_v42 = vpop.f32.mrf.mxu2  ;;  %v1603_v44 = vpop.f32.mrf.mxu3 }
 0x4da   : > { %v1609_v30 = vadd.f32 %v1590_v42, %v8775_v53  ;;  %v1610_v49 = vadd.f32 %v1603_v44, %v8776_v46  ;;  %v1566_v56 = vpop.f32.mrf.mxu0  ;;  %v1579_v4 = vpop.f32.mrf.mxu1  ;;  %v5629_v42 = vld [vmem:[#allocation10 + $0xec] sm:$0xf]  ;;  %v5108_v44 = vld [vmem:[#allocation10 + $0xf8] sm:$0xf0] }
 0x4db   : > { %v5661_v53 = vld [vmem:[#allocation10 + $0x1ec] sm:$0xf]  ;;  %v5236_v46 = vld [vmem:[#allocation10 + $0x1f8] sm:$0xf0]  ;;  %v5663_v56 = vld [vmem:[#allocation10 + $0x1f4] sm:$0xf0] }
 0x4dc   : > { %v1613_v5 = vmul.f32 0.5, %v1609_v30  ;;  %5884 = vtanh.f32 %v1610_v49  ;;  %v5234_v49 = vld [vmem:[#allocation10 + $0x1e8] sm:$0xf] }
 0x4dd   : > { %v5881_v9 = vpop.eup %5880 }
 0x4de   : > { %v5883_v21 = vpop.eup %5882  ;;  %v1617_v28 = vmul.f32 0.5, %v5881_v9  ;;  %5886 = vtanh.f32 %v1613_v5  ;;  %v7006_v5 = vor.u32 %v5629_v42, %v5108_v44  ;;  %v5090_v9 = vld [vmem:[#allocation10 + $0xc8] sm:$0xf]  ;;  %v5076_v42 = vld [vmem:[#allocation10 + $0xb8] sm:$0xf0] }
 0x4df   : > { %v1618_v29 = vmul.f32 0.5, %v5883_v21  ;;  %v5627_v21 = vld [vmem:[#allocation10 + $0xd4] sm:$0xf0]  ;;  %v5653_v44 = vld [vmem:[#allocation10 + $0x1ac] sm:$0xf] }
 0x4e0   : > { %v1620_v37 = vadd.f32 0.5, %v1617_v28  ;;  %v5625_v28 = vld [vmem:[#allocation10 + $0xcc] sm:$0xf] }
 0x4e1   : > { %v1621_v41 = vadd.f32 0.5, %v1618_v29  ;;  %v1592_v60 = vpop.f32.mrf.mxu2  ;;  %v1605_v8 = vpop.f32.mrf.mxu3  ;;  %v7008_v29 = vor.u32 %v5661_v53, %v5236_v46  ;;  %v5204_v53 = vld [vmem:[#allocation10 + $0x1b8] sm:$0xf0]  ;;  %v5655_v46 = vld [vmem:[#allocation10 + $0x1b4] sm:$0xf0] }
 0x4e2   : > { %v5885_v20 = vpop.eup %5884  ;;  %v5657_v60 = vld [vmem:[#allocation10 + $0x1cc] sm:$0xf]  ;;  %v5220_v8 = vld [vmem:[#allocation10 + $0x1d8] sm:$0xf0] }
 0x4e3   : > { %v1624_v23 = vmul.f32 %v1621_v41, %v6897_v14  ;;  %v1625_v7 = vmul.f32 %v5885_v20, %v1620_v37  ;;  %v7004_v14 = vor.u32 %v5631_v0, %v5106_v12  ;;  %8778 = vst [vmem:[#allocation32_spill] sm:$0xff] %v7008_v29  ;;  %v7010_v37 = vor.u32 %v5663_v56, %v5234_v49  ;;  %v5092_v41 = vld [vmem:[#allocation10 + $0xd8] sm:$0xf0]  ;;  %v5218_v20 = vld [vmem:[#allocation10 + $0x1c8] sm:$0xf] }
 0x4e4   : > { %v5887_v11 = vpop.eup %5886  ;;  %v7020_v12 = vor.u32 %v5657_v60, %v5220_v8  ;;  %v5060_v60 = vld [vmem:[#allocation10 + $0x98] sm:$0xf0]  ;;  %v5649_v8 = vld [vmem:[#allocation10 + $0x18c] sm:$0xf] }
 0x4e5   : > { %v7001_v33 = vadd.f32 %v1625_v7, %v1624_v23  ;;  %v1619_v36 = vmul.f32 0.5, %v5887_v11  ;;  %8779 = vst [vmem:[#allocation33_spill] sm:$0xff] %v7010_v37  ;;  %v5659_v23 = vld [vmem:[#allocation10 + $0x1d4] sm:$0xf0]  ;;  %v7014_v7 = vor.u32 %v5627_v21, %v5090_v9  ;;  %v7016_v11 = vor.u32 %v5625_v28, %v5092_v41  ;;  %v5617_v41 = vld [vmem:[#allocation10 + $0x8c] sm:$0xf] }
 0x4e6   : > { %8780 = vst [vmem:[#allocation34_spill] sm:$0xff] %v7020_v12  ;;  %v7022_v0 = vor.u32 %v5659_v23, %v5218_v20  ;;  %v5619_v9 = vld [vmem:[#allocation10 + $0x94] sm:$0xf0]  ;;  %v7032_v21 = vor.u32 %v5653_v44, %v5204_v53  ;;  %v5188_v20 = vld [vmem:[#allocation10 + $0x198] sm:$0xf0] }
 0x4e7   : > { %8777 = vst [vmem:[#allocation31_spill] sm:$0xff] %v7001_v33  ;;  %5888 = vtanh.f32 %v7001_v33  ;;  %v1622_v25 = vadd.f32 0.5, %v1619_v36  ;;  %v5074_v36 = vld [vmem:[#allocation10 + $0xa8] sm:$0xf]  ;;  %v5651_v33 = vld [vmem:[#allocation10 + $0x194] sm:$0xf0]  ;;  %v7044_v44 = vor.u32 %v5649_v8, %v5188_v20  ;;  %v7060_v20 = vor.u32 %v5647_v40, %v5170_v43 }
 0x4e8   : > { %8781 = vst [vmem:[#allocation36_spill] sm:$0xff] %v7022_v0  ;;  %v5186_v23 = vld [vmem:[#allocation10 + $0x188] sm:$0xf]  ;;  %v5611_v8 = vld [vmem:[#allocation10 + $0x54] sm:$0xf0] }
 0x4e9   : > { %8783 = vst [vmem:[#allocation37_spill] sm:$0xff] %v7032_v21  ;;  %v7046_v53 = vor.u32 %v5651_v33, %v5186_v23  ;;  %v7058_v33 = vor.u32 %v5645_v58, %v5172_v54  ;;  %v5609_v23 = vld [vmem:[#allocation10 + $0x4c] sm:$0xf]  ;;  %v5010_v54 = vld [vmem:[#allocation10 + $0x28] sm:$0xf] }
 0x4ea   : > { %8787 = vst [vmem:[#allocation41_spill] sm:$0xff] %v7044_v44  ;;  %v5607_v58 = vld [vmem:[#allocation10 + $0x34] sm:$0xf0] }
 0x4eb   : > { %8788 = vst [vmem:[#allocation42_spill] sm:$0xff] %v7046_v53 }
 0x4ec   : > { %8791 = vst [vmem:[#allocation49_spill] sm:$0xff] %v7058_v33 }
 0x4ed   : > { %v5889_v2 = vpop.eup %5888  ;;  %8792 = vst [vmem:[#allocation50_spill] sm:$0xff] %v7060_v20 }
 0x4ee   : > { %v1628_v30 = vmul.f32 %v5889_v2, %v1622_v25  ;;  %v5623_v25 = vld [vmem:[#allocation10 + $0xb4] sm:$0xf0]  ;;  %v5621_v2 = vld [vmem:[#allocation10 + $0xac] sm:$0xf] }
 0x4ef   : > { %v7026_v49 = vor.u32 %v5623_v25, %v5074_v36  ;;  %v7028_v56 = vor.u32 %v5621_v2, %v5076_v42  ;;  %v7040_v25 = vor.u32 %v5617_v41, %v5060_v60  ;;  %v5042_v2 = vld [vmem:[#allocation10 + $0x68] sm:$0xf]  ;;  %v5615_v42 = vld [vmem:[#allocation10 + $0x74] sm:$0xf0] }
 0x4f0   : > { %v1629_v4 = vpack.c.bf16 %v1628_v30, %v1628_v30  ;;  %v5202_v30 = vld [vmem:[#allocation10 + $0x1a8] sm:$0xf] }
 0x4f1   : > { %8782 = vst [vmem:[#allocation35_spill] sm:$0xff] %v7028_v56  ;;  %v7034_v28 = vor.u32 %v5655_v46, %v5202_v30  ;;  %v5613_v30 = vld [vmem:[#allocation10 + $0x6c] sm:$0xf]  ;;  %v5044_v46 = vld [vmem:[#allocation10 + $0x78] sm:$0xf0] }
 0x4f2   : > { %1630 = vst [vmem:[#allocation2 + $0x18] sm:$0xf] %v1629_v4  ;;  %1643 = vmatmul.bf16.vlgmr.msra.gmra.mxu0 %v1629_v4  ;;  %1656 = vmatmul.bf16.vlgmr.msra.gmra.mxu1 %v1629_v4  ;;  %v7054_v41 = vor.u32 %v5613_v30, %v5044_v46  ;;  %v5026_v60 = vld [vmem:[#allocation10 + $0x48] sm:$0xf]  ;;  %v5643_v30 = vld [vmem:[#allocation10 + $0x154] sm:$0xf0] }
 0x4f3   : > { %1669 = vmatmul.bf16.vlgmr.msra.gmra.mxu2 %v1629_v4  ;;  %1682 = vmatmul.bf16.vlgmr.msra.gmra.mxu3 %v1629_v4  ;;  %v5058_v4 = vld [vmem:[#allocation10 + $0x88] sm:$0xf]  ;;  %8784 = vst [vmem:[#allocation38_spill] sm:$0xff] %v7034_v28  ;;  %v7068_v40 = vor.u32 %v5611_v8, %v5026_v60 }
 0x4f4   : > { %2158 = vmatpush.bf16.msra.mxu0 %v7004_v14  ;;  %2184 = vmatpush.bf16.msra.mxu2 %v7006_v5  ;;  %v7038_v36 = vor.u32 %v5619_v9, %v5058_v4  ;;  %8786 = vst [vmem:[#allocation40_spill] sm:$0xff] %v7040_v25  ;;  %v7050_v4 = vld [vmem:[#allocation2] sm:$0xf]  ;;  %v7052_v9 = vor.u32 %v5615_v42, %v5042_v2  ;;  %v5156_v2 = vld [vmem:[#allocation10 + $0x158] sm:$0xf0] }
 0x4f5   : > { %2197 = vmatpush.bf16.msra.mxu3 %v7008_v29  ;;  %2171 = vmatpush.bf16.msra.mxu1 %v7010_v37  ;;  %8790 = vst [vmem:[#allocation48_spill] sm:$0xff] %v7054_v41  ;;  %v5154_v42 = vld [vmem:[#allocation10 + $0x148] sm:$0xf] }
 0x4f6   : > { %8785 = vst [vmem:[#allocation39_spill] sm:$0xff] %v7038_v36  ;;  %v4994_v8 = vld [vmem:[#allocation10 + $0x8] sm:$0xf] }
 0x4f7   : > { %8789 = vst [vmem:[#allocation44_spill] sm:$0xff] %v7052_v9 }
 0x4f8   : > { %2159 = vmatpush.bf16.msra.mxu0 %v7014_v7  ;;  %2185 = vmatpush.bf16.msra.mxu2 %v7016_v11  ;;  %8794 = vst [vmem:[#allocation51_spill] sm:$0xff] %v7068_v40 }
 0x4f9   : > { %2198 = vmatpush.bf16.msra.mxu3 %v7020_v12  ;;  %2172 = vmatpush.bf16.msra.mxu1 %v7022_v0  ;;  %v5637_v12 = vld [vmem:[#allocation10 + $0x12c] sm:$0xf] }
 0x4fc   : > { %2160 = vmatpush.bf16.msra.mxu0 %v7026_v49  ;;  %2186 = vmatpush.bf16.msra.mxu2 %v7028_v56  ;;  %v5138_v56 = vld [vmem:[#allocation10 + $0x128] sm:$0xf] }
 0x4fd   : > { %2199 = vmatpush.bf16.msra.mxu3 %v7032_v21  ;;  %2173 = vmatpush.bf16.msra.mxu1 %v7034_v28  ;;  %v5028_v21 = vld [vmem:[#allocation10 + $0x58] sm:$0xf0] }
 0x4fe   : > { %v7070_v43 = vor.u32 %v5609_v23, %v5028_v21  ;;  %v5012_v28 = vld [vmem:[#allocation10 + $0x38] sm:$0xf0]  ;;  %v7080_v21 = vor.u32 %v5607_v58, %v5010_v54  ;;  %v8808_v54 = vld [vmem:[#allocation42_spill] sm:$0xff] }
 0x4ff   : > { %v8809_v58 = vld [vmem:[#allocation44_spill] sm:$0xff] }
 0x500   : > { %2161 = vmatpush.bf16.msra.mxu0 %v7038_v36  ;;  %2187 = vmatpush.bf16.msra.mxu2 %v7040_v25  ;;  %v5641_v36 = vld [vmem:[#allocation10 + $0x14c] sm:$0xf]  ;;  %v8793_v25 = vmov 0   ;;  %8795 = vst [vmem:[#allocation52_spill] sm:$0xff] %v7070_v43 }
 0x501   : > { %2200 = vmatpush.bf16.msra.mxu3 %v7044_v44  ;;  %2174 = vmatpush.bf16.msra.mxu1 %v7046_v53  ;;  %v7074_v46 = vor.u32 %v5641_v36, %v5156_v2  ;;  %v7076_v44 = vor.u32 %v5643_v30, %v5154_v42  ;;  %v5605_v53 = vld [vmem:[#allocation10 + $0x2c] sm:$0xf]  ;;  %v5603_v2 = vld [vmem:[#allocation10 + $0x14] sm:$0xf0]  ;;  %v4996_v30 = vld [vmem:[#allocation10 + $0x18] sm:$0xf0] }
 0x502   : > { %2114 = vmatmul.bf16.vlgmr.msrb.gmra.mxu0 %v7050_v4  ;;  %2127 = vmatmul.bf16.vlgmr.msrb.gmra.mxu1 %v8793_v25  ;;  %v7082_v60 = vor.u32 %v5605_v53, %v5012_v28  ;;  %v5601_v42 = vld [vmem:[#allocation10 + $0xc] sm:$0xf]  ;;  %v7092_v28 = vor.u32 %v5603_v2, %v4994_v8  ;;  %v8810_v8 = vld [vmem:[#allocation48_spill] sm:$0xff]  ;;  %v8811_v2 = vld [vmem:[#allocation41_spill] sm:$0xff] }
 0x503   : > { %2140 = vmatmul.bf16.vlgmr.msrb.gmra.mxu2 %v7050_v4  ;;  %2153 = vmatmul.bf16.vlgmr.msrb.gmra.mxu3 %v8793_v25  ;;  %8796 = vst [vmem:[#allocation53_spill] sm:$0xff] %v7074_v46  ;;  %v7094_v53 = vor.u32 %v5601_v42, %v4996_v30  ;;  %v8812_v42 = vld [vmem:[#allocation50_spill] sm:$0xff]  ;;  %v8813_v30 = vld [vmem:[#allocation51_spill] sm:$0xff] }
 0x504   : > { %2162 = vmatpush.bf16.msra.mxu0 %v7052_v9  ;;  %2188 = vmatpush.bf16.msra.mxu2 %v7054_v41  ;;  %8797 = vst [vmem:[#allocation54_spill] sm:$0xff] %v7076_v44  ;;  %v5140_v9 = vld [vmem:[#allocation10 + $0x138] sm:$0xf0]  ;;  %v5639_v41 = vld [vmem:[#allocation10 + $0x134] sm:$0xf0] }
 0x505   : > { %2201 = vmatpush.bf16.msra.mxu3 %v7058_v33  ;;  %2175 = vmatpush.bf16.msra.mxu1 %v7060_v20  ;;  %v7086_v36 = vor.u32 %v5637_v12, %v5140_v9  ;;  %v7088_v23 = vor.u32 %v5639_v41, %v5138_v56  ;;  %v5633_v33 = vld [vmem:[#allocation10 + $0x10c] sm:$0xf]  ;;  %v5122_v20 = vld [vmem:[#allocation10 + $0x108] sm:$0xf]  ;;  %v8802_v9 = vld [vmem:[#allocation35_spill] sm:$0xff] }
 0x506   : > { %v8803_v41 = vld [vmem:[#allocation34_spill] sm:$0xff] }
 0x507   : > { %8798 = vst [vmem:[#allocation55_spill] sm:$0xff] %v7086_v36 }
 0x508   : > { %2163 = vmatpush.bf16.msra.mxu0 %v7068_v40  ;;  %2189 = vmatpush.bf16.msra.mxu2 %v7070_v43  ;;  %8799 = vst [vmem:[#allocation56_spill] sm:$0xff] %v7088_v23  ;;  %v5124_v40 = vld [vmem:[#allocation10 + $0x118] sm:$0xf0]  ;;  %v5635_v43 = vld [vmem:[#allocation10 + $0x114] sm:$0xf0] }
 0x509   : > { %2202 = vmatpush.bf16.msra.mxu3 %v7074_v46  ;;  %2176 = vmatpush.bf16.msra.mxu1 %v7076_v44  ;;  %v7098_v12 = vor.u32 %v5633_v33, %v5124_v40  ;;  %v7100_v56 = vor.u32 %v5635_v43, %v5122_v20  ;;  %v8804_v33 = vld [vmem:[#allocation38_spill] sm:$0xff]  ;;  %v8805_v20 = vld [vmem:[#allocation39_spill] sm:$0xff]  ;;  %v8806_v40 = vld [vmem:[#allocation40_spill] sm:$0xff] }
 0x50a   : > { %v8807_v43 = vld [vmem:[#allocation37_spill] sm:$0xff] }
 0x50b   : > { %8800 = vst [vmem:[#allocation57_spill] sm:$0xff] %v7098_v12 }
 0x50c   : > { %2164 = vmatpush.bf16.msra.mxu0 %v7080_v21  ;;  %2190 = vmatpush.bf16.msra.mxu2 %v7082_v60  ;;  %8801 = vst [vmem:[#allocation58_spill] sm:$0xff] %v7100_v56 }
 0x50d   : > { %2203 = vmatpush.bf16.msra.mxu3 %v7086_v36  ;;  %2177 = vmatpush.bf16.msra.mxu1 %v7088_v23 }
 0x510   : > { %2165 = vmatpush.bf16.msra.mxu0 %v7092_v28  ;;  %2191 = vmatpush.bf16.msra.mxu2 %v7094_v53 }
 0x511   : > { %2204 = vmatpush.bf16.msra.mxu3 %v7098_v12  ;;  %2178 = vmatpush.bf16.msra.mxu1 %v7100_v56 }
 0x513   : > { %2166 = vmatmul.bf16.vlgmr.msra.gmra.mxu0 %v7050_v4  ;;  %2192 = vmatmul.bf16.vlgmr.msra.gmra.mxu2 %v7050_v4  ;;  %v2230_v4 = vld [vmem:[#allocation2 + $0x4] sm:$0xf] }
 0x514   : > { %2231 = vmatpush.bf16.msrb.mxu0 %v6900_v38  ;;  %2257 = vmatpush.bf16.msrb.mxu2 %v6902_v26 }
 0x515   : > { %2205 = vmatmul.bf16.vlgmr.msra.gmra.mxu3 %v8793_v25  ;;  %2244 = vmatpush.bf16.msrb.mxu1 %v6909_v6 }
 0x516   : > { %2179 = vmatmul.bf16.vlgmr.msra.gmra.mxu1 %v8793_v25  ;;  %2270 = vmatpush.bf16.msrb.mxu3 %v6904_v39  ;;  %v8814_v25 = vld [vmem:[#allocation52_spill] sm:$0xff] }
 0x518   : > { %2232 = vmatpush.bf16.msrb.mxu0 %v6911_v50  ;;  %2258 = vmatpush.bf16.msrb.mxu2 %v6914_v24 }
 0x519   : > { %2245 = vmatpush.bf16.msrb.mxu1 %v6921_v55 }
 0x51a   : > { %2271 = vmatpush.bf16.msrb.mxu3 %v6916_v18 }
 0x51c   : > { %2233 = vmatpush.bf16.msrb.mxu0 %v6923_v3  ;;  %2259 = vmatpush.bf16.msrb.mxu2 %v6926_v15 }
 0x51d   : > { %2246 = vmatpush.bf16.msrb.mxu1 %v6933_v27 }
 0x51e   : > { %2272 = vmatpush.bf16.msrb.mxu3 %v6928_v16 }
 0x520   : > { %2234 = vmatpush.bf16.msrb.mxu0 %v6935_v34  ;;  %2260 = vmatpush.bf16.msrb.mxu2 %v6938_v47 }
 0x521   : > { %2247 = vmatpush.bf16.msrb.mxu1 %v6945_v1 }
 0x522   : > { %2273 = vmatpush.bf16.msrb.mxu3 %v6940_v52 }
 0x524   : > { %2235 = vmatpush.bf16.msrb.mxu0 %v6947_v22  ;;  %2261 = vmatpush.bf16.msrb.mxu2 %v6950_v63 }
 0x525   : > { %2248 = vmatpush.bf16.msrb.mxu1 %v6957_v10 }
 0x526   : > { %2274 = vmatpush.bf16.msrb.mxu3 %v6952_v51 }
 0x528   : > { %2236 = vmatpush.bf16.msrb.mxu0 %v6959_v62  ;;  %2262 = vmatpush.bf16.msrb.mxu2 %v6962_v19 }
 0x529   : > { %2249 = vmatpush.bf16.msrb.mxu1 %v6967_v32 }
 0x52a   : > { %2275 = vmatpush.bf16.msrb.mxu3 %v6964_v48 }
 0x52c   : > { %2237 = vmatpush.bf16.msrb.mxu0 %v6971_v57  ;;  %2263 = vmatpush.bf16.msrb.mxu2 %v6973_v61 }
 0x52d   : > { %2250 = vmatpush.bf16.msrb.mxu1 %v6978_v31 }
 0x52e   : > { %2276 = vmatpush.bf16.msrb.mxu3 %v6975_v17 }
 0x530   : > { %2238 = vmatpush.bf16.msrb.mxu0 %v6981_v45  ;;  %2264 = vmatpush.bf16.msrb.mxu2 %v6985_v59 }
 0x531   : > { %2251 = vmatpush.bf16.msrb.mxu1 %v6995_v35 }
 0x532   : > { %2277 = vmatpush.bf16.msrb.mxu3 %v6989_v13 }
 0x533   : > { %2239 = vmatmul.bf16.vlgmr.msrb.gmra.mxu0 %v2230_v4  ;;  %2265 = vmatmul.bf16.vlgmr.msrb.gmra.mxu2 %v2230_v4 }
 0x534   : > { %2283 = vmatpush.bf16.msra.mxu0 %v7004_v14  ;;  %2309 = vmatpush.bf16.msra.mxu2 %v7006_v5 }
 0x535   : > { %2296 = vmatpush.bf16.msra.mxu1 %v7010_v37 }
 0x536   : > { %2322 = vmatpush.bf16.msra.mxu3 %v7008_v29  ;;  %v8821_v29 = vld [vmem:[#allocation46_spill] sm:$0xff] }
 0x538   : > { %2284 = vmatpush.bf16.msra.mxu0 %v7014_v7  ;;  %2310 = vmatpush.bf16.msra.mxu2 %v7016_v11 }
 0x539   : > { %2297 = vmatpush.bf16.msra.mxu1 %v7022_v0  ;;  %v8820_v0 = vld [vmem:[#allocation25_spill] sm:$0xff] }
 0x53a   : > { %2323 = vmatpush.bf16.msra.mxu3 %v8803_v41  ;;  %v816_v37 = vadd.f32 %v8821_v29, %v8820_v0 }
 0x53c   : > { %2285 = vmatpush.bf16.msra.mxu0 %v7026_v49  ;;  %2311 = vmatpush.bf16.msra.mxu2 %v8802_v9 }
 0x53d   : > { %2298 = vmatpush.bf16.msra.mxu1 %v8804_v33  ;;  %v8815_v33 = vld [vmem:[#allocation49_spill] sm:$0xff] }
 0x53e   : > { %2324 = vmatpush.bf16.msra.mxu3 %v8807_v43 }
 0x540   : > { %2286 = vmatpush.bf16.msra.mxu0 %v8805_v20  ;;  %2312 = vmatpush.bf16.msra.mxu2 %v8806_v40 }
 0x541   : > { %2299 = vmatpush.bf16.msra.mxu1 %v8808_v54 }
 0x542   : > { %2325 = vmatpush.bf16.msra.mxu3 %v8811_v2 }
 0x544   : > { %2287 = vmatpush.bf16.msra.mxu0 %v8809_v58  ;;  %2313 = vmatpush.bf16.msra.mxu2 %v8810_v8 }
 0x545   : > { %2300 = vmatpush.bf16.msra.mxu1 %v8812_v42 }
 0x546   : > { %2326 = vmatpush.bf16.msra.mxu3 %v8815_v33 }
 0x548   : > { %2288 = vmatpush.bf16.msra.mxu0 %v8813_v30  ;;  %2314 = vmatpush.bf16.msra.mxu2 %v8814_v25 }
 0x549   : > { %2301 = vmatpush.bf16.msra.mxu1 %v7076_v44 }
 0x54a   : > { %2327 = vmatpush.bf16.msra.mxu3 %v7074_v46  ;;  %v8819_v46 = vld [vmem:[#allocation45_spill] sm:$0xff] }
 0x54c   : > { %2289 = vmatpush.bf16.msra.mxu0 %v7080_v21  ;;  %2315 = vmatpush.bf16.msra.mxu2 %v7082_v60 }
 0x54d   : > { %2302 = vmatpush.bf16.msra.mxu1 %v7088_v23  ;;  %v8818_v23 = vld [vmem:[#allocation24_spill] sm:$0xff] }
 0x54e   : > { %2328 = vmatpush.bf16.msra.mxu3 %v7086_v36  ;;  %v787_v44 = vadd.f32 %v8819_v46, %v8818_v23 }
 0x550   : > { %2290 = vmatpush.bf16.msra.mxu0 %v7092_v28  ;;  %2316 = vmatpush.bf16.msra.mxu2 %v7094_v53 }
 0x551   : > { %2303 = vmatpush.bf16.msra.mxu1 %v7100_v56  ;;  %v8817_v56 = vld [vmem:[#allocation43_spill] sm:$0xff] }
 0x552   : > { %2329 = vmatpush.bf16.msra.mxu3 %v7098_v12  ;;  %v8816_v12 = vld [vmem:[#allocation23_spill] sm:$0xff] }
 0x553   : > { %2291 = vmatmul.bf16.vlgmr.msra.gmra.mxu0 %v2230_v4  ;;  %2317 = vmatmul.bf16.vlgmr.msra.gmra.mxu2 %v2230_v4  ;;  %v7192_v4 = vld [vmem:[#allocation2 + $0x8] sm:$0xf]  ;;  %v758_v36 = vadd.f32 %v8817_v56, %v8816_v12  ;;  %v8823_v56 = vld [vmem:[#allocation47_spill] sm:$0xff] }
 0x554   : > { %2356 = vmatpush.bf16.msrb.mxu0 %v6900_v38  ;;  %2382 = vmatpush.bf16.msrb.mxu2 %v6902_v26  ;;  %v8822_v12 = vld [vmem:[#allocation26_spill] sm:$0xff] }
 0x555   : > { %v845_v13 = vadd.f32 %v8823_v56, %v8822_v12 }
 0x558   : > { %2357 = vmatpush.bf16.msrb.mxu0 %v6911_v50  ;;  %2383 = vmatpush.bf16.msrb.mxu2 %v6914_v24 }
 0x55c   : > { %2358 = vmatpush.bf16.msrb.mxu0 %v6923_v3  ;;  %2384 = vmatpush.bf16.msrb.mxu2 %v6926_v15 }
 0x560   : > { %2359 = vmatpush.bf16.msrb.mxu0 %v6935_v34  ;;  %2385 = vmatpush.bf16.msrb.mxu2 %v6938_v47 }
 0x564   : > { %2360 = vmatpush.bf16.msrb.mxu0 %v6947_v22  ;;  %2386 = vmatpush.bf16.msrb.mxu2 %v6950_v63 }
 0x568   : > { %2361 = vmatpush.bf16.msrb.mxu0 %v6959_v62  ;;  %2387 = vmatpush.bf16.msrb.mxu2 %v6962_v19 }
 0x56c   : > { %2362 = vmatpush.bf16.msrb.mxu0 %v6971_v57  ;;  %2388 = vmatpush.bf16.msrb.mxu2 %v6973_v61 }
 0x56f   : > { %v1644_v33 = vpop.f32.mrf.mxu0  ;;  %v1657_v42 = vpop.f32.mrf.mxu1 }
 0x570   : > { %2363 = vmatpush.bf16.msrb.mxu0 %v6981_v45  ;;  %2389 = vmatpush.bf16.msrb.mxu2 %v6985_v59  ;;  %v1687_v2 = vadd.f32 %v1644_v33, %v758_v36  ;;  %v1688_v54 = vadd.f32 %v1657_v42, %v787_v44 }
 0x572   : > { %v1691_v43 = vmul.f32 0.5, %v1687_v2  ;;  %v1692_v41 = vmul.f32 0.5, %v1688_v54 }
 0x573   : > { %2364 = vmatmul.bf16.vlgmr.msrb.gmra.mxu0 %v7192_v4  ;;  %2390 = vmatmul.bf16.vlgmr.msrb.gmra.mxu2 %v7192_v4 }
 0x574   : > { %2408 = vmatpush.bf16.msra.mxu0 %v7004_v14  ;;  %2434 = vmatpush.bf16.msra.mxu2 %v7006_v5  ;;  %5890 = vtanh.f32 %v1691_v43 }
 0x575   : > { %5892 = vtanh.f32 %v1692_v41 }
 0x576   : > { %v1670_v46 = vpop.f32.mrf.mxu2  ;;  %v1683_v23 = vpop.f32.mrf.mxu3 }
 0x577   : > { %v1689_v36 = vadd.f32 %v1670_v46, %v816_v37  ;;  %v1690_v44 = vadd.f32 %v1683_v23, %v845_v13  ;;  %v1646_v33 = vpop.f32.mrf.mxu0  ;;  %v1659_v42 = vpop.f32.mrf.mxu1 }
 0x578   : > { %2409 = vmatpush.bf16.msra.mxu0 %v7014_v7  ;;  %2435 = vmatpush.bf16.msra.mxu2 %v7016_v11  ;;  %v1775_v42 = vld [vmem:[%s8607_s5] sm:$0xf] }
 0x579   : > { %v1693_v43 = vmul.f32 0.5, %v1689_v36  ;;  %5894 = vtanh.f32 %v1690_v44  ;;  %v8824_v36 = vld [vmem:[#allocation31_spill] sm:$0xff] }
 0x57a   : > { %v5891_v54 = vpop.eup %5890 }
 0x57b   : > { %v5893_v29 = vpop.eup %5892  ;;  %v1697_v0 = vmul.f32 0.5, %v5891_v54  ;;  %5896 = vtanh.f32 %v1693_v43 }
 0x57c   : > { %2410 = vmatpush.bf16.msra.mxu0 %v7026_v49  ;;  %2436 = vmatpush.bf16.msra.mxu2 %v8802_v9  ;;  %v1698_v2 = vmul.f32 0.5, %v5893_v29  ;;  %v7220_v29 = vperm.slane %v1775_v42, 0 }
 0x57d   : > { %v1700_v41 = vadd.f32 0.5, %v1697_v0  ;;  %v7222_v0 = vperm.slane %v1775_v42, 1 }
 0x57e   : > { %v1701_v37 = vadd.f32 0.5, %v1698_v2  ;;  %v1672_v13 = vpop.f32.mrf.mxu2  ;;  %v1685_v12 = vpop.f32.mrf.mxu3  ;;  %8825 = vst [vmem:[#allocation35_spill] sm:$0xff] %v7220_v29 }
 0x57f   : > { %v5895_v56 = vpop.eup %5894  ;;  %v2115_v46 = vpop.f32.mrf.mxu0  ;;  %8826 = vst [vmem:[#allocation39_spill] sm:$0xff] %v7222_v0 }
 0x580   : > { %2411 = vmatpush.bf16.msra.mxu0 %v8805_v20  ;;  %2437 = vmatpush.bf16.msra.mxu2 %v8806_v40  ;;  %v2128_v23 = vpop.f32.mrf.mxu1  ;;  %v1704_v44 = vmul.f32 %v1701_v37, %v8824_v36  ;;  %v1705_v33 = vmul.f32 %v5895_v56, %v1700_v41  ;;  %v2116_v13 = vadd.f32 %v2115_v46, %v7220_v29 }
 0x581   : > { %v5897_v43 = vpop.eup %5896 }
 0x582   : > { %v1706_v54 = vadd.f32 %v1705_v33, %v1704_v44  ;;  %v1699_v2 = vmul.f32 0.5, %v5897_v43  ;;  %v2129_v35 = vadd.f32 %v2128_v23, %v2116_v13  ;;  %v7241_v13 = vperm.slane %v1775_v42, 3 }
 0x584   : > { %2412 = vmatpush.bf16.msra.mxu0 %v8809_v58  ;;  %2438 = vmatpush.bf16.msra.mxu2 %v8810_v8  ;;  %5898 = vtanh.f32 %v1706_v54  ;;  %v1702_v44 = vadd.f32 0.5, %v1699_v2  ;;  %8828 = vst [vmem:[#allocation44_spill] sm:$0xff] %v7241_v13 }
 0x586   : > { %v2141_v41 = vpop.f32.mrf.mxu2  ;;  %v2154_v37 = vpop.f32.mrf.mxu3 }
 0x587   : > { %v2142_v12 = vadd.f32 %v2141_v41, %v7222_v0  ;;  %v2117_v56 = vpop.f32.mrf.mxu0 }
 0x588   : > { %2413 = vmatpush.bf16.msra.mxu0 %v8813_v30  ;;  %2439 = vmatpush.bf16.msra.mxu2 %v8814_v25  ;;  %v2130_v36 = vpop.f32.mrf.mxu1  ;;  %v7236_v56 = vperm.slane %v1775_v42, 2 }
 0x589   : > { %v2155_v33 = vadd.f32 %v2154_v37, %v2142_v12 }
 0x58a   : > { %v5899_v43 = vpop.eup %5898  ;;  %8827 = vst [vmem:[#allocation40_spill] sm:$0xff] %v7236_v56 }
 0x58b   : > { %v1708_v54 = vmul.f32 %v5899_v43, %v1702_v44  ;;  %v2211_v31 = vmul.f32 0.5, %v2155_v33 }
 0x58c   : > { %2414 = vmatpush.bf16.msra.mxu0 %v7080_v21  ;;  %2440 = vmatpush.bf16.msra.mxu2 %v7082_v60 }
 0x58d   : > { %v1709_v17 = vpack.c.bf16 %v1708_v54, %v1708_v54  ;;  %5900 = vtanh.f32 %v2211_v31 }
 0x58e   : > { %v2143_v46 = vpop.f32.mrf.mxu2  ;;  %v2156_v41 = vpop.f32.mrf.mxu3 }
 0x58f   : > { %1710 = vst [vmem:[#allocation2 + $0x1c] sm:$0xf] %v1709_v17 }
 0x590   : > { %2415 = vmatpush.bf16.msra.mxu0 %v7092_v28  ;;  %2441 = vmatpush.bf16.msra.mxu2 %v7094_v53  ;;  %v2167_v2 = vpop.f32.mrf.mxu0 }
 0x591   : > { %v2168_v37 = vadd.f32 %v2167_v2, %v7236_v56 }
 0x593   : > { %2416 = vmatmul.bf16.vlgmr.msra.gmra.mxu0 %v7192_v4  ;;  %2442 = vmatmul.bf16.vlgmr.msra.gmra.mxu2 %v7192_v4  ;;  %v2210_v4 = vmul.f32 0.5, %v2129_v35  ;;  %v2180_v23 = vpop.f32.mrf.mxu1  ;;  %v5901_v17 = vpop.eup %5900 }
 0x594   : > { %2481 = vmatpush.bf16.msrb.mxu0 %v6900_v38  ;;  %2507 = vmatpush.bf16.msrb.mxu2 %v6902_v26  ;;  %v2181_v12 = vadd.f32 %v2180_v23, %v2168_v37  ;;  %v2217_v54 = vmul.f32 0.5, %v5901_v17 }
 0x595   : > { %5902 = vtanh.f32 %v2210_v4 }
 0x596   : > { %v2193_v36 = vpop.f32.mrf.mxu2  ;;  %v2212_v46 = vmul.f32 0.5, %v2181_v12  ;;  %v2220_v4 = vadd.f32 0.5, %v2217_v54  ;;  %v2480_v12 = vld [vmem:[#allocation2 + $0xc] sm:$0xf] }
 0x597   : > { %v2194_v35 = vadd.f32 %v2193_v36, %v7241_v13 }
 0x598   : > { %2482 = vmatpush.bf16.msrb.mxu0 %v6911_v50  ;;  %2508 = vmatpush.bf16.msrb.mxu2 %v6914_v24  ;;  %v2206_v31 = vpop.f32.mrf.mxu3  ;;  %v2169_v44 = vpop.f32.mrf.mxu0 }
 0x599   : > { %v2207_v43 = vadd.f32 %v2206_v31, %v2194_v35  ;;  %v2223_v35 = vmul.f32 0.0, %v2220_v4 }
 0x59b   : > { %v5903_v33 = vpop.eup %5902  ;;  %v2182_v42 = vpop.f32.mrf.mxu1  ;;  %5904 = vtanh.f32 %v2207_v43 }
 0x59c   : > { %2483 = vmatpush.bf16.msrb.mxu0 %v6923_v3  ;;  %2509 = vmatpush.bf16.msrb.mxu2 %v6926_v15  ;;  %v2216_v41 = vmul.f32 0.5, %v5903_v33  ;;  %5906 = vtanh.f32 %v2212_v46 }
 0x59e   : > { %v2195_v2 = vpop.f32.mrf.mxu2  ;;  %v2219_v23 = vadd.f32 0.5, %v2216_v41 }
 0x5a0   : > { %2484 = vmatpush.bf16.msrb.mxu0 %v6935_v34  ;;  %2510 = vmatpush.bf16.msrb.mxu2 %v6938_v47  ;;  %v2208_v37 = vpop.f32.mrf.mxu3 }
 0x5a1   : > { %v5905_v36 = vpop.eup %5904 }
 0x5a2   : > { %v2224_v17 = vmul.f32 %v5905_v36, %v2219_v23  ;;  %v5907_v31 = vpop.eup %5906  ;;  %v8829_v36 = vld [vmem:[#allocation27_spill] sm:$0xff] }
 0x5a3   : > { %v2218_v33 = vmul.f32 0.5, %v5907_v31 }
 0x5a4   : > { %2485 = vmatpush.bf16.msrb.mxu0 %v6947_v22  ;;  %2511 = vmatpush.bf16.msrb.mxu2 %v6950_v63  ;;  %v7254_v44 = vadd.f32 %v2224_v17, %v2223_v35  ;;  %v8830_v35 = vld [vmem:[#allocation28_spill] sm:$0xff]  ;;  %v8831_v17 = vld [vmem:[#allocation30_spill] sm:$0xff] }
 0x5a5   : > { %v2221_v43 = vadd.f32 0.5, %v2218_v33  ;;  %v8833_v33 = vld [vmem:[#allocation33_spill] sm:$0xff] }
 0x5a6   : > { %5908 = vtanh.f32 %v7254_v44 }
 0x5a8   : > { %2486 = vmatpush.bf16.msrb.mxu0 %v6959_v62  ;;  %2512 = vmatpush.bf16.msrb.mxu2 %v6962_v19 }
 0x5ac   : > { %2487 = vmatpush.bf16.msrb.mxu0 %v6971_v57  ;;  %2513 = vmatpush.bf16.msrb.mxu2 %v6973_v61  ;;  %v5909_v54 = vpop.eup %5908 }
 0x5ad   : > { %v2227_v42 = vmul.f32 %v5909_v54, %v2221_v43  ;;  %v8834_v43 = vld [vmem:[#allocation32_spill] sm:$0xff] }
 0x5af   : > { %v2228_v41 = vpack.c.bf16 %v2227_v42, %v2227_v42  ;;  %v8835_v42 = vld [vmem:[#allocation36_spill] sm:$0xff] }
 0x5b0   : > { %2488 = vmatpush.bf16.msrb.mxu0 %v6981_v45  ;;  %2514 = vmatpush.bf16.msrb.mxu2 %v6985_v59  ;;  %v7261_v46 = vpop.f32.mrf.mxu0 }
 0x5b1   : > { %2229 = vst [vmem:[#allocation2] sm:$0xf] %v2228_v41  ;;  %2252 = vmatmul.bf16.vlgmr.msrb.gmra.mxu1 %v2228_v41  ;;  %2278 = vmatmul.bf16.vlgmr.msrb.gmra.mxu3 %v2228_v41 }
 0x5b2   : > { %2369 = vmatpush.bf16.msrb.mxu1 %v6909_v6  ;;  %2395 = vmatpush.bf16.msrb.mxu3 %v6904_v39 }
 0x5b3   : > { %2489 = vmatmul.bf16.vlgmr.msrb.gmra.mxu0 %v2480_v12  ;;  %2515 = vmatmul.bf16.vlgmr.msrb.gmra.mxu2 %v2480_v12 }
 0x5b4   : > { %2533 = vmatpush.bf16.msra.mxu0 %v7004_v14  ;;  %2559 = vmatpush.bf16.msra.mxu2 %v7006_v5 }
 0x5b6   : > { %v7269_v4 = vpop.f32.mrf.mxu2  ;;  %2370 = vmatpush.bf16.msrb.mxu1 %v6921_v55  ;;  %2396 = vmatpush.bf16.msrb.mxu3 %v6916_v18 }
 0x5b8   : > { %2534 = vmatpush.bf16.msra.mxu0 %v7014_v7  ;;  %2560 = vmatpush.bf16.msra.mxu2 %v7016_v11  ;;  %v2242_v2 = vpop.f32.mrf.mxu0 }
 0x5ba   : > { %2371 = vmatpush.bf16.msrb.mxu1 %v6933_v27  ;;  %2397 = vmatpush.bf16.msrb.mxu3 %v6928_v16 }
 0x5bc   : > { %2535 = vmatpush.bf16.msra.mxu0 %v7026_v49  ;;  %2561 = vmatpush.bf16.msra.mxu2 %v8802_v9 }
 0x5be   : > { %v2268_v37 = vpop.f32.mrf.mxu2  ;;  %2372 = vmatpush.bf16.msrb.mxu1 %v6945_v1  ;;  %2398 = vmatpush.bf16.msrb.mxu3 %v6940_v52 }
 0x5bf   : > { %v8837_v37 = vld [vmem:[#allocation38_spill] sm:$0xff] }
 0x5c0   : > { %2536 = vmatpush.bf16.msra.mxu0 %v8805_v20  ;;  %2562 = vmatpush.bf16.msra.mxu2 %v8806_v40 }
 0x5c1   : > { %2304 = vmatmul.bf16.vlgmr.msra.gmra.mxu1 %v2228_v41  ;;  %2330 = vmatmul.bf16.vlgmr.msra.gmra.mxu3 %v2228_v41  ;;  %v8836_v41 = vld [vmem:[#allocation34_spill] sm:$0xff] }
 0x5c2   : > { %2373 = vmatpush.bf16.msrb.mxu1 %v6957_v10  ;;  %2399 = vmatpush.bf16.msrb.mxu3 %v6952_v51 }
 0x5c4   : > { %2537 = vmatpush.bf16.msra.mxu0 %v8809_v58  ;;  %2563 = vmatpush.bf16.msra.mxu2 %v8810_v8 }
 0x5c6   : > { %2374 = vmatpush.bf16.msrb.mxu1 %v6967_v32  ;;  %2400 = vmatpush.bf16.msrb.mxu3 %v6964_v48 }
 0x5c8   : > { %2538 = vmatpush.bf16.msra.mxu0 %v8813_v30  ;;  %2564 = vmatpush.bf16.msra.mxu2 %v8814_v25 }
 0x5ca   : > { %2375 = vmatpush.bf16.msrb.mxu1 %v8829_v36  ;;  %2401 = vmatpush.bf16.msrb.mxu3 %v8830_v35 }
 0x5cc   : > { %2539 = vmatpush.bf16.msra.mxu0 %v7080_v21  ;;  %2565 = vmatpush.bf16.msra.mxu2 %v7082_v60 }
 0x5ce   : > { %2376 = vmatpush.bf16.msrb.mxu1 %v8831_v17 }
 0x5d0   : > { %2540 = vmatpush.bf16.msra.mxu0 %v7092_v28  ;;  %2566 = vmatpush.bf16.msra.mxu2 %v7094_v53  ;;  %v7293_v23 = vpop.f32.mrf.mxu0 }
 0x5d2   : > { %2421 = vmatpush.bf16.msra.mxu1 %v8833_v33  ;;  %v8847_v33 = vld [vmem:[#allocation55_spill] sm:$0xff] }
 0x5d3   : > { %2541 = vmatmul.bf16.vlgmr.msra.gmra.mxu0 %v2480_v12  ;;  %2567 = vmatmul.bf16.vlgmr.msra.gmra.mxu2 %v2480_v12  ;;  %v8832_v12 = vld [vmem:[#allocation29_spill] sm:$0xff] }
 0x5d4   : > { %2606 = vmatpush.bf16.msrb.mxu0 %v6900_v38  ;;  %2632 = vmatpush.bf16.msrb.mxu2 %v6902_v26 }
 0x5d5   : > { %2402 = vmatpush.bf16.msrb.mxu3 %v8832_v12  ;;  %v8838_v12 = vld [vmem:[#allocation37_spill] sm:$0xff] }
 0x5d6   : > { %v7303_v31 = vpop.f32.mrf.mxu2  ;;  %2422 = vmatpush.bf16.msra.mxu1 %v8835_v42  ;;  %v8839_v42 = vld [vmem:[#allocation42_spill] sm:$0xff] }
 0x5d8   : > { %2607 = vmatpush.bf16.msrb.mxu0 %v6911_v50  ;;  %2633 = vmatpush.bf16.msrb.mxu2 %v6914_v24  ;;  %v2294_v54 = vpop.f32.mrf.mxu0 }
 0x5d9   : > { %2447 = vmatpush.bf16.msra.mxu3 %v8834_v43  ;;  %v2605_v54 = vld [vmem:[#allocation2 + $0x10] sm:$0xf]  ;;  %v8844_v43 = vld [vmem:[#allocation53_spill] sm:$0xff] }
 0x5da   : > { %2423 = vmatpush.bf16.msra.mxu1 %v8837_v37  ;;  %v8843_v37 = vld [vmem:[#allocation54_spill] sm:$0xff] }
 0x5dc   : > { %2608 = vmatpush.bf16.msrb.mxu0 %v6923_v3  ;;  %2634 = vmatpush.bf16.msrb.mxu2 %v6926_v15 }
 0x5dd   : > { %2448 = vmatpush.bf16.msra.mxu3 %v8836_v41  ;;  %v8840_v41 = vld [vmem:[#allocation41_spill] sm:$0xff] }
 0x5de   : > { %v2320_v2 = vpop.f32.mrf.mxu2  ;;  %2424 = vmatpush.bf16.msra.mxu1 %v8839_v42 }
 0x5df   : > { %v8841_v2 = vld [vmem:[#allocation50_spill] sm:$0xff] }
 0x5e0   : > { %2609 = vmatpush.bf16.msrb.mxu0 %v6935_v34  ;;  %2635 = vmatpush.bf16.msrb.mxu2 %v6938_v47 }
 0x5e1   : > { %2449 = vmatpush.bf16.msra.mxu3 %v8838_v12  ;;  %v8842_v12 = vld [vmem:[#allocation49_spill] sm:$0xff] }
 0x5e2   : > { %2425 = vmatpush.bf16.msra.mxu1 %v8841_v2 }
 0x5e4   : > { %2610 = vmatpush.bf16.msrb.mxu0 %v6947_v22  ;;  %2636 = vmatpush.bf16.msrb.mxu2 %v6950_v63 }
 0x5e5   : > { %2450 = vmatpush.bf16.msra.mxu3 %v8840_v41  ;;  %v8846_v41 = vld [vmem:[#allocation56_spill] sm:$0xff] }
 0x5e6   : > { %2426 = vmatpush.bf16.msra.mxu1 %v8843_v37  ;;  %v8850_v37 = vld [vmem:[#allocation57_spill] sm:$0xff] }
 0x5e8   : > { %2611 = vmatpush.bf16.msrb.mxu0 %v6959_v62  ;;  %2637 = vmatpush.bf16.msrb.mxu2 %v6962_v19 }
 0x5e9   : > { %2451 = vmatpush.bf16.msra.mxu3 %v8842_v12  ;;  %v8848_v12 = vld [vmem:[#allocation58_spill] sm:$0xff] }
 0x5ea   : > { %2427 = vmatpush.bf16.msra.mxu1 %v8846_v41 }
 0x5ec   : > { %2612 = vmatpush.bf16.msrb.mxu0 %v6971_v57  ;;  %2638 = vmatpush.bf16.msrb.mxu2 %v6973_v61 }
 0x5ed   : > { %2452 = vmatpush.bf16.msra.mxu3 %v8844_v43 }
 0x5ee   : > { %2428 = vmatpush.bf16.msra.mxu1 %v8848_v12  ;;  %v2241_v12 = vadd.f32 %v7261_v46, %v7220_v29  ;;  %v2293_v46 = vadd.f32 %v7293_v23, %v7236_v56 }
 0x5f0   : > { %2613 = vmatpush.bf16.msrb.mxu0 %v6981_v45  ;;  %2639 = vmatpush.bf16.msrb.mxu2 %v6985_v59  ;;  %v7329_v42 = vpop.f32.mrf.mxu0 }
 0x5f1   : > { %8845 = vst [vmem:[#allocation48_spill] sm:$0xff] %v7329_v42  ;;  %2453 = vmatpush.bf16.msra.mxu3 %v8847_v33 }
 0x5f3   : > { %2614 = vmatmul.bf16.vlgmr.msrb.gmra.mxu0 %v2605_v54  ;;  %2640 = vmatmul.bf16.vlgmr.msrb.gmra.mxu2 %v2605_v54 }
 0x5f4   : > { %2658 = vmatpush.bf16.msra.mxu0 %v7004_v14  ;;  %2684 = vmatpush.bf16.msra.mxu2 %v7006_v5 }
 0x5f5   : > { %2454 = vmatpush.bf16.msra.mxu3 %v8850_v37 }
 0x5f6   : > { %v7338_v2 = vpop.f32.mrf.mxu2 }
 0x5f7   : > { %8849 = vst [vmem:[#allocation51_spill] sm:$0xff] %v7338_v2  ;;  %v2730_v2 = vld [vmem:[#allocation2 + $0x14] sm:$0xf] }
 0x5f8   : > { %2659 = vmatpush.bf16.msra.mxu0 %v7014_v7  ;;  %2685 = vmatpush.bf16.msra.mxu2 %v7016_v11  ;;  %v2367_v43 = vpop.f32.mrf.mxu0 }
 0x5fc   : > { %2660 = vmatpush.bf16.msra.mxu0 %v7026_v49  ;;  %2686 = vmatpush.bf16.msra.mxu2 %v8802_v9 }
 0x5fe   : > { %v2393_v42 = vpop.f32.mrf.mxu2 }
 0x600   : > { %2661 = vmatpush.bf16.msra.mxu0 %v8805_v20  ;;  %2687 = vmatpush.bf16.msra.mxu2 %v8806_v40 }
 0x604   : > { %2662 = vmatpush.bf16.msra.mxu0 %v8809_v58  ;;  %2688 = vmatpush.bf16.msra.mxu2 %v8810_v8 }
 0x608   : > { %2663 = vmatpush.bf16.msra.mxu0 %v8813_v30  ;;  %2689 = vmatpush.bf16.msra.mxu2 %v8814_v25 }
 0x60c   : > { %2664 = vmatpush.bf16.msra.mxu0 %v7080_v21  ;;  %2690 = vmatpush.bf16.msra.mxu2 %v7082_v60 }
 0x610   : > { %2665 = vmatpush.bf16.msra.mxu0 %v7092_v28  ;;  %2691 = vmatpush.bf16.msra.mxu2 %v7094_v53  ;;  %v7353_v43 = vpop.f32.mrf.mxu0 }
 0x611   : > { %8851 = vst [vmem:[#allocation52_spill] sm:$0xff] %v7353_v43 }
 0x613   : > { %2666 = vmatmul.bf16.vlgmr.msra.gmra.mxu0 %v2605_v54  ;;  %2692 = vmatmul.bf16.vlgmr.msra.gmra.mxu2 %v2605_v54 }
 0x614   : > { %2731 = vmatpush.bf16.msrb.mxu0 %v6900_v38  ;;  %2757 = vmatpush.bf16.msrb.mxu2 %v6902_v26 }
 0x616   : > { %v7359_v42 = vpop.f32.mrf.mxu2 }
 0x617   : > { %8852 = vst [vmem:[#allocation23_spill] sm:$0xff] %v7359_v42 }
 0x618   : > { %2732 = vmatpush.bf16.msrb.mxu0 %v6911_v50  ;;  %2758 = vmatpush.bf16.msrb.mxu2 %v6914_v24  ;;  %v2419_v54 = vpop.f32.mrf.mxu0 }
 0x61c   : > { %2733 = vmatpush.bf16.msrb.mxu0 %v6923_v3  ;;  %2759 = vmatpush.bf16.msrb.mxu2 %v6926_v15 }
 0x61e   : > { %v2445_v43 = vpop.f32.mrf.mxu2 }
 0x620   : > { %2734 = vmatpush.bf16.msrb.mxu0 %v6935_v34  ;;  %2760 = vmatpush.bf16.msrb.mxu2 %v6938_v47 }
 0x624   : > { %2735 = vmatpush.bf16.msrb.mxu0 %v6947_v22  ;;  %2761 = vmatpush.bf16.msrb.mxu2 %v6950_v63 }
 0x628   : > { %2736 = vmatpush.bf16.msrb.mxu0 %v6959_v62  ;;  %2762 = vmatpush.bf16.msrb.mxu2 %v6962_v19 }
 0x62c   : > { %2737 = vmatpush.bf16.msrb.mxu0 %v6971_v57  ;;  %2763 = vmatpush.bf16.msrb.mxu2 %v6973_v61 }
 0x62e   : > { %v2253_v37 = vpop.f32.mrf.mxu1 }
 0x630   : > { %2738 = vmatpush.bf16.msrb.mxu0 %v6981_v45  ;;  %2764 = vmatpush.bf16.msrb.mxu2 %v6985_v59  ;;  %v7373_v43 = vpop.f32.mrf.mxu0 }
 0x631   : > { %8853 = vst [vmem:[#allocation43_spill] sm:$0xff] %v7373_v43 }
 0x633   : > { %2739 = vmatmul.bf16.vlgmr.msrb.gmra.mxu0 %v2730_v2  ;;  %2765 = vmatmul.bf16.vlgmr.msrb.gmra.mxu2 %v2730_v2 }
 0x634   : > { %2783 = vmatpush.bf16.msra.mxu0 %v7004_v14  ;;  %2809 = vmatpush.bf16.msra.mxu2 %v7006_v5 }
 0x636   : > { %v7379_v54 = vpop.f32.mrf.mxu2  ;;  %v2255_v41 = vpop.f32.mrf.mxu1 }
 0x637   : > { %8854 = vst [vmem:[#allocation24_spill] sm:$0xff] %v7379_v54  ;;  %v2267_v54 = vadd.f32 %v7269_v4, %v7222_v0  ;;  %v2319_v41 = vadd.f32 %v7303_v31, %v7241_v13 }
 0x638   : > { %2784 = vmatpush.bf16.msra.mxu0 %v7014_v7  ;;  %2810 = vmatpush.bf16.msra.mxu2 %v7016_v11  ;;  %v2492_v42 = vpop.f32.mrf.mxu0 }
 0x639   : > { %v2279_v42 = vpop.f32.mrf.mxu3 }
 0x63a   : > { %v2280_v33 = vadd.f32 %v2279_v42, %v2267_v54 }
 0x63c   : > { %2785 = vmatpush.bf16.msra.mxu0 %v7026_v49  ;;  %2811 = vmatpush.bf16.msra.mxu2 %v8802_v9  ;;  %v2336_v17 = vmul.f32 0.5, %v2280_v33 }
 0x63e   : > { %v2518_v43 = vpop.f32.mrf.mxu2  ;;  %5910 = vtanh.f32 %v2336_v17  ;;  %v2305_v36 = vpop.f32.mrf.mxu1 }
 0x63f   : > { %v2254_v43 = vadd.f32 %v2253_v37, %v2241_v12  ;;  %v2306_v12 = vadd.f32 %v2305_v36, %v2293_v46 }
 0x640   : > { %2786 = vmatpush.bf16.msra.mxu0 %v8805_v20  ;;  %2812 = vmatpush.bf16.msra.mxu2 %v8806_v40 }
 0x641   : > { %v2335_v35 = vmul.f32 0.5, %v2254_v43  ;;  %v2281_v4 = vpop.f32.mrf.mxu3 }
 0x642   : > { %v2337_v4 = vmul.f32 0.5, %v2306_v12 }
 0x643   : > { %5912 = vtanh.f32 %v2335_v35 }
 0x644   : > { %2787 = vmatpush.bf16.msra.mxu0 %v8809_v58  ;;  %2813 = vmatpush.bf16.msra.mxu2 %v8810_v8  ;;  %v5911_v33 = vpop.eup %5910 }
 0x645   : > { %v2342_v43 = vmul.f32 0.5, %v5911_v33 }
 0x646   : > { %v2307_v42 = vpop.f32.mrf.mxu1 }
 0x647   : > { %v2345_v36 = vadd.f32 0.5, %v2342_v43 }
 0x648   : > { %2788 = vmatpush.bf16.msra.mxu0 %v8813_v30  ;;  %2814 = vmatpush.bf16.msra.mxu2 %v8814_v25 }
 0x649   : > { %v2331_v37 = vpop.f32.mrf.mxu3 }
 0x64a   : > { %v2332_v54 = vadd.f32 %v2331_v37, %v2319_v41  ;;  %v2348_v37 = vmul.f32 %v2345_v36, %v7254_v44 }
 0x64c   : > { %2789 = vmatpush.bf16.msra.mxu0 %v7080_v21  ;;  %2815 = vmatpush.bf16.msra.mxu2 %v7082_v60  ;;  %5914 = vtanh.f32 %v2332_v54  ;;  %v2855_v54 = vld [vmem:[#allocation2 + $0x18] sm:$0xf] }
 0x64d   : > { %5916 = vtanh.f32 %v2337_v4 }
 0x650   : > { %2790 = vmatpush.bf16.msra.mxu0 %v7092_v28  ;;  %2816 = vmatpush.bf16.msra.mxu2 %v7094_v53  ;;  %v7397_v0 = vpop.f32.mrf.mxu0 }
 0x651   : > { %8855 = vst [vmem:[#allocation45_spill] sm:$0xff] %v7397_v0  ;;  %v5364_v0 = vld [vmem:[#allocation11 + $0xf8] sm:$0xf0] }
 0x653   : > { %2791 = vmatmul.bf16.vlgmr.msra.gmra.mxu0 %v2730_v2  ;;  %2817 = vmatmul.bf16.vlgmr.msra.gmra.mxu2 %v2730_v2  ;;  %v5913_v2 = vpop.eup %5912 }
 0x654   : > { %2856 = vmatpush.bf16.msrb.mxu0 %v6900_v38  ;;  %2882 = vmatpush.bf16.msrb.mxu2 %v6902_v26  ;;  %v2341_v23 = vmul.f32 0.5, %v5913_v2  ;;  %v5915_v41 = vpop.eup %5914 }
 0x655   : > { %v5917_v12 = vpop.eup %5916 }
 0x656   : > { %v7407_v17 = vpop.f32.mrf.mxu2  ;;  %v2344_v31 = vadd.f32 0.5, %v2341_v23 }
 0x657   : > { %8856 = vst [vmem:[#allocation25_spill] sm:$0xff] %v7407_v17  ;;  %v2333_v17 = vpop.f32.mrf.mxu3 }
 0x658   : > { %2857 = vmatpush.bf16.msrb.mxu0 %v6911_v50  ;;  %2883 = vmatpush.bf16.msrb.mxu2 %v6914_v24  ;;  %v2544_v35 = vpop.f32.mrf.mxu0  ;;  %v2349_v33 = vmul.f32 %v5915_v41, %v2344_v31  ;;  %v2343_v17 = vmul.f32 0.5, %v5917_v12  ;;  %v8866_v41 = vld [vmem:[#allocation32_spill] sm:$0xff]  ;;  %v8882_v12 = vld [vmem:[#allocation57_spill] sm:$0xff] }
 0x65a   : > { %v7417_v2 = vadd.f32 %v2349_v33, %v2348_v37  ;;  %v2346_v44 = vadd.f32 0.5, %v2343_v17  ;;  %v8870_v33 = vld [vmem:[#allocation37_spill] sm:$0xff] }
 0x65b   : > { %v5692_v17 = vld [vmem:[#allocation11 + $0xe4] sm:$0xf] }
 0x65c   : > { %2858 = vmatpush.bf16.msrb.mxu0 %v6923_v3  ;;  %2884 = vmatpush.bf16.msrb.mxu2 %v6926_v15  ;;  %5918 = vtanh.f32 %v7417_v2 }
 0x65e   : > { %v2570_v46 = vpop.f32.mrf.mxu2 }
 0x65f   : > { %v8861_v46 = vld [vmem:[#allocation28_spill] sm:$0xff] }
 0x660   : > { %2859 = vmatpush.bf16.msrb.mxu0 %v6935_v34  ;;  %2885 = vmatpush.bf16.msrb.mxu2 %v6938_v47 }
 0x662   : > { %v5919_v35 = vpop.eup %5918 }
 0x663   : > { %v2352_v42 = vmul.f32 %v5919_v35, %v2346_v44  ;;  %v5356_v44 = vld [vmem:[#allocation11 + $0xf0] sm:$0xf0] }
 0x664   : > { %2860 = vmatpush.bf16.msrb.mxu0 %v6947_v22  ;;  %2886 = vmatpush.bf16.msrb.mxu2 %v6950_v63  ;;  %v7511_v35 = vor.u32 %v5692_v17, %v5356_v44  ;;  %v5308_v17 = vld [vmem:[#allocation11 + $0x90] sm:$0xf0] }
 0x665   : > { %v2353_v4 = vpack.c.bf16 %v2352_v42, %v2352_v42  ;;  %v5338_v42 = vld [vmem:[#allocation11 + $0xc0] sm:$0xf] }
 0x667   : > { %2354 = vst [vmem:[#allocation2 + $0x4] sm:$0xf] %v2353_v4  ;;  %2377 = vmatmul.bf16.vlgmr.msrb.gmra.mxu1 %v2353_v4  ;;  %2403 = vmatmul.bf16.vlgmr.msrb.gmra.mxu3 %v2353_v4 }
 0x668   : > { %2861 = vmatpush.bf16.msrb.mxu0 %v6959_v62  ;;  %2887 = vmatpush.bf16.msrb.mxu2 %v6962_v19 }
 0x669   : > { %2494 = vmatpush.bf16.msrb.mxu1 %v6909_v6  ;;  %2520 = vmatpush.bf16.msrb.mxu3 %v6904_v39 }
 0x66c   : > { %2862 = vmatpush.bf16.msrb.mxu0 %v6971_v57  ;;  %2888 = vmatpush.bf16.msrb.mxu2 %v6973_v61 }
 0x66d   : > { %2495 = vmatpush.bf16.msrb.mxu1 %v6921_v55  ;;  %2521 = vmatpush.bf16.msrb.mxu3 %v6916_v18 }
 0x670   : > { %2863 = vmatpush.bf16.msrb.mxu0 %v6981_v45  ;;  %2889 = vmatpush.bf16.msrb.mxu2 %v6985_v59  ;;  %v7425_v43 = vpop.f32.mrf.mxu0 }
 0x671   : > { %8857 = vst [vmem:[#allocation46_spill] sm:$0xff] %v7425_v43  ;;  %2496 = vmatpush.bf16.msrb.mxu1 %v6933_v27  ;;  %2522 = vmatpush.bf16.msrb.mxu3 %v6928_v16  ;;  %v5695_v43 = vld [vmem:[#allocation11 + $0xf4] sm:$0xf0] }
 0x673   : > { %2864 = vmatmul.bf16.vlgmr.msrb.gmra.mxu0 %v2855_v54  ;;  %2890 = vmatmul.bf16.vlgmr.msrb.gmra.mxu2 %v2855_v54 }
 0x674   : > { %2908 = vmatpush.bf16.msra.mxu0 %v7004_v14  ;;  %2934 = vmatpush.bf16.msra.mxu2 %v7006_v5 }
 0x675   : > { %2497 = vmatpush.bf16.msrb.mxu1 %v6945_v1  ;;  %2523 = vmatpush.bf16.msrb.mxu3 %v6940_v52 }
 0x676   : > { %v7433_v23 = vpop.f32.mrf.mxu2 }
 0x677   : > { %8858 = vst [vmem:[#allocation26_spill] sm:$0xff] %v7433_v23  ;;  %2429 = vmatmul.bf16.vlgmr.msra.gmra.mxu1 %v2353_v4  ;;  %2455 = vmatmul.bf16.vlgmr.msra.gmra.mxu3 %v2353_v4  ;;  %v5690_v4 = vld [vmem:[#allocation11 + $0xcc] sm:$0xf0]  ;;  %v5693_v23 = vld [vmem:[#allocation11 + $0xec] sm:$0xf] }
 0x678   : > { %2909 = vmatpush.bf16.msra.mxu0 %v7014_v7  ;;  %2935 = vmatpush.bf16.msra.mxu2 %v7016_v11  ;;  %v2617_v36 = vpop.f32.mrf.mxu0 }
 0x679   : > { %2498 = vmatpush.bf16.msrb.mxu1 %v6957_v10  ;;  %2524 = vmatpush.bf16.msrb.mxu3 %v6952_v51  ;;  %v5688_v36 = vld [vmem:[#allocation11 + $0xc4] sm:$0xf] }
 0x67c   : > { %2910 = vmatpush.bf16.msra.mxu0 %v7026_v49  ;;  %2936 = vmatpush.bf16.msra.mxu2 %v8802_v9 }
 0x67d   : > { %2499 = vmatpush.bf16.msrb.mxu1 %v6967_v32  ;;  %2525 = vmatpush.bf16.msrb.mxu3 %v6964_v48 }
 0x67e   : > { %v2643_v31 = vpop.f32.mrf.mxu2 }
 0x67f   : > { %v5340_v31 = vld [vmem:[#allocation11 + $0xd0] sm:$0xf0] }
 0x680   : > { %2911 = vmatpush.bf16.msra.mxu0 %v8805_v20  ;;  %2937 = vmatpush.bf16.msra.mxu2 %v8806_v40 }
 0x681   : > { %2526 = vmatpush.bf16.msrb.mxu3 %v8861_v46 }
 0x684   : > { %2912 = vmatpush.bf16.msra.mxu0 %v8809_v58  ;;  %2938 = vmatpush.bf16.msra.mxu2 %v8810_v8 }
 0x688   : > { %2913 = vmatpush.bf16.msra.mxu0 %v8813_v30  ;;  %2939 = vmatpush.bf16.msra.mxu2 %v8814_v25 }
 0x68c   : > { %2914 = vmatpush.bf16.msra.mxu0 %v7080_v21  ;;  %2940 = vmatpush.bf16.msra.mxu2 %v7082_v60 }
 0x690   : > { %2915 = vmatpush.bf16.msra.mxu0 %v7092_v28  ;;  %2941 = vmatpush.bf16.msra.mxu2 %v7094_v53 }
 0x693   : > { %2916 = vmatmul.bf16.vlgmr.msra.gmra.mxu0 %v2855_v54  ;;  %2942 = vmatmul.bf16.vlgmr.msra.gmra.mxu2 %v2855_v54 }
 0x694   : > { %2981 = vmatpush.bf16.msrb.mxu0 %v6900_v38  ;;  %3007 = vmatpush.bf16.msrb.mxu2 %v6902_v26  ;;  %v7457_v38 = vpop.f32.mrf.mxu0  ;;  %v8860_v26 = vld [vmem:[#allocation27_spill] sm:$0xff] }
 0x695   : > { %8859 = vst [vmem:[#allocation47_spill] sm:$0xff] %v7457_v38  ;;  %2500 = vmatpush.bf16.msrb.mxu1 %v8860_v26  ;;  %v5664_v38 = vld [vmem:[#allocation11 + $0x4] sm:$0xf] }
 0x698   : > { %2982 = vmatpush.bf16.msrb.mxu0 %v6911_v50  ;;  %3008 = vmatpush.bf16.msrb.mxu2 %v6914_v24  ;;  %v8862_v50 = vld [vmem:[#allocation30_spill] sm:$0xff]  ;;  %v8863_v24 = vld [vmem:[#allocation29_spill] sm:$0xff] }
 0x699   : > { %2501 = vmatpush.bf16.msrb.mxu1 %v8862_v50  ;;  %2527 = vmatpush.bf16.msrb.mxu3 %v8863_v24 }
 0x69c   : > { %2983 = vmatpush.bf16.msrb.mxu0 %v6923_v3  ;;  %3009 = vmatpush.bf16.msrb.mxu2 %v6926_v15  ;;  %v8864_v3 = vld [vmem:[#allocation33_spill] sm:$0xff]  ;;  %v7468_v15 = vpop.f32.mrf.mxu2  ;;  %v2669_v37 = vpop.f32.mrf.mxu0 }
 0x69d   : > { %2546 = vmatpush.bf16.msra.mxu1 %v8864_v3  ;;  %8865 = vst [vmem:[#allocation31_spill] sm:$0xff] %v7468_v15  ;;  %2572 = vmatpush.bf16.msra.mxu3 %v8866_v41  ;;  %v5684_v37 = vld [vmem:[#allocation11 + $0xa4] sm:$0xf] }
 0x6a0   : > { %2984 = vmatpush.bf16.msrb.mxu0 %v6935_v34  ;;  %3010 = vmatpush.bf16.msrb.mxu2 %v6938_v47  ;;  %v8867_v34 = vld [vmem:[#allocation36_spill] sm:$0xff]  ;;  %v8868_v47 = vld [vmem:[#allocation34_spill] sm:$0xff] }
 0x6a1   : > { %2547 = vmatpush.bf16.msra.mxu1 %v8867_v34  ;;  %2573 = vmatpush.bf16.msra.mxu3 %v8868_v47  ;;  %v5665_v34 = vld [vmem:[#allocation11 + $0xc] sm:$0xf] }
 0x6a4   : > { %2985 = vmatpush.bf16.msrb.mxu0 %v6947_v22  ;;  %3011 = vmatpush.bf16.msrb.mxu2 %v6950_v63  ;;  %v8869_v22 = vld [vmem:[#allocation38_spill] sm:$0xff]  ;;  %v2695_v63 = vpop.f32.mrf.mxu2 }
 0x6a5   : > { %2548 = vmatpush.bf16.msra.mxu1 %v8869_v22  ;;  %2574 = vmatpush.bf16.msra.mxu3 %v8870_v33  ;;  %v5324_v63 = vld [vmem:[#allocation11 + $0xb0] sm:$0xf0]  ;;  %v5671_v33 = vld [vmem:[#allocation11 + $0x34] sm:$0xf0]  ;;  %v5268_v22 = vld [vmem:[#allocation11 + $0x38] sm:$0xf0] }
 0x6a8   : > { %2986 = vmatpush.bf16.msrb.mxu0 %v6959_v62  ;;  %3012 = vmatpush.bf16.msrb.mxu2 %v6962_v19  ;;  %v2980_v62 = vld [vmem:[#allocation2 + $0x1c] sm:$0xf]  ;;  %v8871_v19 = vld [vmem:[#allocation42_spill] sm:$0xff] }
 0x6a9   : > { %2549 = vmatpush.bf16.msra.mxu1 %v8871_v19  ;;  %v5284_v19 = vld [vmem:[#allocation11 + $0x58] sm:$0xf0] }
 0x6ac   : > { %2987 = vmatpush.bf16.msrb.mxu0 %v6971_v57  ;;  %3013 = vmatpush.bf16.msrb.mxu2 %v6973_v61  ;;  %v8872_v57 = vld [vmem:[#allocation41_spill] sm:$0xff]  ;;  %v8873_v61 = vld [vmem:[#allocation50_spill] sm:$0xff] }
 0x6ad   : > { %2575 = vmatpush.bf16.msra.mxu3 %v8872_v57  ;;  %2550 = vmatpush.bf16.msra.mxu1 %v8873_v61  ;;  %v5673_v57 = vld [vmem:[#allocation11 + $0x4c] sm:$0xf] }
 0x6b0   : > { %2988 = vmatpush.bf16.msrb.mxu0 %v6981_v45  ;;  %3014 = vmatpush.bf16.msrb.mxu2 %v6985_v59  ;;  %v8874_v45 = vld [vmem:[#allocation49_spill] sm:$0xff]  ;;  %v8875_v59 = vld [vmem:[#allocation54_spill] sm:$0xff] }
 0x6b1   : > { %2576 = vmatpush.bf16.msra.mxu3 %v8874_v45  ;;  %2551 = vmatpush.bf16.msra.mxu1 %v8875_v59  ;;  %v5298_v59 = vld [vmem:[#allocation11 + $0x68] sm:$0xf]  ;;  %v5679_v45 = vld [vmem:[#allocation11 + $0x74] sm:$0xf0] }
 0x6b3   : > { %2989 = vmatmul.bf16.vlgmr.msrb.gmra.mxu0 %v2980_v62  ;;  %3015 = vmatmul.bf16.vlgmr.msrb.gmra.mxu2 %v2980_v62 }
 0x6b4   : > { %3033 = vmatpush.bf16.msra.mxu0 %v7004_v14  ;;  %3059 = vmatpush.bf16.msra.mxu2 %v7006_v5  ;;  %v8876_v14 = vld [vmem:[#allocation53_spill] sm:$0xff]  ;;  %v7493_v5 = vpop.f32.mrf.mxu0 }
 0x6b5   : > { %2577 = vmatpush.bf16.msra.mxu3 %v8876_v14  ;;  %8877 = vst [vmem:[#allocation27_spill] sm:$0xff] %v7493_v5  ;;  %v5670_v5 = vld [vmem:[#allocation11 + $0x2c] sm:$0xf0] }
 0x6b8   : > { %3034 = vmatpush.bf16.msra.mxu0 %v7014_v7  ;;  %3060 = vmatpush.bf16.msra.mxu2 %v7016_v11  ;;  %v8878_v7 = vld [vmem:[#allocation56_spill] sm:$0xff]  ;;  %v8879_v11 = vld [vmem:[#allocation55_spill] sm:$0xff] }
 0x6b9   : > { %2552 = vmatpush.bf16.msra.mxu1 %v8878_v7  ;;  %2578 = vmatpush.bf16.msra.mxu3 %v8879_v11  ;;  %v5348_v11 = vld [vmem:[#allocation11 + $0xd8] sm:$0xf0] }
 0x6bc   : > { %3035 = vmatpush.bf16.msra.mxu0 %v7026_v49  ;;  %3061 = vmatpush.bf16.msra.mxu2 %v8802_v9  ;;  %v8880_v49 = vld [vmem:[#allocation58_spill] sm:$0xff]  ;;  %v7502_v9 = vpop.f32.mrf.mxu2  ;;  %v2742_v54 = vpop.f32.mrf.mxu0 }
 0x6bd   : > { %2553 = vmatpush.bf16.msra.mxu1 %v8880_v49  ;;  %8881 = vst [vmem:[#allocation28_spill] sm:$0xff] %v7502_v9  ;;  %2579 = vmatpush.bf16.msra.mxu3 %v8882_v12  ;;  %v5260_v9 = vld [vmem:[#allocation11 + $0x30] sm:$0xf0]  ;;  %v5691_v12 = vld [vmem:[#allocation11 + $0xd4] sm:$0xf0] }
 0x6be   : > { %v5689_v49 = vld [vmem:[#allocation11 + $0xcc] sm:$0xf] }
 0x6c0   : > { %3036 = vmatpush.bf16.msra.mxu0 %v8805_v20  ;;  %3062 = vmatpush.bf16.msra.mxu2 %v8806_v40  ;;  %v5354_v20 = vld [vmem:[#allocation11 + $0xe0] sm:$0xf]  ;;  %v5694_v40 = vld [vmem:[#allocation11 + $0xec] sm:$0xf0] }
 0x6c4   : > { %3037 = vmatpush.bf16.msra.mxu0 %v8809_v58  ;;  %3063 = vmatpush.bf16.msra.mxu2 %v8810_v8  ;;  %v7509_v58 = vor.u32 %v5694_v40, %v5354_v20  ;;  %v2768_v8 = vpop.f32.mrf.mxu2  ;;  %v5682_v20 = vld [vmem:[#allocation11 + $0x8c] sm:$0xf0]  ;;  %v5680_v40 = vld [vmem:[#allocation11 + $0x84] sm:$0xf] }
 0x6c5   : > { %v7531_v8 = vor.u32 %v5680_v40, %v5308_v17 }
 0x6c8   : > { %3038 = vmatpush.bf16.msra.mxu0 %v8813_v30  ;;  %3064 = vmatpush.bf16.msra.mxu2 %v8814_v25  ;;  %v7516_v25 = vor.u32 %v5690_v4, %v5338_v42  ;;  %v5686_v30 = vld [vmem:[#allocation11 + $0xac] sm:$0xf0]  ;;  %v5676_v4 = vld [vmem:[#allocation11 + $0x64] sm:$0xf] }
 0x6c9   : > { %v5678_v42 = vld [vmem:[#allocation11 + $0x6c] sm:$0xf0] }
 0x6cc   : > { %3039 = vmatpush.bf16.msra.mxu0 %v7080_v21  ;;  %3065 = vmatpush.bf16.msra.mxu2 %v7082_v60  ;;  %v7519_v21 = vor.u32 %v5688_v36, %v5340_v31  ;;  %v5322_v60 = vld [vmem:[#allocation11 + $0xa0] sm:$0xf]  ;;  %v5292_v36 = vld [vmem:[#allocation11 + $0x70] sm:$0xf0] }
 0x6cd   : > { %v7522_v54 = vor.u32 %v5686_v30, %v5322_v60  ;;  %v7539_v30 = vor.u32 %v5676_v4, %v5292_v36 }
 0x6d0   : > { %3040 = vmatpush.bf16.msra.mxu0 %v7092_v28  ;;  %3066 = vmatpush.bf16.msra.mxu2 %v7094_v53  ;;  %v7525_v28 = vor.u32 %v5684_v37, %v5324_v63  ;;  %v5306_v53 = vld [vmem:[#allocation11 + $0x80] sm:$0xf]  ;;  %v7533_v31 = vpop.f32.mrf.mxu0  ;;  %v5674_v63 = vld [vmem:[#allocation11 + $0x4c] sm:$0xf0] }
 0x6d1   : > { %v7528_v44 = vor.u32 %v5682_v20, %v5306_v53  ;;  %8883 = vst [vmem:[#allocation30_spill] sm:$0xff] %v7533_v31  ;;  %v5274_v37 = vld [vmem:[#allocation11 + $0x40] sm:$0xf]  ;;  %v5672_v53 = vld [vmem:[#allocation11 + $0x44] sm:$0xf] }
 0x6d2   : > { %v5276_v20 = vld [vmem:[#allocation11 + $0x50] sm:$0xf0]  ;;  %v7542_v40 = vor.u32 %v5674_v63, %v5274_v37  ;;  %v5258_v31 = vld [vmem:[#allocation11 + $0x20] sm:$0xf]  ;;  %v5666_v63 = vld [vmem:[#allocation11 + $0xc] sm:$0xf0] }
 0x6d3   : > { %3041 = vmatmul.bf16.vlgmr.msra.gmra.mxu0 %v2980_v62  ;;  %3067 = vmatmul.bf16.vlgmr.msra.gmra.mxu2 %v2980_v62  ;;  %v5290_v62 = vld [vmem:[#allocation11 + $0x60] sm:$0xf]  ;;  %v7545_v17 = vor.u32 %v5672_v53, %v5276_v20  ;;  %v7550_v36 = vor.u32 %v5670_v5, %v5258_v31  ;;  %v5244_v53 = vld [vmem:[#allocation11 + $0x10] sm:$0xf0]  ;;  %v5362_v20 = vld [vmem:[#allocation11 + $0xe8] sm:$0xf] }
 0x6d4   : > { %3500 = vmatpush.bf16.msrb.mxu0 %v7509_v58  ;;  %3526 = vmatpush.bf16.msrb.mxu2 %v7511_v35  ;;  %v7536_v60 = vor.u32 %v5678_v42, %v5290_v62  ;;  %v5668_v42 = vld [vmem:[#allocation11 + $0x24] sm:$0xf]  ;;  %v5242_v37 = vld [vmem:[#allocation11] sm:$0xf]  ;;  %v7559_v5 = vor.u32 %v5664_v38, %v5244_v53  ;;  %v7561_v31 = vor.u32 %v5695_v43, %v5362_v20  ;;  %v5332_v53 = vld [vmem:[#allocation11 + $0xb8] sm:$0xf0] }
 0x6d5   : > { %v7553_v15 = vor.u32 %v5668_v42, %v5260_v9  ;;  %v7563_v42 = vor.u32 %v5693_v23, %v5364_v0  ;;  %v7571_v38 = vld [vmem:[#allocation2] sm:$0xf]  ;;  %v7573_v43 = vor.u32 %v5689_v49, %v5348_v11  ;;  %v5330_v0 = vld [vmem:[#allocation11 + $0xa8] sm:$0xf]  ;;  %v5687_v23 = vld [vmem:[#allocation11 + $0xb4] sm:$0xf0] }
 0x6d6   : > { %v7547_v62 = vpop.f32.mrf.mxu2  ;;  %v7578_v20 = vor.u32 %v5687_v23, %v5330_v0  ;;  %v5681_v11 = vld [vmem:[#allocation11 + $0x8c] sm:$0xf]  ;;  %v5316_v49 = vld [vmem:[#allocation11 + $0x98] sm:$0xf0] }
 0x6d7   : > { %8884 = vst [vmem:[#allocation59_spill] sm:$0xff] %v7547_v62  ;;  %v7556_v62 = vor.u32 %v5666_v63, %v5242_v37  ;;  %v5685_v63 = vld [vmem:[#allocation11 + $0xac] sm:$0xf]  ;;  %v7587_v14 = vor.u32 %v5681_v11, %v5316_v49  ;;  %v5300_v23 = vld [vmem:[#allocation11 + $0x78] sm:$0xf0]  ;;  %v7601_v49 = vor.u32 %v5673_v57, %v5284_v19 }
 0x6d8   : > { %3501 = vmatpush.bf16.msrb.mxu0 %v7516_v25  ;;  %3527 = vmatpush.bf16.msrb.mxu2 %v7519_v21  ;;  %v2794_v4 = vpop.f32.mrf.mxu0  ;;  %8886 = vst [vmem:[#allocation61_spill] sm:$0xff] %v7573_v43  ;;  %v5677_v0 = vld [vmem:[#allocation11 + $0x6c] sm:$0xf]  ;;  %v5252_v19 = vld [vmem:[#allocation11 + $0x18] sm:$0xf0] }
 0x6d9   : > { %v5346_v4 = vld [vmem:[#allocation11 + $0xc8] sm:$0xf]  ;;  %8887 = vst [vmem:[#allocation62_spill] sm:$0xff] %v7578_v20 }
 0x6da   : > { %v7568_v37 = vor.u32 %v5691_v12, %v5346_v4  ;;  %v7581_v12 = vor.u32 %v5685_v63, %v5332_v53  ;;  %v5683_v4 = vld [vmem:[#allocation11 + $0x94] sm:$0xf0]  ;;  %8890 = vst [vmem:[#allocation65_spill] sm:$0xff] %v7587_v14  ;;  %v7592_v63 = vor.u32 %v5679_v45, %v5298_v59  ;;  %v7595_v53 = vor.u32 %v5677_v0, %v5300_v23  ;;  %v5669_v59 = vld [vmem:[#allocation11 + $0x2c] sm:$0xf] }
 0x6db   : > { %8895 = vst [vmem:[#allocation70_spill] sm:$0xff] %v7601_v49  ;;  %v7609_v47 = vor.u32 %v5669_v59, %v5268_v22 }
 0x6dc   : > { %3502 = vmatpush.bf16.msrb.mxu0 %v7522_v54  ;;  %3528 = vmatpush.bf16.msrb.mxu2 %v7525_v28  ;;  %8885 = vst [vmem:[#allocation60_spill] sm:$0xff] %v7568_v37 }
 0x6dd   : > { %8888 = vst [vmem:[#allocation63_spill] sm:$0xff] %v7581_v12 }
 0x6de   : > { %v2820_v9 = vpop.f32.mrf.mxu2  ;;  %8892 = vst [vmem:[#allocation67_spill] sm:$0xff] %v7592_v63 }
 0x6df   : > { %v5314_v9 = vld [vmem:[#allocation11 + $0x88] sm:$0xf]  ;;  %8893 = vst [vmem:[#allocation68_spill] sm:$0xff] %v7595_v53 }
 0x6e0   : > { %3503 = vmatpush.bf16.msrb.mxu0 %v7528_v44  ;;  %3529 = vmatpush.bf16.msrb.mxu2 %v7531_v8  ;;  %v7584_v7 = vor.u32 %v5683_v4, %v5314_v9  ;;  %v5282_v9 = vld [vmem:[#allocation11 + $0x48] sm:$0xf]  ;;  %v5675_v4 = vld [vmem:[#allocation11 + $0x54] sm:$0xf0]  ;;  %8898 = vst [vmem:[#allocation73_spill] sm:$0xff] %v7609_v47 }
 0x6e1   : > { %v7598_v11 = vor.u32 %v5675_v4, %v5282_v9  ;;  %v5250_v9 = vld [vmem:[#allocation11 + $0x8] sm:$0xf]  ;;  %v5667_v4 = vld [vmem:[#allocation11 + $0x14] sm:$0xf0] }
 0x6e2   : > { %8889 = vst [vmem:[#allocation64_spill] sm:$0xff] %v7584_v7  ;;  %v7612_v41 = vor.u32 %v5667_v4, %v5250_v9  ;;  %v8903_v9 = vld [vmem:[#allocation48_spill] sm:$0xff] }
 0x6e3   : > { %8894 = vst [vmem:[#allocation69_spill] sm:$0xff] %v7598_v11  ;;  %v2366_v4 = vadd.f32 %v8903_v9, %v7220_v29 }
 0x6e4   : > { %3504 = vmatpush.bf16.msrb.mxu0 %v7536_v60  ;;  %3530 = vmatpush.bf16.msrb.mxu2 %v7539_v30  ;;  %v2378_v57 = vpop.f32.mrf.mxu1  ;;  %8899 = vst [vmem:[#allocation74_spill] sm:$0xff] %v7612_v41 }
 0x6e8   : > { %3505 = vmatpush.bf16.msrb.mxu0 %v7542_v40  ;;  %3531 = vmatpush.bf16.msrb.mxu2 %v7545_v17 }
 0x6ea   : > { %v2404_v59 = vpop.f32.mrf.mxu3 }
 0x6ec   : > { %3506 = vmatpush.bf16.msrb.mxu0 %v7550_v36  ;;  %3532 = vmatpush.bf16.msrb.mxu2 %v7553_v15  ;;  %v2380_v24 = vpop.f32.mrf.mxu1 }
 0x6ed   : > { %v8905_v24 = vld [vmem:[#allocation52_spill] sm:$0xff] }
 0x6f0   : > { %3507 = vmatpush.bf16.msrb.mxu0 %v7556_v62  ;;  %3533 = vmatpush.bf16.msrb.mxu2 %v7559_v5  ;;  %v7589_v61 = vpop.f32.mrf.mxu0 }
 0x6f1   : > { %8891 = vst [vmem:[#allocation66_spill] sm:$0xff] %v7589_v61  ;;  %v5266_v61 = vld [vmem:[#allocation11 + $0x28] sm:$0xf] }
 0x6f2   : > { %v7606_v23 = vor.u32 %v5671_v33, %v5266_v61  ;;  %v8901_v33 = vld [vmem:[#allocation39_spill] sm:$0xff] }
 0x6f3   : > { %3508 = vmatmul.bf16.vlgmr.msrb.gmra.mxu0 %v7571_v38  ;;  %3534 = vmatmul.bf16.vlgmr.msrb.gmra.mxu2 %v7571_v38  ;;  %v8902_v61 = vld [vmem:[#allocation51_spill] sm:$0xff] }
 0x6f4   : > { %3552 = vmatpush.bf16.msra.mxu0 %v7561_v31  ;;  %3578 = vmatpush.bf16.msra.mxu2 %v7563_v42  ;;  %8897 = vst [vmem:[#allocation72_spill] sm:$0xff] %v7606_v23  ;;  %v2392_v22 = vadd.f32 %v8902_v61, %v8901_v33  ;;  %v2406_v61 = vpop.f32.mrf.mxu3  ;;  %v2430_v9 = vpop.f32.mrf.mxu1 }
 0x6f6   : > { %v7603_v45 = vpop.f32.mrf.mxu2  ;;  %v2405_v3 = vadd.f32 %v2404_v59, %v2392_v22  ;;  %v8906_v59 = vld [vmem:[#allocation23_spill] sm:$0xff] }
 0x6f7   : > { %8896 = vst [vmem:[#allocation71_spill] sm:$0xff] %v7603_v45 }
 0x6f8   : > { %3553 = vmatpush.bf16.msra.mxu0 %v7568_v37  ;;  %3579 = vmatpush.bf16.msra.mxu2 %v7573_v43  ;;  %v2867_v0 = vpop.f32.mrf.mxu0 }
 0x6f9   : > { %v7615_v0 = vor.u32 %v5665_v34, %v5252_v19  ;;  %v2379_v34 = vadd.f32 %v2378_v57, %v2366_v4  ;;  %v2444_v4 = vadd.f32 %v8906_v59, %v7241_v13 }
 0x6fb   : > { %8900 = vst [vmem:[#allocation75_spill] sm:$0xff] %v7615_v0  ;;  %v2460_v19 = vmul.f32 0.5, %v2379_v34 }
 0x6fc   : > { %3554 = vmatpush.bf16.msra.mxu0 %v7578_v20  ;;  %3580 = vmatpush.bf16.msra.mxu2 %v7581_v12  ;;  %v2456_v34 = vpop.f32.mrf.mxu3 }
 0x6fd   : > { %v2457_v61 = vadd.f32 %v2456_v34, %v2444_v4 }
 0x6fe   : > { %v2893_v45 = vpop.f32.mrf.mxu2 }
 0x6ff   : > { %v2461_v45 = vmul.f32 0.5, %v2405_v3 }
 0x700   : > { %3555 = vmatpush.bf16.msra.mxu0 %v7584_v7  ;;  %3581 = vmatpush.bf16.msra.mxu2 %v7587_v14 }
 0x701   : > { %5920 = vtanh.f32 %v2461_v45 }
 0x702   : > { %5922 = vtanh.f32 %v2460_v19 }
 0x703   : > { %5924 = vtanh.f32 %v2457_v61 }
 0x704   : > { %3556 = vmatpush.bf16.msra.mxu0 %v7592_v63  ;;  %3582 = vmatpush.bf16.msra.mxu2 %v7595_v53  ;;  %v2458_v13 = vpop.f32.mrf.mxu3 }
 0x707   : > { %v5921_v3 = vpop.eup %5920 }
 0x708   : > { %3557 = vmatpush.bf16.msra.mxu0 %v7598_v11  ;;  %3583 = vmatpush.bf16.msra.mxu2 %v7601_v49  ;;  %v5923_v45 = vpop.eup %5922  ;;  %v2467_v29 = vmul.f32 0.5, %v5921_v3 }
 0x709   : > { %v5925_v4 = vpop.eup %5924 }
 0x70c   : > { %3558 = vmatpush.bf16.msra.mxu0 %v7606_v23  ;;  %3584 = vmatpush.bf16.msra.mxu2 %v7609_v47 }
 0x710   : > { %3559 = vmatpush.bf16.msra.mxu0 %v7612_v41  ;;  %3585 = vmatpush.bf16.msra.mxu2 %v7615_v0  ;;  %v7631_v22 = vpop.f32.mrf.mxu0 }
 0x711   : > { %8904 = vst [vmem:[#allocation51_spill] sm:$0xff] %v7631_v22  ;;  %v2432_v22 = vpop.f32.mrf.mxu1 }
 0x713   : > { %3560 = vmatmul.bf16.vlgmr.msra.gmra.mxu0 %v7571_v38  ;;  %3586 = vmatmul.bf16.vlgmr.msra.gmra.mxu2 %v7571_v38  ;;  %v2418_v38 = vadd.f32 %v8905_v24, %v7236_v56 }
 0x714   : > { %3624 = vmatpush.bf16.msrb.mxu0 %v7509_v58  ;;  %3650 = vmatpush.bf16.msrb.mxu2 %v7511_v35 }
 0x715   : > { %v2431_v57 = vadd.f32 %v2430_v9, %v2418_v38  ;;  %v2466_v9 = vmul.f32 0.5, %v5923_v45  ;;  %v2470_v38 = vadd.f32 0.5, %v2467_v29  ;;  %v3622_v29 = vld [vmem:[#allocation2 + $0x4] sm:$0xf] }
 0x716   : > { %v7641_v19 = vpop.f32.mrf.mxu2 }
 0x717   : > { %8907 = vst [vmem:[#allocation48_spill] sm:$0xff] %v7641_v19  ;;  %v2462_v33 = vmul.f32 0.5, %v2431_v57  ;;  %v2469_v59 = vadd.f32 0.5, %v2466_v9  ;;  %v2473_v22 = vmul.f32 %v2470_v38, %v7417_v2 }
 0x718   : > { %3625 = vmatpush.bf16.msrb.mxu0 %v7516_v25  ;;  %3651 = vmatpush.bf16.msrb.mxu2 %v7519_v21  ;;  %v2919_v24 = vpop.f32.mrf.mxu0 }
 0x719   : > { %5926 = vtanh.f32 %v2462_v33  ;;  %v2474_v57 = vmul.f32 %v5925_v4, %v2469_v59 }
 0x71b   : > { %v7649_v61 = vadd.f32 %v2474_v57, %v2473_v22  ;;  %v8911_v22 = vld [vmem:[#allocation29_spill] sm:$0xff] }
 0x71c   : > { %3626 = vmatpush.bf16.msrb.mxu0 %v7522_v54  ;;  %3652 = vmatpush.bf16.msrb.mxu2 %v7525_v28  ;;  %v8912_v57 = vld [vmem:[#allocation33_spill] sm:$0xff] }
 0x71d   : > { %5928 = vtanh.f32 %v7649_v61 }
 0x71e   : > { %v2945_v34 = vpop.f32.mrf.mxu2 }
 0x71f   : > { %v5927_v3 = vpop.eup %5926 }
 0x720   : > { %3627 = vmatpush.bf16.msrb.mxu0 %v7528_v44  ;;  %3653 = vmatpush.bf16.msrb.mxu2 %v7531_v8  ;;  %v2468_v13 = vmul.f32 0.5, %v5927_v3  ;;  %v8913_v3 = vld [vmem:[#allocation32_spill] sm:$0xff] }
 0x722   : > { %v2471_v2 = vadd.f32 0.5, %v2468_v13 }
 0x723   : > { %v5929_v33 = vpop.eup %5928 }
 0x724   : > { %3628 = vmatpush.bf16.msrb.mxu0 %v7536_v60  ;;  %3654 = vmatpush.bf16.msrb.mxu2 %v7539_v30  ;;  %v2477_v45 = vmul.f32 %v5929_v33, %v2471_v2  ;;  %v8915_v2 = vld [vmem:[#allocation36_spill] sm:$0xff]  ;;  %v8916_v33 = vld [vmem:[#allocation34_spill] sm:$0xff] }
 0x726   : > { %v2478_v9 = vpack.c.bf16 %v2477_v45, %v2477_v45  ;;  %v8917_v45 = vld [vmem:[#allocation38_spill] sm:$0xff] }
 0x728   : > { %3629 = vmatpush.bf16.msrb.mxu0 %v7542_v40  ;;  %3655 = vmatpush.bf16.msrb.mxu2 %v7545_v17  ;;  %2479 = vst [vmem:[#allocation2 + $0x8] sm:$0xf] %v2478_v9 }
 0x729   : > { %2502 = vmatmul.bf16.vlgmr.msrb.gmra.mxu1 %v2478_v9  ;;  %2528 = vmatmul.bf16.vlgmr.msrb.gmra.mxu3 %v2478_v9 }
 0x72a   : > { %2619 = vmatpush.bf16.msrb.mxu1 %v6909_v6  ;;  %2645 = vmatpush.bf16.msrb.mxu3 %v6904_v39 }
 0x72c   : > { %3630 = vmatpush.bf16.msrb.mxu0 %v7550_v36  ;;  %3656 = vmatpush.bf16.msrb.mxu2 %v7553_v15 }
 0x72e   : > { %2620 = vmatpush.bf16.msrb.mxu1 %v6921_v55  ;;  %2646 = vmatpush.bf16.msrb.mxu3 %v6916_v18 }
 0x730   : > { %3631 = vmatpush.bf16.msrb.mxu0 %v7556_v62  ;;  %3657 = vmatpush.bf16.msrb.mxu2 %v7559_v5  ;;  %v7659_v24 = vpop.f32.mrf.mxu0 }
 0x731   : > { %8908 = vst [vmem:[#allocation52_spill] sm:$0xff] %v7659_v24  ;;  %v8922_v24 = vld [vmem:[#allocation49_spill] sm:$0xff] }
 0x732   : > { %2621 = vmatpush.bf16.msrb.mxu1 %v6933_v27  ;;  %2647 = vmatpush.bf16.msrb.mxu3 %v6928_v16 }
 0x733   : > { %3632 = vmatmul.bf16.vlgmr.msrb.gmra.mxu0 %v3622_v29  ;;  %3658 = vmatmul.bf16.vlgmr.msrb.gmra.mxu2 %v3622_v29 }
 0x734   : > { %3676 = vmatpush.bf16.msra.mxu0 %v7561_v31  ;;  %3702 = vmatpush.bf16.msra.mxu2 %v7563_v42 }
 0x736   : > { %v7667_v38 = vpop.f32.mrf.mxu2  ;;  %2622 = vmatpush.bf16.msrb.mxu1 %v6945_v1  ;;  %2648 = vmatpush.bf16.msrb.mxu3 %v6940_v52 }
 0x737   : > { %8909 = vst [vmem:[#allocation23_spill] sm:$0xff] %v7667_v38  ;;  %v8924_v38 = vld [vmem:[#allocation53_spill] sm:$0xff] }
 0x738   : > { %3677 = vmatpush.bf16.msra.mxu0 %v7568_v37  ;;  %3703 = vmatpush.bf16.msra.mxu2 %v7573_v43  ;;  %v2992_v59 = vpop.f32.mrf.mxu0 }
 0x739   : > { %2554 = vmatmul.bf16.vlgmr.msra.gmra.mxu1 %v2478_v9  ;;  %2580 = vmatmul.bf16.vlgmr.msra.gmra.mxu3 %v2478_v9  ;;  %v8918_v9 = vld [vmem:[#allocation37_spill] sm:$0xff] }
 0x73a   : > { %2623 = vmatpush.bf16.msrb.mxu1 %v6957_v10  ;;  %2649 = vmatpush.bf16.msrb.mxu3 %v6952_v51 }
 0x73c   : > { %3678 = vmatpush.bf16.msra.mxu0 %v7578_v20  ;;  %3704 = vmatpush.bf16.msra.mxu2 %v7581_v12 }
 0x73e   : > { %v3018_v4 = vpop.f32.mrf.mxu2  ;;  %2624 = vmatpush.bf16.msrb.mxu1 %v6967_v32  ;;  %2650 = vmatpush.bf16.msrb.mxu3 %v6964_v48 }
 0x73f   : > { %v8919_v4 = vld [vmem:[#allocation42_spill] sm:$0xff] }
 0x740   : > { %3679 = vmatpush.bf16.msra.mxu0 %v7584_v7  ;;  %3705 = vmatpush.bf16.msra.mxu2 %v7587_v14 }
 0x742   : > { %2625 = vmatpush.bf16.msrb.mxu1 %v8860_v26  ;;  %2651 = vmatpush.bf16.msrb.mxu3 %v8861_v46 }
 0x744   : > { %3680 = vmatpush.bf16.msra.mxu0 %v7592_v63  ;;  %3706 = vmatpush.bf16.msra.mxu2 %v7595_v53 }
 0x746   : > { %2626 = vmatpush.bf16.msrb.mxu1 %v8862_v50  ;;  %2652 = vmatpush.bf16.msrb.mxu3 %v8911_v22 }
 0x748   : > { %3681 = vmatpush.bf16.msra.mxu0 %v7598_v11  ;;  %3707 = vmatpush.bf16.msra.mxu2 %v7601_v49 }
 0x74a   : > { %2671 = vmatpush.bf16.msra.mxu1 %v8912_v57  ;;  %2697 = vmatpush.bf16.msra.mxu3 %v8913_v3 }
 0x74c   : > { %3682 = vmatpush.bf16.msra.mxu0 %v7606_v23  ;;  %3708 = vmatpush.bf16.msra.mxu2 %v7609_v47 }
 0x74e   : > { %2672 = vmatpush.bf16.msra.mxu1 %v8915_v2  ;;  %2698 = vmatpush.bf16.msra.mxu3 %v8916_v33 }
 0x750   : > { %3683 = vmatpush.bf16.msra.mxu0 %v7612_v41  ;;  %3709 = vmatpush.bf16.msra.mxu2 %v7615_v0  ;;  %v7691_v34 = vpop.f32.mrf.mxu0 }
 0x751   : > { %8910 = vst [vmem:[#allocation76_spill] sm:$0xff] %v7691_v34  ;;  %v8921_v34 = vld [vmem:[#allocation50_spill] sm:$0xff] }
 0x752   : > { %2673 = vmatpush.bf16.msra.mxu1 %v8917_v45  ;;  %2699 = vmatpush.bf16.msra.mxu3 %v8918_v9 }
 0x753   : > { %3684 = vmatmul.bf16.vlgmr.msra.gmra.mxu0 %v3622_v29  ;;  %3710 = vmatmul.bf16.vlgmr.msra.gmra.mxu2 %v3622_v29 }
 0x754   : > { %3748 = vmatpush.bf16.msrb.mxu0 %v7509_v58  ;;  %3774 = vmatpush.bf16.msrb.mxu2 %v7511_v35 }
 0x756   : > { %v7703_v29 = vpop.f32.mrf.mxu2  ;;  %2674 = vmatpush.bf16.msra.mxu1 %v8919_v4  ;;  %v8929_v4 = vld [vmem:[#allocation57_spill] sm:$0xff] }
 0x757   : > { %8914 = vst [vmem:[#allocation29_spill] sm:$0xff] %v7703_v29  ;;  %v3746_v29 = vld [vmem:[#allocation2 + $0x8] sm:$0xf] }
 0x758   : > { %3749 = vmatpush.bf16.msrb.mxu0 %v7516_v25  ;;  %3775 = vmatpush.bf16.msrb.mxu2 %v7519_v21  ;;  %v3044_v13 = vpop.f32.mrf.mxu0 }
 0x759   : > { %v8920_v13 = vld [vmem:[#allocation41_spill] sm:$0xff] }
 0x75a   : > { %2700 = vmatpush.bf16.msra.mxu3 %v8920_v13  ;;  %2675 = vmatpush.bf16.msra.mxu1 %v8921_v34  ;;  %v8926_v13 = vld [vmem:[#allocation56_spill] sm:$0xff]  ;;  %v8927_v34 = vld [vmem:[#allocation55_spill] sm:$0xff] }
 0x75c   : > { %3750 = vmatpush.bf16.msrb.mxu0 %v7522_v54  ;;  %3776 = vmatpush.bf16.msrb.mxu2 %v7525_v28 }
 0x75e   : > { %v3070_v59 = vpop.f32.mrf.mxu2  ;;  %2701 = vmatpush.bf16.msra.mxu3 %v8922_v24  ;;  %v8928_v24 = vld [vmem:[#allocation58_spill] sm:$0xff] }
 0x75f   : > { %v8923_v59 = vld [vmem:[#allocation54_spill] sm:$0xff] }
 0x760   : > { %3751 = vmatpush.bf16.msrb.mxu0 %v7528_v44  ;;  %3777 = vmatpush.bf16.msrb.mxu2 %v7531_v8 }
 0x761   : > { %2676 = vmatpush.bf16.msra.mxu1 %v8923_v59 }
 0x762   : > { %2702 = vmatpush.bf16.msra.mxu3 %v8924_v38 }
 0x764   : > { %3752 = vmatpush.bf16.msrb.mxu0 %v7536_v60  ;;  %3778 = vmatpush.bf16.msrb.mxu2 %v7539_v30 }
 0x765   : > { %2677 = vmatpush.bf16.msra.mxu1 %v8926_v13 }
 0x766   : > { %2703 = vmatpush.bf16.msra.mxu3 %v8927_v34 }
 0x768   : > { %3753 = vmatpush.bf16.msrb.mxu0 %v7542_v40  ;;  %3779 = vmatpush.bf16.msrb.mxu2 %v7545_v17 }
 0x769   : > { %2678 = vmatpush.bf16.msra.mxu1 %v8928_v24  ;;  %v8936_v24 = vld [vmem:[#allocation24_spill] sm:$0xff] }
 0x76a   : > { %2704 = vmatpush.bf16.msra.mxu3 %v8929_v4 }
 0x76c   : > { %3754 = vmatpush.bf16.msrb.mxu0 %v7550_v36  ;;  %3780 = vmatpush.bf16.msrb.mxu2 %v7553_v15 }
 0x770   : > { %3755 = vmatpush.bf16.msrb.mxu0 %v7556_v62  ;;  %3781 = vmatpush.bf16.msrb.mxu2 %v7559_v5  ;;  %v7727_v19 = vpop.f32.mrf.mxu0 }
 0x771   : > { %8925 = vst [vmem:[#allocation33_spill] sm:$0xff] %v7727_v19 }
 0x773   : > { %3756 = vmatmul.bf16.vlgmr.msrb.gmra.mxu0 %v3746_v29  ;;  %3782 = vmatmul.bf16.vlgmr.msrb.gmra.mxu2 %v3746_v29 }
 0x774   : > { %3800 = vmatpush.bf16.msra.mxu0 %v7561_v31  ;;  %3826 = vmatpush.bf16.msra.mxu2 %v7563_v42 }
 0x776   : > { %v7737_v38 = vpop.f32.mrf.mxu2 }
 0x777   : > { %8930 = vst [vmem:[#allocation32_spill] sm:$0xff] %v7737_v38 }
 0x778   : > { %3801 = vmatpush.bf16.msra.mxu0 %v7568_v37  ;;  %3827 = vmatpush.bf16.msra.mxu2 %v7573_v43  ;;  %v3511_v59 = vpop.f32.mrf.mxu0 }
 0x77c   : > { %3802 = vmatpush.bf16.msra.mxu0 %v7578_v20  ;;  %3828 = vmatpush.bf16.msra.mxu2 %v7581_v12 }
 0x77e   : > { %v3537_v19 = vpop.f32.mrf.mxu2 }
 0x780   : > { %3803 = vmatpush.bf16.msra.mxu0 %v7584_v7  ;;  %3829 = vmatpush.bf16.msra.mxu2 %v7587_v14 }
 0x784   : > { %3804 = vmatpush.bf16.msra.mxu0 %v7592_v63  ;;  %3830 = vmatpush.bf16.msra.mxu2 %v7595_v53 }
 0x788   : > { %3805 = vmatpush.bf16.msra.mxu0 %v7598_v11  ;;  %3831 = vmatpush.bf16.msra.mxu2 %v7601_v49 }
 0x78c   : > { %3806 = vmatpush.bf16.msra.mxu0 %v7606_v23  ;;  %3832 = vmatpush.bf16.msra.mxu2 %v7609_v47 }
 0x790   : > { %3807 = vmatpush.bf16.msra.mxu0 %v7612_v41  ;;  %3833 = vmatpush.bf16.msra.mxu2 %v7615_v0  ;;  %v7751_v59 = vpop.f32.mrf.mxu0 }
 0x791   : > { %8931 = vst [vmem:[#allocation36_spill] sm:$0xff] %v7751_v59 }
 0x793   : > { %3808 = vmatmul.bf16.vlgmr.msra.gmra.mxu0 %v3746_v29  ;;  %3834 = vmatmul.bf16.vlgmr.msra.gmra.mxu2 %v3746_v29 }
 0x794   : > { %3872 = vmatpush.bf16.msrb.mxu0 %v7509_v58  ;;  %3898 = vmatpush.bf16.msrb.mxu2 %v7511_v35 }
 0x796   : > { %v7756_v19 = vpop.f32.mrf.mxu2 }
 0x797   : > { %8932 = vst [vmem:[#allocation34_spill] sm:$0xff] %v7756_v19 }
 0x798   : > { %3873 = vmatpush.bf16.msrb.mxu0 %v7516_v25  ;;  %3899 = vmatpush.bf16.msrb.mxu2 %v7519_v21  ;;  %v3563_v29 = vpop.f32.mrf.mxu0 }
 0x79c   : > { %3874 = vmatpush.bf16.msrb.mxu0 %v7522_v54  ;;  %3900 = vmatpush.bf16.msrb.mxu2 %v7525_v28 }
 0x79e   : > { %v3589_v38 = vpop.f32.mrf.mxu2 }
 0x7a0   : > { %3875 = vmatpush.bf16.msrb.mxu0 %v7528_v44  ;;  %3901 = vmatpush.bf16.msrb.mxu2 %v7531_v8 }
 0x7a4   : > { %3876 = vmatpush.bf16.msrb.mxu0 %v7536_v60  ;;  %3902 = vmatpush.bf16.msrb.mxu2 %v7539_v30 }
 0x7a6   : > { %v2503_v59 = vpop.f32.mrf.mxu1 }
 0x7a8   : > { %3877 = vmatpush.bf16.msrb.mxu0 %v7542_v40  ;;  %3903 = vmatpush.bf16.msrb.mxu2 %v7545_v17 }
 0x7ac   : > { %3878 = vmatpush.bf16.msrb.mxu0 %v7550_v36  ;;  %3904 = vmatpush.bf16.msrb.mxu2 %v7553_v15  ;;  %v2529_v13 = vpop.f32.mrf.mxu3 }
 0x7b0   : > { %3879 = vmatpush.bf16.msrb.mxu0 %v7556_v62  ;;  %3905 = vmatpush.bf16.msrb.mxu2 %v7559_v5  ;;  %v7771_v29 = vpop.f32.mrf.mxu0 }
 0x7b1   : > { %8933 = vst [vmem:[#allocation38_spill] sm:$0xff] %v7771_v29  ;;  %v8935_v29 = vld [vmem:[#allocation39_spill] sm:$0xff] }
 0x7b2   : > { %v2517_v34 = vadd.f32 %v8936_v24, %v8935_v29 }
 0x7b4   : > { %3924 = vmatpush.bf16.msra.mxu0 %v7561_v31  ;;  %3950 = vmatpush.bf16.msra.mxu2 %v7563_v42 }
 0x7b6   : > { %v7776_v38 = vpop.f32.mrf.mxu2 }
 0x7b7   : > { %8934 = vst [vmem:[#allocation37_spill] sm:$0xff] %v7776_v38 }
 0x7b8   : > { %3925 = vmatpush.bf16.msra.mxu0 %v7568_v37  ;;  %3951 = vmatpush.bf16.msra.mxu2 %v7573_v43  ;;  %v3635_v19 = vpop.f32.mrf.mxu0 }
 0x7b9   : > { %v2505_v19 = vpop.f32.mrf.mxu1 }
 0x7bc   : > { %3926 = vmatpush.bf16.msra.mxu0 %v7578_v20  ;;  %3952 = vmatpush.bf16.msra.mxu2 %v7581_v12 }
 0x7be   : > { %v3661_v4 = vpop.f32.mrf.mxu2 }
 0x7c0   : > { %3927 = vmatpush.bf16.msra.mxu0 %v7584_v7  ;;  %3953 = vmatpush.bf16.msra.mxu2 %v7587_v14  ;;  %v8938_v14 = vld [vmem:[#allocation43_spill] sm:$0xff]  ;;  %v2530_v7 = vadd.f32 %v2529_v13, %v2517_v34  ;;  %v8941_v34 = vld [vmem:[#allocation44_spill] sm:$0xff]  ;;  %v8942_v13 = vld [vmem:[#allocation25_spill] sm:$0xff] }
 0x7c1   : > { %v2555_v4 = vpop.f32.mrf.mxu1 }
 0x7c4   : > { %3928 = vmatpush.bf16.msra.mxu0 %v7592_v63  ;;  %3954 = vmatpush.bf16.msra.mxu2 %v7595_v53  ;;  %v8937_v63 = vld [vmem:[#allocation35_spill] sm:$0xff] }
 0x7c5   : > { %v2491_v38 = vadd.f32 %v8938_v14, %v8937_v63  ;;  %v2569_v63 = vadd.f32 %v8942_v13, %v8941_v34 }
 0x7c8   : > { %3929 = vmatpush.bf16.msra.mxu0 %v7598_v11  ;;  %3955 = vmatpush.bf16.msra.mxu2 %v7601_v49  ;;  %v2504_v11 = vadd.f32 %v2503_v59, %v2491_v38  ;;  %v2586_v49 = vmul.f32 0.5, %v2530_v7 }
 0x7ca   : > { %v2585_v53 = vmul.f32 0.5, %v2504_v11  ;;  %5930 = vtanh.f32 %v2586_v49  ;;  %v2557_v11 = vpop.f32.mrf.mxu1 }
 0x7cc   : > { %3930 = vmatpush.bf16.msra.mxu0 %v7606_v23  ;;  %3956 = vmatpush.bf16.msra.mxu2 %v7609_v47  ;;  %v2531_v23 = vpop.f32.mrf.mxu3  ;;  %5932 = vtanh.f32 %v2585_v53  ;;  %v8939_v47 = vld [vmem:[#allocation45_spill] sm:$0xff] }
 0x7cd   : > { %v2543_v24 = vadd.f32 %v8939_v47, %v7236_v56 }
 0x7cf   : > { %v2556_v12 = vadd.f32 %v2555_v4, %v2543_v24 }
 0x7d0   : > { %3931 = vmatpush.bf16.msra.mxu0 %v7612_v41  ;;  %3957 = vmatpush.bf16.msra.mxu2 %v7615_v0  ;;  %v7791_v29 = vpop.f32.mrf.mxu0  ;;  %v5931_v14 = vpop.eup %5930 }
 0x7d1   : > { %8940 = vst [vmem:[#allocation24_spill] sm:$0xff] %v7791_v29  ;;  %v2592_v59 = vmul.f32 0.5, %v5931_v14  ;;  %v2587_v7 = vmul.f32 0.5, %v2556_v12 }
 0x7d2   : > { %v5933_v41 = vpop.eup %5932 }
 0x7d3   : > { %v2591_v49 = vmul.f32 0.5, %v5933_v41  ;;  %v2595_v38 = vadd.f32 0.5, %v2592_v59 }
 0x7d4   : > { %v2581_v19 = vpop.f32.mrf.mxu3 }
 0x7d5   : > { %v2582_v0 = vadd.f32 %v2581_v19, %v2569_v63  ;;  %v2594_v47 = vadd.f32 0.5, %v2591_v49  ;;  %v2598_v24 = vmul.f32 %v2595_v38, %v7649_v61  ;;  %v8948_v38 = vld [vmem:[#allocation42_spill] sm:$0xff] }
 0x7d6   : > { %v7795_v23 = vpop.f32.mrf.mxu2 }
 0x7d7   : > { %5934 = vtanh.f32 %v2582_v0  ;;  %8943 = vst [vmem:[#allocation43_spill] sm:$0xff] %v7795_v23  ;;  %v8967_v23 = vld [vmem:[#allocation74_spill] sm:$0xff] }
 0x7d8   : > { %v3687_v53 = vpop.f32.mrf.mxu0  ;;  %5936 = vtanh.f32 %v2587_v7 }
 0x7dc   : > { %v2583_v29 = vpop.f32.mrf.mxu3 }
 0x7dd   : > { %v5935_v4 = vpop.eup %5934 }
 0x7de   : > { %v2599_v56 = vmul.f32 %v5935_v4, %v2594_v47  ;;  %v5937_v13 = vpop.eup %5936  ;;  %v3713_v63 = vpop.f32.mrf.mxu2  ;;  %v8949_v47 = vld [vmem:[#allocation41_spill] sm:$0xff] }
 0x7df   : > { %v2593_v12 = vmul.f32 0.5, %v5937_v13  ;;  %v8951_v13 = vld [vmem:[#allocation49_spill] sm:$0xff]  ;;  %v8952_v63 = vld [vmem:[#allocation63_spill] sm:$0xff] }
 0x7e0   : > { %v7798_v34 = vadd.f32 %v2599_v56, %v2598_v24  ;;  %v8950_v24 = vld [vmem:[#allocation50_spill] sm:$0xff] }
 0x7e1   : > { %v2596_v0 = vadd.f32 0.5, %v2593_v12  ;;  %v8953_v12 = vld [vmem:[#allocation54_spill] sm:$0xff] }
 0x7e2   : > { %5938 = vtanh.f32 %v7798_v34 }
 0x7e8   : > { %v5939_v41 = vpop.eup %5938 }
 0x7e9   : > { %v2602_v14 = vmul.f32 %v5939_v41, %v2596_v0  ;;  %v8954_v0 = vld [vmem:[#allocation53_spill] sm:$0xff]  ;;  %v8955_v41 = vld [vmem:[#allocation64_spill] sm:$0xff] }
 0x7eb   : > { %v2603_v19 = vpack.c.bf16 %v2602_v14, %v2602_v14  ;;  %v8956_v14 = vld [vmem:[#allocation65_spill] sm:$0xff] }
 0x7ed   : > { %2604 = vst [vmem:[#allocation2 + $0xc] sm:$0xf] %v2603_v19  ;;  %2627 = vmatmul.bf16.vlgmr.msrb.gmra.mxu1 %v2603_v19  ;;  %2653 = vmatmul.bf16.vlgmr.msrb.gmra.mxu3 %v2603_v19 }
 0x7ee   : > { %2744 = vmatpush.bf16.msrb.mxu1 %v6909_v6  ;;  %2770 = vmatpush.bf16.msrb.mxu3 %v6904_v39 }
 0x7f0   : > { %v7801_v59 = vpop.f32.mrf.mxu0 }
 0x7f1   : > { %8944 = vst [vmem:[#allocation45_spill] sm:$0xff] %v7801_v59  ;;  %v8965_v59 = vld [vmem:[#allocation72_spill] sm:$0xff] }
 0x7f2   : > { %2745 = vmatpush.bf16.msrb.mxu1 %v6921_v55  ;;  %2771 = vmatpush.bf16.msrb.mxu3 %v6916_v18 }
 0x7f4   : > { %v3870_v56 = vld [vmem:[#allocation2 + $0xc] sm:$0xf] }
 0x7f5   : > { %3880 = vmatmul.bf16.vlgmr.msrb.gmra.mxu0 %v3870_v56  ;;  %3906 = vmatmul.bf16.vlgmr.msrb.gmra.mxu2 %v3870_v56 }
 0x7f6   : > { %v7807_v61 = vpop.f32.mrf.mxu2  ;;  %2746 = vmatpush.bf16.msrb.mxu1 %v6933_v27  ;;  %2772 = vmatpush.bf16.msrb.mxu3 %v6928_v16 }
 0x7f7   : > { %8945 = vst [vmem:[#allocation25_spill] sm:$0xff] %v7807_v61  ;;  %3996 = vmatpush.bf16.msrb.mxu0 %v7509_v58  ;;  %4022 = vmatpush.bf16.msrb.mxu2 %v7511_v35  ;;  %v8966_v61 = vld [vmem:[#allocation73_spill] sm:$0xff] }
 0x7f8   : > { %v3759_v29 = vpop.f32.mrf.mxu0 }
 0x7f9   : > { %v8959_v29 = vld [vmem:[#allocation67_spill] sm:$0xff] }
 0x7fa   : > { %2747 = vmatpush.bf16.msrb.mxu1 %v6945_v1  ;;  %2773 = vmatpush.bf16.msrb.mxu3 %v6940_v52 }
 0x7fb   : > { %3997 = vmatpush.bf16.msrb.mxu0 %v7516_v25  ;;  %4023 = vmatpush.bf16.msrb.mxu2 %v7519_v21 }
 0x7fd   : > { %2679 = vmatmul.bf16.vlgmr.msra.gmra.mxu1 %v2603_v19  ;;  %2705 = vmatmul.bf16.vlgmr.msra.gmra.mxu3 %v2603_v19  ;;  %v8957_v19 = vld [vmem:[#allocation56_spill] sm:$0xff] }
 0x7fe   : > { %v3785_v7 = vpop.f32.mrf.mxu2  ;;  %2748 = vmatpush.bf16.msrb.mxu1 %v6957_v10  ;;  %2774 = vmatpush.bf16.msrb.mxu3 %v6952_v51 }
 0x7ff   : > { %3998 = vmatpush.bf16.msrb.mxu0 %v7522_v54  ;;  %4024 = vmatpush.bf16.msrb.mxu2 %v7525_v28  ;;  %v8960_v7 = vld [vmem:[#allocation68_spill] sm:$0xff] }
 0x802   : > { %2749 = vmatpush.bf16.msrb.mxu1 %v6967_v32  ;;  %2775 = vmatpush.bf16.msrb.mxu3 %v6964_v48 }
 0x803   : > { %3999 = vmatpush.bf16.msrb.mxu0 %v7528_v44  ;;  %4025 = vmatpush.bf16.msrb.mxu2 %v7531_v8 }
 0x805   : > { %3932 = vmatmul.bf16.vlgmr.msra.gmra.mxu0 %v3870_v56  ;;  %3958 = vmatmul.bf16.vlgmr.msra.gmra.mxu2 %v3870_v56  ;;  %v8958_v56 = vld [vmem:[#allocation55_spill] sm:$0xff] }
 0x806   : > { %2750 = vmatpush.bf16.msrb.mxu1 %v8860_v26  ;;  %2776 = vmatpush.bf16.msrb.mxu3 %v8861_v46 }
 0x807   : > { %4000 = vmatpush.bf16.msrb.mxu0 %v7536_v60  ;;  %4026 = vmatpush.bf16.msrb.mxu2 %v7539_v30 }
 0x80a   : > { %2751 = vmatpush.bf16.msrb.mxu1 %v8862_v50  ;;  %2777 = vmatpush.bf16.msrb.mxu3 %v8911_v22 }
 0x80b   : > { %4001 = vmatpush.bf16.msrb.mxu0 %v7542_v40  ;;  %4027 = vmatpush.bf16.msrb.mxu2 %v7545_v17 }
 0x80e   : > { %2796 = vmatpush.bf16.msra.mxu1 %v8912_v57  ;;  %2822 = vmatpush.bf16.msra.mxu3 %v8913_v3 }
 0x80f   : > { %4002 = vmatpush.bf16.msrb.mxu0 %v7550_v36  ;;  %4028 = vmatpush.bf16.msrb.mxu2 %v7553_v15 }
 0x810   : > { %v7831_v11 = vpop.f32.mrf.mxu0 }
 0x811   : > { %8946 = vst [vmem:[#allocation77_spill] sm:$0xff] %v7831_v11  ;;  %v8964_v11 = vld [vmem:[#allocation70_spill] sm:$0xff] }
 0x812   : > { %2797 = vmatpush.bf16.msra.mxu1 %v8915_v2  ;;  %2823 = vmatpush.bf16.msra.mxu3 %v8916_v33 }
 0x813   : > { %4003 = vmatpush.bf16.msrb.mxu0 %v7556_v62  ;;  %4029 = vmatpush.bf16.msrb.mxu2 %v7559_v5 }
 0x816   : > { %v7841_v49 = vpop.f32.mrf.mxu2  ;;  %2798 = vmatpush.bf16.msra.mxu1 %v8917_v45  ;;  %2824 = vmatpush.bf16.msra.mxu3 %v8918_v9 }
 0x817   : > { %8947 = vst [vmem:[#allocation78_spill] sm:$0xff] %v7841_v49  ;;  %4048 = vmatpush.bf16.msra.mxu0 %v7561_v31  ;;  %4074 = vmatpush.bf16.msra.mxu2 %v7563_v42  ;;  %v8963_v49 = vld [vmem:[#allocation69_spill] sm:$0xff] }
 0x818   : > { %v3811_v53 = vpop.f32.mrf.mxu0 }
 0x819   : > { %v8961_v53 = vld [vmem:[#allocation58_spill] sm:$0xff] }
 0x81a   : > { %2799 = vmatpush.bf16.msra.mxu1 %v8948_v38  ;;  %2825 = vmatpush.bf16.msra.mxu3 %v8949_v47 }
 0x81b   : > { %4049 = vmatpush.bf16.msra.mxu0 %v7568_v37  ;;  %4075 = vmatpush.bf16.msra.mxu2 %v7573_v43 }
 0x81e   : > { %v3837_v4 = vpop.f32.mrf.mxu2  ;;  %2800 = vmatpush.bf16.msra.mxu1 %v8950_v24  ;;  %2826 = vmatpush.bf16.msra.mxu3 %v8951_v13  ;;  %v8975_v24 = vld [vmem:[#allocation40_spill] sm:$0xff] }
 0x81f   : > { %4050 = vmatpush.bf16.msra.mxu0 %v7578_v20  ;;  %4076 = vmatpush.bf16.msra.mxu2 %v8952_v63  ;;  %v8962_v4 = vld [vmem:[#allocation57_spill] sm:$0xff] }
 0x822   : > { %2801 = vmatpush.bf16.msra.mxu1 %v8953_v12  ;;  %2827 = vmatpush.bf16.msra.mxu3 %v8954_v0  ;;  %v8972_v0 = vld [vmem:[#allocation46_spill] sm:$0xff] }
 0x823   : > { %4051 = vmatpush.bf16.msra.mxu0 %v8955_v41  ;;  %4077 = vmatpush.bf16.msra.mxu2 %v8956_v14  ;;  %v8970_v14 = vld [vmem:[#allocation26_spill] sm:$0xff] }
 0x826   : > { %2802 = vmatpush.bf16.msra.mxu1 %v8957_v19  ;;  %2828 = vmatpush.bf16.msra.mxu3 %v8958_v56  ;;  %v8968_v19 = vld [vmem:[#allocation75_spill] sm:$0xff] }
 0x827   : > { %4052 = vmatpush.bf16.msra.mxu0 %v8959_v29  ;;  %4078 = vmatpush.bf16.msra.mxu2 %v8960_v7  ;;  %v8969_v29 = vld [vmem:[#allocation39_spill] sm:$0xff] }
 0x828   : > { %v2642_v7 = vadd.f32 %v8970_v14, %v8969_v29  ;;  %v8976_v14 = vld [vmem:[#allocation47_spill] sm:$0xff] }
 0x829   : > { %v2668_v29 = vadd.f32 %v8976_v14, %v8975_v24 }
 0x82a   : > { %2803 = vmatpush.bf16.msra.mxu1 %v8961_v53  ;;  %2829 = vmatpush.bf16.msra.mxu3 %v8962_v4  ;;  %v8971_v53 = vld [vmem:[#allocation35_spill] sm:$0xff] }
 0x82b   : > { %4053 = vmatpush.bf16.msra.mxu0 %v8963_v49  ;;  %4079 = vmatpush.bf16.msra.mxu2 %v8964_v11  ;;  %v2616_v4 = vadd.f32 %v8972_v0, %v8971_v53  ;;  %v8977_v0 = vld [vmem:[#allocation44_spill] sm:$0xff] }
 0x82f   : > { %4054 = vmatpush.bf16.msra.mxu0 %v8965_v59  ;;  %4080 = vmatpush.bf16.msra.mxu2 %v8966_v61 }
 0x833   : > { %4055 = vmatpush.bf16.msra.mxu0 %v8967_v23  ;;  %4081 = vmatpush.bf16.msra.mxu2 %v8968_v19 }
 0x86a   : > { %v2628_v56 = vpop.f32.mrf.mxu1 }
 0x86b   : > { %v2629_v11 = vadd.f32 %v2628_v56, %v2616_v4 }
 0x86d   : > { %v2710_v20 = vmul.f32 0.5, %v2629_v11 }
 0x870   : > { %v2654_v41 = vpop.f32.mrf.mxu3 }
 0x871   : > { %v2655_v12 = vadd.f32 %v2654_v41, %v2642_v7  ;;  %v8978_v41 = vld [vmem:[#allocation31_spill] sm:$0xff] }
 0x872   : > { %v2630_v49 = vpop.f32.mrf.mxu1  ;;  %v7877_v63 = vpop.f32.mrf.mxu0 }
 0x873   : > { %8973 = vst [vmem:[#allocation42_spill] sm:$0xff] %v7877_v63  ;;  %v2711_v59 = vmul.f32 0.5, %v2655_v12  ;;  %v2694_v49 = vadd.f32 %v8978_v41, %v8977_v0 }
 0x875   : > { %5940 = vtanh.f32 %v2711_v59 }
 0x876   : > { %5942 = vtanh.f32 %v2710_v20 }
 0x878   : > { %v2656_v61 = vpop.f32.mrf.mxu3  ;;  %v7879_v13 = vpop.f32.mrf.mxu2 }
 0x879   : > { %8974 = vst [vmem:[#allocation41_spill] sm:$0xff] %v7879_v13 }
 0x87a   : > { %v2680_v19 = vpop.f32.mrf.mxu1  ;;  %v3883_v23 = vpop.f32.mrf.mxu0 }
 0x87b   : > { %v2681_v43 = vadd.f32 %v2680_v19, %v2668_v29  ;;  %v5941_v37 = vpop.eup %5940 }
 0x87c   : > { %v5943_v56 = vpop.eup %5942  ;;  %v2717_v11 = vmul.f32 0.5, %v5941_v37 }
 0x87d   : > { %v2712_v61 = vmul.f32 0.5, %v2681_v43  ;;  %v2716_v23 = vmul.f32 0.5, %v5943_v56 }
 0x87e   : > { %v2720_v20 = vadd.f32 0.5, %v2717_v11 }
 0x87f   : > { %v2719_v59 = vadd.f32 0.5, %v2716_v23  ;;  %v8985_v23 = vld [vmem:[#allocation62_spill] sm:$0xff] }
 0x880   : > { %v2706_v7 = vpop.f32.mrf.mxu3  ;;  %v3909_v63 = vpop.f32.mrf.mxu2  ;;  %v2723_v41 = vmul.f32 %v2720_v20, %v7798_v34  ;;  %v8986_v20 = vld [vmem:[#allocation63_spill] sm:$0xff] }
 0x881   : > { %v2707_v12 = vadd.f32 %v2706_v7, %v2694_v49 }
 0x882   : > { %v2682_v4 = vpop.f32.mrf.mxu1  ;;  %v7885_v13 = vpop.f32.mrf.mxu0 }
 0x883   : > { %8979 = vst [vmem:[#allocation26_spill] sm:$0xff] %v7885_v13  ;;  %5944 = vtanh.f32 %v2707_v12  ;;  %v8984_v4 = vld [vmem:[#allocation49_spill] sm:$0xff] }
 0x884   : > { %5946 = vtanh.f32 %v2712_v61  ;;  %v8983_v61 = vld [vmem:[#allocation50_spill] sm:$0xff]  ;;  %v9000_v13 = vld [vmem:[#allocation73_spill] sm:$0xff] }
 0x888   : > { %v2708_v14 = vpop.f32.mrf.mxu3  ;;  %v7887_v19 = vpop.f32.mrf.mxu2 }
 0x889   : > { %8980 = vst [vmem:[#allocation35_spill] sm:$0xff] %v7887_v19  ;;  %v5945_v29 = vpop.eup %5944  ;;  %v8988_v14 = vld [vmem:[#allocation53_spill] sm:$0xff]  ;;  %v8999_v19 = vld [vmem:[#allocation72_spill] sm:$0xff] }
 0x88a   : > { %v2724_v0 = vmul.f32 %v5945_v29, %v2719_v59  ;;  %v3935_v63 = vpop.f32.mrf.mxu0  ;;  %v5947_v24 = vpop.eup %5946  ;;  %v8987_v59 = vld [vmem:[#allocation54_spill] sm:$0xff]  ;;  %v8989_v29 = vld [vmem:[#allocation64_spill] sm:$0xff] }
 0x88b   : > { %v2718_v37 = vmul.f32 0.5, %v5947_v24  ;;  %v8981_v24 = vld [vmem:[#allocation60_spill] sm:$0xff] }
 0x88c   : > { %v7890_v49 = vadd.f32 %v2724_v0, %v2723_v41  ;;  %v8982_v0 = vld [vmem:[#allocation61_spill] sm:$0xff]  ;;  %v8991_v63 = vld [vmem:[#allocation56_spill] sm:$0xff] }
 0x88d   : > { %v2721_v7 = vadd.f32 0.5, %v2718_v37  ;;  %v8990_v41 = vld [vmem:[#allocation65_spill] sm:$0xff]  ;;  %v8992_v37 = vld [vmem:[#allocation55_spill] sm:$0xff] }
 0x88e   : > { %5948 = vtanh.f32 %v7890_v49 }
 0x890   : > { %v3961_v43 = vpop.f32.mrf.mxu2 }
 0x891   : > { %v8993_v43 = vld [vmem:[#allocation67_spill] sm:$0xff] }
 0x894   : > { %v5949_v56 = vpop.eup %5948 }
 0x895   : > { %v2727_v12 = vmul.f32 %v5949_v56, %v2721_v7  ;;  %v8994_v7 = vld [vmem:[#allocation68_spill] sm:$0xff]  ;;  %v8995_v56 = vld [vmem:[#allocation58_spill] sm:$0xff] }
 0x897   : > { %v2728_v11 = vpack.c.bf16 %v2727_v12, %v2727_v12  ;;  %v8996_v12 = vld [vmem:[#allocation57_spill] sm:$0xff] }
 0x899   : > { %2729 = vst [vmem:[#allocation2 + $0x10] sm:$0xf] %v2728_v11  ;;  %2752 = vmatmul.bf16.vlgmr.msrb.gmra.mxu1 %v2728_v11  ;;  %2778 = vmatmul.bf16.vlgmr.msrb.gmra.mxu3 %v2728_v11 }
 0x89a   : > { %2869 = vmatpush.bf16.msrb.mxu1 %v6909_v6  ;;  %2895 = vmatpush.bf16.msrb.mxu3 %v6904_v39 }
 0x89e   : > { %2870 = vmatpush.bf16.msrb.mxu1 %v6921_v55  ;;  %2896 = vmatpush.bf16.msrb.mxu3 %v6916_v18 }
 0x8a0   : > { %v3994_v34 = vld [vmem:[#allocation2 + $0x10] sm:$0xf] }
 0x8a1   : > { %4004 = vmatmul.bf16.vlgmr.msrb.gmra.mxu0 %v3994_v34  ;;  %4030 = vmatmul.bf16.vlgmr.msrb.gmra.mxu2 %v3994_v34 }
 0x8a2   : > { %2871 = vmatpush.bf16.msrb.mxu1 %v6933_v27  ;;  %2897 = vmatpush.bf16.msrb.mxu3 %v6928_v16 }
 0x8a3   : > { %4120 = vmatpush.bf16.msrb.mxu0 %v7509_v58  ;;  %4146 = vmatpush.bf16.msrb.mxu2 %v7511_v35 }
 0x8a6   : > { %2872 = vmatpush.bf16.msrb.mxu1 %v6945_v1  ;;  %2898 = vmatpush.bf16.msrb.mxu3 %v6940_v52 }
 0x8a7   : > { %4121 = vmatpush.bf16.msrb.mxu0 %v7516_v25  ;;  %4147 = vmatpush.bf16.msrb.mxu2 %v7519_v21 }
 0x8a9   : > { %2804 = vmatmul.bf16.vlgmr.msra.gmra.mxu1 %v2728_v11  ;;  %2830 = vmatmul.bf16.vlgmr.msra.gmra.mxu3 %v2728_v11  ;;  %v8997_v11 = vld [vmem:[#allocation69_spill] sm:$0xff] }
 0x8aa   : > { %2873 = vmatpush.bf16.msrb.mxu1 %v6957_v10  ;;  %2899 = vmatpush.bf16.msrb.mxu3 %v6952_v51 }
 0x8ab   : > { %4122 = vmatpush.bf16.msrb.mxu0 %v7522_v54  ;;  %4148 = vmatpush.bf16.msrb.mxu2 %v7525_v28 }
 0x8ae   : > { %2874 = vmatpush.bf16.msrb.mxu1 %v6967_v32  ;;  %2900 = vmatpush.bf16.msrb.mxu3 %v6964_v48 }
 0x8af   : > { %4123 = vmatpush.bf16.msrb.mxu0 %v7528_v44  ;;  %4149 = vmatpush.bf16.msrb.mxu2 %v7531_v8 }
 0x8b1   : > { %4056 = vmatmul.bf16.vlgmr.msra.gmra.mxu0 %v3994_v34  ;;  %4082 = vmatmul.bf16.vlgmr.msra.gmra.mxu2 %v3994_v34  ;;  %v8998_v34 = vld [vmem:[#allocation70_spill] sm:$0xff] }
 0x8b2   : > { %2875 = vmatpush.bf16.msrb.mxu1 %v8860_v26  ;;  %2901 = vmatpush.bf16.msrb.mxu3 %v8861_v46 }
 0x8b3   : > { %4124 = vmatpush.bf16.msrb.mxu0 %v7536_v60  ;;  %4150 = vmatpush.bf16.msrb.mxu2 %v7539_v30 }
 0x8b6   : > { %2876 = vmatpush.bf16.msrb.mxu1 %v8862_v50  ;;  %2902 = vmatpush.bf16.msrb.mxu3 %v8911_v22 }
 0x8b7   : > { %4125 = vmatpush.bf16.msrb.mxu0 %v7542_v40  ;;  %4151 = vmatpush.bf16.msrb.mxu2 %v7545_v17 }
 0x8ba   : > { %2921 = vmatpush.bf16.msra.mxu1 %v8912_v57  ;;  %2947 = vmatpush.bf16.msra.mxu3 %v8913_v3 }
 0x8bb   : > { %4126 = vmatpush.bf16.msrb.mxu0 %v7550_v36  ;;  %4152 = vmatpush.bf16.msrb.mxu2 %v7553_v15 }
 0x8be   : > { %2922 = vmatpush.bf16.msra.mxu1 %v8915_v2  ;;  %2948 = vmatpush.bf16.msra.mxu3 %v8916_v33 }
 0x8bf   : > { %4127 = vmatpush.bf16.msrb.mxu0 %v7556_v62  ;;  %4153 = vmatpush.bf16.msrb.mxu2 %v7559_v5 }
 0x8c2   : > { %2923 = vmatpush.bf16.msra.mxu1 %v8917_v45  ;;  %2949 = vmatpush.bf16.msra.mxu3 %v8918_v9 }
 0x8c3   : > { %4172 = vmatpush.bf16.msra.mxu0 %v7561_v31  ;;  %4198 = vmatpush.bf16.msra.mxu2 %v7563_v42 }
 0x8c6   : > { %2924 = vmatpush.bf16.msra.mxu1 %v8948_v38  ;;  %2950 = vmatpush.bf16.msra.mxu3 %v8949_v47 }
 0x8c7   : > { %4173 = vmatpush.bf16.msra.mxu0 %v8981_v24  ;;  %4199 = vmatpush.bf16.msra.mxu2 %v8982_v0 }
 0x8ca   : > { %2925 = vmatpush.bf16.msra.mxu1 %v8983_v61  ;;  %2951 = vmatpush.bf16.msra.mxu3 %v8984_v4  ;;  %v9008_v61 = vld [vmem:[#allocation40_spill] sm:$0xff] }
 0x8cb   : > { %4174 = vmatpush.bf16.msra.mxu0 %v8985_v23  ;;  %4200 = vmatpush.bf16.msra.mxu2 %v8986_v20 }
 0x8ce   : > { %2926 = vmatpush.bf16.msra.mxu1 %v8987_v59  ;;  %2952 = vmatpush.bf16.msra.mxu3 %v8988_v14 }
 0x8cf   : > { %4175 = vmatpush.bf16.msra.mxu0 %v8989_v29  ;;  %4201 = vmatpush.bf16.msra.mxu2 %v8990_v41  ;;  %v9001_v41 = vld [vmem:[#allocation74_spill] sm:$0xff]  ;;  %v9004_v29 = vld [vmem:[#allocation28_spill] sm:$0xff] }
 0x8d2   : > { %2927 = vmatpush.bf16.msra.mxu1 %v8991_v63  ;;  %2953 = vmatpush.bf16.msra.mxu3 %v8992_v37  ;;  %v9002_v63 = vld [vmem:[#allocation75_spill] sm:$0xff] }
 0x8d3   : > { %4176 = vmatpush.bf16.msra.mxu0 %v8993_v43  ;;  %4202 = vmatpush.bf16.msra.mxu2 %v8994_v7  ;;  %v9003_v43 = vld [vmem:[#allocation39_spill] sm:$0xff] }
 0x8d4   : > { %v2767_v7 = vadd.f32 %v9004_v29, %v9003_v43  ;;  %v9009_v29 = vld [vmem:[#allocation30_spill] sm:$0xff] }
 0x8d5   : > { %v2793_v43 = vadd.f32 %v9009_v29, %v9008_v61 }
 0x8d6   : > { %2928 = vmatpush.bf16.msra.mxu1 %v8995_v56  ;;  %2954 = vmatpush.bf16.msra.mxu3 %v8996_v12  ;;  %v9005_v56 = vld [vmem:[#allocation27_spill] sm:$0xff] }
 0x8d7   : > { %4177 = vmatpush.bf16.msra.mxu0 %v8997_v11  ;;  %4203 = vmatpush.bf16.msra.mxu2 %v8998_v34  ;;  %v2741_v12 = vadd.f32 %v9005_v56, %v8971_v53  ;;  %v9010_v56 = vld [vmem:[#allocation44_spill] sm:$0xff] }
 0x8db   : > { %4178 = vmatpush.bf16.msra.mxu0 %v8999_v19  ;;  %4204 = vmatpush.bf16.msra.mxu2 %v9000_v13 }
 0x8df   : > { %4179 = vmatpush.bf16.msra.mxu0 %v9001_v41  ;;  %4205 = vmatpush.bf16.msra.mxu2 %v9002_v63 }
 0x916   : > { %v2753_v37 = vpop.f32.mrf.mxu1 }
 0x917   : > { %v2754_v34 = vadd.f32 %v2753_v37, %v2741_v12 }
 0x919   : > { %v2835_v23 = vmul.f32 0.5, %v2754_v34 }
 0x91c   : > { %v2779_v14 = vpop.f32.mrf.mxu3 }
 0x91d   : > { %v2780_v59 = vadd.f32 %v2779_v14, %v2767_v7  ;;  %v9011_v14 = vld [vmem:[#allocation59_spill] sm:$0xff] }
 0x91e   : > { %v2755_v11 = vpop.f32.mrf.mxu1  ;;  %v7961_v20 = vpop.f32.mrf.mxu0  ;;  %v2819_v7 = vadd.f32 %v9011_v14, %v9010_v56 }
 0x91f   : > { %9006 = vst [vmem:[#allocation46_spill] sm:$0xff] %v7961_v20  ;;  %v2836_v19 = vmul.f32 0.5, %v2780_v59 }
 0x921   : > { %5950 = vtanh.f32 %v2836_v19 }
 0x922   : > { %5952 = vtanh.f32 %v2835_v23 }
 0x924   : > { %v2781_v13 = vpop.f32.mrf.mxu3  ;;  %v7963_v4 = vpop.f32.mrf.mxu2 }
 0x925   : > { %9007 = vst [vmem:[#allocation47_spill] sm:$0xff] %v7963_v4 }
 0x926   : > { %v2805_v63 = vpop.f32.mrf.mxu1  ;;  %v4007_v41 = vpop.f32.mrf.mxu0 }
 0x927   : > { %v2806_v0 = vadd.f32 %v2805_v63, %v2793_v43  ;;  %v5951_v24 = vpop.eup %5950 }
 0x928   : > { %v5953_v37 = vpop.eup %5952  ;;  %v2842_v12 = vmul.f32 0.5, %v5951_v24 }
 0x929   : > { %v2837_v13 = vmul.f32 0.5, %v2806_v0  ;;  %v2841_v19 = vmul.f32 0.5, %v5953_v37 }
 0x92a   : > { %v2845_v23 = vadd.f32 0.5, %v2842_v12 }
 0x92b   : > { %v2844_v41 = vadd.f32 0.5, %v2841_v19 }
 0x92c   : > { %v2831_v11 = vpop.f32.mrf.mxu3  ;;  %v4033_v20 = vpop.f32.mrf.mxu2  ;;  %v2848_v14 = vmul.f32 %v2845_v23, %v7890_v49 }
 0x92d   : > { %v2832_v59 = vadd.f32 %v2831_v11, %v2819_v7 }
 0x92e   : > { %v2807_v34 = vpop.f32.mrf.mxu1  ;;  %v7969_v4 = vpop.f32.mrf.mxu0 }
 0x92f   : > { %5954 = vtanh.f32 %v2832_v59  ;;  %v9036_v34 = vld [vmem:[#allocation66_spill] sm:$0xff] }
 0x930   : > { %5956 = vtanh.f32 %v2837_v13  ;;  %v2866_v19 = vadd.f32 %v9036_v34, %v8971_v53 }
 0x934   : > { %v2833_v29 = vpop.f32.mrf.mxu3  ;;  %v7971_v63 = vpop.f32.mrf.mxu2 }
 0x935   : > { %v5955_v43 = vpop.eup %5954 }
 0x936   : > { %v2849_v56 = vmul.f32 %v5955_v43, %v2844_v41  ;;  %v4059_v20 = vpop.f32.mrf.mxu0  ;;  %v5957_v61 = vpop.eup %5956 }
 0x937   : > { %v2843_v24 = vmul.f32 0.5, %v5957_v61  ;;  %v9035_v61 = vld [vmem:[#allocation71_spill] sm:$0xff] }
 0x938   : > { %v7974_v7 = vadd.f32 %v2849_v56, %v2848_v14 }
 0x939   : > { %v2846_v11 = vadd.f32 0.5, %v2843_v24 }
 0x93a   : > { %5958 = vtanh.f32 %v7974_v7 }
 0x93c   : > { %v4085_v0 = vpop.f32.mrf.mxu2 }
 0x940   : > { %v5959_v37 = vpop.eup %5958 }
 0x941   : > { %v2852_v59 = vmul.f32 %v5959_v37, %v2846_v11 }
 0x943   : > { %v2853_v12 = vpack.c.bf16 %v2852_v59, %v2852_v59  ;;  %v9037_v59 = vld [vmem:[#allocation40_spill] sm:$0xff] }
 0x945   : > { %2854 = vst [vmem:[#allocation2 + $0x14] sm:$0xf] %v2853_v12  ;;  %2877 = vmatmul.bf16.vlgmr.msrb.gmra.mxu1 %v2853_v12  ;;  %2903 = vmatmul.bf16.vlgmr.msrb.gmra.mxu3 %v2853_v12 }
 0x946   : > { %2994 = vmatpush.bf16.msrb.mxu1 %v6909_v6  ;;  %3020 = vmatpush.bf16.msrb.mxu3 %v6904_v39  ;;  %v9012_v39 = vld [vmem:[#allocation60_spill] sm:$0xff]  ;;  %v9013_v6 = vld [vmem:[#allocation61_spill] sm:$0xff] }
 0x94a   : > { %2995 = vmatpush.bf16.msrb.mxu1 %v6921_v55  ;;  %3021 = vmatpush.bf16.msrb.mxu3 %v6916_v18  ;;  %v9014_v18 = vld [vmem:[#allocation50_spill] sm:$0xff]  ;;  %v9015_v55 = vld [vmem:[#allocation49_spill] sm:$0xff] }
 0x94c   : > { %v4118_v49 = vld [vmem:[#allocation2 + $0x14] sm:$0xf] }
 0x94d   : > { %4128 = vmatmul.bf16.vlgmr.msrb.gmra.mxu0 %v4118_v49  ;;  %4154 = vmatmul.bf16.vlgmr.msrb.gmra.mxu2 %v4118_v49 }
 0x94e   : > { %2996 = vmatpush.bf16.msrb.mxu1 %v6933_v27  ;;  %3022 = vmatpush.bf16.msrb.mxu3 %v6928_v16  ;;  %v9016_v16 = vld [vmem:[#allocation62_spill] sm:$0xff]  ;;  %v9017_v27 = vld [vmem:[#allocation63_spill] sm:$0xff] }
 0x94f   : > { %4244 = vmatpush.bf16.msrb.mxu0 %v7509_v58  ;;  %4270 = vmatpush.bf16.msrb.mxu2 %v7511_v35 }
 0x952   : > { %2997 = vmatpush.bf16.msrb.mxu1 %v6945_v1  ;;  %3023 = vmatpush.bf16.msrb.mxu3 %v6940_v52  ;;  %v9018_v52 = vld [vmem:[#allocation54_spill] sm:$0xff]  ;;  %v9019_v1 = vld [vmem:[#allocation53_spill] sm:$0xff] }
 0x953   : > { %4245 = vmatpush.bf16.msrb.mxu0 %v7516_v25  ;;  %4271 = vmatpush.bf16.msrb.mxu2 %v7519_v21 }
 0x955   : > { %2929 = vmatmul.bf16.vlgmr.msra.gmra.mxu1 %v2853_v12  ;;  %2955 = vmatmul.bf16.vlgmr.msra.gmra.mxu3 %v2853_v12  ;;  %v9038_v12 = vld [vmem:[#allocation51_spill] sm:$0xff] }
 0x956   : > { %2998 = vmatpush.bf16.msrb.mxu1 %v6957_v10  ;;  %3024 = vmatpush.bf16.msrb.mxu3 %v6952_v51  ;;  %v9020_v51 = vld [vmem:[#allocation64_spill] sm:$0xff]  ;;  %v9021_v10 = vld [vmem:[#allocation65_spill] sm:$0xff] }
 0x957   : > { %4246 = vmatpush.bf16.msrb.mxu0 %v7522_v54  ;;  %4272 = vmatpush.bf16.msrb.mxu2 %v7525_v28 }
 0x95a   : > { %2999 = vmatpush.bf16.msrb.mxu1 %v6967_v32  ;;  %3025 = vmatpush.bf16.msrb.mxu3 %v6964_v48  ;;  %v9022_v48 = vld [vmem:[#allocation56_spill] sm:$0xff]  ;;  %v9023_v32 = vld [vmem:[#allocation55_spill] sm:$0xff] }
 0x95b   : > { %4247 = vmatpush.bf16.msrb.mxu0 %v7528_v44  ;;  %4273 = vmatpush.bf16.msrb.mxu2 %v7531_v8 }
 0x95d   : > { %4180 = vmatmul.bf16.vlgmr.msra.gmra.mxu0 %v4118_v49  ;;  %4206 = vmatmul.bf16.vlgmr.msra.gmra.mxu2 %v4118_v49  ;;  %v2918_v49 = vadd.f32 %v9038_v12, %v9037_v59 }
 0x95e   : > { %3000 = vmatpush.bf16.msrb.mxu1 %v8860_v26  ;;  %3026 = vmatpush.bf16.msrb.mxu3 %v8861_v46  ;;  %v9024_v26 = vld [vmem:[#allocation67_spill] sm:$0xff]  ;;  %v9025_v46 = vld [vmem:[#allocation68_spill] sm:$0xff] }
 0x95f   : > { %4248 = vmatpush.bf16.msrb.mxu0 %v7536_v60  ;;  %4274 = vmatpush.bf16.msrb.mxu2 %v7539_v30 }
 0x962   : > { %3001 = vmatpush.bf16.msrb.mxu1 %v8862_v50  ;;  %3027 = vmatpush.bf16.msrb.mxu3 %v8911_v22  ;;  %v9026_v50 = vld [vmem:[#allocation58_spill] sm:$0xff]  ;;  %v9027_v22 = vld [vmem:[#allocation57_spill] sm:$0xff] }
 0x963   : > { %4249 = vmatpush.bf16.msrb.mxu0 %v7542_v40  ;;  %4275 = vmatpush.bf16.msrb.mxu2 %v7545_v17 }
 0x966   : > { %3046 = vmatpush.bf16.msra.mxu1 %v8912_v57  ;;  %3072 = vmatpush.bf16.msra.mxu3 %v8913_v3  ;;  %v9028_v57 = vld [vmem:[#allocation69_spill] sm:$0xff]  ;;  %v9029_v3 = vld [vmem:[#allocation70_spill] sm:$0xff] }
 0x967   : > { %4250 = vmatpush.bf16.msrb.mxu0 %v7550_v36  ;;  %4276 = vmatpush.bf16.msrb.mxu2 %v7553_v15 }
 0x96a   : > { %3047 = vmatpush.bf16.msra.mxu1 %v8915_v2  ;;  %3073 = vmatpush.bf16.msra.mxu3 %v8916_v33  ;;  %v9030_v2 = vld [vmem:[#allocation72_spill] sm:$0xff]  ;;  %v9031_v33 = vld [vmem:[#allocation73_spill] sm:$0xff] }
 0x96b   : > { %4251 = vmatpush.bf16.msrb.mxu0 %v7556_v62  ;;  %4277 = vmatpush.bf16.msrb.mxu2 %v7559_v5 }
 0x96e   : > { %3048 = vmatpush.bf16.msra.mxu1 %v8917_v45  ;;  %3074 = vmatpush.bf16.msra.mxu3 %v8918_v9  ;;  %v9032_v45 = vld [vmem:[#allocation74_spill] sm:$0xff]  ;;  %v9033_v9 = vld [vmem:[#allocation75_spill] sm:$0xff] }
 0x96f   : > { %4296 = vmatpush.bf16.msra.mxu0 %v7561_v31  ;;  %4322 = vmatpush.bf16.msra.mxu2 %v7563_v42 }
 0x972   : > { %3049 = vmatpush.bf16.msra.mxu1 %v8948_v38  ;;  %3075 = vmatpush.bf16.msra.mxu3 %v8949_v47  ;;  %v9034_v47 = vld [vmem:[#allocation39_spill] sm:$0xff] }
 0x973   : > { %4297 = vmatpush.bf16.msra.mxu0 %v9012_v39  ;;  %4323 = vmatpush.bf16.msra.mxu2 %v9013_v6  ;;  %v2892_v56 = vadd.f32 %v9035_v61, %v9034_v47 }
 0x976   : > { %3050 = vmatpush.bf16.msra.mxu1 %v9014_v18  ;;  %3076 = vmatpush.bf16.msra.mxu3 %v9015_v55 }
 0x977   : > { %4298 = vmatpush.bf16.msra.mxu0 %v9016_v16  ;;  %4324 = vmatpush.bf16.msra.mxu2 %v9017_v27 }
 0x97a   : > { %3051 = vmatpush.bf16.msra.mxu1 %v9018_v52  ;;  %3077 = vmatpush.bf16.msra.mxu3 %v9019_v1  ;;  %v9039_v52 = vld [vmem:[#allocation44_spill] sm:$0xff] }
 0x97b   : > { %4299 = vmatpush.bf16.msra.mxu0 %v9020_v51  ;;  %4325 = vmatpush.bf16.msra.mxu2 %v9021_v10  ;;  %v9040_v1 = vld [vmem:[#allocation48_spill] sm:$0xff] }
 0x97e   : > { %3052 = vmatpush.bf16.msra.mxu1 %v9022_v48  ;;  %3078 = vmatpush.bf16.msra.mxu3 %v9023_v32  ;;  %v2944_v48 = vadd.f32 %v9040_v1, %v9039_v52  ;;  %v5482_v1 = vld [vmem:[#allocation11 + $0x1e0] sm:$0xf] }
 0x97f   : > { %4300 = vmatpush.bf16.msra.mxu0 %v9024_v26  ;;  %4326 = vmatpush.bf16.msra.mxu2 %v9025_v46 }
 0x982   : > { %3053 = vmatpush.bf16.msra.mxu1 %v9026_v50  ;;  %3079 = vmatpush.bf16.msra.mxu3 %v9027_v22 }
 0x983   : > { %4301 = vmatpush.bf16.msra.mxu0 %v9028_v57  ;;  %4327 = vmatpush.bf16.msra.mxu2 %v9029_v3 }
 0x987   : > { %4302 = vmatpush.bf16.msra.mxu0 %v9030_v2  ;;  %4328 = vmatpush.bf16.msra.mxu2 %v9031_v33 }
 0x98b   : > { %4303 = vmatpush.bf16.msra.mxu0 %v9032_v45  ;;  %4329 = vmatpush.bf16.msra.mxu2 %v9033_v9 }
 0x9c2   : > { %v2878_v38 = vpop.f32.mrf.mxu1 }
 0x9c3   : > { %v2879_v43 = vadd.f32 %v2878_v38, %v2866_v19 }
 0x9c5   : > { %v2960_v20 = vmul.f32 0.5, %v2879_v43 }
 0x9c8   : > { %v2904_v13 = vpop.f32.mrf.mxu3 }
 0x9c9   : > { %v2905_v23 = vadd.f32 %v2904_v13, %v2892_v56 }
 0x9ca   : > { %v2880_v41 = vpop.f32.mrf.mxu1  ;;  %v8045_v29 = vpop.f32.mrf.mxu0 }
 0x9cb   : > { %v2961_v14 = vmul.f32 0.5, %v2905_v23 }
 0x9cd   : > { %5960 = vtanh.f32 %v2961_v14 }
 0x9ce   : > { %5962 = vtanh.f32 %v2960_v20 }
 0x9d0   : > { %v2906_v24 = vpop.f32.mrf.mxu3  ;;  %v8047_v0 = vpop.f32.mrf.mxu2 }
 0x9d2   : > { %v2930_v11 = vpop.f32.mrf.mxu1  ;;  %v4131_v37 = vpop.f32.mrf.mxu0 }
 0x9d3   : > { %v2931_v18 = vadd.f32 %v2930_v11, %v2918_v49  ;;  %v5961_v55 = vpop.eup %5960 }
 0x9d4   : > { %v5963_v22 = vpop.eup %5962  ;;  %v2967_v61 = vmul.f32 0.5, %v5961_v55 }
 0x9d5   : > { %v2962_v56 = vmul.f32 0.5, %v2931_v18  ;;  %v2966_v19 = vmul.f32 0.5, %v5963_v22  ;;  %v5484_v22 = vld [vmem:[#allocation11 + $0x1f0] sm:$0xf0] }
 0x9d6   : > { %v2970_v23 = vadd.f32 0.5, %v2967_v61 }
 0x9d7   : > { %v2969_v41 = vadd.f32 0.5, %v2966_v19 }
 0x9d8   : > { %v2956_v32 = vpop.f32.mrf.mxu3  ;;  %v4157_v50 = vpop.f32.mrf.mxu2  ;;  %v2973_v24 = vmul.f32 %v2970_v23, %v7974_v7  ;;  %v5466_v7 = vld [vmem:[#allocation11 + $0x1c0] sm:$0xf]  ;;  %v5722_v23 = vld [vmem:[#allocation11 + $0x1cc] sm:$0xf0] }
 0x9d9   : > { %v2957_v38 = vadd.f32 %v2956_v32, %v2944_v48  ;;  %v5726_v48 = vld [vmem:[#allocation11 + $0x1ec] sm:$0xf0]  ;;  %v5724_v50 = vld [vmem:[#allocation11 + $0x1e4] sm:$0xf] }
 0x9da   : > { %v2932_v13 = vpop.f32.mrf.mxu1  ;;  %v8053_v34 = vpop.f32.mrf.mxu0 }
 0x9db   : > { %5964 = vtanh.f32 %v2957_v38  ;;  %v8063_v13 = vor.u32 %v5724_v50, %v5484_v22  ;;  %v5712_v50 = vld [vmem:[#allocation11 + $0x184] sm:$0xf]  ;;  %v5436_v22 = vld [vmem:[#allocation11 + $0x190] sm:$0xf0] }
 0x9dc   : > { %5966 = vtanh.f32 %v2962_v56  ;;  %v8061_v56 = vor.u32 %v5726_v48, %v5482_v1  ;;  %v5434_v48 = vld [vmem:[#allocation11 + $0x180] sm:$0xf] }
 0x9e0   : > { %v2958_v43 = vpop.f32.mrf.mxu3  ;;  %v8055_v14 = vpop.f32.mrf.mxu2 }
 0x9e1   : > { %9041 = vst [vmem:[#allocation31_spill] sm:$0xff] %v8055_v14  ;;  %v5965_v20 = vpop.eup %5964  ;;  %v5468_v43 = vld [vmem:[#allocation11 + $0x1d0] sm:$0xf0]  ;;  %v5721_v14 = vld [vmem:[#allocation11 + $0x1cc] sm:$0xf] }
 0x9e2   : > { %v2974_v11 = vmul.f32 %v5965_v20, %v2969_v41  ;;  %v4183_v37 = vpop.f32.mrf.mxu0  ;;  %v5967_v12 = vpop.eup %5966  ;;  %v5720_v41 = vld [vmem:[#allocation11 + $0x1c4] sm:$0xf]  ;;  %v8067_v20 = vor.u32 %v5722_v23, %v5466_v7  ;;  %v8081_v7 = vor.u32 %v5712_v50, %v5436_v22  ;;  %v5418_v23 = vld [vmem:[#allocation11 + $0x160] sm:$0xf]  ;;  %v5404_v50 = vld [vmem:[#allocation11 + $0x150] sm:$0xf0] }
 0x9e3   : > { %v2968_v18 = vmul.f32 0.5, %v5967_v12  ;;  %v5718_v37 = vld [vmem:[#allocation11 + $0x1ac] sm:$0xf0]  ;;  %v5716_v12 = vld [vmem:[#allocation11 + $0x1a4] sm:$0xf] }
 0x9e4   : > { %v8058_v49 = vadd.f32 %v2974_v11, %v2973_v24  ;;  %v8069_v24 = vor.u32 %v5720_v41, %v5468_v43  ;;  %v5450_v11 = vld [vmem:[#allocation11 + $0x1a0] sm:$0xf]  ;;  %v5710_v41 = vld [vmem:[#allocation11 + $0x16c] sm:$0xf0]  ;;  %v5708_v43 = vld [vmem:[#allocation11 + $0x164] sm:$0xf] }
 0x9e5   : > { %v2971_v32 = vadd.f32 0.5, %v2968_v18  ;;  %v5452_v18 = vld [vmem:[#allocation11 + $0x1b0] sm:$0xf0]  ;;  %v5386_v22 = vld [vmem:[#allocation11 + $0x120] sm:$0xf] }
 0x9e6   : > { %5968 = vtanh.f32 %v8058_v49  ;;  %v8075_v1 = vor.u32 %v5716_v12, %v5452_v18  ;;  %v5402_v18 = vld [vmem:[#allocation11 + $0x140] sm:$0xf] }
 0x9e8   : > { %v4209_v55 = vpop.f32.mrf.mxu2 }
 0x9e9   : > { %v8073_v55 = vor.u32 %v5718_v37, %v5450_v11  ;;  %v5420_v11 = vld [vmem:[#allocation11 + $0x170] sm:$0xf0]  ;;  %v8087_v37 = vor.u32 %v5710_v41, %v5418_v23  ;;  %v5702_v23 = vld [vmem:[#allocation11 + $0x12c] sm:$0xf0]  ;;  %v5700_v41 = vld [vmem:[#allocation11 + $0x124] sm:$0xf] }
 0x9ea   : > { %v8089_v12 = vor.u32 %v5708_v43, %v5420_v11  ;;  %v5388_v43 = vld [vmem:[#allocation11 + $0x130] sm:$0xf0]  ;;  %v5698_v11 = vld [vmem:[#allocation11 + $0x10c] sm:$0xf0] }
 0x9ec   : > { %v5969_v38 = vpop.eup %5968 }
 0x9ed   : > { %v2977_v61 = vmul.f32 %v5969_v38, %v2971_v32  ;;  %v5714_v32 = vld [vmem:[#allocation11 + $0x18c] sm:$0xf0] }
 0x9ef   : > { %v2978_v19 = vpack.c.bf16 %v2977_v61, %v2977_v61  ;;  %v8079_v61 = vor.u32 %v5714_v32, %v5434_v48  ;;  %v5706_v48 = vld [vmem:[#allocation11 + $0x14c] sm:$0xf0]  ;;  %v5704_v32 = vld [vmem:[#allocation11 + $0x144] sm:$0xf] }
 0x9f1   : > { %2979 = vst [vmem:[#allocation2 + $0x18] sm:$0xf] %v2978_v19  ;;  %3002 = vmatmul.bf16.vlgmr.msrb.gmra.mxu1 %v2978_v19  ;;  %3028 = vmatmul.bf16.vlgmr.msrb.gmra.mxu3 %v2978_v19 }
 0x9f2   : > { %3513 = vmatpush.bf16.msrb.mxu1 %v8061_v56  ;;  %3539 = vmatpush.bf16.msrb.mxu3 %v8063_v13 }
 0x9f6   : > { %3514 = vmatpush.bf16.msrb.mxu1 %v8067_v20  ;;  %3540 = vmatpush.bf16.msrb.mxu3 %v8069_v24 }
 0x9f8   : > { %v4242_v38 = vld [vmem:[#allocation2 + $0x18] sm:$0xf] }
 0x9f9   : > { %4252 = vmatmul.bf16.vlgmr.msrb.gmra.mxu0 %v4242_v38  ;;  %4278 = vmatmul.bf16.vlgmr.msrb.gmra.mxu2 %v4242_v38 }
 0x9fa   : > { %3515 = vmatpush.bf16.msrb.mxu1 %v8073_v55  ;;  %3541 = vmatpush.bf16.msrb.mxu3 %v8075_v1 }
 0x9fb   : > { %4368 = vmatpush.bf16.msrb.mxu0 %v7509_v58  ;;  %4394 = vmatpush.bf16.msrb.mxu2 %v7511_v35  ;;  %v8095_v58 = vor.u32 %v5706_v48, %v5402_v18  ;;  %v8097_v35 = vor.u32 %v5704_v32, %v5404_v50  ;;  %v5696_v18 = vld [vmem:[#allocation11 + $0x104] sm:$0xf]  ;;  %v5372_v48 = vld [vmem:[#allocation11 + $0x110] sm:$0xf0]  ;;  %v5490_v32 = vld [vmem:[#allocation11 + $0x1e8] sm:$0xf] }
 0x9fc   : > { %v5725_v50 = vld [vmem:[#allocation11 + $0x1ec] sm:$0xf] }
 0x9fe   : > { %3516 = vmatpush.bf16.msrb.mxu1 %v8079_v61  ;;  %3542 = vmatpush.bf16.msrb.mxu3 %v8081_v7 }
 0x9ff   : > { %4369 = vmatpush.bf16.msrb.mxu0 %v7516_v25  ;;  %4395 = vmatpush.bf16.msrb.mxu2 %v7519_v21  ;;  %v8103_v25 = vor.u32 %v5702_v23, %v5386_v22  ;;  %v8105_v21 = vor.u32 %v5700_v41, %v5388_v43  ;;  %v8113_v23 = vor.u32 %v5696_v18, %v5372_v48  ;;  %v5458_v18 = vld [vmem:[#allocation11 + $0x1a8] sm:$0xf]  ;;  %v5719_v48 = vld [vmem:[#allocation11 + $0x1b4] sm:$0xf0] }
 0xa01   : > { %3054 = vmatmul.bf16.vlgmr.msra.gmra.mxu1 %v2978_v19  ;;  %3080 = vmatmul.bf16.vlgmr.msra.gmra.mxu3 %v2978_v19  ;;  %v5370_v19 = vld [vmem:[#allocation11 + $0x100] sm:$0xf] }
 0xa02   : > { %3517 = vmatpush.bf16.msrb.mxu1 %v8087_v37  ;;  %3543 = vmatpush.bf16.msrb.mxu3 %v8089_v12  ;;  %v8111_v22 = vor.u32 %v5698_v11, %v5370_v19 }
 0xa03   : > { %4370 = vmatpush.bf16.msrb.mxu0 %v7522_v54  ;;  %4396 = vmatpush.bf16.msrb.mxu2 %v7525_v28  ;;  %v5727_v54 = vld [vmem:[#allocation11 + $0x1f4] sm:$0xf0]  ;;  %v5492_v28 = vld [vmem:[#allocation11 + $0x1f8] sm:$0xf0] }
 0xa04   : > { %v8115_v41 = vor.u32 %v5727_v54, %v5490_v32  ;;  %v8117_v43 = vor.u32 %v5725_v50, %v5492_v28  ;;  %v5460_v32 = vld [vmem:[#allocation11 + $0x1b8] sm:$0xf0]  ;;  %v8135_v54 = vor.u32 %v5719_v48, %v5458_v18  ;;  %v5442_v50 = vld [vmem:[#allocation11 + $0x188] sm:$0xf]  ;;  %v5715_v28 = vld [vmem:[#allocation11 + $0x194] sm:$0xf0] }
 0xa05   : > { %v5711_v18 = vld [vmem:[#allocation11 + $0x174] sm:$0xf0]  ;;  %v5709_v48 = vld [vmem:[#allocation11 + $0x16c] sm:$0xf] }
 0xa06   : > { %3518 = vmatpush.bf16.msrb.mxu1 %v8095_v58  ;;  %3544 = vmatpush.bf16.msrb.mxu3 %v8097_v35 }
 0xa07   : > { %4371 = vmatpush.bf16.msrb.mxu0 %v7528_v44  ;;  %4397 = vmatpush.bf16.msrb.mxu2 %v7531_v8  ;;  %v5474_v44 = vld [vmem:[#allocation11 + $0x1c8] sm:$0xf]  ;;  %v5723_v8 = vld [vmem:[#allocation11 + $0x1d4] sm:$0xf0] }
 0xa08   : > { %v8125_v19 = vor.u32 %v5723_v8, %v5474_v44  ;;  %v5713_v44 = vld [vmem:[#allocation11 + $0x18c] sm:$0xf]  ;;  %v5444_v8 = vld [vmem:[#allocation11 + $0x198] sm:$0xf0] }
 0xa09   : > { %4304 = vmatmul.bf16.vlgmr.msra.gmra.mxu0 %v4242_v38  ;;  %4330 = vmatmul.bf16.vlgmr.msra.gmra.mxu2 %v4242_v38  ;;  %v5476_v38 = vld [vmem:[#allocation11 + $0x1d8] sm:$0xf0] }
 0xa0a   : > { %3519 = vmatpush.bf16.msrb.mxu1 %v8103_v25  ;;  %3545 = vmatpush.bf16.msrb.mxu3 %v8105_v21  ;;  %v8127_v11 = vor.u32 %v5721_v14, %v5476_v38  ;;  %v5426_v38 = vld [vmem:[#allocation11 + $0x168] sm:$0xf] }
 0xa0b   : > { %4372 = vmatpush.bf16.msrb.mxu0 %v7536_v60  ;;  %4398 = vmatpush.bf16.msrb.mxu2 %v7539_v30  ;;  %v5717_v60 = vld [vmem:[#allocation11 + $0x1ac] sm:$0xf]  ;;  %v9042_v30 = vmov 0  }
 0xa0c   : > { %v8137_v14 = vor.u32 %v5717_v60, %v5460_v32  ;;  %v5428_v60 = vld [vmem:[#allocation11 + $0x178] sm:$0xf0]  ;;  %v5410_v32 = vld [vmem:[#allocation11 + $0x148] sm:$0xf] }
 0xa0e   : > { %3520 = vmatpush.bf16.msrb.mxu1 %v8111_v22  ;;  %3546 = vmatpush.bf16.msrb.mxu3 %v8113_v23 }
 0xa0f   : > { %4373 = vmatpush.bf16.msrb.mxu0 %v7542_v40  ;;  %4399 = vmatpush.bf16.msrb.mxu2 %v7545_v17  ;;  %v8143_v40 = vor.u32 %v5715_v28, %v5442_v50  ;;  %v8145_v17 = vor.u32 %v5713_v44, %v5444_v8  ;;  %v5707_v50 = vld [vmem:[#allocation11 + $0x154] sm:$0xf0]  ;;  %v5705_v28 = vld [vmem:[#allocation11 + $0x14c] sm:$0xf]  ;;  %v5412_v44 = vld [vmem:[#allocation11 + $0x158] sm:$0xf0] }
 0xa10   : > { %v5701_v8 = vld [vmem:[#allocation11 + $0x12c] sm:$0xf] }
 0xa11   : > { %3521 = vmatmul.bf16.vlgmr.msrb.gmra.mxu1 %v9042_v30  ;;  %3547 = vmatmul.bf16.vlgmr.msrb.gmra.mxu3 %v9042_v30 }
 0xa12   : > { %3565 = vmatpush.bf16.msra.mxu1 %v8115_v41  ;;  %3591 = vmatpush.bf16.msra.mxu3 %v8117_v43 }
 0xa13   : > { %4374 = vmatpush.bf16.msrb.mxu0 %v7550_v36  ;;  %4400 = vmatpush.bf16.msrb.mxu2 %v7553_v15  ;;  %v8153_v15 = vor.u32 %v5711_v18, %v5426_v38  ;;  %v8155_v36 = vor.u32 %v5709_v48, %v5428_v60  ;;  %v5396_v38 = vld [vmem:[#allocation11 + $0x138] sm:$0xf0]  ;;  %v5378_v18 = vld [vmem:[#allocation11 + $0x108] sm:$0xf]  ;;  %v5699_v48 = vld [vmem:[#allocation11 + $0x114] sm:$0xf0] }
 0xa14   : > { %v5697_v60 = vld [vmem:[#allocation11 + $0x10c] sm:$0xf] }
 0xa16   : > { %3566 = vmatpush.bf16.msra.mxu1 %v8125_v19  ;;  %3592 = vmatpush.bf16.msra.mxu3 %v8127_v11 }
 0xa17   : > { %4375 = vmatpush.bf16.msrb.mxu0 %v7556_v62  ;;  %4401 = vmatpush.bf16.msrb.mxu2 %v7559_v5  ;;  %v8161_v62 = vor.u32 %v5707_v50, %v5410_v32  ;;  %v8163_v5 = vor.u32 %v5705_v28, %v5412_v44  ;;  %v5380_v32 = vld [vmem:[#allocation11 + $0x118] sm:$0xf0] }
 0xa1a   : > { %3567 = vmatpush.bf16.msra.mxu1 %v8135_v54  ;;  %3593 = vmatpush.bf16.msra.mxu3 %v8137_v14 }
 0xa1b   : > { %4420 = vmatpush.bf16.msra.mxu0 %v7561_v31  ;;  %4446 = vmatpush.bf16.msra.mxu2 %v7563_v42  ;;  %v5394_v31 = vld [vmem:[#allocation11 + $0x128] sm:$0xf]  ;;  %v5703_v42 = vld [vmem:[#allocation11 + $0x134] sm:$0xf0] }
 0xa1e   : > { %3568 = vmatpush.bf16.msra.mxu1 %v8143_v40  ;;  %3594 = vmatpush.bf16.msra.mxu3 %v8145_v17 }
 0xa1f   : > { %4421 = vmatpush.bf16.msra.mxu0 %v9012_v39  ;;  %4447 = vmatpush.bf16.msra.mxu2 %v9013_v6  ;;  %v8169_v39 = vor.u32 %v5703_v42, %v5394_v31  ;;  %v8171_v6 = vor.u32 %v5701_v8, %v5396_v38 }
 0xa22   : > { %3569 = vmatpush.bf16.msra.mxu1 %v8153_v15  ;;  %3595 = vmatpush.bf16.msra.mxu3 %v8155_v36 }
 0xa23   : > { %4422 = vmatpush.bf16.msra.mxu0 %v9016_v16  ;;  %4448 = vmatpush.bf16.msra.mxu2 %v9017_v27  ;;  %v8177_v16 = vor.u32 %v5699_v48, %v5378_v18  ;;  %v8179_v27 = vor.u32 %v5697_v60, %v5380_v32 }
 0xa26   : > { %3570 = vmatpush.bf16.msra.mxu1 %v8161_v62  ;;  %3596 = vmatpush.bf16.msra.mxu3 %v8163_v5 }
 0xa27   : > { %4423 = vmatpush.bf16.msra.mxu0 %v9020_v51  ;;  %4449 = vmatpush.bf16.msra.mxu2 %v9021_v10  ;;  %v9043_v10 = vld [vmem:[#allocation23_spill] sm:$0xff] }
 0xa2a   : > { %3571 = vmatpush.bf16.msra.mxu1 %v8169_v39  ;;  %3597 = vmatpush.bf16.msra.mxu3 %v8171_v6 }
 0xa2b   : > { %4424 = vmatpush.bf16.msra.mxu0 %v9024_v26  ;;  %4450 = vmatpush.bf16.msra.mxu2 %v9025_v46  ;;  %v3017_v26 = vadd.f32 %v9043_v10, %v9034_v47  ;;  %v9045_v47 = vld [vmem:[#allocation76_spill] sm:$0xff] }
 0xa2c   : > { %v3043_v8 = vadd.f32 %v9045_v47, %v9037_v59 }
 0xa2e   : > { %3572 = vmatpush.bf16.msra.mxu1 %v8177_v16  ;;  %3598 = vmatpush.bf16.msra.mxu3 %v8179_v27 }
 0xa2f   : > { %4425 = vmatpush.bf16.msra.mxu0 %v9028_v57  ;;  %4451 = vmatpush.bf16.msra.mxu2 %v9029_v3  ;;  %v9044_v57 = vld [vmem:[#allocation52_spill] sm:$0xff] }
 0xa30   : > { %v2991_v3 = vadd.f32 %v9044_v57, %v8971_v53  ;;  %v9046_v53 = vld [vmem:[#allocation29_spill] sm:$0xff] }
 0xa31   : > { %3573 = vmatmul.bf16.vlgmr.msra.gmra.mxu1 %v9042_v30  ;;  %3599 = vmatmul.bf16.vlgmr.msra.gmra.mxu3 %v9042_v30  ;;  %v3069_v48 = vadd.f32 %v9046_v53, %v9039_v52 }
 0xa32   : > { %3637 = vmatpush.bf16.msrb.mxu1 %v8061_v56  ;;  %3663 = vmatpush.bf16.msrb.mxu3 %v8063_v13 }
 0xa33   : > { %4426 = vmatpush.bf16.msra.mxu0 %v9030_v2  ;;  %4452 = vmatpush.bf16.msra.mxu2 %v9031_v33 }
 0xa36   : > { %3638 = vmatpush.bf16.msrb.mxu1 %v8067_v20  ;;  %3664 = vmatpush.bf16.msrb.mxu3 %v8069_v24 }
 0xa37   : > { %4427 = vmatpush.bf16.msra.mxu0 %v9032_v45  ;;  %4453 = vmatpush.bf16.msra.mxu2 %v9033_v9 }
 0xa3a   : > { %3639 = vmatpush.bf16.msrb.mxu1 %v8073_v55  ;;  %3665 = vmatpush.bf16.msrb.mxu3 %v8075_v1 }
 0xa3e   : > { %3640 = vmatpush.bf16.msrb.mxu1 %v8079_v61  ;;  %3666 = vmatpush.bf16.msrb.mxu3 %v8081_v7 }
 0xa42   : > { %3641 = vmatpush.bf16.msrb.mxu1 %v8087_v37  ;;  %3667 = vmatpush.bf16.msrb.mxu3 %v8089_v12 }
 0xa46   : > { %3642 = vmatpush.bf16.msrb.mxu1 %v8095_v58  ;;  %3668 = vmatpush.bf16.msrb.mxu3 %v8097_v35 }
 0xa4a   : > { %3643 = vmatpush.bf16.msrb.mxu1 %v8103_v25  ;;  %3669 = vmatpush.bf16.msrb.mxu3 %v8105_v21 }
 0xa4e   : > { %3644 = vmatpush.bf16.msrb.mxu1 %v8111_v22  ;;  %3670 = vmatpush.bf16.msrb.mxu3 %v8113_v23 }
 0xa52   : > { %3689 = vmatpush.bf16.msra.mxu1 %v8115_v41  ;;  %3715 = vmatpush.bf16.msra.mxu3 %v8117_v43 }
 0xa56   : > { %3690 = vmatpush.bf16.msra.mxu1 %v8125_v19  ;;  %3716 = vmatpush.bf16.msra.mxu3 %v8127_v11 }
 0xa5a   : > { %3691 = vmatpush.bf16.msra.mxu1 %v8135_v54  ;;  %3717 = vmatpush.bf16.msra.mxu3 %v8137_v14 }
 0xa5e   : > { %3692 = vmatpush.bf16.msra.mxu1 %v8143_v40  ;;  %3718 = vmatpush.bf16.msra.mxu3 %v8145_v17 }
 0xa62   : > { %3693 = vmatpush.bf16.msra.mxu1 %v8153_v15  ;;  %3719 = vmatpush.bf16.msra.mxu3 %v8155_v36 }
 0xa66   : > { %3694 = vmatpush.bf16.msra.mxu1 %v8161_v62  ;;  %3720 = vmatpush.bf16.msra.mxu3 %v8163_v5 }
 0xa6a   : > { %3695 = vmatpush.bf16.msra.mxu1 %v8169_v39  ;;  %3721 = vmatpush.bf16.msra.mxu3 %v8171_v6 }
 0xa6e   : > { %3696 = vmatpush.bf16.msra.mxu1 %v8177_v16  ;;  %3722 = vmatpush.bf16.msra.mxu3 %v8179_v27  ;;  %v3003_v51 = vpop.f32.mrf.mxu1 }
 0xa6f   : > { %v3004_v9 = vadd.f32 %v3003_v51, %v2991_v3 }
 0xa71   : > { %v3085_v50 = vmul.f32 0.5, %v3004_v9 }
 0xa74   : > { %v3029_v46 = vpop.f32.mrf.mxu3 }
 0xa75   : > { %v3030_v2 = vadd.f32 %v3029_v46, %v3017_v26 }
 0xa76   : > { %v3005_v33 = vpop.f32.mrf.mxu1  ;;  %v8229_v45 = vpop.f32.mrf.mxu0 }
 0xa77   : > { %v3086_v30 = vmul.f32 0.5, %v3030_v2 }
 0xa79   : > { %5970 = vtanh.f32 %v3086_v30 }
 0xa7a   : > { %5972 = vtanh.f32 %v3085_v50 }
 0xa7c   : > { %v3031_v28 = vpop.f32.mrf.mxu3  ;;  %v8231_v44 = vpop.f32.mrf.mxu2 }
 0xa7e   : > { %v3055_v31 = vpop.f32.mrf.mxu1  ;;  %v4255_v42 = vpop.f32.mrf.mxu0 }
 0xa7f   : > { %v3056_v38 = vadd.f32 %v3055_v31, %v3043_v8  ;;  %v5971_v18 = vpop.eup %5970 }
 0xa80   : > { %v5973_v51 = vpop.eup %5972  ;;  %v3092_v26 = vmul.f32 0.5, %v5971_v18 }
 0xa81   : > { %v3087_v46 = vmul.f32 0.5, %v3056_v38  ;;  %v3091_v2 = vmul.f32 0.5, %v5973_v51 }
 0xa82   : > { %v3095_v33 = vadd.f32 0.5, %v3092_v26 }
 0xa83   : > { %v3094_v9 = vadd.f32 0.5, %v3091_v2  ;;  %v9049_v2 = vld [vmem:[#allocation32_spill] sm:$0xff] }
 0xa84   : > { %v3081_v60 = vpop.f32.mrf.mxu3  ;;  %v4281_v32 = vpop.f32.mrf.mxu2  ;;  %v3098_v52 = vmul.f32 %v3095_v33, %v8058_v49 }
 0xa85   : > { %v3082_v10 = vadd.f32 %v3081_v60, %v3069_v48 }
 0xa86   : > { %v3057_v57 = vpop.f32.mrf.mxu1  ;;  %v8237_v3 = vpop.f32.mrf.mxu0 }
 0xa87   : > { %9047 = vst [vmem:[#allocation28_spill] sm:$0xff] %v8237_v3  ;;  %5974 = vtanh.f32 %v3082_v10  ;;  %v3169_v10 = vld [vmem:[%s8609_s7] sm:$0xf] }
 0xa88   : > { %5976 = vtanh.f32 %v3087_v46  ;;  %v8245_v46 = vperm.slane %v3169_v10, 1  ;;  %v8247_v57 = vperm.slane %v3169_v10, 0 }
 0xa8a   : > { %v3536_v33 = vadd.f32 %v9049_v2, %v8245_v46 }
 0xa8c   : > { %v3083_v59 = vpop.f32.mrf.mxu3  ;;  %v8239_v30 = vpop.f32.mrf.mxu2 }
 0xa8d   : > { %9048 = vst [vmem:[#allocation27_spill] sm:$0xff] %v8239_v30  ;;  %v5975_v50 = vpop.eup %5974 }
 0xa8e   : > { %v3099_v28 = vmul.f32 %v5975_v50, %v3094_v9  ;;  %v3522_v31 = vpop.f32.mrf.mxu1  ;;  %v4307_v42 = vpop.f32.mrf.mxu0  ;;  %v9050_v9 = vld [vmem:[#allocation33_spill] sm:$0xff] }
 0xa8f   : > { %v5977_v47 = vpop.eup %5976  ;;  %v3510_v59 = vadd.f32 %v9050_v9, %v8247_v57 }
 0xa90   : > { %v3100_v8 = vadd.f32 %v3099_v28, %v3098_v52  ;;  %v3093_v38 = vmul.f32 0.5, %v5977_v47 }
 0xa91   : > { %v3523_v52 = vadd.f32 %v3522_v31, %v3510_v59 }
 0xa92   : > { %5978 = vtanh.f32 %v3100_v8  ;;  %v3096_v60 = vadd.f32 0.5, %v3093_v38  ;;  %v8253_v8 = vperm.slane %v3169_v10, 2 }
 0xa93   : > { %v3604_v47 = vmul.f32 0.5, %v3523_v52 }
 0xa94   : > { %v3548_v18 = vpop.f32.mrf.mxu3  ;;  %v4333_v53 = vpop.f32.mrf.mxu2 }
 0xa95   : > { %v3549_v50 = vadd.f32 %v3548_v18, %v3536_v33  ;;  %v8255_v53 = vperm.slane %v3169_v10, 3  ;;  %v9052_v18 = vld [vmem:[#allocation34_spill] sm:$0xff] }
 0xa96   : > { %v3524_v48 = vpop.f32.mrf.mxu1 }
 0xa97   : > { %v3605_v42 = vmul.f32 0.5, %v3549_v50  ;;  %v9051_v48 = vld [vmem:[#allocation36_spill] sm:$0xff]  ;;  %v3588_v31 = vadd.f32 %v9052_v18, %v8255_v53 }
 0xa98   : > { %v5979_v32 = vpop.eup %5978 }
 0xa99   : > { %v3102_v51 = vmul.f32 %v5979_v32, %v3096_v60  ;;  %5980 = vtanh.f32 %v3605_v42  ;;  %v3562_v60 = vadd.f32 %v9051_v48, %v8253_v8 }
 0xa9a   : > { %5982 = vtanh.f32 %v3604_v47 }
 0xa9b   : > { %v3103_v26 = vpack.c.bf16 %v3102_v51, %v3102_v51 }
 0xa9c   : > { %v3550_v49 = vpop.f32.mrf.mxu3 }
 0xa9d   : > { %3104 = vst [vmem:[#allocation2 + $0x1c] sm:$0xf] %v3103_v26 }
 0xa9f   : > { %v5981_v51 = vpop.eup %5980 }
 0xaa0   : > { %v5983_v49 = vpop.eup %5982  ;;  %v3611_v33 = vmul.f32 0.5, %v5981_v51 }
 0xaa1   : > { %v3610_v50 = vmul.f32 0.5, %v5983_v49 }
 0xaa2   : > { %v3614_v10 = vadd.f32 0.5, %v3611_v33 }
 0xaa3   : > { %v3613_v52 = vadd.f32 0.5, %v3610_v50 }
 0xaa4   : > { %v4366_v28 = vld [vmem:[#allocation2 + $0x1c] sm:$0xf] }
 0xaa5   : > { %4376 = vmatmul.bf16.vlgmr.msrb.gmra.mxu0 %v4366_v28  ;;  %4402 = vmatmul.bf16.vlgmr.msrb.gmra.mxu2 %v4366_v28 }
 0xaae   : > { %v3574_v38 = vpop.f32.mrf.mxu1 }
 0xaaf   : > { %v3575_v32 = vadd.f32 %v3574_v38, %v3562_v60  ;;  %v3617_v38 = vmul.f32 0.0, %v3614_v10 }
 0xab1   : > { %v3606_v9 = vmul.f32 0.5, %v3575_v32 }
 0xab4   : > { %v3600_v26 = vpop.f32.mrf.mxu3 }
 0xab5   : > { %v3601_v2 = vadd.f32 %v3600_v26, %v3588_v31  ;;  %4428 = vmatmul.bf16.vlgmr.msra.gmra.mxu0 %v4366_v28  ;;  %4454 = vmatmul.bf16.vlgmr.msra.gmra.mxu2 %v4366_v28 }
 0xab6   : > { %v3576_v59 = vpop.f32.mrf.mxu1 }
 0xab7   : > { %5984 = vtanh.f32 %v3601_v2 }
 0xab8   : > { %5986 = vtanh.f32 %v3606_v9 }
 0xabc   : > { %v3602_v42 = vpop.f32.mrf.mxu3 }
 0xabd   : > { %v5985_v47 = vpop.eup %5984  ;;  %v9057_v42 = vld [vmem:[#allocation37_spill] sm:$0xff] }
 0xabe   : > { %v3618_v48 = vmul.f32 %v5985_v47, %v3613_v52  ;;  %v5987_v60 = vpop.eup %5986  ;;  %v3660_v47 = vadd.f32 %v9057_v42, %v8245_v46  ;;  %v9060_v42 = vld [vmem:[#allocation43_spill] sm:$0xff] }
 0xabf   : > { %v3612_v18 = vmul.f32 0.5, %v5987_v60 }
 0xac0   : > { %v8261_v30 = vadd.f32 %v3618_v48, %v3617_v38  ;;  %v9058_v48 = vld [vmem:[#allocation38_spill] sm:$0xff] }
 0xac1   : > { %v3615_v51 = vadd.f32 0.5, %v3612_v18  ;;  %v3634_v60 = vadd.f32 %v9058_v48, %v8247_v57 }
 0xac2   : > { %5988 = vtanh.f32 %v8261_v30 }
 0xac8   : > { %v5989_v32 = vpop.eup %5988 }
 0xac9   : > { %v3621_v31 = vmul.f32 %v5989_v32, %v3615_v51 }
 0xacb   : > { %v3623_v26 = vpack.c.bf16 %v3621_v31, %v3621_v31 }
 0xacd   : > { %3645 = vmatmul.bf16.vlgmr.msrb.gmra.mxu1 %v3623_v26  ;;  %3671 = vmatmul.bf16.vlgmr.msrb.gmra.mxu3 %v3623_v26 }
 0xace   : > { %3761 = vmatpush.bf16.msrb.mxu1 %v8061_v56  ;;  %3787 = vmatpush.bf16.msrb.mxu3 %v8063_v13 }
 0xad2   : > { %3762 = vmatpush.bf16.msrb.mxu1 %v8067_v20  ;;  %3788 = vmatpush.bf16.msrb.mxu3 %v8069_v24 }
 0xad6   : > { %3763 = vmatpush.bf16.msrb.mxu1 %v8073_v55  ;;  %3789 = vmatpush.bf16.msrb.mxu3 %v8075_v1 }
 0xada   : > { %3764 = vmatpush.bf16.msrb.mxu1 %v8079_v61  ;;  %3790 = vmatpush.bf16.msrb.mxu3 %v8081_v7 }
 0xadd   : > { %3697 = vmatmul.bf16.vlgmr.msra.gmra.mxu1 %v3623_v26  ;;  %3723 = vmatmul.bf16.vlgmr.msra.gmra.mxu3 %v3623_v26 }
 0xade   : > { %3765 = vmatpush.bf16.msrb.mxu1 %v8087_v37  ;;  %3791 = vmatpush.bf16.msrb.mxu3 %v8089_v12 }
 0xae2   : > { %3766 = vmatpush.bf16.msrb.mxu1 %v8095_v58  ;;  %3792 = vmatpush.bf16.msrb.mxu3 %v8097_v35 }
 0xae6   : > { %3767 = vmatpush.bf16.msrb.mxu1 %v8103_v25  ;;  %3793 = vmatpush.bf16.msrb.mxu3 %v8105_v21 }
 0xaea   : > { %3768 = vmatpush.bf16.msrb.mxu1 %v8111_v22  ;;  %3794 = vmatpush.bf16.msrb.mxu3 %v8113_v23 }
 0xaee   : > { %3813 = vmatpush.bf16.msra.mxu1 %v8115_v41  ;;  %3839 = vmatpush.bf16.msra.mxu3 %v8117_v43 }
 0xaf2   : > { %3814 = vmatpush.bf16.msra.mxu1 %v8125_v19  ;;  %3840 = vmatpush.bf16.msra.mxu3 %v8127_v11 }
 0xaf6   : > { %3815 = vmatpush.bf16.msra.mxu1 %v8135_v54  ;;  %3841 = vmatpush.bf16.msra.mxu3 %v8137_v14 }
 0xafa   : > { %3816 = vmatpush.bf16.msra.mxu1 %v8143_v40  ;;  %3842 = vmatpush.bf16.msra.mxu3 %v8145_v17 }
 0xafe   : > { %3817 = vmatpush.bf16.msra.mxu1 %v8153_v15  ;;  %3843 = vmatpush.bf16.msra.mxu3 %v8155_v36 }
 0xb02   : > { %3818 = vmatpush.bf16.msra.mxu1 %v8161_v62  ;;  %3844 = vmatpush.bf16.msra.mxu3 %v8163_v5 }
 0xb06   : > { %3819 = vmatpush.bf16.msra.mxu1 %v8169_v39  ;;  %3845 = vmatpush.bf16.msra.mxu3 %v8171_v6 }
 0xb0a   : > { %3820 = vmatpush.bf16.msra.mxu1 %v8177_v16  ;;  %3846 = vmatpush.bf16.msra.mxu3 %v8179_v27 }
 0xb22   : > { %v8296_v28 = vpop.f32.mrf.mxu0 }
 0xb23   : > { %9053 = vst [vmem:[#allocation30_spill] sm:$0xff] %v8296_v28  ;;  %v3712_v28 = vadd.f32 %v9060_v42, %v8255_v53 }
 0xb28   : > { %v8298_v49 = vpop.f32.mrf.mxu2 }
 0xb29   : > { %9054 = vst [vmem:[#allocation59_spill] sm:$0xff] %v8298_v49 }
 0xb2a   : > { %v4379_v2 = vpop.f32.mrf.mxu0 }
 0xb30   : > { %v4405_v33 = vpop.f32.mrf.mxu2 }
 0xb32   : > { %v8300_v9 = vpop.f32.mrf.mxu0 }
 0xb33   : > { %9055 = vst [vmem:[#allocation60_spill] sm:$0xff] %v8300_v9 }
 0xb38   : > { %v8302_v59 = vpop.f32.mrf.mxu2 }
 0xb39   : > { %9056 = vst [vmem:[#allocation61_spill] sm:$0xff] %v8302_v59 }
 0xb3a   : > { %v4431_v50 = vpop.f32.mrf.mxu0 }
 0xb3b   : > { %v9059_v50 = vld [vmem:[#allocation24_spill] sm:$0xff] }
 0xb40   : > { %v4457_v10 = vpop.f32.mrf.mxu2 }
 0xb41   : > { %v3686_v10 = vadd.f32 %v9059_v50, %v8253_v8 }
 0xb4a   : > { %v3646_v52 = vpop.f32.mrf.mxu1 }
 0xb4b   : > { %v3647_v32 = vadd.f32 %v3646_v52, %v3634_v60 }
 0xb4d   : > { %v3728_v26 = vmul.f32 0.5, %v3647_v32 }
 0xb50   : > { %v3672_v38 = vpop.f32.mrf.mxu3 }
 0xb51   : > { %v3673_v18 = vadd.f32 %v3672_v38, %v3660_v47 }
 0xb52   : > { %v3648_v51 = vpop.f32.mrf.mxu1 }
 0xb53   : > { %v3729_v31 = vmul.f32 0.5, %v3673_v18 }
 0xb55   : > { %5990 = vtanh.f32 %v3729_v31 }
 0xb56   : > { %5992 = vtanh.f32 %v3728_v26 }
 0xb58   : > { %v3674_v2 = vpop.f32.mrf.mxu3 }
 0xb5a   : > { %v3698_v33 = vpop.f32.mrf.mxu1 }
 0xb5b   : > { %v3699_v59 = vadd.f32 %v3698_v33, %v3686_v10  ;;  %v5991_v9 = vpop.eup %5990 }
 0xb5c   : > { %v5993_v3 = vpop.eup %5992  ;;  %v3735_v47 = vmul.f32 0.5, %v5991_v9 }
 0xb5d   : > { %v3730_v38 = vmul.f32 0.5, %v3699_v59  ;;  %v3734_v60 = vmul.f32 0.5, %v5993_v3 }
 0xb5e   : > { %v3738_v18 = vadd.f32 0.5, %v3735_v47  ;;  %v9062_v47 = vld [vmem:[#allocation45_spill] sm:$0xff] }
 0xb5f   : > { %v3737_v51 = vadd.f32 0.5, %v3734_v60 }
 0xb60   : > { %v3724_v49 = vpop.f32.mrf.mxu3  ;;  %v3741_v26 = vmul.f32 %v3738_v18, %v8261_v30  ;;  %v9061_v30 = vld [vmem:[#allocation25_spill] sm:$0xff] }
 0xb61   : > { %v3725_v48 = vadd.f32 %v3724_v49, %v3712_v28  ;;  %v3784_v42 = vadd.f32 %v9061_v30, %v8245_v46 }
 0xb62   : > { %v3700_v52 = vpop.f32.mrf.mxu1 }
 0xb63   : > { %5994 = vtanh.f32 %v3725_v48 }
 0xb64   : > { %5996 = vtanh.f32 %v3730_v38  ;;  %v3758_v38 = vadd.f32 %v9062_v47, %v8247_v57 }
 0xb68   : > { %v3726_v32 = vpop.f32.mrf.mxu3 }
 0xb69   : > { %v5995_v31 = vpop.eup %5994 }
 0xb6a   : > { %v3742_v2 = vmul.f32 %v5995_v31, %v3737_v51  ;;  %v5997_v33 = vpop.eup %5996 }
 0xb6b   : > { %v3736_v10 = vmul.f32 0.5, %v5997_v33 }
 0xb6c   : > { %v8313_v50 = vadd.f32 %v3742_v2, %v3741_v26  ;;  %v9063_v2 = vld [vmem:[#allocation77_spill] sm:$0xff] }
 0xb6d   : > { %v3739_v28 = vadd.f32 0.5, %v3736_v10  ;;  %v3810_v33 = vadd.f32 %v9063_v2, %v8253_v8 }
 0xb6e   : > { %5998 = vtanh.f32 %v8313_v50 }
 0xb74   : > { %v5999_v49 = vpop.eup %5998 }
 0xb75   : > { %v3745_v9 = vmul.f32 %v5999_v49, %v3739_v28  ;;  %v9064_v49 = vld [vmem:[#allocation78_spill] sm:$0xff] }
 0xb77   : > { %v3747_v59 = vpack.c.bf16 %v3745_v9, %v3745_v9  ;;  %v3836_v9 = vadd.f32 %v9064_v49, %v8255_v53 }
 0xb79   : > { %3769 = vmatmul.bf16.vlgmr.msrb.gmra.mxu1 %v3747_v59  ;;  %3795 = vmatmul.bf16.vlgmr.msrb.gmra.mxu3 %v3747_v59 }
 0xb7a   : > { %3885 = vmatpush.bf16.msrb.mxu1 %v8061_v56  ;;  %3911 = vmatpush.bf16.msrb.mxu3 %v8063_v13 }
 0xb7e   : > { %3886 = vmatpush.bf16.msrb.mxu1 %v8067_v20  ;;  %3912 = vmatpush.bf16.msrb.mxu3 %v8069_v24 }
 0xb82   : > { %3887 = vmatpush.bf16.msrb.mxu1 %v8073_v55  ;;  %3913 = vmatpush.bf16.msrb.mxu3 %v8075_v1 }
 0xb86   : > { %3888 = vmatpush.bf16.msrb.mxu1 %v8079_v61  ;;  %3914 = vmatpush.bf16.msrb.mxu3 %v8081_v7 }
 0xb89   : > { %3821 = vmatmul.bf16.vlgmr.msra.gmra.mxu1 %v3747_v59  ;;  %3847 = vmatmul.bf16.vlgmr.msra.gmra.mxu3 %v3747_v59 }
 0xb8a   : > { %3889 = vmatpush.bf16.msrb.mxu1 %v8087_v37  ;;  %3915 = vmatpush.bf16.msrb.mxu3 %v8089_v12 }
 0xb8e   : > { %3890 = vmatpush.bf16.msrb.mxu1 %v8095_v58  ;;  %3916 = vmatpush.bf16.msrb.mxu3 %v8097_v35 }
 0xb92   : > { %3891 = vmatpush.bf16.msrb.mxu1 %v8103_v25  ;;  %3917 = vmatpush.bf16.msrb.mxu3 %v8105_v21 }
 0xb96   : > { %3892 = vmatpush.bf16.msrb.mxu1 %v8111_v22  ;;  %3918 = vmatpush.bf16.msrb.mxu3 %v8113_v23 }
 0xb9a   : > { %3937 = vmatpush.bf16.msra.mxu1 %v8115_v41  ;;  %3963 = vmatpush.bf16.msra.mxu3 %v8117_v43 }
 0xb9e   : > { %3938 = vmatpush.bf16.msra.mxu1 %v8125_v19  ;;  %3964 = vmatpush.bf16.msra.mxu3 %v8127_v11 }
 0xba2   : > { %3939 = vmatpush.bf16.msra.mxu1 %v8135_v54  ;;  %3965 = vmatpush.bf16.msra.mxu3 %v8137_v14 }
 0xba6   : > { %3940 = vmatpush.bf16.msra.mxu1 %v8143_v40  ;;  %3966 = vmatpush.bf16.msra.mxu3 %v8145_v17 }
 0xbaa   : > { %3941 = vmatpush.bf16.msra.mxu1 %v8153_v15  ;;  %3967 = vmatpush.bf16.msra.mxu3 %v8155_v36 }
 0xbae   : > { %3942 = vmatpush.bf16.msra.mxu1 %v8161_v62  ;;  %3968 = vmatpush.bf16.msra.mxu3 %v8163_v5 }
 0xbb2   : > { %3943 = vmatpush.bf16.msra.mxu1 %v8169_v39  ;;  %3969 = vmatpush.bf16.msra.mxu3 %v8171_v6 }
 0xbb6   : > { %3944 = vmatpush.bf16.msra.mxu1 %v8177_v16  ;;  %3970 = vmatpush.bf16.msra.mxu3 %v8179_v27 }
 0xbf6   : > { %v3770_v3 = vpop.f32.mrf.mxu1 }
 0xbf7   : > { %v3771_v18 = vadd.f32 %v3770_v3, %v3758_v38 }
 0xbf9   : > { %v3852_v32 = vmul.f32 0.5, %v3771_v18 }
 0xbfc   : > { %v3796_v48 = vpop.f32.mrf.mxu3 }
 0xbfd   : > { %v3797_v52 = vadd.f32 %v3796_v48, %v3784_v42 }
 0xbfe   : > { %v3772_v60 = vpop.f32.mrf.mxu1 }
 0xbff   : > { %v3853_v51 = vmul.f32 0.5, %v3797_v52 }
 0xc01   : > { %6000 = vtanh.f32 %v3853_v51 }
 0xc02   : > { %6002 = vtanh.f32 %v3852_v32 }
 0xc04   : > { %v3798_v31 = vpop.f32.mrf.mxu3 }
 0xc06   : > { %v3822_v26 = vpop.f32.mrf.mxu1 }
 0xc07   : > { %v3823_v10 = vadd.f32 %v3822_v26, %v3810_v33  ;;  %v6001_v28 = vpop.eup %6000 }
 0xc08   : > { %v6003_v30 = vpop.eup %6002  ;;  %v3859_v42 = vmul.f32 0.5, %v6001_v28 }
 0xc09   : > { %v3854_v48 = vmul.f32 0.5, %v3823_v10  ;;  %v3858_v38 = vmul.f32 0.5, %v6003_v30 }
 0xc0a   : > { %v3862_v52 = vadd.f32 0.5, %v3859_v42  ;;  %v9066_v42 = vld [vmem:[#allocation42_spill] sm:$0xff] }
 0xc0b   : > { %v3861_v60 = vadd.f32 0.5, %v3858_v38 }
 0xc0c   : > { %v3848_v59 = vpop.f32.mrf.mxu3  ;;  %v3865_v32 = vmul.f32 %v3862_v52, %v8313_v50 }
 0xc0d   : > { %v3849_v47 = vadd.f32 %v3848_v59, %v3836_v9  ;;  %v9065_v59 = vld [vmem:[#allocation41_spill] sm:$0xff] }
 0xc0e   : > { %v3824_v3 = vpop.f32.mrf.mxu1  ;;  %v3908_v30 = vadd.f32 %v9065_v59, %v8245_v46 }
 0xc0f   : > { %6004 = vtanh.f32 %v3849_v47 }
 0xc10   : > { %6006 = vtanh.f32 %v3854_v48  ;;  %v3882_v48 = vadd.f32 %v9066_v42, %v8247_v57 }
 0xc14   : > { %v3850_v18 = vpop.f32.mrf.mxu3 }
 0xc15   : > { %v6005_v51 = vpop.eup %6004 }
 0xc16   : > { %v3866_v31 = vmul.f32 %v6005_v51, %v3861_v60  ;;  %v6007_v26 = vpop.eup %6006 }
 0xc17   : > { %v3860_v33 = vmul.f32 0.5, %v6007_v26 }
 0xc18   : > { %v8357_v2 = vadd.f32 %v3866_v31, %v3865_v32  ;;  %v9067_v31 = vld [vmem:[#allocation26_spill] sm:$0xff] }
 0xc19   : > { %v3863_v49 = vadd.f32 0.5, %v3860_v33  ;;  %v3934_v26 = vadd.f32 %v9067_v31, %v8253_v8 }
 0xc1a   : > { %6008 = vtanh.f32 %v8357_v2 }
 0xc20   : > { %v6009_v28 = vpop.eup %6008 }
 0xc21   : > { %v3869_v10 = vmul.f32 %v6009_v28, %v3863_v49  ;;  %v9068_v28 = vld [vmem:[#allocation35_spill] sm:$0xff] }
 0xc23   : > { %v3871_v9 = vpack.c.bf16 %v3869_v10, %v3869_v10  ;;  %v3960_v10 = vadd.f32 %v9068_v28, %v8255_v53 }
 0xc25   : > { %3893 = vmatmul.bf16.vlgmr.msrb.gmra.mxu1 %v3871_v9  ;;  %3919 = vmatmul.bf16.vlgmr.msrb.gmra.mxu3 %v3871_v9 }
 0xc26   : > { %4009 = vmatpush.bf16.msrb.mxu1 %v8061_v56  ;;  %4035 = vmatpush.bf16.msrb.mxu3 %v8063_v13 }
 0xc2a   : > { %4010 = vmatpush.bf16.msrb.mxu1 %v8067_v20  ;;  %4036 = vmatpush.bf16.msrb.mxu3 %v8069_v24 }
 0xc2e   : > { %4011 = vmatpush.bf16.msrb.mxu1 %v8073_v55  ;;  %4037 = vmatpush.bf16.msrb.mxu3 %v8075_v1 }
 0xc32   : > { %4012 = vmatpush.bf16.msrb.mxu1 %v8079_v61  ;;  %4038 = vmatpush.bf16.msrb.mxu3 %v8081_v7 }
 0xc35   : > { %3945 = vmatmul.bf16.vlgmr.msra.gmra.mxu1 %v3871_v9  ;;  %3971 = vmatmul.bf16.vlgmr.msra.gmra.mxu3 %v3871_v9 }
 0xc36   : > { %4013 = vmatpush.bf16.msrb.mxu1 %v8087_v37  ;;  %4039 = vmatpush.bf16.msrb.mxu3 %v8089_v12 }
 0xc3a   : > { %4014 = vmatpush.bf16.msrb.mxu1 %v8095_v58  ;;  %4040 = vmatpush.bf16.msrb.mxu3 %v8097_v35 }
 0xc3e   : > { %4015 = vmatpush.bf16.msrb.mxu1 %v8103_v25  ;;  %4041 = vmatpush.bf16.msrb.mxu3 %v8105_v21 }
 0xc42   : > { %4016 = vmatpush.bf16.msrb.mxu1 %v8111_v22  ;;  %4042 = vmatpush.bf16.msrb.mxu3 %v8113_v23 }
 0xc46   : > { %4061 = vmatpush.bf16.msra.mxu1 %v8115_v41  ;;  %4087 = vmatpush.bf16.msra.mxu3 %v8117_v43 }
 0xc4a   : > { %4062 = vmatpush.bf16.msra.mxu1 %v8125_v19  ;;  %4088 = vmatpush.bf16.msra.mxu3 %v8127_v11 }
 0xc4e   : > { %4063 = vmatpush.bf16.msra.mxu1 %v8135_v54  ;;  %4089 = vmatpush.bf16.msra.mxu3 %v8137_v14 }
 0xc52   : > { %4064 = vmatpush.bf16.msra.mxu1 %v8143_v40  ;;  %4090 = vmatpush.bf16.msra.mxu3 %v8145_v17 }
 0xc56   : > { %4065 = vmatpush.bf16.msra.mxu1 %v8153_v15  ;;  %4091 = vmatpush.bf16.msra.mxu3 %v8155_v36 }
 0xc5a   : > { %4066 = vmatpush.bf16.msra.mxu1 %v8161_v62  ;;  %4092 = vmatpush.bf16.msra.mxu3 %v8163_v5 }
 0xc5e   : > { %4067 = vmatpush.bf16.msra.mxu1 %v8169_v39  ;;  %4093 = vmatpush.bf16.msra.mxu3 %v8171_v6 }
 0xc62   : > { %4068 = vmatpush.bf16.msra.mxu1 %v8177_v16  ;;  %4094 = vmatpush.bf16.msra.mxu3 %v8179_v27 }
 0xca2   : > { %v3894_v50 = vpop.f32.mrf.mxu1 }
 0xca3   : > { %v3895_v52 = vadd.f32 %v3894_v50, %v3882_v48 }
 0xca5   : > { %v3976_v18 = vmul.f32 0.5, %v3895_v52 }
 0xca8   : > { %v3920_v47 = vpop.f32.mrf.mxu3 }
 0xca9   : > { %v3921_v3 = vadd.f32 %v3920_v47, %v3908_v30 }
 0xcaa   : > { %v3896_v38 = vpop.f32.mrf.mxu1 }
 0xcab   : > { %v3977_v60 = vmul.f32 0.5, %v3921_v3 }
 0xcad   : > { %6010 = vtanh.f32 %v3977_v60 }
 0xcae   : > { %6012 = vtanh.f32 %v3976_v18 }
 0xcb0   : > { %v3922_v51 = vpop.f32.mrf.mxu3 }
 0xcb2   : > { %v3946_v32 = vpop.f32.mrf.mxu1 }
 0xcb3   : > { %v3947_v33 = vadd.f32 %v3946_v32, %v3934_v26  ;;  %v6011_v49 = vpop.eup %6010 }
 0xcb4   : > { %v6013_v59 = vpop.eup %6012  ;;  %v3983_v30 = vmul.f32 0.5, %v6011_v49 }
 0xcb5   : > { %v3978_v47 = vmul.f32 0.5, %v3947_v33  ;;  %v3982_v48 = vmul.f32 0.5, %v6013_v59 }
 0xcb6   : > { %v3986_v3 = vadd.f32 0.5, %v3983_v30  ;;  %v9070_v30 = vld [vmem:[#allocation46_spill] sm:$0xff] }
 0xcb7   : > { %v3985_v38 = vadd.f32 0.5, %v3982_v48 }
 0xcb8   : > { %v3972_v9 = vpop.f32.mrf.mxu3  ;;  %v3989_v18 = vmul.f32 %v3986_v3, %v8357_v2 }
 0xcb9   : > { %v3973_v42 = vadd.f32 %v3972_v9, %v3960_v10  ;;  %v9069_v9 = vld [vmem:[#allocation47_spill] sm:$0xff] }
 0xcba   : > { %v3948_v50 = vpop.f32.mrf.mxu1  ;;  %v4032_v59 = vadd.f32 %v9069_v9, %v8245_v46 }
 0xcbb   : > { %6014 = vtanh.f32 %v3973_v42 }
 0xcbc   : > { %6016 = vtanh.f32 %v3978_v47  ;;  %v4006_v47 = vadd.f32 %v9070_v30, %v8247_v57 }
 0xcc0   : > { %v3974_v52 = vpop.f32.mrf.mxu3 }
 0xcc1   : > { %v6015_v60 = vpop.eup %6014 }
 0xcc2   : > { %v3990_v51 = vmul.f32 %v6015_v60, %v3985_v38  ;;  %v6017_v32 = vpop.eup %6016 }
 0xcc3   : > { %v3984_v26 = vmul.f32 0.5, %v6017_v32 }
 0xcc4   : > { %v8401_v31 = vadd.f32 %v3990_v51, %v3989_v18  ;;  %v4058_v51 = vadd.f32 %v7969_v4, %v8253_v8 }
 0xcc5   : > { %v3987_v28 = vadd.f32 0.5, %v3984_v26 }
 0xcc6   : > { %6018 = vtanh.f32 %v8401_v31 }
 0xccc   : > { %v6019_v49 = vpop.eup %6018 }
 0xccd   : > { %v3993_v33 = vmul.f32 %v6019_v49, %v3987_v28  ;;  %v4084_v28 = vadd.f32 %v7971_v63, %v8255_v53 }
 0xccf   : > { %v3995_v10 = vpack.c.bf16 %v3993_v33, %v3993_v33 }
 0xcd1   : > { %4017 = vmatmul.bf16.vlgmr.msrb.gmra.mxu1 %v3995_v10  ;;  %4043 = vmatmul.bf16.vlgmr.msrb.gmra.mxu3 %v3995_v10 }
 0xcd2   : > { %4133 = vmatpush.bf16.msrb.mxu1 %v8061_v56  ;;  %4159 = vmatpush.bf16.msrb.mxu3 %v8063_v13 }
 0xcd6   : > { %4134 = vmatpush.bf16.msrb.mxu1 %v8067_v20  ;;  %4160 = vmatpush.bf16.msrb.mxu3 %v8069_v24 }
 0xcda   : > { %4135 = vmatpush.bf16.msrb.mxu1 %v8073_v55  ;;  %4161 = vmatpush.bf16.msrb.mxu3 %v8075_v1 }
 0xcde   : > { %4136 = vmatpush.bf16.msrb.mxu1 %v8079_v61  ;;  %4162 = vmatpush.bf16.msrb.mxu3 %v8081_v7 }
 0xce1   : > { %4069 = vmatmul.bf16.vlgmr.msra.gmra.mxu1 %v3995_v10  ;;  %4095 = vmatmul.bf16.vlgmr.msra.gmra.mxu3 %v3995_v10 }
 0xce2   : > { %4137 = vmatpush.bf16.msrb.mxu1 %v8087_v37  ;;  %4163 = vmatpush.bf16.msrb.mxu3 %v8089_v12 }
 0xce6   : > { %4138 = vmatpush.bf16.msrb.mxu1 %v8095_v58  ;;  %4164 = vmatpush.bf16.msrb.mxu3 %v8097_v35 }
 0xcea   : > { %4139 = vmatpush.bf16.msrb.mxu1 %v8103_v25  ;;  %4165 = vmatpush.bf16.msrb.mxu3 %v8105_v21 }
 0xcee   : > { %4140 = vmatpush.bf16.msrb.mxu1 %v8111_v22  ;;  %4166 = vmatpush.bf16.msrb.mxu3 %v8113_v23 }
 0xcf2   : > { %4185 = vmatpush.bf16.msra.mxu1 %v8115_v41  ;;  %4211 = vmatpush.bf16.msra.mxu3 %v8117_v43 }
 0xcf6   : > { %4186 = vmatpush.bf16.msra.mxu1 %v8125_v19  ;;  %4212 = vmatpush.bf16.msra.mxu3 %v8127_v11 }
 0xcfa   : > { %4187 = vmatpush.bf16.msra.mxu1 %v8135_v54  ;;  %4213 = vmatpush.bf16.msra.mxu3 %v8137_v14 }
 0xcfe   : > { %4188 = vmatpush.bf16.msra.mxu1 %v8143_v40  ;;  %4214 = vmatpush.bf16.msra.mxu3 %v8145_v17 }
 0xd02   : > { %4189 = vmatpush.bf16.msra.mxu1 %v8153_v15  ;;  %4215 = vmatpush.bf16.msra.mxu3 %v8155_v36 }
 0xd06   : > { %4190 = vmatpush.bf16.msra.mxu1 %v8161_v62  ;;  %4216 = vmatpush.bf16.msra.mxu3 %v8163_v5 }
 0xd0a   : > { %4191 = vmatpush.bf16.msra.mxu1 %v8169_v39  ;;  %4217 = vmatpush.bf16.msra.mxu3 %v8171_v6 }
 0xd0e   : > { %4192 = vmatpush.bf16.msra.mxu1 %v8177_v16  ;;  %4218 = vmatpush.bf16.msra.mxu3 %v8179_v27 }
 0xd4e   : > { %v4018_v2 = vpop.f32.mrf.mxu1 }
 0xd4f   : > { %v4019_v3 = vadd.f32 %v4018_v2, %v4006_v47 }
 0xd51   : > { %v4100_v52 = vmul.f32 0.5, %v4019_v3 }
 0xd54   : > { %v4044_v42 = vpop.f32.mrf.mxu3 }
 0xd55   : > { %v4045_v50 = vadd.f32 %v4044_v42, %v4032_v59 }
 0xd56   : > { %v4020_v48 = vpop.f32.mrf.mxu1 }
 0xd57   : > { %v4101_v38 = vmul.f32 0.5, %v4045_v50 }
 0xd59   : > { %6020 = vtanh.f32 %v4101_v38 }
 0xd5a   : > { %6022 = vtanh.f32 %v4100_v52 }
 0xd5c   : > { %v4046_v60 = vpop.f32.mrf.mxu3 }
 0xd5e   : > { %v4070_v18 = vpop.f32.mrf.mxu1 }
 0xd5f   : > { %v4071_v32 = vadd.f32 %v4070_v18, %v4058_v51  ;;  %v6021_v26 = vpop.eup %6020 }
 0xd60   : > { %v6023_v33 = vpop.eup %6022  ;;  %v4107_v9 = vmul.f32 0.5, %v6021_v26  ;;  %v4156_v26 = vadd.f32 %v8047_v0, %v8245_v46  ;;  %v9071_v0 = vld [vmem:[#allocation31_spill] sm:$0xff] }
 0xd61   : > { %v4102_v59 = vmul.f32 0.5, %v4071_v32  ;;  %v4106_v42 = vmul.f32 0.5, %v6023_v33 }
 0xd62   : > { %v4110_v30 = vadd.f32 0.5, %v4107_v9 }
 0xd63   : > { %v4109_v47 = vadd.f32 0.5, %v4106_v42 }
 0xd64   : > { %v4096_v49 = vpop.f32.mrf.mxu3  ;;  %v4113_v4 = vmul.f32 %v4110_v30, %v8401_v31 }
 0xd65   : > { %v4097_v10 = vadd.f32 %v4096_v49, %v4084_v28  ;;  %v4130_v49 = vadd.f32 %v8045_v29, %v8247_v57 }
 0xd66   : > { %v4072_v2 = vpop.f32.mrf.mxu1 }
 0xd67   : > { %6024 = vtanh.f32 %v4097_v10 }
 0xd68   : > { %6026 = vtanh.f32 %v4102_v59 }
 0xd6c   : > { %v4098_v50 = vpop.f32.mrf.mxu3 }
 0xd6d   : > { %v6025_v48 = vpop.eup %6024 }
 0xd6e   : > { %v4114_v3 = vmul.f32 %v6025_v48, %v4109_v47  ;;  %v6027_v38 = vpop.eup %6026  ;;  %v4182_v47 = vadd.f32 %v8053_v34, %v8253_v8 }
 0xd6f   : > { %v4108_v63 = vmul.f32 0.5, %v6027_v38 }
 0xd70   : > { %v8445_v52 = vadd.f32 %v4114_v3, %v4113_v4  ;;  %v4208_v4 = vadd.f32 %v9071_v0, %v8255_v53  ;;  %v5734_v0 = vld [vmem:[%s8610_s8 + $0x30] sm:$0xff] }
 0xd71   : > { %v4111_v60 = vadd.f32 0.5, %v4108_v63 }
 0xd72   : > { %6028 = vtanh.f32 %v8445_v52 }
 0xd78   : > { %v6029_v18 = vpop.eup %6028 }
 0xd79   : > { %v4117_v51 = vmul.f32 %v6029_v18, %v4111_v60 }
 0xd7b   : > { %v4119_v32 = vpack.c.bf16 %v4117_v51, %v4117_v51 }
 0xd7d   : > { %4141 = vmatmul.bf16.vlgmr.msrb.gmra.mxu1 %v4119_v32  ;;  %4167 = vmatmul.bf16.vlgmr.msrb.gmra.mxu3 %v4119_v32 }
 0xd7e   : > { %4257 = vmatpush.bf16.msrb.mxu1 %v8061_v56  ;;  %4283 = vmatpush.bf16.msrb.mxu3 %v8063_v13 }
 0xd82   : > { %4258 = vmatpush.bf16.msrb.mxu1 %v8067_v20  ;;  %4284 = vmatpush.bf16.msrb.mxu3 %v8069_v24 }
 0xd86   : > { %4259 = vmatpush.bf16.msrb.mxu1 %v8073_v55  ;;  %4285 = vmatpush.bf16.msrb.mxu3 %v8075_v1 }
 0xd8a   : > { %4260 = vmatpush.bf16.msrb.mxu1 %v8079_v61  ;;  %4286 = vmatpush.bf16.msrb.mxu3 %v8081_v7 }
 0xd8d   : > { %4193 = vmatmul.bf16.vlgmr.msra.gmra.mxu1 %v4119_v32  ;;  %4219 = vmatmul.bf16.vlgmr.msra.gmra.mxu3 %v4119_v32 }
 0xd8e   : > { %4261 = vmatpush.bf16.msrb.mxu1 %v8087_v37  ;;  %4287 = vmatpush.bf16.msrb.mxu3 %v8089_v12 }
 0xd92   : > { %4262 = vmatpush.bf16.msrb.mxu1 %v8095_v58  ;;  %4288 = vmatpush.bf16.msrb.mxu3 %v8097_v35 }
 0xd96   : > { %4263 = vmatpush.bf16.msrb.mxu1 %v8103_v25  ;;  %4289 = vmatpush.bf16.msrb.mxu3 %v8105_v21 }
 0xd9a   : > { %4264 = vmatpush.bf16.msrb.mxu1 %v8111_v22  ;;  %4290 = vmatpush.bf16.msrb.mxu3 %v8113_v23 }
 0xd9e   : > { %4309 = vmatpush.bf16.msra.mxu1 %v8115_v41  ;;  %4335 = vmatpush.bf16.msra.mxu3 %v8117_v43 }
 0xda2   : > { %4310 = vmatpush.bf16.msra.mxu1 %v8125_v19  ;;  %4336 = vmatpush.bf16.msra.mxu3 %v8127_v11 }
 0xda6   : > { %4311 = vmatpush.bf16.msra.mxu1 %v8135_v54  ;;  %4337 = vmatpush.bf16.msra.mxu3 %v8137_v14 }
 0xdaa   : > { %4312 = vmatpush.bf16.msra.mxu1 %v8143_v40  ;;  %4338 = vmatpush.bf16.msra.mxu3 %v8145_v17 }
 0xdae   : > { %4313 = vmatpush.bf16.msra.mxu1 %v8153_v15  ;;  %4339 = vmatpush.bf16.msra.mxu3 %v8155_v36 }
 0xdb2   : > { %4314 = vmatpush.bf16.msra.mxu1 %v8161_v62  ;;  %4340 = vmatpush.bf16.msra.mxu3 %v8163_v5 }
 0xdb6   : > { %4315 = vmatpush.bf16.msra.mxu1 %v8169_v39  ;;  %4341 = vmatpush.bf16.msra.mxu3 %v8171_v6 }
 0xdba   : > { %4316 = vmatpush.bf16.msra.mxu1 %v8177_v16  ;;  %4342 = vmatpush.bf16.msra.mxu3 %v8179_v27 }
 0xdfa   : > { %v4142_v31 = vpop.f32.mrf.mxu1 }
 0xdfb   : > { %v4143_v9 = vadd.f32 %v4142_v31, %v4130_v49 }
 0xdfd   : > { %v4224_v2 = vmul.f32 0.5, %v4143_v9 }
 0xe00   : > { %v4168_v28 = vpop.f32.mrf.mxu3 }
 0xe01   : > { %v4169_v33 = vadd.f32 %v4168_v28, %v4156_v26 }
 0xe02   : > { %v4144_v10 = vpop.f32.mrf.mxu1 }
 0xe03   : > { %v4225_v59 = vmul.f32 0.5, %v4169_v33 }
 0xe05   : > { %6030 = vtanh.f32 %v4225_v59 }
 0xe06   : > { %6032 = vtanh.f32 %v4224_v2 }
 0xe08   : > { %v4170_v42 = vpop.f32.mrf.mxu3 }
 0xe0a   : > { %v4194_v30 = vpop.f32.mrf.mxu1 }
 0xe0b   : > { %v4195_v50 = vadd.f32 %v4194_v30, %v4182_v47  ;;  %v6031_v48 = vpop.eup %6030 }
 0xe0c   : > { %v6033_v38 = vpop.eup %6032  ;;  %v4231_v63 = vmul.f32 0.5, %v6031_v48  ;;  %v5735_v48 = vld [vmem:[%s8610_s8 + $0x38] sm:$0xff] }
 0xe0d   : > { %v4226_v60 = vmul.f32 0.5, %v4195_v50  ;;  %v4230_v51 = vmul.f32 0.5, %v6033_v38  ;;  %4559 = vmatpush.bf16.msrb.mxu0 %v5735_v48  ;;  %v5731_v38 = vld [vmem:[%s8610_s8 + $0x18] sm:$0xff] }
 0xe0e   : > { %v4234_v32 = vadd.f32 0.5, %v4231_v63  ;;  %v5730_v63 = vld [vmem:[%s8610_s8 + $0x10] sm:$0xff] }
 0xe0f   : > { %v4233_v31 = vadd.f32 0.5, %v4230_v51 }
 0xe10   : > { %v4220_v3 = vpop.f32.mrf.mxu3  ;;  %v4237_v34 = vmul.f32 %v4234_v32, %v8445_v52 }
 0xe11   : > { %v4221_v29 = vadd.f32 %v4220_v3, %v4208_v4  ;;  %4560 = vmatpush.bf16.msrb.mxu0 %v5734_v0  ;;  %v5733_v4 = vld [vmem:[%s8610_s8 + $0x28] sm:$0xff]  ;;  %v5732_v3 = vld [vmem:[%s8610_s8 + $0x20] sm:$0xff] }
 0xe12   : > { %v4196_v18 = vpop.f32.mrf.mxu1 }
 0xe13   : > { %6034 = vtanh.f32 %v4221_v29  ;;  %v9074_v18 = vld [vmem:[#allocation59_spill] sm:$0xff] }
 0xe14   : > { %6036 = vtanh.f32 %v4226_v60  ;;  %v5729_v60 = vld [vmem:[%s8610_s8 + $0x8] sm:$0xff]  ;;  %v4404_v51 = vadd.f32 %v9074_v18, %v8245_v46 }
 0xe15   : > { %4561 = vmatpush.bf16.msrb.mxu0 %v5733_v4 }
 0xe18   : > { %v4222_v26 = vpop.f32.mrf.mxu3 }
 0xe19   : > { %v6035_v28 = vpop.eup %6034  ;;  %4562 = vmatpush.bf16.msrb.mxu0 %v5732_v3 }
 0xe1a   : > { %v4238_v49 = vmul.f32 %v6035_v28, %v4233_v31  ;;  %v6037_v33 = vpop.eup %6036  ;;  %v9075_v31 = vld [vmem:[#allocation30_spill] sm:$0xff] }
 0xe1b   : > { %v4232_v9 = vmul.f32 0.5, %v6037_v33  ;;  %v4378_v26 = vadd.f32 %v9075_v31, %v8247_v57 }
 0xe1c   : > { %v8489_v10 = vadd.f32 %v4238_v49, %v4237_v34  ;;  %v5728_v49 = vld [vmem:[%s8610_s8] sm:$0xff] }
 0xe1d   : > { %v4235_v59 = vadd.f32 0.5, %v4232_v9  ;;  %4563 = vmatpush.bf16.msrb.mxu0 %v5731_v38 }
 0xe1e   : > { %6038 = vtanh.f32 %v8489_v10 }
 0xe21   : > { %4564 = vmatpush.bf16.msrb.mxu0 %v5730_v63 }
 0xe24   : > { %v6039_v2 = vpop.eup %6038 }
 0xe25   : > { %v4241_v42 = vmul.f32 %v6039_v2, %v4235_v59  ;;  %4565 = vmatpush.bf16.msrb.mxu0 %v5729_v60 }
 0xe27   : > { %v4243_v30 = vpack.c.bf16 %v4241_v42, %v4241_v42 }
 0xe29   : > { %4265 = vmatmul.bf16.vlgmr.msrb.gmra.mxu1 %v4243_v30  ;;  %4291 = vmatmul.bf16.vlgmr.msrb.gmra.mxu3 %v4243_v30 }
 0xe2a   : > { %4381 = vmatpush.bf16.msrb.mxu1 %v8061_v56  ;;  %4407 = vmatpush.bf16.msrb.mxu3 %v8063_v13  ;;  %v4280_v13 = vadd.f32 %v8231_v44, %v8245_v46  ;;  %v9076_v46 = vld [vmem:[#allocation60_spill] sm:$0xff] }
 0xe2b   : > { %4566 = vmatpush.bf16.msrb.mxu0 %v5728_v49  ;;  %v4430_v42 = vadd.f32 %v9076_v46, %v8253_v8 }
 0xe2e   : > { %4382 = vmatpush.bf16.msrb.mxu1 %v8067_v20  ;;  %4408 = vmatpush.bf16.msrb.mxu3 %v8069_v24  ;;  %v4254_v24 = vadd.f32 %v8229_v45, %v8247_v57 }
 0xe32   : > { %4383 = vmatpush.bf16.msrb.mxu1 %v8073_v55  ;;  %4409 = vmatpush.bf16.msrb.mxu3 %v8075_v1 }
 0xe36   : > { %4384 = vmatpush.bf16.msrb.mxu1 %v8079_v61  ;;  %4410 = vmatpush.bf16.msrb.mxu3 %v8081_v7 }
 0xe39   : > { %4317 = vmatmul.bf16.vlgmr.msra.gmra.mxu1 %v4243_v30  ;;  %4343 = vmatmul.bf16.vlgmr.msra.gmra.mxu3 %v4243_v30 }
 0xe3a   : > { %4385 = vmatpush.bf16.msrb.mxu1 %v8087_v37  ;;  %4411 = vmatpush.bf16.msrb.mxu3 %v8089_v12 }
 0xe3e   : > { %4386 = vmatpush.bf16.msrb.mxu1 %v8095_v58  ;;  %4412 = vmatpush.bf16.msrb.mxu3 %v8097_v35  ;;  %v9072_v35 = vld [vmem:[#allocation28_spill] sm:$0xff] }
 0xe42   : > { %4387 = vmatpush.bf16.msrb.mxu1 %v8103_v25  ;;  %4413 = vmatpush.bf16.msrb.mxu3 %v8105_v21  ;;  %v4306_v25 = vadd.f32 %v9072_v35, %v8253_v8 }
 0xe46   : > { %4388 = vmatpush.bf16.msrb.mxu1 %v8111_v22  ;;  %4414 = vmatpush.bf16.msrb.mxu3 %v8113_v23  ;;  %v9073_v23 = vld [vmem:[#allocation27_spill] sm:$0xff] }
 0xe4a   : > { %4433 = vmatpush.bf16.msra.mxu1 %v8115_v41  ;;  %4459 = vmatpush.bf16.msra.mxu3 %v8117_v43  ;;  %v4332_v41 = vadd.f32 %v9073_v23, %v8255_v53 }
 0xe4e   : > { %4434 = vmatpush.bf16.msra.mxu1 %v8125_v19  ;;  %4460 = vmatpush.bf16.msra.mxu3 %v8127_v11 }
 0xe52   : > { %4435 = vmatpush.bf16.msra.mxu1 %v8135_v54  ;;  %4461 = vmatpush.bf16.msra.mxu3 %v8137_v14 }
 0xe56   : > { %4436 = vmatpush.bf16.msra.mxu1 %v8143_v40  ;;  %4462 = vmatpush.bf16.msra.mxu3 %v8145_v17 }
 0xe5a   : > { %4437 = vmatpush.bf16.msra.mxu1 %v8153_v15  ;;  %4463 = vmatpush.bf16.msra.mxu3 %v8155_v36 }
 0xe5e   : > { %4438 = vmatpush.bf16.msra.mxu1 %v8161_v62  ;;  %4464 = vmatpush.bf16.msra.mxu3 %v8163_v5 }
 0xe62   : > { %4439 = vmatpush.bf16.msra.mxu1 %v8169_v39  ;;  %4465 = vmatpush.bf16.msra.mxu3 %v8171_v6 }
 0xe66   : > { %4440 = vmatpush.bf16.msra.mxu1 %v8177_v16  ;;  %4466 = vmatpush.bf16.msra.mxu3 %v8179_v27 }
 0xea6   : > { %v4266_v56 = vpop.f32.mrf.mxu1 }
 0xea7   : > { %v4267_v61 = vadd.f32 %v4266_v56, %v4254_v24  ;;  %v9077_v56 = vld [vmem:[#allocation61_spill] sm:$0xff] }
 0xea9   : > { %v4348_v37 = vmul.f32 0.5, %v4267_v61 }
 0xeac   : > { %v4292_v20 = vpop.f32.mrf.mxu3 }
 0xead   : > { %v4293_v55 = vadd.f32 %v4292_v20, %v4280_v13  ;;  %v4456_v13 = vadd.f32 %v9077_v56, %v8255_v53 }
 0xeae   : > { %v4268_v1 = vpop.f32.mrf.mxu1 }
 0xeaf   : > { %v4349_v7 = vmul.f32 0.5, %v4293_v55 }
 0xeb1   : > { %6040 = vtanh.f32 %v4349_v7 }
 0xeb2   : > { %6042 = vtanh.f32 %v4348_v37 }
 0xeb4   : > { %v4294_v12 = vpop.f32.mrf.mxu3 }
 0xeb6   : > { %v4318_v58 = vpop.f32.mrf.mxu1 }
 0xeb7   : > { %v4319_v21 = vadd.f32 %v4318_v58, %v4306_v25  ;;  %v6041_v22 = vpop.eup %6040 }
 0xeb8   : > { %v6043_v19 = vpop.eup %6042  ;;  %v4355_v54 = vmul.f32 0.5, %v6041_v22 }
 0xeb9   : > { %v4350_v14 = vmul.f32 0.5, %v4319_v21  ;;  %v4354_v17 = vmul.f32 0.5, %v6043_v19 }
 0xeba   : > { %v4358_v15 = vadd.f32 0.5, %v4355_v54  ;;  %v5819_v54 = vld [vmem:[%s8611_s9] ss:$0 sm:$0xff] }
 0xebb   : > { %v4357_v36 = vadd.f32 0.5, %v4354_v17 }
 0xebc   : > { %v4344_v43 = vpop.f32.mrf.mxu3  ;;  %v4361_v39 = vmul.f32 %v4358_v15, %v8489_v10 }
 0xebd   : > { %v4345_v11 = vadd.f32 %v4344_v43, %v4332_v41 }
 0xebe   : > { %v4320_v40 = vpop.f32.mrf.mxu1 }
 0xebf   : > { %6044 = vtanh.f32 %v4345_v11 }
 0xec0   : > { %6046 = vtanh.f32 %v4350_v14 }
 0xec4   : > { %v4346_v62 = vpop.f32.mrf.mxu3 }
 0xec5   : > { %v6045_v5 = vpop.eup %6044 }
 0xec6   : > { %v4362_v6 = vmul.f32 %v6045_v5, %v4357_v36  ;;  %v6047_v16 = vpop.eup %6046 }
 0xec7   : > { %v4356_v45 = vmul.f32 0.5, %v6047_v16 }
 0xec8   : > { %v4363_v27 = vadd.f32 %v4362_v6, %v4361_v39 }
 0xec9   : > { %v4359_v44 = vadd.f32 0.5, %v4356_v45 }
 0xeca   : > { %6048 = vtanh.f32 %v4363_v27 }
 0xed0   : > { %v6049_v52 = vpop.eup %6048 }
 0xed1   : > { %v4365_v47 = vmul.f32 %v6049_v52, %v4359_v44 }
 0xed3   : > { %v4367_v50 = vpack.c.bf16 %v4365_v47, %v4365_v47 }
 0xed5   : > { %4389 = vmatmul.bf16.vlgmr.msrb.gmra.mxu1 %v4367_v50  ;;  %4415 = vmatmul.bf16.vlgmr.msrb.gmra.mxu3 %v4367_v50 }
 0xee5   : > { %4441 = vmatmul.bf16.vlgmr.msra.gmra.mxu1 %v4367_v50  ;;  %4467 = vmatmul.bf16.vlgmr.msra.gmra.mxu3 %v4367_v50 }
 0xf52   : > { %v4390_v29 = vpop.f32.mrf.mxu1 }
 0xf53   : > { %v4391_v33 = vadd.f32 %v4390_v29, %v4378_v26 }
 0xf55   : > { %v4472_v9 = vmul.f32 0.5, %v4391_v33 }
 0xf58   : > { %v4416_v32 = vpop.f32.mrf.mxu3 }
 0xf59   : > { %v4417_v28 = vadd.f32 %v4416_v32, %v4404_v51 }
 0xf5a   : > { %v4392_v34 = vpop.f32.mrf.mxu1 }
 0xf5b   : > { %v4473_v10 = vmul.f32 0.5, %v4417_v28 }
 0xf5d   : > { %6050 = vtanh.f32 %v4473_v10 }
 0xf5e   : > { %6052 = vtanh.f32 %v4472_v9 }
 0xf60   : > { %v4418_v59 = vpop.f32.mrf.mxu3 }
 0xf62   : > { %v4442_v2 = vpop.f32.mrf.mxu1 }
 0xf63   : > { %v4443_v30 = vadd.f32 %v4442_v2, %v4430_v42  ;;  %v6051_v57 = vpop.eup %6050 }
 0xf64   : > { %v6053_v24 = vpop.eup %6052  ;;  %v4479_v1 = vmul.f32 0.5, %v6051_v57 }
 0xf65   : > { %v4474_v61 = vmul.f32 0.5, %v4443_v30  ;;  %v4478_v37 = vmul.f32 0.5, %v6053_v24 }
 0xf66   : > { %v4482_v12 = vadd.f32 0.5, %v4479_v1 }
 0xf67   : > { %v4481_v58 = vadd.f32 0.5, %v4478_v37 }
 0xf68   : > { %v4468_v20 = vpop.f32.mrf.mxu3  ;;  %v4485_v25 = vmul.f32 %v4482_v12, %v4363_v27 }
 0xf69   : > { %v4469_v55 = vadd.f32 %v4468_v20, %v4456_v13 }
 0xf6a   : > { %v4444_v7 = vpop.f32.mrf.mxu1 }
 0xf6b   : > { %6054 = vtanh.f32 %v4469_v55 }
 0xf6c   : > { %6056 = vtanh.f32 %v4474_v61 }
 0xf70   : > { %v4470_v35 = vpop.f32.mrf.mxu3 }
 0xf71   : > { %v6055_v8 = vpop.eup %6054 }
 0xf72   : > { %v4486_v21 = vmul.f32 %v6055_v8, %v4481_v58  ;;  %v6057_v22 = vpop.eup %6056 }
 0xf73   : > { %v4480_v53 = vmul.f32 0.5, %v6057_v22 }
 0xf74   : > { %v4487_v23 = vadd.f32 %v4486_v21, %v4485_v25 }
 0xf75   : > { %v4483_v41 = vadd.f32 0.5, %v4480_v53 }
 0xf76   : > { %6058 = vtanh.f32 %v4487_v23 }
 0xf7c   : > { %v6059_v43 = vpop.eup %6058 }
 0xf7d   : > { %v4489_v19 = vmul.f32 %v6059_v43, %v4483_v41 }
 0xf7f   : > { %v4506_v11 = vpack.c.bf16 %v4489_v19, %v4489_v19 }
 0xf81   : > { %4567 = vmatmul.bf16.vlgmr.msrb.gmra.mxu0 %v4506_v11 }
 0xffe   : > { %v4568_v14 = vpop.f32.mrf.mxu0 }
 0xfff   : > { %v4569_v40 = vadd.f32 %v5819_v54, %v4568_v14 }
0x1001   : > { %v4572_v17 = vmax.f32 %v4569_v40, 0.0 }
0x1003   : > { %4573 = vst [vmem:[%s495_s24] sm:$0xff] %v4572_v17 }
0x1004   : > { %6207 = shalt.err (!%p6204_p9)
}
0x1005   : > { %5752 = dma.vmem_to_hbm [thread:$0]  (%p6361_p6), %s4588_s25, 128, %s4590_s18, %s4575_s21  }
0x1006   : > { %v4570_v15 = vpop.f32.mrf.mxu0 }
0x1007 PF: > { %s9079_s23 = sld [smem:[#allocation18_spill]]  ;;  %p5768_p11 = pnand %p4702_p1, %p6367_p10 }
0x1009   : > { %p5769_p12 = pneg %p5768_p11 }
0x100d   : > { %s4601_s2 = sand.u32 1, %s9079_s23  }
0x100e   : > { %s4602_s1 = scalar_lea.sflag [#allocation7], %s4601_s2 }
0x100f   : > { %6237 = dma.done.wait (%p5769_p12), %s4602_s1, 128  }
0x1010   : > { %6239 = vsyncadd (%p5769_p12), %s4602_s1, 4294967168  ;;  %s9081_s16 = sld [smem:[#allocation19_spill]]  ;;  %s9083_s13 = smov %s6246_s14 }
0x1011   : > { %s9082_s19 = sld [smem:[#allocation20_spill]]  ;;  %s9084_s14 = smov %s6250_s15 }
0x1016   : > { %p23_p13 = scmp.ge.s32.totalorder %s9081_s16, 4  }
0x1017   : > { %s9085_s15 = smov %s9082_s19 }
0x1018   :  { %25 = sbr.rel (!%p23_p13) target bundleno = 9 (0x9), region = 158 }
0x101d   :  { %4608 = vsyncpa [#allocation6], 1 }
0x101e   :  { %4610 = vsyncpa [#allocation6 + $0x1], 1 }
0x101f   :  { %4611 = vsyncpa [#allocation9], 1 }
0x1020   :  { %4612 = vsyncpa [#allocation12], 1 }
0x1021   :  { %4613 = vsyncpa [#allocation7], 1 }
0x1022   :  { %4615 = vsyncpa [#allocation7 + $0x1], 1 }

</bundles_post_ra>
